<compile_context>
chip_gen: v7x
topology: tpu7x:2x2x1
jax: 0.10.0
libtpu: 0.0.40
codegen_flags: <defaults>
</compile_context>

<pallas_src>
import functools
import math

import jax
import jax.numpy as jnp
from jax.experimental import pallas as pl
from jax.experimental.pallas import tpu as pltpu


# ----------------------------------------------------------------------------
# Parameter init (deterministic, PyTorch nn.Linear style)
# ----------------------------------------------------------------------------
def _linear_init(key, fan_in, fan_out):
    kw, kb = jax.random.split(key)
    bound = 1.0 / math.sqrt(fan_in)
    w = jax.random.uniform(kw, (fan_in, fan_out), jnp.float32, -bound, bound)
    b = jax.random.uniform(kb, (fan_out,), jnp.float32, -bound, bound)
    return w, b


# ----------------------------------------------------------------------------
# Neighbor selection (plain JAX glue: pairwise distances, top_k, gather, pool)
# Returns keys stacked along axis=2 -> (B, N, scale+1, C): the packed kernel
# input slab is then a pure reshape (no extra HBM transpose pass).
# ----------------------------------------------------------------------------
def select_neighbors_in_one_key(pcd, coordinate, K, scale, group_type="diff"):
    sq = jnp.sum(coordinate ** 2, axis=-1)
    d2 = (sq[:, :, None] + sq[:, None, :]
          - 2.0 * jnp.einsum("bnd,bmd->bnm", coordinate, coordinate))
    # top_k of negated distances: only (scale+1)*K neighbors, not a full argsort
    _, idx_all = jax.lax.top_k(-d2, (scale + 1) * K)          # (B, N, (scale+1)*K)
    keys = []
    for s in range(scale + 1):
        idx = idx_all[:, :, s * K:(s + 1) * K]                # dilated ring s, (B, N, K)
        nbrs = jax.vmap(lambda f, i: f[i])(pcd, idx)          # (B, N, K, C)
        if group_type == "diff":
            nbrs = nbrs - pcd[:, :, None, :]
        keys.append(jnp.max(nbrs, axis=2))                    # max-pool -> one key
    return jnp.stack(keys, axis=2)                            # (B, N, scale+1, C)


# ----------------------------------------------------------------------------
# Pallas kernel: one fused K=(S1+1)*C_in projection + multi-scale head attention
# ----------------------------------------------------------------------------
def _cross_attn_kernel(xk_ref, w_ref, b_ref, hme_ref, hmo_ref, o_ref, *,
                       S1, H, C_out):
    # Single block-diagonal MXU push on the 128-lane packed slab:
    #   columns [0 : S1*C_out)            -> q replicated S1 times
    #   columns [S1*C_out : (S1+1)*C_out) -> v
    #   columns [(S1+1)*C_out : end)      -> k for every scale
    proj = jnp.dot(xk_ref[...], w_ref[...],
                   preferred_element_type=jnp.float32) + b_ref[...]
    q_rep = proj[:, :S1 * C_out]                        # (tile, S1*C_out)  f32
    v = proj[:, S1 * C_out:(S1 + 1) * C_out]            # (tile, C_out)     f32
    k_all = proj[:, (S1 + 1) * C_out:]                  # (tile, S1*C_out)  f32

    # Per-head energies for all scales with one head-mask matmul; 1/sqrt(d) is
    # folded into hme. bf16 MXU operands, f32 accumulation (VPU math stays f32).
    qk = (q_rep * k_all).astype(jnp.bfloat16)
    e_all = jnp.dot(qk, hme_ref[...],
                    preferred_element_type=jnp.float32)  # (tile, S1*H) f32

    attn = jnp.zeros((e_all.shape[0], H), jnp.float32)
    for s in range(S1):                                  # small static unroll
        e = e_all[:, s * H:(s + 1) * H]
        e = e - jnp.max(e, axis=-1, keepdims=True)
        p = jnp.exp(e)
        attn = attn + p * pl.reciprocal(jnp.sum(p, axis=-1, keepdims=True),
                                        approx=True)

    # Broadcast per-head weight over head_dim channels and scale the value:
    # == matmul(attention_map.unsqueeze(-2), value).squeeze(-2).reshape(..., H*D)
    o_ref[...] = (jnp.dot(attn.astype(jnp.bfloat16), hmo_ref[...],
                          preferred_element_type=jnp.float32) * v
                  ).astype(o_ref.dtype)


def _choose_tile(total_rows, requested):
    # Multiples of 16 (bf16 sublane packing); never exceed the row count by more
    # than one padded tile. Remainders are handled by padding + cdiv grid (no
    # tile=BN fallback that would blow VMEM / kill pipelining).
    t = min(requested, total_rows)
    t = max(16, (t // 16) * 16)
    return t


def cross_attention_ms_onek(pcd, coordinate, params, *, K, scale, num_heads,
                            group_type="diff", tile_n=1024,
                            out_dtype=jnp.float32):
    B, N, C_in = pcd.shape
    H = num_heads
    head_dim = C_in // H
    S1 = scale + 1
    q_out = params["wq"].shape[1]
    nk, k_in, k_out = params["wk"].shape
    v_in, v_out = params["wv"].shape
    C_out = q_out
    assert nk == S1
    assert k_in == C_in and v_in == C_in
    # A config where these differ would silently mis-group heads in the mask matmuls.
    assert q_out == k_out == v_out == H * head_dim, \
        "q_out / k_out / v_out must all equal num_heads * (q_in // num_heads)"

    BN = B * N
    D_in = (S1 + 1) * C_in            # packed slab width: [x | key_0 | ... | key_scale]
    D_out = (2 * S1 + 1) * C_out      # [q_rep | v | k_all]

    # ---- plain-JAX glue: multi-scale 'one key' selection + packed bf16 slab ----
    keys = select_neighbors_in_one_key(pcd, coordinate, K, scale, group_type)
    slab = jnp.concatenate([pcd[:, :, None, :].astype(jnp.bfloat16),
                            keys.astype(jnp.bfloat16)], axis=2)   # (B, N, S1+1, C_in)
    slab = slab.reshape(BN, D_in)                                  # lane-dense (BN, 128)

    # ---- tile / grid (pad rows instead of a tile=BN fallback) ----
    tile = _choose_tile(BN, tile_n)
    n_steps = pl.cdiv(BN, tile)
    BN_pad = n_steps * tile
    if BN_pad != BN:
        slab = jnp.pad(slab, ((0, BN_pad - BN), (0, 0)))  # only when BN not tile-aligned

    # ---- one fused block-diagonal projection weight (single K=D_in MXU push) ----
    W = jnp.zeros((D_in, D_out), jnp.float32)
    W = W.at[:C_in, :S1 * C_out].set(jnp.tile(params["wq"], (1, S1)))   # q replicated
    W = W.at[:C_in, S1 * C_out:(S1 + 1) * C_out].set(params["wv"])      # v
    for s in range(S1):                                                  # k per scale
        W = W.at[(1 + s) * C_in:(2 + s) * C_in,
                 (S1 + 1 + s) * C_out:(S1 + 2 + s) * C_out].set(params["wk"][s])
    W = W.astype(jnp.bfloat16)
    bias = jnp.concatenate([jnp.tile(params["bq"], S1), params["bv"],
                            params["bk"].reshape(-1)]).reshape(1, D_out)
    bias = bias.astype(jnp.float32)

    # ---- head masks: energy mask (1/sqrt(d) folded in) + head->channel broadcast ----
    head_of = jnp.arange(C_out) // head_dim
    hme_one = (head_of[:, None] == jnp.arange(H)[None, :]).astype(jnp.float32)
    hme_one = hme_one / math.sqrt(head_dim)
    hme = jax.scipy.linalg.block_diag(*([hme_one] * S1)).astype(jnp.bfloat16)  # (S1*C_out, S1*H)
    hmo = (jnp.arange(H)[:, None] == head_of[None, :]).astype(jnp.bfloat16)    # (H, C_out)

    kernel = functools.partial(_cross_attn_kernel, S1=S1, H=H, C_out=C_out)

    out = pl.pallas_call(
        kernel,
        out_shape=jax.ShapeDtypeStruct((BN_pad, C_out), out_dtype),
        grid=(n_steps,),
        in_specs=[
            pl.BlockSpec((tile, D_in), lambda i: (i, 0)),        # streamed packed slab
            pl.BlockSpec((D_in, D_out), lambda i: (0, 0)),       # resident fused weight
            pl.BlockSpec((1, D_out), lambda i: (0, 0)),          # resident fused bias
            pl.BlockSpec((S1 * C_out, S1 * H), lambda i: (0, 0)),
            pl.BlockSpec((H, C_out), lambda i: (0, 0)),
        ],
        out_specs=pl.BlockSpec((tile, C_out), lambda i: (i, 0)),
        compiler_params=pltpu.CompilerParams(
            dimension_semantics=("parallel",),
            # Per-step VMEM at tile=1024: 2x256 KiB bf16 slab + 2x128 KiB f32 out
            # + ~1.5 MiB f32 intermediates + small resident weights -> well under
            # 32 MiB on v5e/v6e (128 MiB physical) and within v7x's 64 MiB.
            vmem_limit_bytes=32 * 1024 * 1024),
    )(slab, W, bias, hme, hmo)

    if BN_pad != BN:
        out = out[:BN]
    return out.reshape(B, N, C_out)


# ----------------------------------------------------------------------------
# Pure-JAX f32 reference (same reconstructed semantics) for a sanity check
# ----------------------------------------------------------------------------
def reference(pcd, coordinate, params, *, K, scale, num_heads, group_type="diff"):
    B, N, C = pcd.shape
    head_dim = C // num_heads
    keys_agg = select_neighbors_in_one_key(pcd, coordinate, K, scale, group_type)
    q = (pcd @ params["wq"] + params["bq"]).reshape(B, N, num_heads, head_dim)
    v = (pcd @ params["wv"] + params["bv"]).reshape(B, N, num_heads, head_dim)
    attn = jnp.zeros((B, N, num_heads), jnp.float32)
    for s in range(scale + 1):
        k = (keys_agg[:, :, s] @ params["wk"][s] + params["bk"][s]).reshape(
            B, N, num_heads, head_dim)
        e = jnp.sum(q * k, axis=-1) / math.sqrt(head_dim)
        attn = attn + jax.nn.softmax(e, axis=-1)
    out = attn[..., None] * v
    return out.reshape(B, N, num_heads * head_dim)


if __name__ == "__main__":
    B, N = 2, 256
    q_in = q_out = k_in = k_out = v_in = v_out = 32
    num_heads, scale, K = 4, 2, 8

    root = jax.random.PRNGKey(0)
    k_pcd, k_coord, kq, kk, kv = jax.random.split(root, 5)
    pcd = jax.random.normal(k_pcd, (B, N, q_in), jnp.float32)
    coordinate = jax.random.normal(k_coord, (B, N, 3), jnp.float32)

    wq, bq = _linear_init(kq, q_in, q_out)
    wv, bv = _linear_init(kv, v_in, v_out)
    wks, bks = [], []
    for sub in jax.random.split(kk, scale + 1):
        w, b = _linear_init(sub, k_in, k_out)
        wks.append(w)
        bks.append(b)
    params = dict(wq=wq, bq=bq, wv=wv, bv=bv,
                  wk=jnp.stack(wks), bk=jnp.stack(bks))

    out = cross_attention_ms_onek(pcd, coordinate, params, K=K, scale=scale,
                                  num_heads=num_heads, group_type="diff",
                                  tile_n=1024)
    out = jax.block_until_ready(out)

    ref = reference(pcd, coordinate, params, K=K, scale=scale,
                    num_heads=num_heads, group_type="diff")
    assert out.shape == (B, N, num_heads * (q_in // num_heads))
    assert bool(jnp.all(jnp.isfinite(out)))
    # bf16 MXU operands (inputs, qk, attn) + approx-reciprocal softmax denominator
    # -> loosened tolerance vs the f32 reference.
    max_err = float(jnp.max(jnp.abs(out - ref)))
    assert bool(jnp.allclose(out, ref, atol=7.5e-2, rtol=7.5e-2)), max_err
    print("KERNEL_OK")
</pallas_src>

<mosaic_0001>
module attributes {stable_mosaic.version = 11 : i64} {
  func.func @_cross_attn_kernel(%arg0: i32, %arg1: memref<512x128xbf16, #tpu.memory_space<vmem>>, %arg2: memref<128x224xbf16, #tpu.memory_space<vmem>>, %arg3: memref<1x224xf32, #tpu.memory_space<vmem>>, %arg4: memref<96x12xbf16, #tpu.memory_space<vmem>>, %arg5: memref<4x32xbf16, #tpu.memory_space<vmem>>, %arg6: memref<512x32xf32, #tpu.memory_space<vmem>>) attributes {dimension_semantics = [#tpu.dimension_semantics<parallel>], iteration_bounds = array<i64: 1>, scalar_prefetch = 0 : i64, scratch_operands = 0 : i64, tpu.core_type = #tpu.core_type<tc>, window_params = [{transform_indices = @transform_0, window_bounds = array<i64: 512, 128>}, {pipeline_mode = #tpu.pipeline_mode<synchronous>, transform_indices = @transform_1, window_bounds = array<i64: 128, 224>}, {pipeline_mode = #tpu.pipeline_mode<synchronous>, transform_indices = @transform_2, window_bounds = array<i64: 1, 224>}, {pipeline_mode = #tpu.pipeline_mode<synchronous>, transform_indices = @transform_3, window_bounds = array<i64: 96, 12>}, {pipeline_mode = #tpu.pipeline_mode<synchronous>, transform_indices = @transform_4, window_bounds = array<i64: 4, 32>}, {transform_indices = @transform_5, window_bounds = array<i64: 512, 32>}]} {
    %c0 = arith.constant 0 : index
    %c0_0 = arith.constant 0 : index
    %0 = vector.load %arg1[%c0, %c0_0] : memref<512x128xbf16, #tpu.memory_space<vmem>>, vector<512x128xbf16>
    %c0_1 = arith.constant 0 : index
    %c0_2 = arith.constant 0 : index
    %1 = vector.load %arg2[%c0_1, %c0_2] : memref<128x224xbf16, #tpu.memory_space<vmem>>, vector<128x224xbf16>
    %cst = arith.constant dense<0.000000e+00> : vector<512x224xf32>
    %2 = tpu.matmul %0, %1, %cst {dimension_numbers = #tpu.dot_dimension_numbers<[1], [0], [0], [1], [0, 0, 1, 1], [], []>} : vector<512x128xbf16>, vector<128x224xbf16>, vector<512x224xf32> -> vector<512x224xf32>
    %c0_3 = arith.constant 0 : index
    %c0_4 = arith.constant 0 : index
    %3 = vector.load %arg3[%c0_3, %c0_4] : memref<1x224xf32, #tpu.memory_space<vmem>>, vector<1x224xf32>
    %4 = vector.broadcast %3 : vector<1x224xf32> to vector<512x224xf32>
    %5 = arith.addf %2, %4 : vector<512x224xf32>
    %6 = vector.extract_strided_slice %5 {offsets = [0, 0], sizes = [512, 96], strides = [1, 1]} : vector<512x224xf32> to vector<512x96xf32>
    %7 = vector.extract_strided_slice %5 {offsets = [0, 96], sizes = [512, 32], strides = [1, 1]} : vector<512x224xf32> to vector<512x32xf32>
    %8 = vector.extract_strided_slice %5 {offsets = [0, 128], sizes = [512, 96], strides = [1, 1]} : vector<512x224xf32> to vector<512x96xf32>
    %9 = arith.mulf %6, %8 : vector<512x96xf32>
    %10 = arith.truncf %9 : vector<512x96xf32> to vector<512x96xbf16>
    %c0_5 = arith.constant 0 : index
    %c0_6 = arith.constant 0 : index
    %11 = vector.load %arg4[%c0_5, %c0_6] : memref<96x12xbf16, #tpu.memory_space<vmem>>, vector<96x12xbf16>
    %cst_7 = arith.constant dense<0.000000e+00> : vector<512x12xf32>
    %12 = tpu.matmul %10, %11, %cst_7 {dimension_numbers = #tpu.dot_dimension_numbers<[1], [0], [0], [1], [0, 0, 1, 1], [], []>} : vector<512x96xbf16>, vector<96x12xbf16>, vector<512x12xf32> -> vector<512x12xf32>
    %cst_8 = arith.constant 0.000000e+00 : f32
    %13 = vector.broadcast %cst_8 : f32 to vector<512x4xf32>
    %14 = vector.extract_strided_slice %12 {offsets = [0, 0], sizes = [512, 4], strides = [1, 1]} : vector<512x12xf32> to vector<512x4xf32>
    %cst_9 = arith.constant dense<0xFF800000> : vector<512xf32>
    %15 = vector.multi_reduction <maximumf>, %14, %cst_9 [1] : vector<512x4xf32> to vector<512xf32>
    %16 = vector.shape_cast %15 : vector<512xf32> to vector<512x1xf32>
    %17 = vector.broadcast %16 : vector<512x1xf32> to vector<512x4xf32>
    %18 = arith.subf %14, %17 : vector<512x4xf32>
    %19 = math.exp %18 : vector<512x4xf32>
    %cst_10 = arith.constant dense<0.000000e+00> : vector<512xf32>
    %20 = vector.multi_reduction <add>, %19, %cst_10 [1] : vector<512x4xf32> to vector<512xf32>
    %21 = vector.shape_cast %20 : vector<512xf32> to vector<512x1xf32>
    %22 = tpu.reciprocal %21 {approx = true} : vector<512x1xf32> -> vector<512x1xf32>
    %23 = vector.broadcast %22 : vector<512x1xf32> to vector<512x4xf32>
    %24 = arith.mulf %19, %23 : vector<512x4xf32>
    %25 = arith.addf %13, %24 : vector<512x4xf32>
    %26 = vector.extract_strided_slice %12 {offsets = [0, 4], sizes = [512, 4], strides = [1, 1]} : vector<512x12xf32> to vector<512x4xf32>
    %cst_11 = arith.constant dense<0xFF800000> : vector<512xf32>
    %27 = vector.multi_reduction <maximumf>, %26, %cst_11 [1] : vector<512x4xf32> to vector<512xf32>
    %28 = vector.shape_cast %27 : vector<512xf32> to vector<512x1xf32>
    %29 = vector.broadcast %28 : vector<512x1xf32> to vector<512x4xf32>
    %30 = arith.subf %26, %29 : vector<512x4xf32>
    %31 = math.exp %30 : vector<512x4xf32>
    %cst_12 = arith.constant dense<0.000000e+00> : vector<512xf32>
    %32 = vector.multi_reduction <add>, %31, %cst_12 [1] : vector<512x4xf32> to vector<512xf32>
    %33 = vector.shape_cast %32 : vector<512xf32> to vector<512x1xf32>
    %34 = tpu.reciprocal %33 {approx = true} : vector<512x1xf32> -> vector<512x1xf32>
    %35 = vector.broadcast %34 : vector<512x1xf32> to vector<512x4xf32>
    %36 = arith.mulf %31, %35 : vector<512x4xf32>
    %37 = arith.addf %25, %36 : vector<512x4xf32>
    %38 = vector.extract_strided_slice %12 {offsets = [0, 8], sizes = [512, 4], strides = [1, 1]} : vector<512x12xf32> to vector<512x4xf32>
    %cst_13 = arith.constant dense<0xFF800000> : vector<512xf32>
    %39 = vector.multi_reduction <maximumf>, %38, %cst_13 [1] : vector<512x4xf32> to vector<512xf32>
    %40 = vector.shape_cast %39 : vector<512xf32> to vector<512x1xf32>
    %41 = vector.broadcast %40 : vector<512x1xf32> to vector<512x4xf32>
    %42 = arith.subf %38, %41 : vector<512x4xf32>
    %43 = math.exp %42 : vector<512x4xf32>
    %cst_14 = arith.constant dense<0.000000e+00> : vector<512xf32>
    %44 = vector.multi_reduction <add>, %43, %cst_14 [1] : vector<512x4xf32> to vector<512xf32>
    %45 = vector.shape_cast %44 : vector<512xf32> to vector<512x1xf32>
    %46 = tpu.reciprocal %45 {approx = true} : vector<512x1xf32> -> vector<512x1xf32>
    %47 = vector.broadcast %46 : vector<512x1xf32> to vector<512x4xf32>
    %48 = arith.mulf %43, %47 : vector<512x4xf32>
    %49 = arith.addf %37, %48 : vector<512x4xf32>
    %50 = arith.truncf %49 : vector<512x4xf32> to vector<512x4xbf16>
    %c0_15 = arith.constant 0 : index
    %c0_16 = arith.constant 0 : index
    %51 = vector.load %arg5[%c0_15, %c0_16] : memref<4x32xbf16, #tpu.memory_space<vmem>>, vector<4x32xbf16>
    %cst_17 = arith.constant dense<0.000000e+00> : vector<512x32xf32>
    %52 = tpu.matmul %50, %51, %cst_17 {dimension_numbers = #tpu.dot_dimension_numbers<[1], [0], [0], [1], [0, 0, 1, 1], [], []>} : vector<512x4xbf16>, vector<4x32xbf16>, vector<512x32xf32> -> vector<512x32xf32>
    %53 = arith.mulf %52, %7 : vector<512x32xf32>
    %c0_18 = arith.constant 0 : index
    %c0_19 = arith.constant 0 : index
    %54 = vector.load %arg6[%c0_18, %c0_19] : memref<512x32xf32, #tpu.memory_space<vmem>>, vector<512x32xf32>
    tpu.vector_store %arg6[%c0_18, %c0_19], %53 {strides = array<i32>} : memref<512x32xf32, #tpu.memory_space<vmem>>, vector<512x32xf32>,
    return
  }
  func.func @transform_0(%arg0: i32) -> (i32, i32) {
    %c0_i32 = arith.constant 0 : i32
    %c0_i32_0 = arith.constant 0 : i32
    return %arg0, %c0_i32 : i32, i32
  }
  func.func @transform_1(%arg0: i32) -> (i32, i32) {
    %c0_i32 = arith.constant 0 : i32
    %c0_i32_0 = arith.constant 0 : i32
    %c0_i32_1 = arith.constant 0 : i32
    return %c0_i32, %c0_i32_0 : i32, i32
  }
  func.func @transform_2(%arg0: i32) -> (i32, i32) {
    %c0_i32 = arith.constant 0 : i32
    %c0_i32_0 = arith.constant 0 : i32
    %c0_i32_1 = arith.constant 0 : i32
    return %c0_i32, %c0_i32_0 : i32, i32
  }
  func.func @transform_3(%arg0: i32) -> (i32, i32) {
    %c0_i32 = arith.constant 0 : i32
    %c0_i32_0 = arith.constant 0 : i32
    %c0_i32_1 = arith.constant 0 : i32
    return %c0_i32, %c0_i32_0 : i32, i32
  }
  func.func @transform_4(%arg0: i32) -> (i32, i32) {
    %c0_i32 = arith.constant 0 : i32
    %c0_i32_0 = arith.constant 0 : i32
    %c0_i32_1 = arith.constant 0 : i32
    return %c0_i32, %c0_i32_0 : i32, i32
  }
  func.func @transform_5(%arg0: i32) -> (i32, i32) {
    %c0_i32 = arith.constant 0 : i32
    %c0_i32_0 = arith.constant 0 : i32
    return %arg0, %c0_i32 : i32, i32
  }
}

</mosaic_0001>

<bundles_post_ra>
// kernel: tpu_custom_call.1
= control target key start
LH: loop header
LB: loop body
LE: loop exit
PB: predicated region body
PF: predicated region fallthrough
CT: control target
= control target key end

     0   :  { %v10978_v1 = vmov 0   ;;  %v103_v45 = vlaneseq  ;;  %vm882_vm0 = vcmask 785408   ;;  %vm2037_vm1 = vcmask 64544   ;;  %s6578_s15 = smov 120   ;;  %s10972_s1 = inlined_call_operand.vmem [shape: bf16[128,224], index: 1, kind: input, shape index: {}]   ;;  %s10973_s0 = inlined_call_operand.vmem [shape: bf16[512,128], index: 0, kind: input, shape index: {}]   ;;  %s10974_s3 = inlined_call_operand.vmem [shape: bf16[96,12], index: 3, kind: input, shape index: {}]   ;;  %s10975_s2 = inlined_call_operand.vmem [shape: f32[1,224], index: 2, kind: input, shape index: {}]   ;;  %s10976_s4 = inlined_call_operand.vmem [shape: bf16[4,32], index: 4, kind: input, shape index: {}]   ;;  %s10977_s5 = inlined_call_operand.vmem [shape: f32[512,32], index: 5, kind: output, shape index: {}]  }
   0x1   :  { %v5746_v0 = vld [vmem:[%s10972_s1 + $0x4] ss:$8 sps:$4 sm:$0xff]   ;;  %417 = vmatprep.mubr.bf16.mxu0 %v10978_v1  ;;  %v5748_v2 = vld [vmem:[%s10972_s1] ss:$8 sps:$4 sm:$0xff]   ;;  %v5749_v3 = vld [vmem:[%s10972_s1 + $0x14] ss:$8 sps:$4 sm:$0xff]  }
   0x2   :  { %385 = vmatprep.subr.bf16.mxu0 %v5746_v0  ;;  %v5751_v4 = vld [vmem:[%s10972_s1 + $0x10] ss:$8 sps:$4 sm:$0xff]   ;;  %v5752_v5 = vld [vmem:[%s10972_s1 + $0x24] ss:$8 sps:$4 sm:$0xff]   ;;  %v5754_v6 = vld [vmem:[%s10972_s1 + $0x20] ss:$8 sps:$4 sm:$0xff]  }
   0x3   :  { %386 = vmatpush1.bf16.msra.mxu0 %v5748_v2  ;;  %v5755_v7 = vld [vmem:[%s10972_s1 + $0x34] ss:$8 sps:$4 sm:$0xff]   ;;  %v5757_v8 = vld [vmem:[%s10972_s1 + $0x30] ss:$8 sps:$4 sm:$0xff]   ;;  %v5758_v9 = vld [vmem:[%s10972_s1 + $0x44] ss:$8 sps:$4 sm:$0xff]  }
   0x4   :  { %387 = vmatprep.subr.bf16.mxu0 %v5749_v3  ;;  %v5760_v10 = vld [vmem:[%s10972_s1 + $0x40] ss:$8 sps:$4 sm:$0xff]   ;;  %v5761_v11 = vld [vmem:[%s10972_s1 + $0x54] ss:$8 sps:$4 sm:$0xff]   ;;  %v5763_v12 = vld [vmem:[%s10972_s1 + $0x50] ss:$8 sps:$4 sm:$0xff]  }
   0x5   :  { %v5764_v13 = vld [vmem:[%s10972_s1 + $0x64] ss:$8 sps:$4 sm:$0xff]   ;;  %v5766_v14 = vld [vmem:[%s10972_s1 + $0x60] ss:$8 sps:$4 sm:$0xff]   ;;  %v5767_v15 = vld [vmem:[%s10972_s1 + $0x74] ss:$8 sps:$4 sm:$0xff]  }
   0x6   :  { %v5769_v16 = vld [vmem:[%s10972_s1 + $0x70] ss:$8 sps:$4 sm:$0xff]   ;;  %v5770_v17 = vld [vmem:[%s10973_s0] sm:$0xff]   ;;  %v5771_v18 = vld [vmem:[%s10973_s0 + $0x8] sm:$0xff]   ;;  %v104_v46 = vshrl.u32 %v103_v45, 7  ;;  %vm1268_vm2 = vcmask 31744  }
   0x7   :  { %388 = vmatpush1.bf16.msra.mxu0 %v5751_v4  ;;  %v5772_v19 = vld [vmem:[%s10973_s0 + $0x10] sm:$0xff]   ;;  %v5789_v20 = vld [vmem:[%s10974_s3] sm:$0xff]   ;;  %v5790_v21 = vld [vmem:[%s10974_s3 + $0x8] sm:$0xff]   ;;  %vm3318_vm3 = vcmask 97344   ;;  %vm4728_vm4 = vcmask 1041408   ;;  %vm5341_vm5 = vcmask 261120  }
   0x8   :  { %389 = vmatprep.subr.bf16.mxu0 %v5752_v5  ;;  %5599 = vmatprep.subr.bf16.mxu1 %v5789_v20  ;;  %v5773_v22 = vld [vmem:[%s10973_s0 + $0x18] sm:$0xff]   ;;  %v5774_v23 = vld [vmem:[%s10973_s0 + $0x20] sm:$0xff]   ;;  %v5775_v24 = vld [vmem:[%s10973_s0 + $0x28] sm:$0xff]   ;;  %v105_v47 = vsub.s32 0, %v104_v46  ;;  %v109_v48 = vsub.s32 1, %v104_v46 }
   0x9   :  { %5600 = vmatpush3.bf16.msra.mxu1 %v5789_v20  ;;  %v5776_v25 = vld [vmem:[%s10973_s0 + $0x30] sm:$0xff]   ;;  %v5777_v26 = vld [vmem:[%s10973_s0 + $0x38] sm:$0xff]   ;;  %v5778_v27 = vld [vmem:[%s10973_s0 + $0x40] sm:$0xff]  }
   0xa   :  { %5601 = vmatprep.subr.bf16.mxu1 %v5790_v21  ;;  %v5779_v28 = vld [vmem:[%s10973_s0 + $0x48] sm:$0xff]   ;;  %v5780_v29 = vld [vmem:[%s10973_s0 + $0x50] sm:$0xff]   ;;  %v5781_v31 = vld [vmem:[%s10973_s0 + $0x58] sm:$0xff]  }
   0xb   :  { %390 = vmatpush1.bf16.msra.mxu0 %v5754_v6  ;;  %v5792_v30 = vld [vmem:[%s10974_s3 + $0x10] sm:$0xff]   ;;  %v5793_v32 = vld [vmem:[%s10974_s3 + $0x18] sm:$0xff]   ;;  %v5794_v33 = vld [vmem:[%s10974_s3 + $0x20] sm:$0xff]  }
   0xc   :  { %391 = vmatprep.subr.bf16.mxu0 %v5755_v7  ;;  %v5782_v34 = vld [vmem:[%s10973_s0 + $0x60] sm:$0xff]   ;;  %v5795_v35 = vld [vmem:[%s10974_s3 + $0x28] sm:$0xff]   ;;  %v5784_v37 = vld [vmem:[%s10973_s0 + $0x70] sm:$0xff]   ;;  %s6577_s3 = smov 124  }
   0xd   :  { %5602 = vmatpush3.bf16.msra.mxu1 %v5790_v21  ;;  %v5783_v36 = vld [vmem:[%s10973_s0 + $0x68] sm:$0xff]   ;;  %v5785_v38 = vld [vmem:[%s10973_s0 + $0x78] sm:$0xff]   ;;  %v5786_v39 = vld [vmem:[%s10973_s0 + $0x80] sm:$0xff]  }
   0xe   :  { %5603 = vmatprep.subr.bf16.mxu1 %v5792_v30  ;;  %v5787_v40 = vld [vmem:[%s10973_s0 + $0x88] sm:$0xff]   ;;  %v5788_v41 = vld [vmem:[%s10973_s0 + $0x90] sm:$0xff]   ;;  %v5791_v42 = vld [vmem:[%s10973_s0 + $0x98] sm:$0xff]  }
   0xf   :  { %392 = vmatpush1.bf16.msra.mxu0 %v5757_v8  ;;  %v5796_v43 = vld [vmem:[%s10973_s0 + $0xa0] sm:$0xff]   ;;  %v5797_v44 = vld [vmem:[%s10973_s0 + $0xa8] sm:$0xff]  }
  0x10   :  { %393 = vmatprep.subr.bf16.mxu0 %v5758_v9  ;;  %v101_v49 = vld [vmem:[%s10975_s2] sm:$0x3] }
  0x11   :  { %5604 = vmatpush3.bf16.msra.mxu1 %v5792_v30  ;;  %v6768_v50 = vrot.slane %v101_v49, %v105_v47  ;;  %v6770_v51 = vrot.slane %v101_v49, %v109_v48 }
  0x12   :  { %5605 = vmatprep.subr.bf16.mxu1 %v5793_v32 }
  0x13   :  { %394 = vmatpush1.bf16.msra.mxu0 %v5760_v10 }
  0x14   :  { %395 = vmatprep.subr.bf16.mxu0 %v5761_v11 }
  0x15   :  { %5606 = vmatpush3.bf16.msra.mxu1 %v5793_v32 }
  0x16   :  { %5607 = vmatprep.subr.bf16.mxu1 %v5794_v33 }
  0x17   :  { %396 = vmatpush1.bf16.msra.mxu0 %v5763_v12 }
  0x18   :  { %397 = vmatprep.subr.bf16.mxu0 %v5764_v13 }
  0x19   :  { %5608 = vmatpush3.bf16.msra.mxu1 %v5794_v33 }
  0x1a   :  { %5609 = vmatprep.subr.bf16.mxu1 %v5795_v35 }
  0x1b   :  { %398 = vmatpush1.bf16.msra.mxu0 %v5766_v14 }
  0x1c   :  { %399 = vmatprep.subr.bf16.mxu0 %v5767_v15 }
  0x1d   :  { %5610 = vmatpush3.bf16.msra.mxu1 %v5795_v35 }
  0x1f   :  { %400 = vmatpush1.bf16.msra.mxu0 %v5769_v16 }
  0x22   :  { %418 = vmatmul.mubr.bf16.vlgmr.msra.gmra.mrb[0].mxu0 %v5770_v17 }
  0x23   :  { %427 = vmatprep.mubr.bf16.mxu0 %v10978_v1 }
  0x2a   :  { %428 = vmatmul.mubr.bf16.gmra.mrb[4].mxu0 %v5771_v18 }
  0x2b   :  { %437 = vmatprep.mubr.bf16.mxu0 %v10978_v1 }
  0x32   :  { %438 = vmatmul.mubr.bf16.gmra.mrb[8].mxu0 %v5772_v19 }
  0x33   :  { %447 = vmatprep.mubr.bf16.mxu0 %v10978_v1 }
  0x3a   :  { %448 = vmatmul.mubr.bf16.gmra.mrb[12].mxu0 %v5773_v22 }
  0x3b   :  { %457 = vmatprep.mubr.bf16.mxu0 %v10978_v1 }
  0x42   :  { %458 = vmatmul.mubr.bf16.gmra.mrb[16].mxu0 %v5774_v23 }
  0x43   :  { %467 = vmatprep.mubr.bf16.mxu0 %v10978_v1 }
  0x4a   :  { %468 = vmatmul.mubr.bf16.gmra.mrb[20].mxu0 %v5775_v24 }
  0x4b   :  { %477 = vmatprep.mubr.bf16.mxu0 %v10978_v1 }
  0x52   :  { %478 = vmatmul.mubr.bf16.gmra.mrb[24].mxu0 %v5776_v25 }
  0x53   :  { %487 = vmatprep.mubr.bf16.mxu0 %v10978_v1 }
  0x5a   :  { %488 = vmatmul.mubr.bf16.gmra.mrb[28].mxu0 %v5777_v26 }
  0x5b   :  { %497 = vmatprep.mubr.bf16.mxu0 %v10978_v1 }
  0x62   :  { %498 = vmatmul.mubr.bf16.gmra.mrb[32].mxu0 %v5778_v27 }
  0x63   :  { %507 = vmatprep.mubr.bf16.mxu0 %v10978_v1 }
  0x6a   :  { %508 = vmatmul.mubr.bf16.gmra.mrb[36].mxu0 %v5779_v28 }
  0x6b   :  { %517 = vmatprep.mubr.bf16.mxu0 %v10978_v1 }
  0x72   :  { %518 = vmatmul.mubr.bf16.gmra.mrb[40].mxu0 %v5780_v29 }
  0x73   :  { %527 = vmatprep.mubr.bf16.mxu0 %v10978_v1 }
  0x7a   :  { %528 = vmatmul.mubr.bf16.gmra.mrb[44].mxu0 %v5781_v31 }
  0x7b   :  { %537 = vmatprep.mubr.bf16.mxu0 %v10978_v1 }
  0x82   :  { %538 = vmatmul.mubr.bf16.gmra.mrb[48].mxu0 %v5782_v34 }
  0x83   :  { %547 = vmatprep.mubr.bf16.mxu0 %v10978_v1 }
  0x8a   :  { %548 = vmatmul.mubr.bf16.gmra.mrb[52].mxu0 %v5783_v36 }
  0x8b   :  { %557 = vmatprep.mubr.bf16.mxu0 %v10978_v1 }
  0x92   :  { %558 = vmatmul.mubr.bf16.gmra.mrb[56].mxu0 %v5784_v37 }
  0x93   :  { %567 = vmatprep.mubr.bf16.mxu0 %v10978_v1 }
  0x9a   :  { %568 = vmatmul.mubr.bf16.gmra.mrb[60].mxu0 %v5785_v38 }
  0x9b   :  { %577 = vmatprep.mubr.bf16.mxu0 %v10978_v1 }
  0xa2   :  { %578 = vmatmul.mubr.bf16.gmra.mrb[64].mxu0 %v5786_v39 }
  0xa3   :  { %587 = vmatprep.mubr.bf16.mxu0 %v10978_v1 }
  0xaa   :  { %588 = vmatmul.mubr.bf16.gmra.mrb[68].mxu0 %v5787_v40 }
  0xab   :  { %597 = vmatprep.mubr.bf16.mxu0 %v10978_v1 }
  0xb2   :  { %598 = vmatmul.mubr.bf16.gmra.mrb[72].mxu0 %v5788_v41 }
  0xb3   :  { %607 = vmatprep.mubr.bf16.mxu0 %v10978_v1 }
  0xba   :  { %608 = vmatmul.mubr.bf16.gmra.mrb[76].mxu0 %v5791_v42 }
  0xbb   :  { %617 = vmatprep.mubr.bf16.mxu0 %v10978_v1 }
  0xc2   :  { %618 = vmatmul.mubr.bf16.gmra.mrb[80].mxu0 %v5796_v43 }
  0xc3   :  { %627 = vmatprep.mubr.bf16.mxu0 %v10978_v1 }
  0xca   :  { %628 = vmatmul.mubr.bf16.gmra.mrb[84].mxu0 %v5797_v44 }
  0xcb   :  { %637 = vmatprep.mubr.bf16.mxu0 %v10978_v1 }
  0xf5   :  { %v419_v52 = vpop.f32.mrb[0].mxu0 }
  0xf6   :  { %v421_v53 = vpop.f32.mrb[1].mxu0  ;;  %v6773_v54 = vadd.f32 %v419_v52, %v6768_v50 }
  0xf7   :  { %v422_v55 = vadd.f32 %v421_v53, %v6770_v51  ;;  %v423_v56 = vpop.f32.mrb[2].mxu0 }
  0xf8   :  { %11320 = vst [vmem:[#allocation2_spill] sm:$0xff] %v6773_v54  ;;  %v6777_v57 = vadd.f32 %v423_v56, %v6768_v50  ;;  %v425_v58 = vpop.f32.mrb[3].mxu0 }
  0xf9   :  { %v426_v59 = vadd.f32 %v425_v58, %v6770_v51  ;;  %v738_v60 = vmul.f32 %v422_v55, %v6773_v54 }
  0xfa   :  { %11321 = vst [vmem:[#allocation3_spill] sm:$0xff] %v6777_v57 }
  0xfb   :  { %v739_v61 = vmul.f32 %v426_v59, %v6777_v57 }
  0xfd   :  { %v429_v62 = vpop.f32.mrb[4].mxu0  ;;  %v802_v63 = vpack.c.bf16 %v739_v61, %v738_v60 }
  0xfe   :  { %v431_v0 = vpop.f32.mrb[5].mxu0  ;;  %v6783_v2 = vadd.f32 %v429_v62, %v6768_v50 }
  0xff   :  { %v432_v3 = vadd.f32 %v431_v0, %v6770_v51  ;;  %v433_v4 = vpop.f32.mrb[6].mxu0  ;;  %5611 = vmatprep.mubr.msk.bf16.mxu1 %vm882_vm0, %v802_v63 }
 0x100   :  { %11322 = vst [vmem:[#allocation4_spill] sm:$0xff] %v6783_v2  ;;  %v6788_v5 = vadd.f32 %v433_v4, %v6768_v50  ;;  %v435_v6 = vpop.f32.mrb[7].mxu0 }
 0x101   :  { %v436_v7 = vadd.f32 %v435_v6, %v6770_v51  ;;  %v740_v8 = vmul.f32 %v432_v3, %v6783_v2 }
 0x102   :  { %11323 = vst [vmem:[#allocation5_spill] sm:$0xff] %v6788_v5 }
 0x103   :  { %v741_v9 = vmul.f32 %v436_v7, %v6788_v5 }
 0x105   :  { %v803_v10 = vpack.c.bf16 %v741_v9, %v740_v8  ;;  %v439_v11 = vpop.f32.mrb[8].mxu0 }
 0x106   :  { %v6794_v12 = vadd.f32 %v439_v11, %v6768_v50  ;;  %v441_v13 = vpop.f32.mrb[9].mxu0 }
 0x107   :  { %v442_v14 = vadd.f32 %v441_v13, %v6770_v51  ;;  %v443_v15 = vpop.f32.mrb[10].mxu0  ;;  %5612 = vmatmul.mubr.msk.bf16.vlgmr.msra.gmra.mrb[0].mxu1 %vm882_vm0, %v803_v10 }
 0x108   :  { %11324 = vst [vmem:[#allocation6_spill] sm:$0xff] %v6794_v12  ;;  %v6799_v16 = vadd.f32 %v443_v15, %v6768_v50  ;;  %v445_v17 = vpop.f32.mrb[11].mxu0 }
 0x109   :  { %v742_v18 = vmul.f32 %v442_v14, %v6794_v12  ;;  %v446_v19 = vadd.f32 %v445_v17, %v6770_v51 }
 0x10a   :  { %11325 = vst [vmem:[#allocation7_spill] sm:$0xff] %v6799_v16 }
 0x10b   :  { %v743_v20 = vmul.f32 %v446_v19, %v6799_v16  ;;  %v5803_v16 = vld [vmem:[%s10973_s0 + $0xd8] sm:$0xff]  }
 0x10d   :  { %v804_v21 = vpack.c.bf16 %v743_v20, %v742_v18  ;;  %v449_v22 = vpop.f32.mrb[12].mxu0 }
 0x10e   :  { %v6805_v23 = vadd.f32 %v449_v22, %v6768_v50  ;;  %v451_v24 = vpop.f32.mrb[13].mxu0 }
 0x10f   :  { %v452_v25 = vadd.f32 %v451_v24, %v6770_v51  ;;  %v453_v26 = vpop.f32.mrb[14].mxu0  ;;  %5615 = vmatprep.mubr.msk.bf16.mxu1 %vm882_vm0, %v804_v21 }
 0x110   :  { %11326 = vst [vmem:[#allocation8_spill] sm:$0xff] %v6805_v23  ;;  %v6810_v27 = vadd.f32 %v453_v26, %v6768_v50  ;;  %v455_v28 = vpop.f32.mrb[15].mxu0 }
 0x111   :  { %v744_v29 = vmul.f32 %v452_v25, %v6805_v23  ;;  %v456_v30 = vadd.f32 %v455_v28, %v6770_v51 }
 0x112   :  { %11327 = vst [vmem:[#allocation9_spill] sm:$0xff] %v6810_v27 }
 0x113   :  { %v745_v31 = vmul.f32 %v456_v30, %v6810_v27 }
 0x115   :  { %v805_v32 = vpack.c.bf16 %v745_v31, %v744_v29  ;;  %v459_v33 = vpop.f32.mrb[16].mxu0 }
 0x116   :  { %v6816_v34 = vadd.f32 %v459_v33, %v6768_v50  ;;  %v461_v35 = vpop.f32.mrb[17].mxu0 }
 0x117   :  { %5616 = vmatmul.mubr.msk.bf16.gmra.mrb[4].mxu1 %vm882_vm0, %v805_v32  ;;  %v462_v36 = vadd.f32 %v461_v35, %v6770_v51  ;;  %v463_v37 = vpop.f32.mrb[18].mxu0 }
 0x118   :  { %11328 = vst [vmem:[#allocation10_spill] sm:$0xff] %v6816_v34  ;;  %v6821_v38 = vadd.f32 %v463_v37, %v6768_v50  ;;  %v465_v39 = vpop.f32.mrb[19].mxu0 }
 0x119   :  { %v746_v40 = vmul.f32 %v462_v36, %v6816_v34  ;;  %v466_v41 = vadd.f32 %v465_v39, %v6770_v51 }
 0x11a   :  { %11329 = vst [vmem:[#allocation11_spill] sm:$0xff] %v6821_v38 }
 0x11b   :  { %v747_v42 = vmul.f32 %v466_v41, %v6821_v38  ;;  %v11393_v38 = vmov 0  }
 0x11d   :  { %v806_v43 = vpack.c.bf16 %v747_v42, %v746_v40  ;;  %v469_v44 = vpop.f32.mrb[20].mxu0 }
 0x11e   :  { %v6827_v45 = vadd.f32 %v469_v44, %v6768_v50  ;;  %v471_v46 = vpop.f32.mrb[21].mxu0 }
 0x11f   :  { %v472_v47 = vadd.f32 %v471_v46, %v6770_v51  ;;  %v473_v48 = vpop.f32.mrb[22].mxu0  ;;  %5619 = vmatprep.mubr.msk.bf16.mxu1 %vm882_vm0, %v806_v43 }
 0x120   :  { %11330 = vst [vmem:[#allocation12_spill] sm:$0xff] %v6827_v45  ;;  %v6832_v49 = vadd.f32 %v473_v48, %v6768_v50  ;;  %v475_v52 = vpop.f32.mrb[23].mxu0 }
 0x121   :  { %v748_v53 = vmul.f32 %v472_v47, %v6827_v45  ;;  %v476_v55 = vadd.f32 %v475_v52, %v6770_v51 }
 0x122   :  { %11331 = vst [vmem:[#allocation13_spill] sm:$0xff] %v6832_v49 }
 0x123   :  { %v749_v56 = vmul.f32 %v476_v55, %v6832_v49 }
 0x125   :  { %v807_v58 = vpack.c.bf16 %v749_v56, %v748_v53  ;;  %v479_v59 = vpop.f32.mrb[24].mxu0 }
 0x126   :  { %v6838_v60 = vadd.f32 %v479_v59, %v6768_v50  ;;  %v481_v61 = vpop.f32.mrb[25].mxu0 }
 0x127   :  { %5620 = vmatmul.mubr.msk.bf16.gmra.mrb[8].mxu1 %vm882_vm0, %v807_v58  ;;  %v482_v62 = vadd.f32 %v481_v61, %v6770_v51  ;;  %v483_v63 = vpop.f32.mrb[26].mxu0 }
 0x128   :  { %11332 = vst [vmem:[#allocation14_spill] sm:$0xff] %v6838_v60  ;;  %v6843_v0 = vadd.f32 %v483_v63, %v6768_v50  ;;  %v485_v3 = vpop.f32.mrb[27].mxu0 }
 0x129   :  { %v750_v4 = vmul.f32 %v482_v62, %v6838_v60  ;;  %v486_v6 = vadd.f32 %v485_v3, %v6770_v51 }
 0x12a   :  { %11333 = vst [vmem:[#allocation15_spill] sm:$0xff] %v6843_v0 }
 0x12b   :  { %v751_v7 = vmul.f32 %v486_v6, %v6843_v0 }
 0x12d   :  { %v808_v8 = vpack.c.bf16 %v751_v7, %v750_v4  ;;  %v489_v9 = vpop.f32.mrb[28].mxu0 }
 0x12e   :  { %v6849_v10 = vadd.f32 %v489_v9, %v6768_v50  ;;  %v491_v11 = vpop.f32.mrb[29].mxu0 }
 0x12f   :  { %v492_v13 = vadd.f32 %v491_v11, %v6770_v51  ;;  %v493_v14 = vpop.f32.mrb[30].mxu0  ;;  %5623 = vmatprep.mubr.msk.bf16.mxu1 %vm882_vm0, %v808_v8 }
 0x130   :  { %11334 = vst [vmem:[#allocation16_spill] sm:$0xff] %v6849_v10  ;;  %v6854_v15 = vadd.f32 %v493_v14, %v6768_v50  ;;  %v495_v17 = vpop.f32.mrb[31].mxu0 }
 0x131   :  { %v752_v18 = vmul.f32 %v492_v13, %v6849_v10  ;;  %v496_v19 = vadd.f32 %v495_v17, %v6770_v51 }
 0x132   :  { %11335 = vst [vmem:[#allocation17_spill] sm:$0xff] %v6854_v15 }
 0x133   :  { %v753_v20 = vmul.f32 %v496_v19, %v6854_v15 }
 0x135   :  { %v809_v21 = vpack.c.bf16 %v753_v20, %v752_v18  ;;  %v499_v22 = vpop.f32.mrb[32].mxu0 }
 0x136   :  { %v6860_v24 = vadd.f32 %v499_v22, %v6768_v50  ;;  %v501_v25 = vpop.f32.mrb[33].mxu0 }
 0x137   :  { %5624 = vmatmul.mubr.msk.bf16.gmra.mrb[12].mxu1 %vm882_vm0, %v809_v21  ;;  %v502_v26 = vadd.f32 %v501_v25, %v6770_v51  ;;  %v503_v28 = vpop.f32.mrb[34].mxu0 }
 0x138   :  { %11336 = vst [vmem:[#allocation18_spill] sm:$0xff] %v6860_v24  ;;  %v6865_v29 = vadd.f32 %v503_v28, %v6768_v50  ;;  %v505_v30 = vpop.f32.mrb[35].mxu0 }
 0x139   :  { %v754_v31 = vmul.f32 %v502_v26, %v6860_v24  ;;  %v506_v32 = vadd.f32 %v505_v30, %v6770_v51 }
 0x13a   :  { %11337 = vst [vmem:[#allocation19_spill] sm:$0xff] %v6865_v29 }
 0x13b   :  { %v755_v33 = vmul.f32 %v506_v32, %v6865_v29 }
 0x13d   :  { %v810_v35 = vpack.c.bf16 %v755_v33, %v754_v31  ;;  %v509_v36 = vpop.f32.mrb[36].mxu0 }
 0x13e   :  { %v6871_v37 = vadd.f32 %v509_v36, %v6768_v50  ;;  %v511_v39 = vpop.f32.mrb[37].mxu0 }
 0x13f   :  { %v512_v40 = vadd.f32 %v511_v39, %v6770_v51  ;;  %v513_v41 = vpop.f32.mrb[38].mxu0  ;;  %5627 = vmatprep.mubr.msk.bf16.mxu1 %vm882_vm0, %v810_v35  ;;  %v5798_v35 = vld [vmem:[%s10973_s0 + $0xb0] sm:$0xff]  }
 0x140   :  { %11338 = vst [vmem:[#allocation20_spill] sm:$0xff] %v6871_v37  ;;  %v6876_v42 = vadd.f32 %v513_v41, %v6768_v50  ;;  %v515_v43 = vpop.f32.mrb[39].mxu0  ;;  %638 = vmatmul.mubr.bf16.gmra.mrb[88].mxu0 %v5798_v35 }
 0x141   :  { %v756_v44 = vmul.f32 %v512_v40, %v6871_v37  ;;  %v516_v46 = vadd.f32 %v515_v43, %v6770_v51  ;;  %647 = vmatprep.mubr.bf16.mxu0 %v10978_v1 }
 0x142   :  { %11339 = vst [vmem:[#allocation21_spill] sm:$0xff] %v6876_v42 }
 0x143   :  { %v757_v47 = vmul.f32 %v516_v46, %v6876_v42 }
 0x145   :  { %v811_v48 = vpack.c.bf16 %v757_v47, %v756_v44  ;;  %v519_v52 = vpop.f32.mrb[40].mxu0 }
 0x146   :  { %v6882_v53 = vadd.f32 %v519_v52, %v6768_v50  ;;  %v521_v55 = vpop.f32.mrb[41].mxu0  ;;  %v5799_v52 = vld [vmem:[%s10973_s0 + $0xb8] sm:$0xff]  }
 0x147   :  { %5628 = vmatmul.mubr.msk.bf16.gmra.mrb[16].mxu1 %vm882_vm0, %v811_v48  ;;  %v522_v56 = vadd.f32 %v521_v55, %v6770_v51  ;;  %v523_v58 = vpop.f32.mrb[42].mxu0 }
 0x148   :  { %11340 = vst [vmem:[#allocation22_spill] sm:$0xff] %v6882_v53  ;;  %v6887_v59 = vadd.f32 %v523_v58, %v6768_v50  ;;  %v525_v61 = vpop.f32.mrb[43].mxu0  ;;  %648 = vmatmul.mubr.bf16.gmra.mrb[92].mxu0 %v5799_v52 }
 0x149   :  { %v758_v62 = vmul.f32 %v522_v56, %v6882_v53  ;;  %v526_v63 = vadd.f32 %v525_v61, %v6770_v51  ;;  %657 = vmatprep.mubr.bf16.mxu0 %v10978_v1 }
 0x14a   :  { %11341 = vst [vmem:[#allocation23_spill] sm:$0xff] %v6887_v59 }
 0x14b   :  { %v759_v3 = vmul.f32 %v526_v63, %v6887_v59 }
 0x14d   :  { %v812_v4 = vpack.c.bf16 %v759_v3, %v758_v62  ;;  %v529_v6 = vpop.f32.mrb[44].mxu0 }
 0x14e   :  { %v6893_v7 = vadd.f32 %v529_v6, %v6768_v50  ;;  %v531_v8 = vpop.f32.mrb[45].mxu0 }
 0x14f   :  { %v532_v9 = vadd.f32 %v531_v8, %v6770_v51  ;;  %v533_v11 = vpop.f32.mrb[46].mxu0  ;;  %5631 = vmatprep.mubr.msk.bf16.mxu1 %vm882_vm0, %v812_v4 }
 0x150   :  { %11342 = vst [vmem:[#allocation24_spill] sm:$0xff] %v6893_v7  ;;  %v6898_v13 = vadd.f32 %v533_v11, %v6768_v50  ;;  %v535_v14 = vpop.f32.mrb[47].mxu0 }
 0x151   :  { %v760_v17 = vmul.f32 %v532_v9, %v6893_v7  ;;  %v536_v18 = vadd.f32 %v535_v14, %v6770_v51 }
 0x152   :  { %11343 = vst [vmem:[#allocation25_spill] sm:$0xff] %v6898_v13 }
 0x153   :  { %v761_v19 = vmul.f32 %v536_v18, %v6898_v13 }
 0x155   :  { %v813_v20 = vpack.c.bf16 %v761_v19, %v760_v17  ;;  %v539_v21 = vpop.f32.mrb[48].mxu0 }
 0x156   :  { %v6904_v22 = vadd.f32 %v539_v21, %v6768_v50  ;;  %v541_v25 = vpop.f32.mrb[49].mxu0 }
 0x157   :  { %5632 = vmatmul.mubr.msk.bf16.gmra.mrb[20].mxu1 %vm882_vm0, %v813_v20  ;;  %v542_v26 = vadd.f32 %v541_v25, %v6770_v51  ;;  %v543_v28 = vpop.f32.mrb[50].mxu0 }
 0x158   :  { %11344 = vst [vmem:[#allocation26_spill] sm:$0xff] %v6904_v22  ;;  %v6909_v30 = vadd.f32 %v543_v28, %v6768_v50  ;;  %v545_v31 = vpop.f32.mrb[51].mxu0 }
 0x159   :  { %v762_v32 = vmul.f32 %v542_v26, %v6904_v22  ;;  %v546_v33 = vadd.f32 %v545_v31, %v6770_v51 }
 0x15a   :  { %11345 = vst [vmem:[#allocation27_spill] sm:$0xff] %v6909_v30 }
 0x15b   :  { %v763_v36 = vmul.f32 %v546_v33, %v6909_v30 }
 0x15d   :  { %v814_v39 = vpack.c.bf16 %v763_v36, %v762_v32  ;;  %v549_v40 = vpop.f32.mrb[52].mxu0 }
 0x15e   :  { %v6919_v41 = vadd.f32 %v549_v40, %v6768_v50  ;;  %v551_v43 = vpop.f32.mrb[53].mxu0 }
 0x15f   :  { %v552_v44 = vadd.f32 %v551_v43, %v6770_v51  ;;  %v553_v46 = vpop.f32.mrb[54].mxu0  ;;  %5635 = vmatprep.mubr.msk.bf16.mxu1 %vm882_vm0, %v814_v39 }
 0x160   :  { %11346 = vst [vmem:[#allocation28_spill] sm:$0xff] %v6919_v41  ;;  %v6924_v47 = vadd.f32 %v553_v46, %v6768_v50  ;;  %v555_v48 = vpop.f32.mrb[55].mxu0 }
 0x161   :  { %v764_v55 = vmul.f32 %v552_v44, %v6919_v41  ;;  %v556_v56 = vadd.f32 %v555_v48, %v6770_v51 }
 0x162   :  { %11347 = vst [vmem:[#allocation29_spill] sm:$0xff] %v6924_v47 }
 0x163   :  { %v765_v58 = vmul.f32 %v556_v56, %v6924_v47 }
 0x165   :  { %v815_v61 = vpack.c.bf16 %v765_v58, %v764_v55  ;;  %v559_v62 = vpop.f32.mrb[56].mxu0 }
 0x166   :  { %v6934_v63 = vadd.f32 %v559_v62, %v6768_v50  ;;  %v561_v3 = vpop.f32.mrb[57].mxu0 }
 0x167   :  { %5636 = vmatmul.mubr.msk.bf16.gmra.mrb[24].mxu1 %vm882_vm0, %v815_v61  ;;  %v562_v4 = vadd.f32 %v561_v3, %v6770_v51  ;;  %v563_v6 = vpop.f32.mrb[58].mxu0 }
 0x168   :  { %11348 = vst [vmem:[#allocation30_spill] sm:$0xff] %v6934_v63  ;;  %v6939_v8 = vadd.f32 %v563_v6, %v6768_v50  ;;  %v565_v9 = vpop.f32.mrb[59].mxu0 }
 0x169   :  { %v766_v11 = vmul.f32 %v562_v4, %v6934_v63  ;;  %v566_v14 = vadd.f32 %v565_v9, %v6770_v51 }
 0x16a   :  { %11349 = vst [vmem:[#allocation31_spill] sm:$0xff] %v6939_v8 }
 0x16b   :  { %v767_v17 = vmul.f32 %v566_v14, %v6939_v8 }
 0x16d   :  { %v816_v18 = vpack.c.bf16 %v767_v17, %v766_v11  ;;  %v569_v19 = vpop.f32.mrb[60].mxu0 }
 0x16e   :  { %v6945_v20 = vadd.f32 %v569_v19, %v6768_v50  ;;  %v571_v21 = vpop.f32.mrb[61].mxu0 }
 0x16f   :  { %v572_v25 = vadd.f32 %v571_v21, %v6770_v51  ;;  %v573_v26 = vpop.f32.mrb[62].mxu0  ;;  %5639 = vmatprep.mubr.msk.bf16.mxu1 %vm882_vm0, %v816_v18 }
 0x170   :  { %11350 = vst [vmem:[#allocation32_spill] sm:$0xff] %v6945_v20  ;;  %v6950_v28 = vadd.f32 %v573_v26, %v6768_v50  ;;  %v575_v31 = vpop.f32.mrb[63].mxu0 }
 0x171   :  { %v768_v32 = vmul.f32 %v572_v25, %v6945_v20  ;;  %v576_v33 = vadd.f32 %v575_v31, %v6770_v51 }
 0x172   :  { %11351 = vst [vmem:[#allocation33_spill] sm:$0xff] %v6950_v28 }
 0x173   :  { %v769_v35 = vmul.f32 %v576_v33, %v6950_v28 }
 0x175   :  { %v817_v36 = vpack.c.bf16 %v769_v35, %v768_v32  ;;  %v579_v39 = vpop.f32.mrb[64].mxu0 }
 0x176   :  { %v6956_v40 = vadd.f32 %v579_v39, %v6768_v50  ;;  %v581_v43 = vpop.f32.mrb[65].mxu0 }
 0x177   :  { %5640 = vmatmul.mubr.msk.bf16.gmra.mrb[28].mxu1 %vm882_vm0, %v817_v36  ;;  %v582_v44 = vadd.f32 %v581_v43, %v6770_v51  ;;  %v583_v46 = vpop.f32.mrb[66].mxu0 }
 0x178   :  { %11352 = vst [vmem:[#allocation34_spill] sm:$0xff] %v6956_v40  ;;  %v6961_v48 = vadd.f32 %v583_v46, %v6768_v50  ;;  %v585_v52 = vpop.f32.mrb[67].mxu0 }
 0x179   :  { %v770_v55 = vmul.f32 %v582_v44, %v6956_v40  ;;  %v586_v56 = vadd.f32 %v585_v52, %v6770_v51 }
 0x17a   :  { %11353 = vst [vmem:[#allocation35_spill] sm:$0xff] %v6961_v48 }
 0x17b   :  { %v771_v58 = vmul.f32 %v586_v56, %v6961_v48 }
 0x17d   :  { %v818_v61 = vpack.c.bf16 %v771_v58, %v770_v55  ;;  %v589_v62 = vpop.f32.mrb[68].mxu0 }
 0x17e   :  { %v6967_v3 = vadd.f32 %v589_v62, %v6768_v50  ;;  %v591_v4 = vpop.f32.mrb[69].mxu0 }
 0x17f   :  { %v592_v6 = vadd.f32 %v591_v4, %v6770_v51  ;;  %v593_v9 = vpop.f32.mrb[70].mxu0  ;;  %5643 = vmatprep.mubr.msk.bf16.mxu1 %vm882_vm0, %v818_v61 }
 0x180   :  { %11354 = vst [vmem:[#allocation36_spill] sm:$0xff] %v6967_v3  ;;  %v6972_v11 = vadd.f32 %v593_v9, %v6768_v50  ;;  %v595_v14 = vpop.f32.mrb[71].mxu0 }
 0x181   :  { %v772_v17 = vmul.f32 %v592_v6, %v6967_v3  ;;  %v596_v18 = vadd.f32 %v595_v14, %v6770_v51 }
 0x182   :  { %11355 = vst [vmem:[#allocation37_spill] sm:$0xff] %v6972_v11 }
 0x183   :  { %v773_v19 = vmul.f32 %v596_v18, %v6972_v11 }
 0x185   :  { %v819_v21 = vpack.c.bf16 %v773_v19, %v772_v17  ;;  %v599_v25 = vpop.f32.mrb[72].mxu0 }
 0x186   :  { %v6978_v26 = vadd.f32 %v599_v25, %v6768_v50  ;;  %v601_v31 = vpop.f32.mrb[73].mxu0 }
 0x187   :  { %5644 = vmatmul.mubr.msk.bf16.gmra.mrb[32].mxu1 %vm882_vm0, %v819_v21  ;;  %v602_v32 = vadd.f32 %v601_v31, %v6770_v51  ;;  %v603_v33 = vpop.f32.mrb[74].mxu0 }
 0x188   :  { %11356 = vst [vmem:[#allocation38_spill] sm:$0xff] %v6978_v26  ;;  %v6983_v35 = vadd.f32 %v603_v33, %v6768_v50  ;;  %v605_v36 = vpop.f32.mrb[75].mxu0 }
 0x189   :  { %v774_v39 = vmul.f32 %v602_v32, %v6978_v26  ;;  %v606_v43 = vadd.f32 %v605_v36, %v6770_v51 }
 0x18a   :  { %11357 = vst [vmem:[#allocation39_spill] sm:$0xff] %v6983_v35 }
 0x18b   :  { %v775_v44 = vmul.f32 %v606_v43, %v6983_v35 }
 0x18d   :  { %v820_v46 = vpack.c.bf16 %v775_v44, %v774_v39  ;;  %v609_v52 = vpop.f32.mrb[76].mxu0 }
 0x18e   :  { %v6989_v55 = vadd.f32 %v609_v52, %v6768_v50  ;;  %v611_v56 = vpop.f32.mrb[77].mxu0 }
 0x18f   :  { %v612_v58 = vadd.f32 %v611_v56, %v6770_v51  ;;  %v613_v61 = vpop.f32.mrb[78].mxu0  ;;  %5647 = vmatprep.mubr.msk.bf16.mxu1 %vm882_vm0, %v820_v46 }
 0x190   :  { %11358 = vst [vmem:[#allocation40_spill] sm:$0xff] %v6989_v55  ;;  %v6994_v62 = vadd.f32 %v613_v61, %v6768_v50  ;;  %v615_v4 = vpop.f32.mrb[79].mxu0 }
 0x191   :  { %v776_v6 = vmul.f32 %v612_v58, %v6989_v55  ;;  %v616_v9 = vadd.f32 %v615_v4, %v6770_v51 }
 0x192   :  { %11359 = vst [vmem:[#allocation41_spill] sm:$0xff] %v6994_v62 }
 0x193   :  { %v777_v14 = vmul.f32 %v616_v9, %v6994_v62 }
 0x195   :  { %v821_v17 = vpack.c.bf16 %v777_v14, %v776_v6  ;;  %v619_v18 = vpop.f32.mrb[80].mxu0 }
 0x196   :  { %v7001_v19 = vadd.f32 %v619_v18, %v6768_v50  ;;  %v621_v21 = vpop.f32.mrb[81].mxu0 }
 0x197   :  { %5648 = vmatmul.mubr.msk.bf16.gmra.mrb[36].mxu1 %vm882_vm0, %v821_v17  ;;  %v622_v25 = vadd.f32 %v621_v21, %v6770_v51  ;;  %v623_v31 = vpop.f32.mrb[82].mxu0 }
 0x198   :  { %11360 = vst [vmem:[#allocation42_spill] sm:$0xff] %v7001_v19  ;;  %v7005_v32 = vadd.f32 %v623_v31, %v6768_v50  ;;  %v625_v33 = vpop.f32.mrb[83].mxu0 }
 0x199   :  { %v778_v36 = vmul.f32 %v622_v25, %v7001_v19  ;;  %v626_v39 = vadd.f32 %v625_v33, %v6770_v51 }
 0x19a   :  { %11361 = vst [vmem:[#allocation43_spill] sm:$0xff] %v7005_v32 }
 0x19b   :  { %v779_v44 = vmul.f32 %v626_v39, %v7005_v32 }
 0x19d   :  { %v629_v43 = vpop.f32.mrb[84].mxu0  ;;  %v822_v61 = vpack.c.bf16 %v779_v44, %v778_v36 }
 0x19e   :  { %v7011_v46 = vadd.f32 %v629_v43, %v6768_v50  ;;  %v631_v52 = vpop.f32.mrb[85].mxu0 }
 0x19f   :  { %v632_v56 = vadd.f32 %v631_v52, %v6770_v51  ;;  %v633_v58 = vpop.f32.mrb[86].mxu0  ;;  %5651 = vmatprep.mubr.msk.bf16.mxu1 %vm882_vm0, %v822_v61 }
 0x1a0   :  { %11362 = vst [vmem:[#allocation44_spill] sm:$0xff] %v7011_v46  ;;  %v7015_v4 = vadd.f32 %v633_v58, %v6768_v50  ;;  %v635_v6 = vpop.f32.mrb[87].mxu0  ;;  %v5800_v58 = vld [vmem:[%s10973_s0 + $0xc0] sm:$0xff]  }
 0x1a1   :  { %v780_v9 = vmul.f32 %v632_v56, %v7011_v46  ;;  %v636_v14 = vadd.f32 %v635_v6, %v6770_v51  ;;  %658 = vmatmul.mubr.bf16.gmra.mrb[96].mxu0 %v5800_v58 }
 0x1a2   :  { %11363 = vst [vmem:[#allocation45_spill] sm:$0xff] %v7015_v4  ;;  %667 = vmatprep.mubr.bf16.mxu0 %v10978_v1 }
 0x1a3   :  { %v781_v17 = vmul.f32 %v636_v14, %v7015_v4 }
 0x1a5   :  { %v823_v18 = vpack.c.bf16 %v781_v17, %v780_v9 }
 0x1a7   :  { %5652 = vmatmul.mubr.msk.bf16.gmra.mrb[40].mxu1 %vm882_vm0, %v823_v18 }
 0x1da   :  { %v7022_v21 = vpop.f32.mrb[0].mxu1 }
 0x1db   :  { %v7024_v25 = vpop.f32.mrb[1].mxu1  ;;  %v2044_v31 = vsel %vm2037_vm1, %v7022_v21, -inf  ;;  %v1275_v33 = vsel %vm1268_vm2, %v7022_v21, -inf  ;;  %v3325_v43 = vsel %vm3318_vm3, %v7022_v21, -inf }
 0x1dc   :  { %2045 = vmax.xlane.f32.xlu0 %v2044_v31  ;;  %1276 = vmax.xlane.f32.xlu1 %v1275_v33  ;;  %v7030_v36 = vpop.f32.mrb[2].mxu1  ;;  %v1269_v52 = vsel %vm1268_vm2, %v7024_v25, -inf  ;;  %v2038_v61 = vsel %vm2037_vm1, %v7024_v25, -inf  ;;  %v3319_v17 = vsel %vm3318_vm3, %v7024_v25, -inf }
 0x1dd   :  { %v7032_v39 = vpop.f32.mrb[3].mxu1  ;;  %v1278_v44 = vsel %vm1268_vm2, %v7030_v36, -inf  ;;  %v2047_v56 = vsel %vm2037_vm1, %v7030_v36, -inf }
 0x1de   :  { %v2041_v6 = vsel %vm2037_vm1, %v7032_v39, -inf  ;;  %v3322_v18 = vsel %vm3318_vm3, %v7032_v39, -inf }
 0x1e0   :  { %3326 = vmax.xlane.f32.xlu0 %v3325_v43  ;;  %1279 = vmax.xlane.f32.xlu1 %v1278_v44  ;;  %v5801_v43 = vld [vmem:[%s10973_s0 + $0xc8] sm:$0xff]   ;;  %v3328_v44 = vsel %vm3318_vm3, %v7030_v36, -inf }
 0x1e1   :  { %668 = vmatmul.mubr.bf16.gmra.mrb[100].mxu0 %v5801_v43 }
 0x1e2   :  { %677 = vmatprep.mubr.bf16.mxu0 %v10978_v1 }
 0x1e4   :  { %1270 = vmax.xlane.f32.xlu0 %v1269_v52  ;;  %2048 = vmax.xlane.f32.xlu1 %v2047_v56  ;;  %v1272_v56 = vsel %vm1268_vm2, %v7032_v39, -inf }
 0x1e8   :  { %2039 = vmax.xlane.f32.xlu0 %v2038_v61  ;;  %2042 = vmax.xlane.f32.xlu1 %v2041_v6 }
 0x1ea   :  { %v7050_v9 = vpop.f32.mrb[4].mxu1 }
 0x1eb   :  { %v7052_v14 = vpop.f32.mrb[5].mxu1  ;;  %v1287_v61 = vsel %vm1268_vm2, %v7050_v9, -inf }
 0x1ec   :  { %3320 = vmax.xlane.f32.xlu0 %v3319_v17  ;;  %3323 = vmax.xlane.f32.xlu1 %v3322_v18  ;;  %v7058_v31 = vpop.f32.mrb[6].mxu1  ;;  %v2056_v18 = vsel %vm2037_vm1, %v7050_v9, -inf }
 0x1ed   :  { %v7060_v33 = vpop.f32.mrb[7].mxu1  ;;  %v1290_v52 = vsel %vm1268_vm2, %v7058_v31, -inf  ;;  %v2059_v58 = vsel %vm2037_vm1, %v7058_v31, -inf  ;;  %v3340_v6 = vsel %vm3318_vm3, %v7058_v31, -inf }
 0x1ee   :  { %v1284_v43 = vsel %vm1268_vm2, %v7060_v33, -inf  ;;  %v3334_v1 = vsel %vm3318_vm3, %v7060_v33, -inf }
 0x1f0   :  { %3329 = vmax.xlane.f32.xlu0 %v3328_v44  ;;  %1291 = vmax.xlane.f32.xlu1 %v1290_v52 }
 0x1f4   :  { %1273 = vmax.xlane.f32.xlu0 %v1272_v56  ;;  %2060 = vmax.xlane.f32.xlu1 %v2059_v58  ;;  %v3337_v58 = vsel %vm3318_vm3, %v7050_v9, -inf }
 0x1f8   :  { %1288 = vmax.xlane.f32.xlu0 %v1287_v61  ;;  %3341 = vmax.xlane.f32.xlu1 %v3340_v6  ;;  %v2053_v61 = vsel %vm2037_vm1, %v7060_v33, -inf  ;;  %v1281_v6 = vsel %vm1268_vm2, %v7052_v14, -inf }
 0x1fa   :  { %v7078_v17 = vpop.f32.mrb[8].mxu1 }
 0x1fb   :  { %v7084_v44 = vpop.f32.mrb[9].mxu1  ;;  %v2068_v62 = vsel %vm2037_vm1, %v7078_v17, -inf }
 0x1fc   :  { %2057 = vmax.xlane.f32.xlu0 %v2056_v18  ;;  %1285 = vmax.xlane.f32.xlu1 %v1284_v43  ;;  %v7086_v52 = vpop.f32.mrb[10].mxu1  ;;  %v2050_v18 = vsel %vm2037_vm1, %v7052_v14, -inf  ;;  %v3343_v11 = vsel %vm3318_vm3, %v7084_v44, -inf }
 0x1fd   :  { %v7088_v56 = vpop.f32.mrb[11].mxu1  ;;  %v1302_v43 = vsel %vm1268_vm2, %v7086_v52, -inf }
 0x1fe   :  { %v1296_v46 = vsel %vm1268_vm2, %v7088_v56, -inf }
 0x200   :  { %3338 = vmax.xlane.f32.xlu0 %v3337_v58  ;;  %2054 = vmax.xlane.f32.xlu1 %v2053_v61  ;;  %v3331_v58 = vsel %vm3318_vm3, %v7052_v14, -inf  ;;  %v2071_v61 = vsel %vm2037_vm1, %v7086_v52, -inf }
 0x204   :  { %1282 = vmax.xlane.f32.xlu0 %v1281_v6  ;;  %3335 = vmax.xlane.f32.xlu1 %v3334_v1 }
 0x208   :  { %2051 = vmax.xlane.f32.xlu0 %v2050_v18  ;;  %1303 = vmax.xlane.f32.xlu1 %v1302_v43  ;;  %v1299_v18 = vsel %vm1268_vm2, %v7078_v17, -inf  ;;  %v3352_v43 = vsel %vm3318_vm3, %v7086_v52, -inf }
 0x20a   :  { %v7102_v4 = vpop.f32.mrb[12].mxu1 }
 0x20b   :  { %v7108_v32 = vpop.f32.mrb[13].mxu1 }
 0x20c   :  { %3332 = vmax.xlane.f32.xlu0 %v3331_v58  ;;  %2072 = vmax.xlane.f32.xlu1 %v2071_v61  ;;  %v7110_v1 = vpop.f32.mrb[14].mxu1  ;;  %v3349_v58 = vsel %vm3318_vm3, %v7078_v17, -inf  ;;  %v2065_v61 = vsel %vm2037_vm1, %v7088_v56, -inf  ;;  %v1305_v28 = vsel %vm1268_vm2, %v7108_v32, -inf  ;;  %v2074_v40 = vsel %vm2037_vm1, %v7108_v32, -inf }
 0x20d   :  { %v7112_v6 = vpop.f32.mrb[15].mxu1  ;;  %v2083_v55 = vsel %vm2037_vm1, %v7110_v1, -inf }
 0x20e   :  { %11364 = vst [vmem:[#allocation46_spill] sm:$0xff] %v7112_v6  ;;  %v3358_v3 = vsel %vm3318_vm3, %v7112_v6, -inf }
 0x210   :  { %1300 = vmax.xlane.f32.xlu0 %v1299_v18  ;;  %3353 = vmax.xlane.f32.xlu1 %v3352_v43  ;;  %v1293_v18 = vsel %vm1268_vm2, %v7084_v44, -inf  ;;  %v3346_v43 = vsel %vm3318_vm3, %v7088_v56, -inf }
 0x214   :  { %2069 = vmax.xlane.f32.xlu0 %v2068_v62  ;;  %1297 = vmax.xlane.f32.xlu1 %v1296_v46 }
 0x218   :  { %3350 = vmax.xlane.f32.xlu0 %v3349_v58  ;;  %2066 = vmax.xlane.f32.xlu1 %v2065_v61  ;;  %v2062_v58 = vsel %vm2037_vm1, %v7084_v44, -inf  ;;  %v1314_v61 = vsel %vm1268_vm2, %v7110_v1, -inf }
 0x21a   :  { %v7126_v35 = vpop.f32.mrb[16].mxu1 }
 0x21b   :  { %11365 = vst [vmem:[#allocation47_spill] sm:$0xff] %v7126_v35  ;;  %v7132_v19 = vpop.f32.mrb[17].mxu1 }
 0x21c   :  { %11366 = vst [vmem:[#allocation48_spill] sm:$0xff] %v7132_v19  ;;  %1294 = vmax.xlane.f32.xlu0 %v1293_v18  ;;  %3347 = vmax.xlane.f32.xlu1 %v3346_v43  ;;  %v7134_v62 = vpop.f32.mrb[18].mxu1  ;;  %v1311_v18 = vsel %vm1268_vm2, %v7102_v4, -inf  ;;  %v3364_v43 = vsel %vm3318_vm3, %v7110_v1, -inf }
 0x21d   :  { %11367 = vst [vmem:[#allocation49_spill] sm:$0xff] %v7134_v62  ;;  %v7136_v46 = vpop.f32.mrb[19].mxu1  ;;  %v1326_v47 = vsel %vm1268_vm2, %v7134_v62, -inf }
 0x21e   :  { %11368 = vst [vmem:[#allocation50_spill] sm:$0xff] %v7136_v46 }
 0x220   :  { %2063 = vmax.xlane.f32.xlu0 %v2062_v58  ;;  %1315 = vmax.xlane.f32.xlu1 %v1314_v61  ;;  %v2080_v58 = vsel %vm2037_vm1, %v7102_v4, -inf  ;;  %v1308_v61 = vsel %vm1268_vm2, %v7112_v6, -inf }
 0x224   :  { %3344 = vmax.xlane.f32.xlu0 %v3343_v11  ;;  %2084 = vmax.xlane.f32.xlu1 %v2083_v55 }
 0x228   :  { %1312 = vmax.xlane.f32.xlu0 %v1311_v18  ;;  %3365 = vmax.xlane.f32.xlu1 %v3364_v43  ;;  %v3361_v18 = vsel %vm3318_vm3, %v7102_v4, -inf  ;;  %v2077_v43 = vsel %vm2037_vm1, %v7112_v6, -inf }
 0x22a   :  { %v7150_v48 = vpop.f32.mrb[20].mxu1 }
 0x22b   :  { %11369 = vst [vmem:[#allocation51_spill] sm:$0xff] %v7150_v48  ;;  %v7156_v26 = vpop.f32.mrb[21].mxu1 }
 0x22c   :  { %11370 = vst [vmem:[#allocation52_spill] sm:$0xff] %v7156_v26  ;;  %2081 = vmax.xlane.f32.xlu0 %v2080_v58  ;;  %1309 = vmax.xlane.f32.xlu1 %v1308_v61  ;;  %v7158_v11 = vpop.f32.mrb[22].mxu1  ;;  %v639_v58 = vpop.f32.mrb[88].mxu0  ;;  %v1329_v42 = vsel %vm1268_vm2, %v7156_v26, -inf  ;;  %v3379_v53 = vsel %vm3318_vm3, %v7156_v26, -inf }
 0x22d   :  { %11371 = vst [vmem:[#allocation53_spill] sm:$0xff] %v7158_v11  ;;  %v7160_v55 = vpop.f32.mrb[23].mxu1  ;;  %v641_v61 = vpop.f32.mrb[89].mxu0 }
 0x22e   :  { %11372 = vst [vmem:[#allocation54_spill] sm:$0xff] %v7160_v55  ;;  %v643_v8 = vpop.f32.mrb[90].mxu0  ;;  %v3382_v7 = vsel %vm3318_vm3, %v7160_v55, -inf }
 0x22f   :  { %v645_v20 = vpop.f32.mrb[91].mxu0  ;;  %v7179_v30 = vadd.f32 %v643_v8, %v6768_v50  ;;  %v2095_v8 = vsel %vm2037_vm1, %v7134_v62, -inf }
 0x230   :  { %3362 = vmax.xlane.f32.xlu0 %v3361_v18  ;;  %2078 = vmax.xlane.f32.xlu1 %v2077_v43  ;;  %v7175_v18 = vadd.f32 %v639_v58, %v6768_v50  ;;  %v642_v43 = vadd.f32 %v641_v61, %v6770_v51  ;;  %v3355_v58 = vsel %vm3318_vm3, %v7108_v32, -inf }
 0x231   :  { %11374 = vst [vmem:[#allocation56_spill] sm:$0xff] %v7179_v30 }
 0x232   :  { %11373 = vst [vmem:[#allocation55_spill] sm:$0xff] %v7175_v18  ;;  %v782_v63 = vmul.f32 %v642_v43, %v7175_v18 }
 0x234   :  { %1306 = vmax.xlane.f32.xlu0 %v1305_v28  ;;  %3359 = vmax.xlane.f32.xlu1 %v3358_v3  ;;  %v646_v28 = vadd.f32 %v645_v20, %v6770_v51  ;;  %v649_v3 = vpop.f32.mrb[92].mxu0 }
 0x235   :  { %v651_v41 = vpop.f32.mrb[93].mxu0  ;;  %v7195_v43 = vadd.f32 %v649_v3, %v6768_v50 }
 0x236   :  { %v783_v13 = vmul.f32 %v646_v28, %v7179_v30  ;;  %v653_v22 = vpop.f32.mrb[94].mxu0  ;;  %v652_v30 = vadd.f32 %v651_v41, %v6770_v51  ;;  %v2092_v41 = vsel %vm2037_vm1, %v7126_v35, -inf }
 0x237   :  { %11378 = vst [vmem:[#allocation60_spill] sm:$0xff] %v7195_v43  ;;  %v7202_v18 = vadd.f32 %v653_v22, %v6768_v50  ;;  %v1320_v22 = vsel %vm1268_vm2, %v7136_v46, -inf }
 0x238   :  { %2075 = vmax.xlane.f32.xlu0 %v2074_v40  ;;  %1327 = vmax.xlane.f32.xlu1 %v1326_v47  ;;  %v824_v20 = vpack.c.bf16 %v783_v13, %v782_v63  ;;  %v655_v40 = vpop.f32.mrb[95].mxu0  ;;  %v1323_v13 = vsel %vm1268_vm2, %v7126_v35, -inf  ;;  %v3376_v63 = vsel %vm3318_vm3, %v7134_v62, -inf }
 0x239   :  { %11380 = vst [vmem:[#allocation62_spill] sm:$0xff] %v7202_v18  ;;  %v656_v3 = vadd.f32 %v655_v40, %v6770_v51  ;;  %v2089_v40 = vsel %vm2037_vm1, %v7136_v46, -inf }
 0x23a   :  { %v7184_v59 = vpop.f32.mrb[24].mxu1  ;;  %5655 = vmatprep.mubr.msk.bf16.mxu1 %vm882_vm0, %v824_v20 }
 0x23b   :  { %11375 = vst [vmem:[#allocation57_spill] sm:$0xff] %v7184_v59  ;;  %v7190_v61 = vpop.f32.mrb[25].mxu1  ;;  %v1347_v24 = vsel %vm1268_vm2, %v7184_v59, -inf  ;;  %v2116_v60 = vsel %vm2037_vm1, %v7184_v59, -inf  ;;  %v3397_v37 = vsel %vm3318_vm3, %v7184_v59, -inf }
 0x23c   :  { %11376 = vst [vmem:[#allocation58_spill] sm:$0xff] %v7190_v61  ;;  %3356 = vmax.xlane.f32.xlu0 %v3355_v58  ;;  %2096 = vmax.xlane.f32.xlu1 %v2095_v8  ;;  %v7192_v47 = vpop.f32.mrb[26].mxu1  ;;  %v784_v58 = vmul.f32 %v652_v30, %v7195_v43  ;;  %v785_v8 = vmul.f32 %v656_v3, %v7202_v18  ;;  %v3373_v30 = vsel %vm3318_vm3, %v7126_v35, -inf  ;;  %v1341_v34 = vsel %vm1268_vm2, %v7190_v61, -inf }
 0x23d   :  { %11377 = vst [vmem:[#allocation59_spill] sm:$0xff] %v7192_v47  ;;  %v7197_v28 = vpop.f32.mrb[27].mxu1  ;;  %v3400_v49 = vsel %vm3318_vm3, %v7192_v47, -inf }
 0x23e   :  { %11379 = vst [vmem:[#allocation61_spill] sm:$0xff] %v7197_v28  ;;  %v825_v20 = vpack.c.bf16 %v785_v8, %v784_v58  ;;  %v3370_v58 = vsel %vm3318_vm3, %v7136_v46, -inf  ;;  %v1344_v27 = vsel %vm1268_vm2, %v7197_v28, -inf  ;;  %v2113_v45 = vsel %vm2037_vm1, %v7197_v28, -inf }
 0x23f   :  { %v3394_v5 = vsel %vm3318_vm3, %v7197_v28, -inf }
 0x240   :  { %1324 = vmax.xlane.f32.xlu0 %v1323_v13  ;;  %3377 = vmax.xlane.f32.xlu1 %v3376_v63  ;;  %v1317_v63 = vsel %vm1268_vm2, %v7132_v19, -inf }
 0x241   :  { %5656 = vmatmul.mubr.msk.bf16.gmra.mrb[44].mxu1 %vm882_vm0, %v825_v20  ;;  %v1338_v20 = vsel %vm1268_vm2, %v7158_v11, -inf }
 0x244   :  { %2093 = vmax.xlane.f32.xlu0 %v2092_v41  ;;  %1321 = vmax.xlane.f32.xlu1 %v1320_v22  ;;  %v2086_v22 = vsel %vm2037_vm1, %v7132_v19, -inf }
 0x248   :  { %3374 = vmax.xlane.f32.xlu0 %v3373_v30  ;;  %2090 = vmax.xlane.f32.xlu1 %v2089_v40  ;;  %v3367_v30 = vsel %vm3318_vm3, %v7132_v19, -inf  ;;  %v2107_v40 = vsel %vm2037_vm1, %v7158_v11, -inf }
 0x24a   :  { %v7220_v13 = vpop.f32.mrb[28].mxu1 }
 0x24b   :  { %11381 = vst [vmem:[#allocation63_spill] sm:$0xff] %v7220_v13  ;;  %v7226_v3 = vpop.f32.mrb[29].mxu1 }
 0x24c   :  { %11382 = vst [vmem:[#allocation64_spill] sm:$0xff] %v7226_v3  ;;  %1318 = vmax.xlane.f32.xlu0 %v1317_v63  ;;  %3371 = vmax.xlane.f32.xlu1 %v3370_v58  ;;  %v7228_v8 = vpop.f32.mrb[30].mxu1  ;;  %v1335_v63 = vsel %vm1268_vm2, %v7150_v48, -inf  ;;  %v3388_v58 = vsel %vm3318_vm3, %v7158_v11, -inf  ;;  %v1353_v54 = vsel %vm1268_vm2, %v7226_v3, -inf }
 0x24d   :  { %11383 = vst [vmem:[#allocation65_spill] sm:$0xff] %v7228_v8  ;;  %v7230_v41 = vpop.f32.mrb[31].mxu1  ;;  %v1362_v23 = vsel %vm1268_vm2, %v7228_v8, -inf  ;;  %v2131_v2 = vsel %vm2037_vm1, %v7228_v8, -inf  ;;  %v3412_v28 = vsel %vm3318_vm3, %v7228_v8, -inf }
 0x24e   :  { %11384 = vst [vmem:[#allocation66_spill] sm:$0xff] %v7230_v41 }
 0x250   :  { %2087 = vmax.xlane.f32.xlu0 %v2086_v22  ;;  %1339 = vmax.xlane.f32.xlu1 %v1338_v20  ;;  %v2104_v22 = vsel %vm2037_vm1, %v7150_v48, -inf  ;;  %v1332_v20 = vsel %vm1268_vm2, %v7160_v55, -inf }
 0x254   :  { %3368 = vmax.xlane.f32.xlu0 %v3367_v30  ;;  %2108 = vmax.xlane.f32.xlu1 %v2107_v40 }
 0x258   :  { %1336 = vmax.xlane.f32.xlu0 %v1335_v63  ;;  %3389 = vmax.xlane.f32.xlu1 %v3388_v58  ;;  %v3385_v63 = vsel %vm3318_vm3, %v7150_v48, -inf  ;;  %v2101_v58 = vsel %vm2037_vm1, %v7160_v55, -inf  ;;  %v3406_v48 = vsel %vm3318_vm3, %v7230_v41, -inf }
 0x25a   :  { %v7244_v18 = vpop.f32.mrb[32].mxu1 }
 0x25b   :  { %11385 = vst [vmem:[#allocation67_spill] sm:$0xff] %v7244_v18  ;;  %v7250_v43 = vpop.f32.mrb[33].mxu1  ;;  %v1371_v46 = vsel %vm1268_vm2, %v7244_v18, -inf }
 0x25c   :  { %11386 = vst [vmem:[#allocation68_spill] sm:$0xff] %v7250_v43  ;;  %2105 = vmax.xlane.f32.xlu0 %v2104_v22  ;;  %1333 = vmax.xlane.f32.xlu1 %v1332_v20  ;;  %v7252_v30 = vpop.f32.mrb[34].mxu1  ;;  %v2098_v22 = vsel %vm2037_vm1, %v7156_v26, -inf  ;;  %v1350_v20 = vsel %vm1268_vm2, %v7192_v47, -inf  ;;  %v3409_v26 = vsel %vm3318_vm3, %v7220_v13, -inf }
 0x25d   :  { %11387 = vst [vmem:[#allocation69_spill] sm:$0xff] %v7252_v30  ;;  %v7254_v40 = vpop.f32.mrb[35].mxu1 }
 0x25e   :  { %11388 = vst [vmem:[#allocation70_spill] sm:$0xff] %v7254_v40 }
 0x260   :  { %3386 = vmax.xlane.f32.xlu0 %v3385_v63  ;;  %2102 = vmax.xlane.f32.xlu1 %v2101_v58 }
 0x264   :  { %1330 = vmax.xlane.f32.xlu0 %v1329_v42  ;;  %3383 = vmax.xlane.f32.xlu1 %v3382_v7  ;;  %v2119_v42 = vsel %vm2037_vm1, %v7192_v47, -inf  ;;  %v1356_v47 = vsel %vm1268_vm2, %v7230_v41, -inf }
 0x268   :  { %2099 = vmax.xlane.f32.xlu0 %v2098_v22  ;;  %1351 = vmax.xlane.f32.xlu1 %v1350_v20 }
 0x269   :  { %v7268_v29 = vpop.xlane.xlu0 %2045  ;;  %v7270_v63 = vpop.xlane.xlu1 %1276 }
 0x26a   :  { %v7272_v58 = vpop.f32.mrb[36].mxu1 }
 0x26b   :  { %11389 = vst [vmem:[#allocation71_spill] sm:$0xff] %v7272_v58  ;;  %v7278_v7 = vpop.f32.mrb[37].mxu1 }
 0x26c   :  { %11390 = vst [vmem:[#allocation72_spill] sm:$0xff] %v7278_v7  ;;  %3380 = vmax.xlane.f32.xlu0 %v3379_v53  ;;  %2120 = vmax.xlane.f32.xlu1 %v2119_v42  ;;  %v7280_v15 = vpop.f32.mrb[38].mxu1  ;;  %v5802_v53 = vld [vmem:[%s10973_s0 + $0xd0] sm:$0xff]  }
 0x26d   :  { %11391 = vst [vmem:[#allocation73_spill] sm:$0xff] %v7280_v15  ;;  %v7282_v22 = vpop.xlane.xlu0 %3326  ;;  %v7284_v20 = vpop.xlane.xlu1 %1279  ;;  %678 = vmatmul.mubr.bf16.gmra.mrb[104].mxu0 %v5802_v53  ;;  %v2110_v53 = vsel %vm2037_vm1, %v7190_v61, -inf }
 0x26e   :  { %v7288_v0 = vpop.f32.mrb[39].mxu1  ;;  %687 = vmatprep.mubr.bf16.mxu0 %v11393_v38 }
 0x26f   :  { %11392 = vst [vmem:[#allocation74_spill] sm:$0xff] %v7288_v0 }
 0x270   :  { %1348 = vmax.xlane.f32.xlu0 %v1347_v24  ;;  %3401 = vmax.xlane.f32.xlu1 %v3400_v49 }
 0x271   :  { %v7297_v42 = vpop.xlane.xlu0 %1270  ;;  %v7299_v10 = vpop.xlane.xlu1 %2048 }
 0x274   :  { %2117 = vmax.xlane.f32.xlu0 %v2116_v60  ;;  %1345 = vmax.xlane.f32.xlu1 %v1344_v27 }
 0x275   :  { %v7308_v24 = vpop.xlane.xlu0 %2039  ;;  %v7310_v49 = vpop.xlane.xlu1 %2042  ;;  %688 = vmatmul.mubr.bf16.gmra.mrb[108].mxu0 %v5803_v16  ;;  %v3391_v16 = vsel %vm3318_vm3, %v7190_v61, -inf }
 0x276   :  { %697 = vmatprep.mubr.bf16.mxu0 %v11393_v38 }
 0x278   :  { %3398 = vmax.xlane.f32.xlu0 %v3397_v37  ;;  %2114 = vmax.xlane.f32.xlu1 %v2113_v45 }
 0x279   :  { %v7321_v27 = vpop.xlane.xlu0 %3320  ;;  %v7323_v60 = vpop.xlane.xlu1 %3323 }
 0x27a   :  { %v7378_v59 = vpop.f32.mrb[40].mxu1 }
 0x27b   :  { %11394 = vst [vmem:[#allocation75_spill] sm:$0xff] %v7378_v59 }
 0x27c   :  { %1342 = vmax.xlane.f32.xlu0 %v1341_v34  ;;  %3395 = vmax.xlane.f32.xlu1 %v3394_v5  ;;  %v1359_v34 = vsel %vm1268_vm2, %v7220_v13, -inf  ;;  %v2128_v5 = vsel %vm2037_vm1, %v7220_v13, -inf }
 0x27d   :  { %v7332_v37 = vpop.xlane.xlu0 %3329  ;;  %v7334_v45 = vpop.xlane.xlu1 %1291 }
 0x280   :  { %2111 = vmax.xlane.f32.xlu0 %v2110_v53  ;;  %1363 = vmax.xlane.f32.xlu1 %v1362_v23 }
 0x281   :  { %v7342_v57 = vpop.xlane.xlu0 %1273  ;;  %v7344_v12 = vpop.xlane.xlu1 %2060 }
 0x284   :  { %3392 = vmax.xlane.f32.xlu0 %v3391_v16  ;;  %2132 = vmax.xlane.f32.xlu1 %v2131_v2 }
 0x285   :  { %v7354_v53 = vpop.xlane.xlu0 %1288  ;;  %v7356_v23 = vpop.xlane.xlu1 %3341 }
 0x288   :  { %1360 = vmax.xlane.f32.xlu0 %v1359_v34  ;;  %3413 = vmax.xlane.f32.xlu1 %v3412_v28  ;;  %v7380_v28 = vpop.f32.mrb[41].mxu1 }
 0x289   :  { %v7366_v16 = vpop.xlane.xlu0 %2057  ;;  %v7368_v2 = vpop.xlane.xlu1 %1285  ;;  %11395 = vst [vmem:[#allocation76_spill] sm:$0xff] %v7380_v28 }
 0x28a   :  { %v7390_v55 = vpop.f32.mrb[42].mxu1 }
 0x28b   :  { %11396 = vst [vmem:[#allocation77_spill] sm:$0xff] %v7390_v55 }
 0x28c   :  { %2129 = vmax.xlane.f32.xlu0 %v2128_v5  ;;  %1357 = vmax.xlane.f32.xlu1 %v1356_v47  ;;  %v2125_v47 = vsel %vm2037_vm1, %v7230_v41, -inf  ;;  %v7396_v5 = vpop.f32.mrb[43].mxu1  ;;  %v1368_v41 = vsel %vm1268_vm2, %v7254_v40, -inf }
 0x28d   :  { %v7382_v34 = vpop.xlane.xlu0 %3338  ;;  %v7384_v8 = vpop.xlane.xlu1 %2054  ;;  %11397 = vst [vmem:[#allocation78_spill] sm:$0xff] %v7396_v5 }
 0x290   :  { %3410 = vmax.xlane.f32.xlu0 %v3409_v26  ;;  %2126 = vmax.xlane.f32.xlu1 %v2125_v47  ;;  %v2122_v26 = vsel %vm2037_vm1, %v7226_v3, -inf  ;;  %v1374_v47 = vsel %vm1268_vm2, %v7252_v30, -inf }
 0x291   :  { %v7398_v11 = vpop.xlane.xlu0 %1282 }
 0x294   :  { %1354 = vmax.xlane.f32.xlu0 %v1353_v54  ;;  %3407 = vmax.xlane.f32.xlu1 %v3406_v48  ;;  %v3403_v54 = vsel %vm3318_vm3, %v7226_v3, -inf  ;;  %v2143_v48 = vsel %vm2037_vm1, %v7252_v30, -inf  ;;  %v3513_v3 = vsub.f32 %v7022_v21, %v7282_v22 }
 0x295   :  { %v7406_v13 = vpop.xlane.xlu0 %2051 }
 0x298   :  { %2123 = vmax.xlane.f32.xlu0 %v2122_v26  ;;  %1375 = vmax.xlane.f32.xlu1 %v1374_v47  ;;  %v3424_v26 = vsel %vm3318_vm3, %v7252_v30, -inf  ;;  %v2140_v47 = vsel %vm2037_vm1, %v7244_v18, -inf }
 0x299   :  { %v7414_v61 = vpop.xlane.xlu0 %3332 }
 0x29c   :  { %3404 = vmax.xlane.f32.xlu0 %v3403_v54  ;;  %2144 = vmax.xlane.f32.xlu1 %v2143_v48  ;;  %v3421_v54 = vsel %vm3318_vm3, %v7244_v18, -inf  ;;  %v2137_v48 = vsel %vm2037_vm1, %v7254_v40, -inf }
 0x2a0   :  { %1372 = vmax.xlane.f32.xlu0 %v1371_v46  ;;  %3425 = vmax.xlane.f32.xlu1 %v3424_v26  ;;  %v1365_v46 = vsel %vm1268_vm2, %v7250_v43, -inf  ;;  %v3418_v26 = vsel %vm3318_vm3, %v7254_v40, -inf  ;;  %v1380_v40 = vsel %vm1268_vm2, %v7288_v0, -inf }
 0x2a4   :  { %2141 = vmax.xlane.f32.xlu0 %v2140_v47  ;;  %1369 = vmax.xlane.f32.xlu1 %v1368_v41  ;;  %v2134_v47 = vsel %vm2037_vm1, %v7250_v43, -inf  ;;  %v1386_v41 = vsel %vm1268_vm2, %v7280_v15, -inf }
 0x2a8   :  { %3422 = vmax.xlane.f32.xlu0 %v3421_v54  ;;  %2138 = vmax.xlane.f32.xlu1 %v2137_v48  ;;  %v3415_v54 = vsel %vm3318_vm3, %v7250_v43, -inf  ;;  %v2155_v48 = vsel %vm2037_vm1, %v7280_v15, -inf  ;;  %v3433_v43 = vsel %vm3318_vm3, %v7272_v58, -inf }
 0x2ac   :  { %1366 = vmax.xlane.f32.xlu0 %v1365_v46  ;;  %3419 = vmax.xlane.f32.xlu1 %v3418_v26  ;;  %v1383_v46 = vsel %vm1268_vm2, %v7272_v58, -inf  ;;  %v3436_v26 = vsel %vm3318_vm3, %v7280_v15, -inf }
 0x2b0   :  { %2135 = vmax.xlane.f32.xlu0 %v2134_v47  ;;  %1387 = vmax.xlane.f32.xlu1 %v1386_v41  ;;  %v1463_v47 = vsub.f32 %v7022_v21, %v7270_v63  ;;  %v2152_v41 = vsel %vm2037_vm1, %v7272_v58, -inf  ;;  %v1377_v58 = vsel %vm1268_vm2, %v7278_v7, -inf }
 0x2b4   :  { %3416 = vmax.xlane.f32.xlu0 %v3415_v54  ;;  %2156 = vmax.xlane.f32.xlu1 %v2155_v48  ;;  %v1529_v54 = vmul.f32 1.442695, %v1463_v47  ;;  %v659_v48 = vpop.f32.mrb[96].mxu0 }
 0x2b5   :  { %v661_v63 = vpop.f32.mrb[97].mxu0 }
 0x2b6   :  { %v662_v15 = vadd.f32 %v661_v63, %v6770_v51  ;;  %v663_v30 = vpop.f32.mrb[98].mxu0  ;;  %5808 = vpow2.f32 %v1529_v54 }
 0x2b7   :  { %v665_v47 = vpop.f32.mrb[99].mxu0 }
 0x2b8   :  { %1384 = vmax.xlane.f32.xlu0 %v1383_v46  ;;  %3437 = vmax.xlane.f32.xlu1 %v3436_v26  ;;  %v2149_v46 = vsel %vm2037_vm1, %v7288_v0, -inf  ;;  %v7461_v26 = vadd.f32 %v659_v48, %v6768_v50  ;;  %v3430_v48 = vsel %vm3318_vm3, %v7288_v0, -inf  ;;  %v669_v63 = vpop.f32.mrb[100].mxu0 }
 0x2b9   :  { %v671_v18 = vpop.f32.mrb[101].mxu0 }
 0x2ba   :  { %11398 = vst [vmem:[#allocation79_spill] sm:$0xff] %v7461_v26  ;;  %v672_v19 = vadd.f32 %v671_v18, %v6770_v51  ;;  %v673_v0 = vpop.f32.mrb[102].mxu0  ;;  %v2233_v18 = vsub.f32 %v7030_v36, %v7299_v10 }
 0x2bc   :  { %2153 = vmax.xlane.f32.xlu0 %v2152_v41  ;;  %1381 = vmax.xlane.f32.xlu1 %v1380_v40  ;;  %v7465_v41 = vadd.f32 %v663_v30, %v6768_v50  ;;  %v2232_v40 = vsub.f32 %v7022_v21, %v7268_v29  ;;  %v7476_v30 = vadd.f32 %v669_v63, %v6768_v50  ;;  %v3579_v21 = vmul.f32 1.442695, %v3513_v3  ;;  %v7500_v3 = vpop.xlane.xlu1 %3335 }
 0x2be   :  { %11399 = vst [vmem:[#allocation80_spill] sm:$0xff] %v7465_v41  ;;  %11400 = vst [vmem:[#allocation81_spill] sm:$0xff] %v7476_v30  ;;  %v2298_v54 = vmul.f32 1.442695, %v2232_v40  ;;  %v788_v63 = vmul.f32 %v672_v19, %v7476_v30  ;;  %v3427_v40 = vsel %vm3318_vm3, %v7278_v7, -inf }
 0x2bf   :  { %v2300_v19 = vmul.f32 1.442695, %v2233_v18 }
 0x2c0   :  { %3434 = vmax.xlane.f32.xlu0 %v3433_v43  ;;  %2150 = vmax.xlane.f32.xlu1 %v2149_v46  ;;  %v786_v43 = vmul.f32 %v662_v15, %v7461_v26  ;;  %v666_v46 = vadd.f32 %v665_v47, %v6770_v51  ;;  %v2146_v15 = vsel %vm2037_vm1, %v7278_v7, -inf  ;;  %5810 = vpow2.f32 %v2298_v54 }
 0x2c1   :  { %5812 = vpow2.f32 %v3579_v21 }
 0x2c2   :  { %v787_v29 = vmul.f32 %v666_v46, %v7465_v41  ;;  %5814 = vpow2.f32 %v2300_v19  ;;  %v11414_v41 = vsub.f32 %v7032_v39, %v7323_v60  ;;  %v1389_v60 = vsel %vm1268_vm2, %v7380_v28, -inf }
 0x2c4   :  { %1378 = vmax.xlane.f32.xlu0 %v1377_v58  ;;  %3431 = vmax.xlane.f32.xlu1 %v3430_v48  ;;  %v826_v47 = vpack.c.bf16 %v787_v29, %v786_v43  ;;  %v7485_v58 = vadd.f32 %v673_v0, %v6768_v50  ;;  %v675_v48 = vpop.f32.mrb[103].mxu0  ;;  %v7495_v0 = vpop.eup %5808  ;;  %v3514_v29 = vsub.f32 %v7030_v36, %v7332_v37  ;;  %v3577_v30 = vmul.f32 1.442695, %v11414_v41 }
 0x2c5   :  { %v676_v46 = vadd.f32 %v675_v48, %v6770_v51  ;;  %11402 = vst [vmem:[#allocation83_spill] sm:$0xff] %v7495_v0  ;;  %v1659_v10 = vsel %vm1268_vm2, %v7495_v0, 0.0  ;;  %v7508_v48 = vpop.xlane.xlu1 %1303  ;;  %v2158_v0 = vsel %vm2037_vm1, %v7380_v28, -inf }
 0x2c6   :  { %11401 = vst [vmem:[#allocation82_spill] sm:$0xff] %v7485_v58  ;;  %5659 = vmatprep.mubr.msk.bf16.mxu1 %vm882_vm0, %v826_v47  ;;  %v3581_v54 = vmul.f32 1.442695, %v3514_v29 }
 0x2c7   :  { %v789_v22 = vmul.f32 %v676_v46, %v7485_v58 }
 0x2c8   :  { %2147 = vmax.xlane.f32.xlu0 %v2146_v15  ;;  %v2230_v15 = vsub.f32 %v7024_v25, %v7308_v24  ;;  %5816 = vpow2.f32 %v3581_v54 }
 0x2c9   :  { %v827_v43 = vpack.c.bf16 %v789_v22, %v788_v63  ;;  %v3511_v63 = vsub.f32 %v7024_v25, %v7321_v27  ;;  %v7518_v21 = vpop.xlane.xlu1 %2072  ;;  %v7530_v27 = vpop.xlane.xlu0 %1300 }
 0x2ca   :  { %v7506_v47 = vpop.eup %5810  ;;  %v2294_v37 = vmul.f32 1.442695, %v2230_v15  ;;  %v5804_v15 = vld [vmem:[%s10973_s0 + $0xe0] sm:$0xff]  }
 0x2cb   :  { %5660 = vmatmul.mubr.msk.bf16.gmra.mrb[48].mxu1 %vm882_vm0, %v827_v43  ;;  %11403 = vst [vmem:[#allocation84_spill] sm:$0xff] %v7506_v47  ;;  %v7514_v46 = vpop.eup %5812  ;;  %v3575_v24 = vmul.f32 1.442695, %v3511_v63  ;;  %698 = vmatmul.mubr.bf16.gmra.mrb[112].mxu0 %v5804_v15 }
 0x2cc   :  { %3428 = vmax.xlane.f32.xlu0 %v3427_v40  ;;  %11404 = vst [vmem:[#allocation85_spill] sm:$0xff] %v7514_v46  ;;  %5818 = vpow2.f32 %v2294_v37  ;;  %v7520_v18 = vpop.eup %5814  ;;  %v11410_v37 = vsub.f32 %v7024_v25, %v7297_v42  ;;  %707 = vmatprep.mubr.bf16.mxu0 %v11393_v38 }
 0x2cd   :  { %11405 = vst [vmem:[#allocation86_spill] sm:$0xff] %v7520_v18  ;;  %5820 = vpow2.f32 %v3575_v24  ;;  %v7526_v40 = vpop.xlane.xlu1 %3353  ;;  %v7538_v29 = vpop.xlane.xlu0 %2069  ;;  %v5805_v24 = vld [vmem:[%s10973_s0 + $0xe8] sm:$0xff]  }
 0x2ce   :  { %v1525_v63 = vmul.f32 1.442695, %v11410_v37 }
 0x2d0   :  { %1660 = vadd.xlane.f32.xlu0 %v1659_v10  ;;  %v11409_v10 = vsub.f32 %v7030_v36, %v7284_v20 }
 0x2d1   :  { %v7555_v58 = vpop.xlane.xlu0 %3350 }
 0x2d2   :  { %v7524_v22 = vpop.eup %5816  ;;  %v1531_v54 = vmul.f32 1.442695, %v11409_v10  ;;  %v7566_v10 = vpop.xlane.xlu1 %1297 }
 0x2d3   :  { %11406 = vst [vmem:[#allocation87_spill] sm:$0xff] %v7524_v22  ;;  %708 = vmatmul.mubr.bf16.gmra.mrb[116].mxu0 %v5805_v24  ;;  %v1395_v24 = vsel %vm1268_vm2, %v7378_v59, -inf }
 0x2d4   :  { %5822 = vpow2.f32 %v1531_v54  ;;  %717 = vmatprep.mubr.bf16.mxu0 %v11393_v38  ;;  %v11413_v54 = vsub.f32 %v7032_v39, %v7310_v49  ;;  %v2164_v49 = vsel %vm2037_vm1, %v7378_v59, -inf }
 0x2d5   :  { %2490 = vrot.lane.b32.xlu1 %v7506_v47, %s6577_s3  ;;  %5824 = vpow2.f32 %v1525_v63  ;;  %v7560_v20 = vpop.xlane.xlu0 %1294 }
 0x2d6   :  { %v7532_v43 = vpop.eup %5818  ;;  %v2296_v15 = vmul.f32 1.442695, %v11413_v54  ;;  %v7584_v54 = vpop.xlane.xlu1 %2066 }
 0x2d7   :  { %11407 = vst [vmem:[#allocation88_spill] sm:$0xff] %v7532_v43  ;;  %v7536_v19 = vpop.eup %5820 }
 0x2d8   :  { %11408 = vst [vmem:[#allocation89_spill] sm:$0xff] %v7536_v19  ;;  %5826 = vpow2.f32 %v2296_v15 }
 0x2d9   :  { %3771 = vrot.lane.b32.xlu1 %v7514_v46, %s6578_s15  ;;  %v7573_v63 = vpop.xlane.xlu0 %2063  ;;  %5828 = vpow2.f32 %v3577_v30  ;;  %v11421_v46 = vsub.f32 %v7050_v9, %v7366_v16 }
 0x2dd   :  { %2492 = vrot.lane.b32.xlu1 %v7520_v18, %s6577_s3  ;;  %v11423_v18 = vsub.f32 %v7050_v9, %v7382_v34 }
 0x2de   :  { %v7558_v36 = vpop.eup %5822 }
 0x2df   :  { %11411 = vst [vmem:[#allocation90_spill] sm:$0xff] %v7558_v36  ;;  %v1662_v25 = vsel %vm1268_vm2, %v7558_v36, 0.0  ;;  %v7564_v42 = vpop.eup %5824  ;;  %v3587_v47 = vmul.f32 1.442695, %v11423_v18 }
 0x2e0   :  { %11412 = vst [vmem:[#allocation91_spill] sm:$0xff] %v7564_v42  ;;  %v1653_v37 = vsel %vm1268_vm2, %v7564_v42, 0.0 }
 0x2e1   :  { %3773 = vrot.lane.b32.xlu1 %v7524_v22, %s6578_s15 }
 0x2e2   :  { %v7588_v26 = vpop.eup %5826 }
 0x2e3   :  { %11415 = vst [vmem:[#allocation92_spill] sm:$0xff] %v7588_v26  ;;  %v7598_v30 = vpop.eup %5828 }
 0x2e4   :  { %11417 = vst [vmem:[#allocation94_spill] sm:$0xff] %v7598_v30 }
 0x2e6   :  { %2486 = vrot.lane.b32.xlu0 %v7532_v43, %s6577_s3 }
 0x2ea   :  { %3767 = vrot.lane.b32.xlu0 %v7536_v19, %s6578_s15  ;;  %v2306_v19 = vmul.f32 1.442695, %v11421_v46 }
 0x2ec   :  { %5830 = vpow2.f32 %v2306_v19  ;;  %v2167_v19 = vsel %vm2037_vm1, %v7390_v55, -inf }
 0x305   :  { %1663 = vadd.xlane.f32.xlu1 %v1662_v25  ;;  %v7580_v25 = vpop.xlane.xlu0 %3344 }
 0x309   :  { %1654 = vadd.xlane.f32.xlu0 %v1653_v37  ;;  %v3445_v37 = vsel %vm3318_vm3, %v7378_v59, -inf  ;;  %v7590_v15 = vpop.xlane.xlu0 %1312 }
 0x30d   :  { %1396 = vmax.xlane.f32.xlu0 %v1395_v24  ;;  %v7600_v24 = vpop.xlane.xlu1 %3347  ;;  %v7606_v36 = vpop.xlane.xlu0 %2081 }
 0x311   :  { %2165 = vmax.xlane.f32.xlu0 %v2164_v49  ;;  %v7616_v22 = vpop.xlane.xlu0 %3362 }
 0x314   :  { %v7596_v41 = vpop.f32.mrb[44].mxu1 }
 0x315   :  { %3446 = vmax.xlane.f32.xlu0 %v3445_v37  ;;  %11416 = vst [vmem:[#allocation93_spill] sm:$0xff] %v7596_v41  ;;  %v7604_v49 = vpop.f32.mrb[45].mxu1  ;;  %v7629_v43 = vpop.xlane.xlu0 %1306 }
 0x316   :  { %2488 = vrot.lane.b32.xlu1 %v7588_v26, %s6577_s3  ;;  %11418 = vst [vmem:[#allocation95_spill] sm:$0xff] %v7604_v49  ;;  %v7608_v37 = vpop.f32.mrb[46].mxu1 }
 0x317   :  { %11419 = vst [vmem:[#allocation96_spill] sm:$0xff] %v7608_v37  ;;  %v7612_v42 = vpop.f32.mrb[47].mxu1 }
 0x318   :  { %11420 = vst [vmem:[#allocation97_spill] sm:$0xff] %v7612_v42 }
 0x319   :  { %1390 = vmax.xlane.f32.xlu0 %v1389_v60  ;;  %v3439_v60 = vsel %vm3318_vm3, %v7380_v28, -inf  ;;  %v7641_v46 = vpop.xlane.xlu0 %2075 }
 0x31a   :  { %3769 = vrot.lane.b32.xlu1 %v7598_v30, %s6578_s15  ;;  %v11422_v30 = vsub.f32 %v7032_v39, %v7342_v57 }
 0x31c   :  { %v1527_v26 = vmul.f32 1.442695, %v11422_v30 }
 0x31d   :  { %2159 = vmax.xlane.f32.xlu0 %v2158_v0  ;;  %v7627_v0 = vpop.xlane.xlu1 %1315 }
 0x31e   :  { %5832 = vpow2.f32 %v1527_v26 }
 0x31f   :  { %5834 = vpow2.f32 %v3587_v47  ;;  %v1398_v47 = vsel %vm1268_vm2, %v7390_v55, -inf }
 0x321   :  { %3440 = vmax.xlane.f32.xlu0 %v3439_v60  ;;  %v7631_v60 = vpop.eup %5830  ;;  %v7635_v16 = vpop.xlane.xlu1 %2084 }
 0x322   :  { %11424 = vst [vmem:[#allocation98_spill] sm:$0xff] %v7631_v60 }
 0x325   :  { %v7647_v26 = vpop.xlane.xlu1 %3365 }
 0x328   :  { %v7637_v57 = vpop.eup %5832 }
 0x329   :  { %11425 = vst [vmem:[#allocation99_spill] sm:$0xff] %v7637_v57  ;;  %v7639_v39 = vpop.eup %5834  ;;  %v1656_v34 = vsel %vm1268_vm2, %v7637_v57, 0.0  ;;  %v7651_v18 = vpop.xlane.xlu1 %1309  ;;  %v11429_v57 = vsub.f32 %v7050_v9, %v7354_v53  ;;  %v1392_v53 = vsel %vm1268_vm2, %v7396_v5, -inf }
 0x32a   :  { %11426 = vst [vmem:[#allocation100_spill] sm:$0xff] %v7639_v39  ;;  %11427 = vst [vmem:[#allocation101_spill] sm:$0xff] %v7651_v18 }
 0x32b   :  { %v1537_v28 = vmul.f32 1.442695, %v11429_v57 }
 0x32d   :  { %v7667_v62 = vpop.xlane.xlu1 %2078  ;;  %5836 = vpow2.f32 %v1537_v28 }
 0x331   :  { %v7678_v6 = vpop.xlane.xlu1 %3359 }
 0x337   :  { %2498 = vrot.lane.b32.xlu0 %v7631_v60, %s6577_s3 }
 0x33b   :  { %3779 = vrot.lane.b32.xlu0 %v7639_v39, %s6578_s15 }
 0x33e   :  { %1657 = vadd.xlane.f32.xlu1 %v1656_v34 }
 0x340   :  { %v679_v30 = vpop.f32.mrb[104].mxu0 }
 0x341   :  { %v7656_v60 = vadd.f32 %v679_v30, %v6768_v50  ;;  %v681_v39 = vpop.f32.mrb[105].mxu0 }
 0x342   :  { %1399 = vmax.xlane.f32.xlu1 %v1398_v47  ;;  %v682_v34 = vadd.f32 %v681_v39, %v6770_v51  ;;  %v683_v59 = vpop.f32.mrb[106].mxu0  ;;  %v3448_v47 = vsel %vm3318_vm3, %v7390_v55, -inf }
 0x343   :  { %11428 = vst [vmem:[#allocation102_spill] sm:$0xff] %v7656_v60  ;;  %v7665_v7 = vadd.f32 %v683_v59, %v6768_v50 }
 0x344   :  { %v790_v30 = vmul.f32 %v682_v34, %v7656_v60 }
 0x345   :  { %11430 = vst [vmem:[#allocation103_spill] sm:$0xff] %v7665_v7 }
 0x346   :  { %2168 = vmax.xlane.f32.xlu1 %v2167_v19  ;;  %v685_v19 = vpop.f32.mrb[107].mxu0 }
 0x347   :  { %v686_v18 = vadd.f32 %v685_v19, %v6770_v51  ;;  %v2161_v19 = vsel %vm2037_vm1, %v7396_v5, -inf }
 0x348   :  { %v689_v9 = vpop.f32.mrb[108].mxu0 }
 0x349   :  { %v791_v57 = vmul.f32 %v686_v18, %v7665_v7  ;;  %v7675_v39 = vadd.f32 %v689_v9, %v6768_v50  ;;  %v691_v59 = vpop.f32.mrb[109].mxu0  ;;  %v5807_v7 = vld [vmem:[%s10973_s0 + $0xf8] sm:$0xff]  }
 0x34a   :  { %3449 = vmax.xlane.f32.xlu1 %v3448_v47  ;;  %v692_v47 = vadd.f32 %v691_v59, %v6770_v51  ;;  %v693_v35 = vpop.f32.mrb[110].mxu0  ;;  %v7691_v59 = vpop.eup %5836 }
 0x34b   :  { %11431 = vst [vmem:[#allocation104_spill] sm:$0xff] %v7675_v39  ;;  %v828_v55 = vpack.c.bf16 %v791_v57, %v790_v30  ;;  %v7681_v34 = vadd.f32 %v693_v35, %v6768_v50  ;;  %v695_v28 = vpop.f32.mrb[111].mxu0  ;;  %11433 = vst [vmem:[#allocation106_spill] sm:$0xff] %v7691_v59  ;;  %v7693_v35 = vpop.xlane.xlu1 %1327 }
 0x34c   :  { %v792_v18 = vmul.f32 %v692_v47, %v7675_v39  ;;  %v696_v9 = vadd.f32 %v695_v28, %v6770_v51  ;;  %v11434_v47 = vsub.f32 %v7058_v31, %v7344_v12  ;;  %v11437_v12 = vsub.f32 %v7052_v14, %v7414_v61 }
 0x34d   :  { %11432 = vst [vmem:[#allocation105_spill] sm:$0xff] %v7681_v34  ;;  %5663 = vmatprep.mubr.msk.bf16.mxu1 %vm882_vm0, %v828_v55  ;;  %v1671_v55 = vsel %vm1268_vm2, %v7691_v59, 0.0 }
 0x34e   :  { %1393 = vmax.xlane.f32.xlu1 %v1392_v53  ;;  %v793_v30 = vmul.f32 %v696_v9, %v7681_v34  ;;  %v3442_v53 = vsel %vm3318_vm3, %v7396_v5, -inf  ;;  %v2308_v28 = vmul.f32 1.442695, %v11434_v47 }
 0x34f   :  { %v7712_v47 = vpop.xlane.xlu1 %2096 }
 0x350   :  { %v829_v57 = vpack.c.bf16 %v793_v30, %v792_v18  ;;  %5838 = vpow2.f32 %v2308_v28  ;;  %v11435_v18 = vsub.f32 %v7058_v31, %v7356_v23  ;;  %v11436_v30 = vsub.f32 %v7052_v14, %v7406_v13 }
 0x352   :  { %2162 = vmax.xlane.f32.xlu1 %v2161_v19  ;;  %5664 = vmatmul.mubr.msk.bf16.gmra.mrb[52].mxu1 %vm882_vm0, %v829_v57  ;;  %v7701_v19 = vpop.xlane.xlu0 %3356  ;;  %v3589_v9 = vmul.f32 1.442695, %v11435_v18  ;;  %v3583_v57 = vmul.f32 1.442695, %v11437_v12  ;;  %v11443_v12 = vsub.f32 %v7052_v14, %v7398_v11 }
 0x353   :  { %v7720_v28 = vpop.xlane.xlu1 %3377 }
 0x354   :  { %5840 = vpow2.f32 %v3589_v9  ;;  %v11442_v9 = vsub.f32 %v7058_v31, %v7334_v45 }
 0x356   :  { %3443 = vmax.xlane.f32.xlu1 %v3442_v53  ;;  %v2302_v53 = vmul.f32 1.442695, %v11436_v30  ;;  %v7724_v13 = vpop.xlane.xlu0 %1324  ;;  %v1539_v30 = vmul.f32 1.442695, %v11442_v9 }
 0x357   :  { %v7759_v14 = vpop.xlane.xlu1 %1321 }
 0x358   :  { %5842 = vpow2.f32 %v2302_v53  ;;  %v5806_v53 = vld [vmem:[%s10973_s0 + $0xf0] sm:$0xff]  }
 0x359   :  { %5844 = vpow2.f32 %v3583_v57  ;;  %718 = vmatmul.mubr.bf16.gmra.mrb[120].mxu0 %v5806_v53  ;;  %v1533_v57 = vmul.f32 1.442695, %v11443_v12  ;;  %v3516_v53 = vsub.f32 %v7060_v33, %v7500_v3 }
 0x35a   :  { %1672 = vadd.xlane.f32.xlu0 %v1671_v55  ;;  %v7714_v34 = vpop.eup %5838  ;;  %v7732_v18 = vpop.xlane.xlu0 %2093  ;;  %5846 = vpow2.f32 %v1539_v30  ;;  %727 = vmatprep.mubr.bf16.mxu0 %v11393_v38  ;;  %v11446_v38 = vsub.f32 %v7060_v33, %v7384_v8  ;;  %v2176_v8 = vsel %vm2037_vm1, %v7596_v41, -inf }
 0x35b   :  { %11438 = vst [vmem:[#allocation107_spill] sm:$0xff] %v7714_v34  ;;  %5848 = vpow2.f32 %v1533_v57  ;;  %v1407_v57 = vsel %vm1268_vm2, %v7596_v41, -inf  ;;  %v3585_v60 = vmul.f32 1.442695, %v3516_v53  ;;  %v7776_v3 = vpop.xlane.xlu1 %2090 }
 0x35c   :  { %v2304_v11 = vmul.f32 1.442695, %v11446_v38  ;;  %v3457_v38 = vsel %vm3318_vm3, %v7596_v41, -inf }
 0x35e   :  { %v7718_v23 = vpop.eup %5840  ;;  %v7749_v39 = vpop.xlane.xlu0 %3374  ;;  %5850 = vpow2.f32 %v2304_v11  ;;  %v1401_v11 = vsel %vm1268_vm2, %v7604_v49, -inf }
 0x35f   :  { %11439 = vst [vmem:[#allocation108_spill] sm:$0xff] %v7718_v23  ;;  %5852 = vpow2.f32 %v3585_v60  ;;  %v7796_v59 = vpop.xlane.xlu1 %3371 }
 0x361   :  { %728 = vmatmul.mubr.bf16.gmra.mrb[124].mxu0 %v5807_v7 }
 0x362   :  { %v7726_v55 = vpop.eup %5842  ;;  %v7753_v45 = vpop.xlane.xlu0 %1318 }
 0x363   :  { %11440 = vst [vmem:[#allocation109_spill] sm:$0xff] %v7726_v55  ;;  %v7730_v61 = vpop.eup %5844 }
 0x364   :  { %11441 = vst [vmem:[#allocation110_spill] sm:$0xff] %v7730_v61  ;;  %v7751_v31 = vpop.eup %5846 }
 0x365   :  { %11444 = vst [vmem:[#allocation111_spill] sm:$0xff] %v7751_v31  ;;  %v1674_v9 = vsel %vm1268_vm2, %v7751_v31, 0.0  ;;  %v7757_v30 = vpop.eup %5848 }
 0x366   :  { %11445 = vst [vmem:[#allocation112_spill] sm:$0xff] %v7757_v30  ;;  %v1665_v7 = vsel %vm1268_vm2, %v7757_v30, 0.0  ;;  %v7768_v12 = vpop.xlane.xlu0 %2087 }
 0x367   :  { %2500 = vrot.lane.b32.xlu1 %v7714_v34, %s6577_s3 }
 0x368   :  { %v7780_v31 = vpop.eup %5850 }
 0x369   :  { %11447 = vst [vmem:[#allocation113_spill] sm:$0xff] %v7780_v31 }
 0x36b   :  { %3781 = vrot.lane.b32.xlu1 %v7718_v23, %s6578_s15  ;;  %v2170_v23 = vsel %vm2037_vm1, %v7604_v49, -inf }
 0x370   :  { %2494 = vrot.lane.b32.xlu0 %v7726_v55, %s6577_s3  ;;  %v11453_v55 = vsub.f32 %v7060_v33, %v7368_v2 }
 0x372   :  { %v1535_v41 = vmul.f32 1.442695, %v11453_v55 }
 0x374   :  { %3775 = vrot.lane.b32.xlu0 %v7730_v61, %s6578_s15  ;;  %v3451_v61 = vsel %vm3318_vm3, %v7604_v49, -inf }
 0x38f   :  { %1675 = vadd.xlane.f32.xlu1 %v1674_v9  ;;  %v7772_v9 = vpop.xlane.xlu0 %3368 }
 0x393   :  { %1666 = vadd.xlane.f32.xlu0 %v1665_v7  ;;  %v7782_v7 = vpop.xlane.xlu0 %1336 }
 0x397   :  { %1408 = vmax.xlane.f32.xlu0 %v1407_v57  ;;  %v7792_v57 = vpop.eup %5852  ;;  %v7802_v30 = vpop.xlane.xlu0 %2105 }
 0x398   :  { %11450 = vst [vmem:[#allocation116_spill] sm:$0xff] %v7792_v57 }
 0x39b   :  { %2177 = vmax.xlane.f32.xlu0 %v2176_v8 }
 0x39e   :  { %v7786_v60 = vpop.f32.mrb[48].mxu1 }
 0x39f   :  { %3458 = vmax.xlane.f32.xlu0 %v3457_v38  ;;  %11448 = vst [vmem:[#allocation114_spill] sm:$0xff] %v7786_v60  ;;  %v7790_v53 = vpop.f32.mrb[49].mxu1 }
 0x3a0   :  { %2496 = vrot.lane.b32.xlu1 %v7780_v31, %s6577_s3  ;;  %11449 = vst [vmem:[#allocation115_spill] sm:$0xff] %v7790_v53  ;;  %v7794_v8 = vpop.f32.mrb[50].mxu1  ;;  %v7808_v31 = vpop.xlane.xlu0 %3386 }
 0x3a1   :  { %11451 = vst [vmem:[#allocation117_spill] sm:$0xff] %v7794_v8  ;;  %v7800_v38 = vpop.f32.mrb[51].mxu1 }
 0x3a2   :  { %11452 = vst [vmem:[#allocation118_spill] sm:$0xff] %v7800_v38 }
 0x3a3   :  { %1402 = vmax.xlane.f32.xlu0 %v1401_v11  ;;  %v2240_v11 = vsub.f32 %v7078_v17, %v7538_v29 }
 0x3a4   :  { %3777 = vrot.lane.b32.xlu1 %v7792_v57, %s6578_s15  ;;  %v3521_v57 = vsub.f32 %v7078_v17, %v7555_v58  ;;  %v7819_v49 = vpop.xlane.xlu0 %1330 }
 0x3a5   :  { %v2314_v34 = vmul.f32 1.442695, %v2240_v11  ;;  %11455 = vst [vmem:[#allocation120_spill] sm:$0xff] %v7819_v49 }
 0x3a6   :  { %v3595_v5 = vmul.f32 1.442695, %v3521_v57  ;;  %v2179_v57 = vsel %vm2037_vm1, %v7608_v37, -inf }
 0x3a7   :  { %2171 = vmax.xlane.f32.xlu0 %v2170_v23  ;;  %5854 = vpow2.f32 %v2314_v34  ;;  %v7817_v23 = vpop.xlane.xlu1 %1339  ;;  %v1471_v34 = vsub.f32 %v7078_v17, %v7530_v27  ;;  %v3460_v17 = vsel %vm3318_vm3, %v7608_v37, -inf }
 0x3a8   :  { %5856 = vpow2.f32 %v1535_v41  ;;  %11454 = vst [vmem:[#allocation119_spill] sm:$0xff] %v7817_v23  ;;  %v7831_v33 = vpop.xlane.xlu0 %2099  ;;  %v1410_v41 = vsel %vm1268_vm2, %v7608_v37, -inf }
 0x3a9   :  { %5858 = vpow2.f32 %v3595_v5  ;;  %11460 = vst [vmem:[#allocation125_spill] sm:$0xff] %v7831_v33  ;;  %v1545_v23 = vmul.f32 1.442695, %v1471_v34  ;;  %v1404_v34 = vsel %vm1268_vm2, %v7612_v42, -inf }
 0x3ab   :  { %3452 = vmax.xlane.f32.xlu0 %v3451_v61  ;;  %v7825_v29 = vpop.xlane.xlu1 %2108  ;;  %5860 = vpow2.f32 %v1545_v23 }
 0x3ac   :  { %11457 = vst [vmem:[#allocation122_spill] sm:$0xff] %v7825_v29 }
 0x3af   :  { %v7837_v5 = vpop.xlane.xlu1 %3389 }
 0x3b0   :  { %11461 = vst [vmem:[#allocation126_spill] sm:$0xff] %v7837_v5 }
 0x3b1   :  { %v7821_v61 = vpop.eup %5854 }
 0x3b2   :  { %11456 = vst [vmem:[#allocation121_spill] sm:$0xff] %v7821_v61  ;;  %v7827_v58 = vpop.eup %5856 }
 0x3b3   :  { %11458 = vst [vmem:[#allocation123_spill] sm:$0xff] %v7827_v58  ;;  %v7829_v11 = vpop.eup %5858  ;;  %v1668_v2 = vsel %vm1268_vm2, %v7827_v58, 0.0  ;;  %v7843_v55 = vpop.xlane.xlu1 %1333 }
 0x3b4   :  { %11459 = vst [vmem:[#allocation124_spill] sm:$0xff] %v7829_v11  ;;  %11462 = vst [vmem:[#allocation127_spill] sm:$0xff] %v7843_v55 }
 0x3b7   :  { %v7858_v5 = vpop.xlane.xlu1 %2102 }
 0x3bb   :  { %v7873_v23 = vpop.xlane.xlu1 %3383 }
 0x3c1   :  { %2506 = vrot.lane.b32.xlu0 %v7821_v61, %s6577_s3  ;;  %v699_v61 = vpop.f32.mrb[112].mxu0 }
 0x3c2   :  { %v701_v58 = vpop.f32.mrb[113].mxu0 }
 0x3c3   :  { %v703_v49 = vpop.f32.mrb[114].mxu0 }
 0x3c4   :  { %v705_v33 = vpop.f32.mrb[115].mxu0 }
 0x3c5   :  { %3787 = vrot.lane.b32.xlu0 %v7829_v11, %s6578_s15  ;;  %v7848_v11 = vadd.f32 %v699_v61, %v6768_v50  ;;  %v706_v55 = vadd.f32 %v705_v33, %v6770_v51 }
 0x3c7   :  { %11463 = vst [vmem:[#allocation128_spill] sm:$0xff] %v7848_v11 }
 0x3c8   :  { %1669 = vadd.xlane.f32.xlu1 %v1668_v2  ;;  %v702_v2 = vadd.f32 %v701_v58, %v6770_v51 }
 0x3ca   :  { %v794_v27 = vmul.f32 %v702_v2, %v7848_v11 }
 0x3cc   :  { %1411 = vmax.xlane.f32.xlu1 %v1410_v41  ;;  %v7852_v41 = vadd.f32 %v703_v49, %v6768_v50 }
 0x3ce   :  { %11464 = vst [vmem:[#allocation129_spill] sm:$0xff] %v7852_v41  ;;  %v795_v61 = vmul.f32 %v706_v55, %v7852_v41 }
 0x3d0   :  { %2180 = vmax.xlane.f32.xlu1 %v2179_v57  ;;  %v709_v57 = vpop.f32.mrb[116].mxu0  ;;  %v830_v29 = vpack.c.bf16 %v795_v61, %v794_v27 }
 0x3d1   :  { %v7862_v58 = vadd.f32 %v709_v57, %v6768_v50  ;;  %v711_v49 = vpop.f32.mrb[117].mxu0  ;;  %v2173_v57 = vsel %vm2037_vm1, %v7612_v42, -inf }
 0x3d2   :  { %v712_v37 = vadd.f32 %v711_v49, %v6770_v51  ;;  %v713_v2 = vpop.f32.mrb[118].mxu0  ;;  %5667 = vmatprep.mubr.msk.bf16.mxu1 %vm882_vm0, %v830_v29  ;;  %v2241_v49 = vsub.f32 %v7086_v52, %v7518_v21  ;;  %v7885_v29 = vpop.xlane.xlu1 %1351 }
 0x3d3   :  { %11465 = vst [vmem:[#allocation130_spill] sm:$0xff] %v7862_v58  ;;  %v7868_v33 = vadd.f32 %v713_v2, %v6768_v50  ;;  %v715_v11 = vpop.f32.mrb[119].mxu0  ;;  %v3522_v2 = vsub.f32 %v7086_v52, %v7526_v40 }
 0x3d4   :  { %3461 = vmax.xlane.f32.xlu1 %v3460_v17  ;;  %v796_v17 = vmul.f32 %v712_v37, %v7862_v58  ;;  %v716_v55 = vadd.f32 %v715_v11, %v6770_v51  ;;  %v7883_v37 = vpop.eup %5860  ;;  %v2316_v11 = vmul.f32 1.442695, %v2241_v49  ;;  %v2239_v58 = vsub.f32 %v7088_v56, %v7584_v54 }
 0x3d5   :  { %11466 = vst [vmem:[#allocation131_spill] sm:$0xff] %v7868_v33  ;;  %11467 = vst [vmem:[#allocation132_spill] sm:$0xff] %v7883_v37  ;;  %v3597_v21 = vmul.f32 1.442695, %v3522_v2  ;;  %v1419_v54 = vsel %vm1268_vm2, %v7786_v60, -inf }
 0x3d6   :  { %v797_v27 = vmul.f32 %v716_v55, %v7868_v33  ;;  %v7891_v55 = vpop.xlane.xlu0 %3380  ;;  %5862 = vpow2.f32 %v2316_v11 }
 0x3d7   :  { %5864 = vpow2.f32 %v3597_v21 }
 0x3d8   :  { %1405 = vmax.xlane.f32.xlu1 %v1404_v34  ;;  %v831_v61 = vpack.c.bf16 %v797_v27, %v796_v17  ;;  %v3454_v34 = vsel %vm3318_vm3, %v7612_v42, -inf  ;;  %v1683_v17 = vsel %vm1268_vm2, %v7883_v37, 0.0 }
 0x3da   :  { %5668 = vmatmul.mubr.msk.bf16.gmra.mrb[56].mxu1 %vm882_vm0, %v831_v61  ;;  %v3519_v61 = vsub.f32 %v7084_v44, %v7580_v25 }
 0x3dc   :  { %2174 = vmax.xlane.f32.xlu1 %v2173_v57  ;;  %v2238_v57 = vsub.f32 %v7084_v44, %v7573_v63  ;;  %v3591_v49 = vmul.f32 1.442695, %v3519_v61  ;;  %v7909_v63 = vpop.xlane.xlu0 %1348  ;;  %v1469_v61 = vsub.f32 %v7084_v44, %v7560_v20  ;;  %v2312_v44 = vmul.f32 1.442695, %v2239_v58 }
 0x3dd   :  { %v3520_v20 = vsub.f32 %v7088_v56, %v7600_v24  ;;  %v2188_v58 = vsel %vm2037_vm1, %v7786_v60, -inf }
 0x3de   :  { %v2310_v27 = vmul.f32 1.442695, %v2238_v57  ;;  %v1472_v57 = vsub.f32 %v7086_v52, %v7508_v48 }
 0x3e0   :  { %3455 = vmax.xlane.f32.xlu1 %v3454_v34  ;;  %5866 = vpow2.f32 %v2310_v27  ;;  %v7897_v34 = vpop.xlane.xlu1 %2120  ;;  %v7899_v40 = vpop.eup %5862  ;;  %v1547_v27 = vmul.f32 1.442695, %v1472_v57 }
 0x3e1   :  { %11468 = vst [vmem:[#allocation133_spill] sm:$0xff] %v7899_v40  ;;  %5868 = vpow2.f32 %v3591_v49  ;;  %v7903_v11 = vpop.eup %5864  ;;  %v7917_v21 = vpop.xlane.xlu0 %2117  ;;  %v1541_v49 = vmul.f32 1.442695, %v1469_v61  ;;  %v3593_v61 = vmul.f32 1.442695, %v3520_v20 }
 0x3e2   :  { %11469 = vst [vmem:[#allocation134_spill] sm:$0xff] %v7903_v11  ;;  %5870 = vpow2.f32 %v1547_v27 }
 0x3e3   :  { %5872 = vpow2.f32 %v1541_v49 }
 0x3e4   :  { %1684 = vadd.xlane.f32.xlu0 %v1683_v17  ;;  %v7905_v2 = vpop.xlane.xlu1 %3401  ;;  %5874 = vpow2.f32 %v2312_v44 }
 0x3e5   :  { %v7925_v33 = vpop.xlane.xlu0 %3398  ;;  %5876 = vpow2.f32 %v3593_v61 }
 0x3e8   :  { %v7937_v48 = vpop.xlane.xlu1 %1345 }
 0x3e9   :  { %v7931_v37 = vpop.xlane.xlu0 %1342  ;;  %11474 = vst [vmem:[#allocation139_spill] sm:$0xff] %v7937_v48 }
 0x3ea   :  { %v7911_v25 = vpop.eup %5866 }
 0x3eb   :  { %11470 = vst [vmem:[#allocation135_spill] sm:$0xff] %v7911_v25  ;;  %v7915_v17 = vpop.eup %5868 }
 0x3ec   :  { %11471 = vst [vmem:[#allocation136_spill] sm:$0xff] %v7915_v17  ;;  %v7927_v41 = vpop.eup %5870  ;;  %v7951_v24 = vpop.xlane.xlu1 %2114 }
 0x3ed   :  { %11472 = vst [vmem:[#allocation137_spill] sm:$0xff] %v7927_v41  ;;  %v7935_v52 = vpop.eup %5872  ;;  %v7943_v27 = vpop.xlane.xlu0 %2111 }
 0x3ee   :  { %11473 = vst [vmem:[#allocation138_spill] sm:$0xff] %v7935_v52  ;;  %v1677_v57 = vsel %vm1268_vm2, %v7935_v52, 0.0 }
 0x3f1   :  { %2508 = vrot.lane.b32.xlu1 %v7899_v40, %s6577_s3  ;;  %v7947_v49 = vpop.xlane.xlu0 %3392  ;;  %v3463_v40 = vsel %vm3318_vm3, %v7790_v53, -inf }
 0x3f5   :  { %3789 = vrot.lane.b32.xlu1 %v7903_v11, %s6578_s15  ;;  %v1686_v11 = vsel %vm1268_vm2, %v7927_v41, 0.0  ;;  %v7955_v41 = vpop.eup %5874 }
 0x3f6   :  { %11475 = vst [vmem:[#allocation140_spill] sm:$0xff] %v7955_v41 }
 0x3fa   :  { %2502 = vrot.lane.b32.xlu0 %v7911_v25, %s6577_s3 }
 0x3fe   :  { %3783 = vrot.lane.b32.xlu0 %v7915_v17, %s6578_s15  ;;  %v7973_v17 = vpop.xlane.xlu1 %3395 }
 0x419   :  { %1687 = vadd.xlane.f32.xlu1 %v1686_v11  ;;  %v3469_v11 = vsel %vm3318_vm3, %v7786_v60, -inf  ;;  %v1470_v60 = vsub.f32 %v7088_v56, %v7566_v10 }
 0x41d   :  { %1678 = vadd.xlane.f32.xlu0 %v1677_v57  ;;  %v7957_v57 = vpop.xlane.xlu0 %1360 }
 0x41e   :  { %11476 = vst [vmem:[#allocation141_spill] sm:$0xff] %v7957_v57  ;;  %v1543_v57 = vmul.f32 1.442695, %v1470_v60 }
 0x421   :  { %1420 = vmax.xlane.f32.xlu0 %v1419_v54  ;;  %v1413_v54 = vsel %vm1268_vm2, %v7790_v53, -inf }
 0x425   :  { %2189 = vmax.xlane.f32.xlu0 %v2188_v58  ;;  %v7961_v44 = vpop.f32.mrb[52].mxu1  ;;  %v7969_v58 = vpop.eup %5876 }
 0x426   :  { %11477 = vst [vmem:[#allocation142_spill] sm:$0xff] %v7961_v44  ;;  %v7963_v20 = vpop.f32.mrb[53].mxu1  ;;  %11480 = vst [vmem:[#allocation145_spill] sm:$0xff] %v7969_v58 }
 0x427   :  { %11478 = vst [vmem:[#allocation143_spill] sm:$0xff] %v7963_v20  ;;  %v7967_v61 = vpop.f32.mrb[54].mxu1 }
 0x428   :  { %11479 = vst [vmem:[#allocation144_spill] sm:$0xff] %v7967_v61  ;;  %v7971_v52 = vpop.f32.mrb[55].mxu1 }
 0x429   :  { %3470 = vmax.xlane.f32.xlu0 %v3469_v11  ;;  %11481 = vst [vmem:[#allocation146_spill] sm:$0xff] %v7971_v52  ;;  %v7977_v11 = vpop.xlane.xlu0 %2129 }
 0x42a   :  { %2504 = vrot.lane.b32.xlu1 %v7955_v41, %s6577_s3  ;;  %v2182_v41 = vsel %vm2037_vm1, %v7790_v53, -inf }
 0x42d   :  { %1414 = vmax.xlane.f32.xlu0 %v1413_v54  ;;  %v7983_v25 = vpop.xlane.xlu0 %3410  ;;  %v2244_v54 = vsub.f32 %v7102_v4, %v7606_v36 }
 0x42e   :  { %3785 = vrot.lane.b32.xlu1 %v7969_v58, %s6578_s15  ;;  %v3525_v58 = vsub.f32 %v7102_v4, %v7616_v22 }
 0x42f   :  { %v2322_v42 = vmul.f32 1.442695, %v2244_v54  ;;  %v2191_v54 = vsel %vm2037_vm1, %v7794_v8, -inf }
 0x430   :  { %v3603_v48 = vmul.f32 1.442695, %v3525_v58 }
 0x431   :  { %2183 = vmax.xlane.f32.xlu0 %v2182_v41  ;;  %5878 = vpow2.f32 %v2322_v42  ;;  %v7991_v41 = vpop.xlane.xlu1 %1363  ;;  %v7993_v53 = vpop.xlane.xlu0 %1354 }
 0x432   :  { %5880 = vpow2.f32 %v1543_v57  ;;  %11482 = vst [vmem:[#allocation147_spill] sm:$0xff] %v7991_v41  ;;  %11483 = vst [vmem:[#allocation148_spill] sm:$0xff] %v7993_v53  ;;  %v1475_v57 = vsub.f32 %v7102_v4, %v7590_v15  ;;  %v3472_v4 = vsel %vm3318_vm3, %v7794_v8, -inf }
 0x433   :  { %5882 = vpow2.f32 %v3603_v48  ;;  %v1422_v48 = vsel %vm1268_vm2, %v7794_v8, -inf }
 0x434   :  { %v1553_v41 = vmul.f32 1.442695, %v1475_v57  ;;  %v1416_v57 = vsel %vm1268_vm2, %v7800_v38, -inf }
 0x435   :  { %3464 = vmax.xlane.f32.xlu0 %v3463_v40  ;;  %v7999_v36 = vpop.xlane.xlu1 %2132  ;;  %v8005_v22 = vpop.xlane.xlu0 %2123 }
 0x436   :  { %11485 = vst [vmem:[#allocation150_spill] sm:$0xff] %v7999_v36  ;;  %11488 = vst [vmem:[#allocation153_spill] sm:$0xff] %v8005_v22  ;;  %5884 = vpow2.f32 %v1553_v41 }
 0x439   :  { %v8011_v60 = vpop.xlane.xlu1 %3413 }
 0x43a   :  { %11489 = vst [vmem:[#allocation154_spill] sm:$0xff] %v8011_v60 }
 0x43b   :  { %v7995_v40 = vpop.eup %5878 }
 0x43c   :  { %11484 = vst [vmem:[#allocation149_spill] sm:$0xff] %v7995_v40  ;;  %v8001_v56 = vpop.eup %5880 }
 0x43d   :  { %11486 = vst [vmem:[#allocation151_spill] sm:$0xff] %v8001_v56  ;;  %v8003_v10 = vpop.eup %5882  ;;  %v1680_v42 = vsel %vm1268_vm2, %v8001_v56, 0.0  ;;  %v8017_v58 = vpop.xlane.xlu1 %1357 }
 0x43e   :  { %11487 = vst [vmem:[#allocation152_spill] sm:$0xff] %v8003_v10  ;;  %11490 = vst [vmem:[#allocation155_spill] sm:$0xff] %v8017_v58 }
 0x441   :  { %v8032_v60 = vpop.xlane.xlu1 %2126 }
 0x445   :  { %v8047_v41 = vpop.xlane.xlu1 %3407 }
 0x44b   :  { %2514 = vrot.lane.b32.xlu0 %v7995_v40, %s6577_s3  ;;  %v719_v40 = vpop.f32.mrb[120].mxu0 }
 0x44c   :  { %v721_v56 = vpop.f32.mrb[121].mxu0 }
 0x44d   :  { %v723_v53 = vpop.f32.mrb[122].mxu0 }
 0x44e   :  { %v725_v22 = vpop.f32.mrb[123].mxu0 }
 0x44f   :  { %3795 = vrot.lane.b32.xlu0 %v8003_v10, %s6578_s15  ;;  %v8022_v10 = vadd.f32 %v719_v40, %v6768_v50  ;;  %v726_v58 = vadd.f32 %v725_v22, %v6770_v51 }
 0x451   :  { %11491 = vst [vmem:[#allocation156_spill] sm:$0xff] %v8022_v10 }
 0x452   :  { %1681 = vadd.xlane.f32.xlu1 %v1680_v42  ;;  %v722_v42 = vadd.f32 %v721_v56, %v6770_v51 }
 0x454   :  { %v798_v15 = vmul.f32 %v722_v42, %v8022_v10 }
 0x456   :  { %1423 = vmax.xlane.f32.xlu1 %v1422_v48  ;;  %v8026_v48 = vadd.f32 %v723_v53, %v6768_v50 }
 0x458   :  { %11492 = vst [vmem:[#allocation157_spill] sm:$0xff] %v8026_v48  ;;  %v799_v40 = vmul.f32 %v726_v58, %v8026_v48 }
 0x45a   :  { %2192 = vmax.xlane.f32.xlu1 %v2191_v54  ;;  %v729_v54 = vpop.f32.mrb[124].mxu0  ;;  %v832_v36 = vpack.c.bf16 %v799_v40, %v798_v15 }
 0x45b   :  { %v8036_v56 = vadd.f32 %v729_v54, %v6768_v50  ;;  %v731_v53 = vpop.f32.mrb[125].mxu0  ;;  %v2185_v54 = vsel %vm2037_vm1, %v7800_v38, -inf }
 0x45c   :  { %v732_v8 = vadd.f32 %v731_v53, %v6770_v51  ;;  %v733_v42 = vpop.f32.mrb[126].mxu0  ;;  %5671 = vmatprep.mubr.msk.bf16.mxu1 %vm882_vm0, %v832_v36  ;;  %v3466_v53 = vsel %vm3318_vm3, %v7800_v38, -inf }
 0x45d   :  { %11493 = vst [vmem:[#allocation158_spill] sm:$0xff] %v8036_v56  ;;  %v8042_v22 = vadd.f32 %v733_v42, %v6768_v50  ;;  %v735_v10 = vpop.f32.mrb[127].mxu0  ;;  %v2245_v50 = vsub.f32 %v7110_v1, %v7635_v16  ;;  %v8065_v42 = vpop.xlane.xlu0 %3404 }
 0x45e   :  { %3473 = vmax.xlane.f32.xlu1 %v3472_v4  ;;  %v800_v4 = vmul.f32 %v732_v8, %v8036_v56  ;;  %v736_v58 = vadd.f32 %v735_v10, %v6770_v51  ;;  %v8057_v51 = vpop.eup %5884  ;;  %v8059_v8 = vpop.xlane.xlu1 %1375  ;;  %v3526_v10 = vsub.f32 %v7110_v1, %v7647_v26 }
 0x45f   :  { %11494 = vst [vmem:[#allocation159_spill] sm:$0xff] %v8042_v22  ;;  %11495 = vst [vmem:[#allocation160_spill] sm:$0xff] %v8057_v51  ;;  %v2324_v36 = vmul.f32 1.442695, %v2245_v50 }
 0x460   :  { %v801_v15 = vmul.f32 %v736_v58, %v8042_v22  ;;  %v3605_v16 = vmul.f32 1.442695, %v3526_v10  ;;  %v11503_v22 = vld [vmem:[#allocation46_spill] sm:$0xff] }
 0x461   :  { %5886 = vpow2.f32 %v2324_v36  ;;  %v2243_v48 = vsub.f32 %v11503_v22, %v7667_v62  ;;  %v1431_v62 = vsel %vm1268_vm2, %v7961_v44, -inf }
 0x462   :  { %1417 = vmax.xlane.f32.xlu1 %v1416_v57  ;;  %v833_v40 = vpack.c.bf16 %v801_v15, %v800_v4  ;;  %v1695_v57 = vsel %vm1268_vm2, %v8057_v51, 0.0  ;;  %v2242_v4 = vsub.f32 %v7108_v32, %v7641_v46  ;;  %5888 = vpow2.f32 %v3605_v16  ;;  %v8083_v46 = vpop.xlane.xlu0 %1372 }
 0x464   :  { %5672 = vmatmul.mubr.msk.bf16.gmra.mrb[60].mxu1 %vm882_vm0, %v833_v40  ;;  %v2318_v58 = vmul.f32 1.442695, %v2242_v4  ;;  %v8071_v40 = vpop.xlane.xlu1 %2144  ;;  %v1473_v4 = vsub.f32 %v7108_v32, %v7629_v43  ;;  %v3524_v43 = vsub.f32 %v11503_v22, %v7678_v6 }
 0x466   :  { %2186 = vmax.xlane.f32.xlu1 %v2185_v54  ;;  %v3523_v54 = vsub.f32 %v7108_v32, %v7701_v19  ;;  %5890 = vpow2.f32 %v2318_v58  ;;  %v8091_v10 = vpop.xlane.xlu0 %2141  ;;  %v1549_v58 = vmul.f32 1.442695, %v1473_v4  ;;  %v2320_v32 = vmul.f32 1.442695, %v2243_v48 }
 0x467   :  { %v3601_v4 = vmul.f32 1.442695, %v3524_v43  ;;  %v2200_v48 = vsel %vm2037_vm1, %v7961_v44, -inf }
 0x468   :  { %v3599_v15 = vmul.f32 1.442695, %v3523_v54 }
 0x46a   :  { %3467 = vmax.xlane.f32.xlu1 %v3466_v53  ;;  %5892 = vpow2.f32 %v3599_v15  ;;  %v8079_v53 = vpop.xlane.xlu1 %3425  ;;  %v8099_v54 = vpop.xlane.xlu0 %3422 }
 0x46b   :  { %v8073_v26 = vpop.eup %5886  ;;  %11498 = vst [vmem:[#allocation163_spill] sm:$0xff] %v8079_v53  ;;  %11501 = vst [vmem:[#allocation166_spill] sm:$0xff] %v8099_v54  ;;  %v3475_v53 = vsel %vm3318_vm3, %v7963_v20, -inf  ;;  %v11514_v54 = vld [vmem:[#allocation47_spill] sm:$0xff] }
 0x46c   :  { %11496 = vst [vmem:[#allocation161_spill] sm:$0xff] %v8073_v26  ;;  %v8077_v50 = vpop.eup %5888 }
 0x46d   :  { %11497 = vst [vmem:[#allocation162_spill] sm:$0xff] %v8077_v50 }
 0x46e   :  { %1696 = vadd.xlane.f32.xlu0 %v1695_v57  ;;  %v1476_v57 = vsub.f32 %v7110_v1, %v7627_v0  ;;  %v8105_v56 = vpop.xlane.xlu0 %1366  ;;  %v8111_v0 = vpop.xlane.xlu1 %1369 }
 0x470   :  { %v8085_v19 = vpop.eup %5890  ;;  %v1555_v16 = vmul.f32 1.442695, %v1476_v57 }
 0x471   :  { %11499 = vst [vmem:[#allocation164_spill] sm:$0xff] %v8085_v19 }
 0x472   :  { %5894 = vpow2.f32 %v1555_v16  ;;  %v8117_v16 = vpop.xlane.xlu0 %2135  ;;  %v8125_v6 = vpop.xlane.xlu1 %2138 }
 0x473   :  { %5896 = vpow2.f32 %v1549_v58 }
 0x474   :  { %v8089_v36 = vpop.eup %5892  ;;  %5898 = vpow2.f32 %v2320_v32 }
 0x475   :  { %11500 = vst [vmem:[#allocation165_spill] sm:$0xff] %v8089_v36  ;;  %5900 = vpow2.f32 %v3601_v4 }
 0x476   :  { %v8121_v58 = vpop.xlane.xlu0 %3416 }
 0x477   :  { %11505 = vst [vmem:[#allocation168_spill] sm:$0xff] %v8121_v58 }
 0x47b   :  { %2516 = vrot.lane.b32.xlu1 %v8073_v26, %s6577_s3 }
 0x47c   :  { %v8101_v15 = vpop.eup %5894 }
 0x47d   :  { %11502 = vst [vmem:[#allocation167_spill] sm:$0xff] %v8101_v15  ;;  %v1698_v51 = vsel %vm1268_vm2, %v8101_v15, 0.0  ;;  %v8109_v1 = vpop.eup %5896 }
 0x47e   :  { %11504 = vst [vmem:[#allocation46_spill] sm:$0xff] %v8109_v1  ;;  %v1689_v57 = vsel %vm1268_vm2, %v8109_v1, 0.0  ;;  %v8133_v1 = vpop.xlane.xlu0 %1384 }
 0x47f   :  { %3797 = vrot.lane.b32.xlu1 %v8077_v50, %s6578_s15  ;;  %v8147_v50 = vpop.xlane.xlu1 %3419 }
 0x480   :  { %11512 = vst [vmem:[#allocation175_spill] sm:$0xff] %v8147_v50 }
 0x484   :  { %2510 = vrot.lane.b32.xlu0 %v8085_v19, %s6577_s3 }
 0x488   :  { %3791 = vrot.lane.b32.xlu0 %v8089_v36, %s6578_s15  ;;  %v2194_v36 = vsel %vm2037_vm1, %v7963_v20, -inf }
 0x4a3   :  { %1699 = vadd.xlane.f32.xlu1 %v1698_v51  ;;  %v3481_v51 = vsel %vm3318_vm3, %v7961_v44, -inf }
 0x4a7   :  { %1690 = vadd.xlane.f32.xlu0 %v1689_v57  ;;  %v8131_v57 = vpop.eup %5898 }
 0x4a8   :  { %11507 = vst [vmem:[#allocation170_spill] sm:$0xff] %v8131_v57 }
 0x4ab   :  { %1432 = vmax.xlane.f32.xlu0 %v1431_v62  ;;  %v1425_v62 = vsel %vm1268_vm2, %v7963_v20, -inf }
 0x4ad   :  { %v8129_v15 = vpop.f32.mrb[56].mxu1 }
 0x4ae   :  { %11506 = vst [vmem:[#allocation169_spill] sm:$0xff] %v8129_v15  ;;  %v8135_v32 = vpop.f32.mrb[57].mxu1 }
 0x4af   :  { %2201 = vmax.xlane.f32.xlu0 %v2200_v48  ;;  %11508 = vst [vmem:[#allocation171_spill] sm:$0xff] %v8135_v32  ;;  %v8139_v43 = vpop.f32.mrb[58].mxu1  ;;  %v8145_v48 = vpop.eup %5900 }
 0x4b0   :  { %11509 = vst [vmem:[#allocation172_spill] sm:$0xff] %v8139_v43  ;;  %v8143_v4 = vpop.f32.mrb[59].mxu1  ;;  %11511 = vst [vmem:[#allocation174_spill] sm:$0xff] %v8145_v48 }
 0x4b1   :  { %11510 = vst [vmem:[#allocation173_spill] sm:$0xff] %v8143_v4 }
 0x4b3   :  { %3482 = vmax.xlane.f32.xlu0 %v3481_v51  ;;  %v8151_v51 = vpop.xlane.xlu0 %2153 }
 0x4b4   :  { %2512 = vrot.lane.b32.xlu1 %v8131_v57, %s6577_s3  ;;  %v11515_v57 = vld [vmem:[#allocation101_spill] sm:$0xff] }
 0x4b5   :  { %v1474_v50 = vsub.f32 %v11503_v22, %v11515_v57 }
 0x4b7   :  { %1426 = vmax.xlane.f32.xlu0 %v1425_v62  ;;  %v8157_v58 = vpop.xlane.xlu0 %3434  ;;  %v2248_v62 = vsub.f32 %v11514_v54, %v7732_v18  ;;  %v1551_v19 = vmul.f32 1.442695, %v1474_v50  ;;  %v1434_v50 = vsel %vm1268_vm2, %v7967_v61, -inf }
 0x4b8   :  { %3793 = vrot.lane.b32.xlu1 %v8145_v48, %s6578_s15  ;;  %11513 = vst [vmem:[#allocation176_spill] sm:$0xff] %v8157_v58  ;;  %v3529_v48 = vsub.f32 %v11514_v54, %v7749_v39 }
 0x4b9   :  { %v2330_v26 = vmul.f32 1.442695, %v2248_v62  ;;  %v2203_v62 = vsel %vm2037_vm1, %v7967_v61, -inf }
 0x4ba   :  { %v3611_v44 = vmul.f32 1.442695, %v3529_v48 }
 0x4bb   :  { %2195 = vmax.xlane.f32.xlu0 %v2194_v36  ;;  %5902 = vpow2.f32 %v2330_v26  ;;  %v8165_v36 = vpop.xlane.xlu1 %1387  ;;  %v8167_v20 = vpop.xlane.xlu0 %1378 }
 0x4bc   :  { %5904 = vpow2.f32 %v1551_v19  ;;  %v1479_v19 = vsub.f32 %v11514_v54, %v7724_v13  ;;  %v2197_v13 = vsel %vm2037_vm1, %v7971_v52, -inf  ;;  %v11521_v54 = vld [vmem:[#allocation49_spill] sm:$0xff] }
 0x4bd   :  { %5906 = vpow2.f32 %v3611_v44 }
 0x4bf   :  { %3476 = vmax.xlane.f32.xlu0 %v3475_v53  ;;  %v8173_v18 = vpop.xlane.xlu1 %2156  ;;  %v8179_v39 = vpop.xlane.xlu0 %2147 }
 0x4c3   :  { %v8185_v26 = vpop.xlane.xlu1 %3437 }
 0x4c4   :  { %11519 = vst [vmem:[#allocation178_spill] sm:$0xff] %v8185_v26 }
 0x4c5   :  { %v8169_v53 = vpop.eup %5902 }
 0x4c6   :  { %11516 = vst [vmem:[#allocation47_spill] sm:$0xff] %v8169_v53  ;;  %v8175_v22 = vpop.eup %5904 }
 0x4c7   :  { %11517 = vst [vmem:[#allocation101_spill] sm:$0xff] %v8175_v22  ;;  %v8177_v57 = vpop.eup %5906  ;;  %v1692_v44 = vsel %vm1268_vm2, %v8175_v22, 0.0  ;;  %v8191_v48 = vpop.xlane.xlu1 %1381  ;;  %v3484_v22 = vsel %vm3318_vm3, %v7967_v61, -inf }
 0x4c8   :  { %11518 = vst [vmem:[#allocation177_spill] sm:$0xff] %v8177_v57 }
 0x4cb   :  { %v8197_v58 = vpop.xlane.xlu1 %2150 }
 0x4d5   :  { %2522 = vrot.lane.b32.xlu0 %v8169_v53, %s6577_s3  ;;  %v8217_v53 = vpop.xlane.xlu0 %3428 }
 0x4d6   :  { %11523 = vst [vmem:[#allocation180_spill] sm:$0xff] %v8217_v53 }
 0x4d9   :  { %3803 = vrot.lane.b32.xlu0 %v8177_v57, %s6578_s15  ;;  %v1561_v57 = vmul.f32 1.442695, %v1479_v19  ;;  %v2249_v19 = vsub.f32 %v11521_v54, %v7712_v47 }
 0x4db   :  { %5908 = vpow2.f32 %v1561_v57  ;;  %v2332_v57 = vmul.f32 1.442695, %v2249_v19 }
 0x4dc   :  { %1693 = vadd.xlane.f32.xlu1 %v1692_v44  ;;  %v1428_v44 = vsel %vm1268_vm2, %v7971_v52, -inf }
 0x4dd   :  { %5910 = vpow2.f32 %v2332_v57 }
 0x4e0   :  { %1435 = vmax.xlane.f32.xlu1 %v1434_v50  ;;  %v8201_v50 = vpop.xlane.xlu1 %3431 }
 0x4e1   :  { %11520 = vst [vmem:[#allocation179_spill] sm:$0xff] %v8201_v50 }
 0x4e4   :  { %2204 = vmax.xlane.f32.xlu1 %v2203_v62  ;;  %v3478_v62 = vsel %vm3318_vm3, %v7971_v52, -inf }
 0x4e5   :  { %v8209_v26 = vpop.eup %5908 }
 0x4e6   :  { %11522 = vst [vmem:[#allocation49_spill] sm:$0xff] %v8209_v26  ;;  %v1707_v50 = vsel %vm1268_vm2, %v8209_v26, 0.0 }
 0x4e8   :  { %3485 = vmax.xlane.f32.xlu1 %v3484_v22  ;;  %v8211_v22 = vpop.permute.xlu1 %2490 }
 0x4ec   :  { %1429 = vmax.xlane.f32.xlu1 %v1428_v44  ;;  %v3530_v44 = vsub.f32 %v11521_v54, %v7720_v28  ;;  %v8223_v38 = vpop.permute.xlu1 %3771  ;;  %v8225_v28 = vpop.eup %5910 }
 0x4ed   :  { %11526 = vst [vmem:[#allocation181_spill] sm:$0xff] %v8225_v28 }
 0x4ee   :  { %v3613_v47 = vmul.f32 1.442695, %v3530_v44  ;;  %v1480_v44 = vsub.f32 %v11521_v54, %v7693_v35 }
 0x4f0   :  { %2198 = vmax.xlane.f32.xlu1 %v2197_v13  ;;  %v11524_v13 = vld [vmem:[#allocation48_spill] sm:$0xff]  ;;  %5912 = vpow2.f32 %v3613_v47  ;;  %v8231_v57 = vpop.permute.xlu1 %2492  ;;  %v1563_v47 = vmul.f32 1.442695, %v1480_v44 }
 0x4f1   :  { %v2246_v52 = vsub.f32 %v11524_v13, %v7768_v12  ;;  %11525 = vst [vmem:[#allocation48_spill] sm:$0xff] %v8223_v38  ;;  %v8235_v12 = vpop.xlane.xlu0 %1660 }
 0x4f2   :  { %11528 = vst [vmem:[#allocation183_spill] sm:$0xff] %v8235_v12  ;;  %v11533_v12 = vld [vmem:[#allocation50_spill] sm:$0xff] }
 0x4f3   :  { %v2326_v61 = vmul.f32 1.442695, %v2246_v52  ;;  %v2247_v53 = vsub.f32 %v11533_v12, %v7776_v3  ;;  %v1443_v3 = vsel %vm1268_vm2, %v8129_v15, -inf }
 0x4f4   :  { %3479 = vmax.xlane.f32.xlu1 %v3478_v62  ;;  %v3527_v62 = vsub.f32 %v11524_v13, %v7772_v9  ;;  %v8263_v54 = vpop.permute.xlu1 %3773 }
 0x4f5   :  { %5914 = vpow2.f32 %v2326_v61  ;;  %v8243_v61 = vpop.permute.xlu0 %2486  ;;  %11536 = vst [vmem:[#allocation189_spill] sm:$0xff] %v8263_v54 }
 0x4f6   :  { %v3607_v19 = vmul.f32 1.442695, %v3527_v62  ;;  %v1477_v62 = vsub.f32 %v11524_v13, %v7753_v45  ;;  %v2328_v45 = vmul.f32 1.442695, %v2247_v53  ;;  %v3528_v13 = vsub.f32 %v11533_v12, %v7796_v59 }
 0x4f7   :  { %v2212_v53 = vsel %vm2037_vm1, %v8129_v15, -inf }
 0x4f8   :  { %1708 = vadd.xlane.f32.xlu0 %v1707_v50  ;;  %5916 = vpow2.f32 %v3607_v19  ;;  %v1557_v19 = vmul.f32 1.442695, %v1477_v62  ;;  %v3609_v62 = vmul.f32 1.442695, %v3528_v13  ;;  %v8277_v59 = vpop.xlane.xlu1 %1663 }
 0x4f9   :  { %5918 = vpow2.f32 %v1563_v47  ;;  %v8251_v26 = vpop.permute.xlu0 %3767  ;;  %11537 = vst [vmem:[#allocation190_spill] sm:$0xff] %v8277_v59 }
 0x4fa   :  { %v8229_v50 = vpop.eup %5912  ;;  %5920 = vpow2.f32 %v1557_v19  ;;  %11531 = vst [vmem:[#allocation186_spill] sm:$0xff] %v8251_v26  ;;  %v11546_v26 = vld [vmem:[#allocation51_spill] sm:$0xff] }
 0x4fb   :  { %11527 = vst [vmem:[#allocation182_spill] sm:$0xff] %v8229_v50  ;;  %5922 = vpow2.f32 %v2328_v45 }
 0x4fc   :  { %5924 = vpow2.f32 %v3609_v62  ;;  %v8299_v59 = vpop.permute.xlu1 %2488 }
 0x4fd   :  { %v8257_v38 = vpop.xlane.xlu0 %1654 }
 0x4fe   :  { %11534 = vst [vmem:[#allocation50_spill] sm:$0xff] %v8257_v38  ;;  %v2206_v38 = vsel %vm2037_vm1, %v8135_v32, -inf }
 0x4ff   :  { %v8237_v9 = vpop.eup %5914 }
 0x500   :  { %11529 = vst [vmem:[#allocation184_spill] sm:$0xff] %v8237_v9 }
 0x501   :  { %v8269_v47 = vpop.xlane.xlu0 %1396 }
 0x502   :  { %v8241_v52 = vpop.eup %5916 }
 0x503   :  { %11530 = vst [vmem:[#allocation185_spill] sm:$0xff] %v8241_v52 }
 0x505   :  { %2524 = vrot.lane.b32.xlu1 %v8225_v28, %s6577_s3  ;;  %v8273_v19 = vpop.xlane.xlu0 %2165 }
 0x509   :  { %3805 = vrot.lane.b32.xlu1 %v8229_v50, %s6578_s15  ;;  %v8253_v50 = vpop.eup %5918 }
 0x50a   :  { %11532 = vst [vmem:[#allocation187_spill] sm:$0xff] %v8253_v50  ;;  %v8261_v35 = vpop.eup %5920 }
 0x50b   :  { %11535 = vst [vmem:[#allocation188_spill] sm:$0xff] %v8261_v35  ;;  %v1701_v44 = vsel %vm1268_vm2, %v8261_v35, 0.0  ;;  %v8285_v35 = vpop.xlane.xlu0 %3446 }
 0x50c   :  { %11540 = vst [vmem:[#allocation193_spill] sm:$0xff] %v8285_v35  ;;  %v3487_v35 = vsel %vm3318_vm3, %v8135_v32, -inf }
 0x50e   :  { %2518 = vrot.lane.b32.xlu0 %v8237_v9, %s6577_s3 }
 0x512   :  { %3799 = vrot.lane.b32.xlu0 %v8241_v52, %s6578_s15  ;;  %v1710_v52 = vsel %vm1268_vm2, %v8253_v50, 0.0 }
 0x52d   :  { %1711 = vadd.xlane.f32.xlu1 %v1710_v52  ;;  %v3493_v52 = vsel %vm3318_vm3, %v8129_v15, -inf }
 0x531   :  { %1702 = vadd.xlane.f32.xlu0 %v1701_v44  ;;  %v8283_v44 = vpop.eup %5922 }
 0x532   :  { %11539 = vst [vmem:[#allocation192_spill] sm:$0xff] %v8283_v44 }
 0x535   :  { %1444 = vmax.xlane.f32.xlu0 %v1443_v3  ;;  %v1437_v3 = vsel %vm1268_vm2, %v8135_v32, -inf }
 0x537   :  { %v8281_v50 = vpop.f32.mrb[60].mxu1 }
 0x538   :  { %11538 = vst [vmem:[#allocation191_spill] sm:$0xff] %v8281_v50  ;;  %v8287_v45 = vpop.f32.mrb[61].mxu1 }
 0x539   :  { %2213 = vmax.xlane.f32.xlu0 %v2212_v53  ;;  %11541 = vst [vmem:[#allocation194_spill] sm:$0xff] %v8287_v45  ;;  %v8291_v13 = vpop.f32.mrb[62].mxu1  ;;  %v8297_v53 = vpop.eup %5924 }
 0x53a   :  { %11542 = vst [vmem:[#allocation195_spill] sm:$0xff] %v8291_v13  ;;  %v8295_v62 = vpop.f32.mrb[63].mxu1  ;;  %11544 = vst [vmem:[#allocation197_spill] sm:$0xff] %v8297_v53 }
 0x53b   :  { %11543 = vst [vmem:[#allocation196_spill] sm:$0xff] %v8295_v62 }
 0x53d   :  { %3494 = vmax.xlane.f32.xlu0 %v3493_v52  ;;  %v8303_v52 = vpop.xlane.xlu0 %1390 }
 0x53e   :  { %2520 = vrot.lane.b32.xlu1 %v8283_v44, %s6577_s3  ;;  %11545 = vst [vmem:[#allocation198_spill] sm:$0xff] %v8303_v52  ;;  %v1478_v44 = vsub.f32 %v11533_v12, %v7759_v14 }
 0x540   :  { %v1559_v9 = vmul.f32 1.442695, %v1478_v44  ;;  %v1483_v44 = vsub.f32 %v11546_v26, %v7782_v7  ;;  %v2209_v7 = vsel %vm2037_vm1, %v8143_v4, -inf }
 0x541   :  { %1438 = vmax.xlane.f32.xlu0 %v1437_v3  ;;  %v8309_v54 = vpop.xlane.xlu0 %2159  ;;  %v2252_v3 = vsub.f32 %v11546_v26, %v7802_v30 }
 0x542   :  { %3801 = vrot.lane.b32.xlu1 %v8297_v53, %s6578_s15  ;;  %v3533_v53 = vsub.f32 %v11546_v26, %v7808_v31  ;;  %v11555_v26 = vld [vmem:[#allocation122_spill] sm:$0xff] }
 0x543   :  { %v2338_v28 = vmul.f32 1.442695, %v2252_v3  ;;  %v2215_v3 = vsel %vm2037_vm1, %v8139_v43, -inf }
 0x544   :  { %v3619_v15 = vmul.f32 1.442695, %v3533_v53 }
 0x545   :  { %2207 = vmax.xlane.f32.xlu0 %v2206_v38  ;;  %5926 = vpow2.f32 %v2338_v28  ;;  %v8317_v38 = vpop.permute.xlu1 %3769  ;;  %v8319_v32 = vpop.xlane.xlu0 %3440 }
 0x546   :  { %5928 = vpow2.f32 %v1559_v9  ;;  %11547 = vst [vmem:[#allocation51_spill] sm:$0xff] %v8317_v38  ;;  %11548 = vst [vmem:[#allocation199_spill] sm:$0xff] %v8319_v32  ;;  %v1446_v9 = vsel %vm1268_vm2, %v8139_v43, -inf  ;;  %v3490_v32 = vsel %vm3318_vm3, %v8143_v4, -inf }
 0x547   :  { %5930 = vpow2.f32 %v3619_v15 }
 0x549   :  { %3488 = vmax.xlane.f32.xlu0 %v3487_v35  ;;  %v8325_v30 = vpop.xlane.xlu1 %1657  ;;  %v8331_v31 = vpop.permute.xlu0 %2498 }
 0x54a   :  { %11550 = vst [vmem:[#allocation201_spill] sm:$0xff] %v8325_v30 }
 0x54d   :  { %v8337_v28 = vpop.xlane.xlu1 %1399 }
 0x54f   :  { %v8321_v35 = vpop.eup %5926 }
 0x550   :  { %11549 = vst [vmem:[#allocation200_spill] sm:$0xff] %v8321_v35  ;;  %v8327_v14 = vpop.eup %5928 }
 0x551   :  { %11551 = vst [vmem:[#allocation202_spill] sm:$0xff] %v8327_v14  ;;  %v8329_v12 = vpop.eup %5930  ;;  %v1704_v15 = vsel %vm1268_vm2, %v8327_v14, 0.0  ;;  %v8343_v53 = vpop.xlane.xlu1 %2168  ;;  %v3496_v14 = vsel %vm3318_vm3, %v8139_v43, -inf }
 0x552   :  { %11552 = vst [vmem:[#allocation203_spill] sm:$0xff] %v8329_v12  ;;  %v8369_v43 = vpop.permute.xlu0 %3779 }
 0x555   :  { %v8349_v30 = vpop.xlane.xlu1 %3449 }
 0x556   :  { %11553 = vst [vmem:[#allocation204_spill] sm:$0xff] %v8349_v30  ;;  %v11559_v30 = vld [vmem:[#allocation126_spill] sm:$0xff] }
 0x557   :  { %11560 = vst [vmem:[#allocation126_spill] sm:$0xff] %v8369_v43  ;;  %v11573_v43 = vld [vmem:[#allocation54_spill] sm:$0xff] }
 0x55f   :  { %2530 = vrot.lane.b32.xlu0 %v8321_v35, %s6577_s3 }
 0x563   :  { %3811 = vrot.lane.b32.xlu0 %v8329_v12, %s6578_s15  ;;  %v1569_v12 = vmul.f32 1.442695, %v1483_v44 }
 0x565   :  { %5932 = vpow2.f32 %v1569_v12 }
 0x566   :  { %1705 = vadd.xlane.f32.xlu1 %v1704_v15  ;;  %v1440_v15 = vsel %vm1268_vm2, %v8143_v4, -inf }
 0x56a   :  { %1447 = vmax.xlane.f32.xlu1 %v1446_v9  ;;  %v8353_v9 = vpop.xlane.xlu1 %1393 }
 0x56b   :  { %11554 = vst [vmem:[#allocation205_spill] sm:$0xff] %v8353_v9  ;;  %v11562_v9 = vld [vmem:[#allocation52_spill] sm:$0xff] }
 0x56e   :  { %2216 = vmax.xlane.f32.xlu1 %v2215_v3  ;;  %v11556_v3 = vld [vmem:[#allocation53_spill] sm:$0xff] }
 0x56f   :  { %v2253_v44 = vsub.f32 %v11556_v3, %v11555_v26  ;;  %v8361_v38 = vpop.eup %5932  ;;  %v11561_v26 = vld [vmem:[#allocation125_spill] sm:$0xff] }
 0x570   :  { %11557 = vst [vmem:[#allocation122_spill] sm:$0xff] %v8361_v38  ;;  %v1719_v35 = vsel %vm1268_vm2, %v8361_v38, 0.0  ;;  %v2250_v4 = vsub.f32 %v11562_v9, %v11561_v26 }
 0x571   :  { %v2340_v12 = vmul.f32 1.442695, %v2253_v44 }
 0x572   :  { %3497 = vmax.xlane.f32.xlu1 %v3496_v14  ;;  %v8363_v14 = vpop.xlane.xlu1 %2162  ;;  %v2334_v52 = vmul.f32 1.442695, %v2250_v4  ;;  %v8387_v4 = vpop.xlane.xlu0 %1672 }
 0x573   :  { %11558 = vst [vmem:[#allocation53_spill] sm:$0xff] %v8363_v14  ;;  %5934 = vpow2.f32 %v2340_v12  ;;  %11566 = vst [vmem:[#allocation207_spill] sm:$0xff] %v8387_v4 }
 0x576   :  { %1441 = vmax.xlane.f32.xlu1 %v1440_v15  ;;  %v3534_v15 = vsub.f32 %v11556_v3, %v11559_v30  ;;  %v8375_v14 = vpop.xlane.xlu1 %3443 }
 0x577   :  { %11563 = vst [vmem:[#allocation125_spill] sm:$0xff] %v8375_v14 }
 0x57a   :  { %2210 = vmax.xlane.f32.xlu1 %v2209_v7  ;;  %v3621_v7 = vmul.f32 1.442695, %v3534_v15  ;;  %v8383_v12 = vpop.permute.xlu1 %2500  ;;  %v8395_v15 = vpop.permute.xlu0 %2494 }
 0x57c   :  { %5936 = vpow2.f32 %v3621_v7  ;;  %v11569_v7 = vld [vmem:[#allocation119_spill] sm:$0xff] }
 0x57d   :  { %5938 = vpow2.f32 %v2334_v52  ;;  %v8377_v30 = vpop.eup %5934  ;;  %v1484_v26 = vsub.f32 %v11556_v3, %v11569_v7 }
 0x57e   :  { %3491 = vmax.xlane.f32.xlu1 %v3490_v32  ;;  %v3531_v32 = vsub.f32 %v11562_v9, %v7891_v55  ;;  %11564 = vst [vmem:[#allocation52_spill] sm:$0xff] %v8377_v30  ;;  %v8403_v4 = vpop.permute.xlu0 %3775  ;;  %v8415_v7 = vpop.permute.xlu1 %3781 }
 0x57f   :  { %11571 = vst [vmem:[#allocation119_spill] sm:$0xff] %v8403_v4  ;;  %11576 = vst [vmem:[#allocation211_spill] sm:$0xff] %v8415_v7 }
 0x580   :  { %v3615_v44 = vmul.f32 1.442695, %v3531_v32  ;;  %v1571_v32 = vmul.f32 1.442695, %v1484_v26 }
 0x582   :  { %1720 = vadd.xlane.f32.xlu0 %v1719_v35  ;;  %5940 = vpow2.f32 %v3615_v44  ;;  %v11570_v44 = vld [vmem:[#allocation120_spill] sm:$0xff] }
 0x583   :  { %v1481_v38 = vsub.f32 %v11562_v9, %v11570_v44  ;;  %5942 = vpow2.f32 %v1571_v32 }
 0x586   :  { %v8381_v35 = vpop.eup %5936 }
 0x587   :  { %11565 = vst [vmem:[#allocation206_spill] sm:$0xff] %v8381_v35  ;;  %v8389_v55 = vpop.eup %5938 }
 0x588   :  { %11567 = vst [vmem:[#allocation208_spill] sm:$0xff] %v8389_v55 }
 0x58c   :  { %v8393_v52 = vpop.eup %5940 }
 0x58d   :  { %11568 = vst [vmem:[#allocation209_spill] sm:$0xff] %v8393_v52  ;;  %v8405_v14 = vpop.eup %5942 }
 0x58e   :  { %11572 = vst [vmem:[#allocation120_spill] sm:$0xff] %v8405_v14 }
 0x58f   :  { %2532 = vrot.lane.b32.xlu1 %v8377_v30, %s6577_s3  ;;  %v2251_v30 = vsub.f32 %v11573_v43, %v7858_v5  ;;  %v1455_v5 = vsel %vm1268_vm2, %v8281_v50, -inf }
 0x591   :  { %v2336_v9 = vmul.f32 1.442695, %v2251_v30  ;;  %v2224_v30 = vsel %vm2037_vm1, %v8281_v50, -inf }
 0x593   :  { %3813 = vrot.lane.b32.xlu1 %v8381_v35, %s6578_s15  ;;  %v1565_v35 = vmul.f32 1.442695, %v1481_v38  ;;  %v3532_v38 = vsub.f32 %v11573_v43, %v7873_v23  ;;  %v8429_v23 = vpop.xlane.xlu1 %1675 }
 0x594   :  { %11577 = vst [vmem:[#allocation212_spill] sm:$0xff] %v8429_v23  ;;  %v11581_v23 = vld [vmem:[#allocation57_spill] sm:$0xff] }
 0x595   :  { %5944 = vpow2.f32 %v1565_v35  ;;  %v3617_v32 = vmul.f32 1.442695, %v3532_v38 }
 0x596   :  { %5946 = vpow2.f32 %v2336_v9  ;;  %v1449_v9 = vsel %vm1268_vm2, %v8287_v45, -inf }
 0x597   :  { %5948 = vpow2.f32 %v3617_v32 }
 0x598   :  { %2526 = vrot.lane.b32.xlu0 %v8389_v55, %s6577_s3  ;;  %v8409_v55 = vpop.xlane.xlu0 %1666 }
 0x599   :  { %11574 = vst [vmem:[#allocation54_spill] sm:$0xff] %v8409_v55  ;;  %v11582_v55 = vld [vmem:[#allocation127_spill] sm:$0xff] }
 0x59c   :  { %3807 = vrot.lane.b32.xlu0 %v8393_v52, %s6578_s15  ;;  %v1722_v52 = vsel %vm1268_vm2, %v8405_v14, 0.0  ;;  %v8421_v26 = vpop.xlane.xlu0 %1408 }
 0x59f   :  { %v8413_v3 = vpop.eup %5944 }
 0x5a0   :  { %11575 = vst [vmem:[#allocation210_spill] sm:$0xff] %v8413_v3  ;;  %v1713_v35 = vsel %vm1268_vm2, %v8413_v3, 0.0  ;;  %v8425_v44 = vpop.xlane.xlu0 %2177  ;;  %v8433_v14 = vpop.eup %5946 }
 0x5a1   :  { %11578 = vst [vmem:[#allocation213_spill] sm:$0xff] %v8433_v14  ;;  %v8441_v38 = vpop.eup %5948 }
 0x5a2   :  { %11580 = vst [vmem:[#allocation215_spill] sm:$0xff] %v8441_v38 }
 0x5b7   :  { %1723 = vadd.xlane.f32.xlu1 %v1722_v52  ;;  %v3505_v52 = vsel %vm3318_vm3, %v8281_v50, -inf }
 0x5bb   :  { %1714 = vadd.xlane.f32.xlu0 %v1713_v35  ;;  %v8435_v35 = vpop.xlane.xlu0 %3458 }
 0x5bc   :  { %11579 = vst [vmem:[#allocation214_spill] sm:$0xff] %v8435_v35  ;;  %v1482_v35 = vsub.f32 %v11573_v43, %v11582_v55 }
 0x5be   :  { %v1567_v4 = vmul.f32 1.442695, %v1482_v35  ;;  %v1487_v35 = vsub.f32 %v11581_v23, %v7909_v63  ;;  %v2221_v63 = vsel %vm2037_vm1, %v8295_v62, -inf }
 0x5bf   :  { %1456 = vmax.xlane.f32.xlu0 %v1455_v5  ;;  %v8443_v5 = vpop.permute.xlu1 %2496  ;;  %v8447_v32 = vpop.xlane.xlu0 %1402 }
 0x5c3   :  { %2225 = vmax.xlane.f32.xlu0 %v2224_v30  ;;  %v2218_v30 = vsel %vm2037_vm1, %v8287_v45, -inf  ;;  %v8453_v3 = vpop.xlane.xlu0 %2171 }
 0x5c7   :  { %3506 = vmax.xlane.f32.xlu0 %v3505_v52  ;;  %v3499_v52 = vsel %vm3318_vm3, %v8287_v45, -inf  ;;  %v8463_v45 = vpop.xlane.xlu0 %3452 }
 0x5c8   :  { %2528 = vrot.lane.b32.xlu1 %v8433_v14, %s6577_s3  ;;  %11584 = vst [vmem:[#allocation127_spill] sm:$0xff] %v8463_v45 }
 0x5cb   :  { %1450 = vmax.xlane.f32.xlu0 %v1449_v9  ;;  %v2256_v9 = vsub.f32 %v11581_v23, %v7917_v21 }
 0x5cc   :  { %3809 = vrot.lane.b32.xlu1 %v8441_v38, %s6578_s15  ;;  %v3537_v38 = vsub.f32 %v11581_v23, %v7925_v33  ;;  %v8475_v33 = vpop.permute.xlu0 %2506  ;;  %v11590_v23 = vld [vmem:[#allocation59_spill] sm:$0xff] }
 0x5cd   :  { %v2346_v7 = vmul.f32 1.442695, %v2256_v9  ;;  %v2227_v9 = vsel %vm2037_vm1, %v8291_v13, -inf }
 0x5ce   :  { %v3627_v14 = vmul.f32 1.442695, %v3537_v38 }
 0x5cf   :  { %2219 = vmax.xlane.f32.xlu0 %v2218_v30  ;;  %5950 = vpow2.f32 %v2346_v7  ;;  %v8461_v30 = vpop.permute.xlu1 %3777  ;;  %v1458_v7 = vsel %vm1268_vm2, %v8291_v13, -inf }
 0x5d0   :  { %5952 = vpow2.f32 %v1567_v4  ;;  %11583 = vst [vmem:[#allocation57_spill] sm:$0xff] %v8461_v30  ;;  %v8513_v30 = vpop.permute.xlu0 %3787 }
 0x5d1   :  { %5954 = vpow2.f32 %v3627_v14  ;;  %11592 = vst [vmem:[#allocation221_spill] sm:$0xff] %v8513_v30 }
 0x5d3   :  { %3500 = vmax.xlane.f32.xlu0 %v3499_v52  ;;  %v8469_v21 = vpop.xlane.xlu1 %1669 }
 0x5d4   :  { %11586 = vst [vmem:[#allocation217_spill] sm:$0xff] %v8469_v21 }
 0x5d7   :  { %v8481_v4 = vpop.xlane.xlu1 %1411 }
 0x5d9   :  { %v8465_v52 = vpop.eup %5950 }
 0x5da   :  { %11585 = vst [vmem:[#allocation216_spill] sm:$0xff] %v8465_v52  ;;  %v8471_v43 = vpop.eup %5952 }
 0x5db   :  { %11587 = vst [vmem:[#allocation218_spill] sm:$0xff] %v8471_v43  ;;  %v8473_v55 = vpop.eup %5954  ;;  %v1716_v14 = vsel %vm1268_vm2, %v8471_v43, 0.0  ;;  %v8487_v38 = vpop.xlane.xlu1 %2180  ;;  %v3508_v43 = vsel %vm3318_vm3, %v8291_v13, -inf }
 0x5dc   :  { %11588 = vst [vmem:[#allocation219_spill] sm:$0xff] %v8473_v55 }
 0x5df   :  { %v8493_v21 = vpop.xlane.xlu1 %3461 }
 0x5e0   :  { %11589 = vst [vmem:[#allocation220_spill] sm:$0xff] %v8493_v21 }
 0x5e9   :  { %2538 = vrot.lane.b32.xlu0 %v8465_v52, %s6577_s3 }
 0x5ed   :  { %3819 = vrot.lane.b32.xlu0 %v8473_v55, %s6578_s15  ;;  %v1577_v55 = vmul.f32 1.442695, %v1487_v35  ;;  %v2257_v35 = vsub.f32 %v11590_v23, %v7897_v34 }
 0x5ef   :  { %5956 = vpow2.f32 %v1577_v55  ;;  %v2348_v55 = vmul.f32 1.442695, %v2257_v35 }
 0x5f0   :  { %1717 = vadd.xlane.f32.xlu1 %v1716_v14  ;;  %v1452_v14 = vsel %vm1268_vm2, %v8295_v62, -inf }
 0x5f1   :  { %5958 = vpow2.f32 %v2348_v55 }
 0x5f4   :  { %1459 = vmax.xlane.f32.xlu1 %v1458_v7  ;;  %v8497_v7 = vpop.xlane.xlu1 %1405 }
 0x5f8   :  { %2228 = vmax.xlane.f32.xlu1 %v2227_v9  ;;  %v3502_v9 = vsel %vm3318_vm3, %v8295_v62, -inf }
 0x5f9   :  { %v8505_v45 = vpop.eup %5956 }
 0x5fa   :  { %11591 = vst [vmem:[#allocation59_spill] sm:$0xff] %v8505_v45  ;;  %v1731_v21 = vsel %vm1268_vm2, %v8505_v45, 0.0 }
 0x5fc   :  { %3509 = vmax.xlane.f32.xlu1 %v3508_v43  ;;  %v8507_v43 = vpop.xlane.xlu1 %2174 }
 0x600   :  { %1453 = vmax.xlane.f32.xlu1 %v1452_v14  ;;  %v3538_v14 = vsub.f32 %v11590_v23, %v7905_v2  ;;  %v8519_v13 = vpop.xlane.xlu1 %3455  ;;  %v8521_v2 = vpop.eup %5958 }
 0x601   :  { %11595 = vst [vmem:[#allocation222_spill] sm:$0xff] %v8521_v2 }
 0x602   :  { %v3629_v34 = vmul.f32 1.442695, %v3538_v14  ;;  %v1488_v14 = vsub.f32 %v11590_v23, %v7885_v29 }
 0x604   :  { %2222 = vmax.xlane.f32.xlu1 %v2221_v63  ;;  %v11593_v63 = vld [vmem:[#allocation58_spill] sm:$0xff]  ;;  %5960 = vpow2.f32 %v3629_v34  ;;  %v8527_v55 = vpop.permute.xlu1 %2508  ;;  %v1579_v34 = vmul.f32 1.442695, %v1488_v14  ;;  %v11604_v14 = vld [vmem:[#allocation63_spill] sm:$0xff] }
 0x605   :  { %v2254_v52 = vsub.f32 %v11593_v63, %v7943_v27  ;;  %11594 = vst [vmem:[#allocation58_spill] sm:$0xff] %v8519_v13  ;;  %v8531_v27 = vpop.xlane.xlu0 %1684 }
 0x606   :  { %11597 = vst [vmem:[#allocation224_spill] sm:$0xff] %v8531_v27 }
 0x607   :  { %v2342_v62 = vmul.f32 1.442695, %v2254_v52 }
 0x608   :  { %3503 = vmax.xlane.f32.xlu1 %v3502_v9  ;;  %v3535_v9 = vsub.f32 %v11593_v63, %v7947_v49 }
 0x609   :  { %5962 = vpow2.f32 %v2342_v62  ;;  %v8539_v52 = vpop.permute.xlu0 %2502 }
 0x60a   :  { %v3623_v35 = vmul.f32 1.442695, %v3535_v9  ;;  %v1485_v9 = vsub.f32 %v11593_v63, %v7931_v37 }
 0x60c   :  { %1732 = vadd.xlane.f32.xlu0 %v1731_v21  ;;  %5964 = vpow2.f32 %v3623_v35  ;;  %v1573_v35 = vmul.f32 1.442695, %v1485_v9 }
 0x60d   :  { %5966 = vpow2.f32 %v1579_v34  ;;  %v8561_v63 = vpop.permute.xlu0 %3783  ;;  %v2260_v34 = vsub.f32 %v11604_v14, %v7977_v11 }
 0x60e   :  { %v8525_v21 = vpop.eup %5960  ;;  %5968 = vpow2.f32 %v1573_v35  ;;  %11603 = vst [vmem:[#allocation228_spill] sm:$0xff] %v8561_v63 }
 0x60f   :  { %11596 = vst [vmem:[#allocation223_spill] sm:$0xff] %v8525_v21  ;;  %v2354_v9 = vmul.f32 1.442695, %v2260_v34  ;;  %v11610_v34 = vld [vmem:[#allocation139_spill] sm:$0xff] }
 0x611   :  { %v8579_v11 = vpop.xlane.xlu0 %1678 }
 0x612   :  { %11608 = vst [vmem:[#allocation231_spill] sm:$0xff] %v8579_v11  ;;  %v11614_v11 = vld [vmem:[#allocation65_spill] sm:$0xff] }
 0x613   :  { %v8533_v49 = vpop.eup %5962 }
 0x616   :  { %v8537_v62 = vpop.eup %5964 }
 0x617   :  { %11598 = vst [vmem:[#allocation225_spill] sm:$0xff] %v8537_v62  ;;  %v8547_v45 = vpop.eup %5966 }
 0x618   :  { %11599 = vst [vmem:[#allocation226_spill] sm:$0xff] %v8547_v45  ;;  %v1734_v13 = vsel %vm1268_vm2, %v8547_v45, 0.0  ;;  %v8553_v30 = vpop.eup %5968 }
 0x619   :  { %2540 = vrot.lane.b32.xlu1 %v8521_v2, %s6577_s3  ;;  %v1725_v23 = vsel %vm1268_vm2, %v8553_v30, 0.0 }
 0x61d   :  { %3821 = vrot.lane.b32.xlu1 %v8525_v21, %s6578_s15  ;;  %v11600_v21 = vld [vmem:[#allocation61_spill] sm:$0xff] }
 0x61e   :  { %v2255_v27 = vsub.f32 %v11600_v21, %v7951_v24  ;;  %11601 = vst [vmem:[#allocation61_spill] sm:$0xff] %v8553_v30  ;;  %v3536_v37 = vsub.f32 %v11600_v21, %v7973_v17 }
 0x620   :  { %v2344_v29 = vmul.f32 1.442695, %v2255_v27  ;;  %v3625_v24 = vmul.f32 1.442695, %v3536_v37 }
 0x622   :  { %2534 = vrot.lane.b32.xlu0 %v8533_v49, %s6577_s3  ;;  %5970 = vpow2.f32 %v2344_v29 }
 0x623   :  { %5972 = vpow2.f32 %v3625_v24  ;;  %v8587_v24 = vpop.xlane.xlu0 %1420 }
 0x624   :  { %5974 = vpow2.f32 %v2354_v9  ;;  %v1486_v9 = vsub.f32 %v11600_v21, %v11610_v34  ;;  %v11617_v34 = vld [vmem:[#allocation154_spill] sm:$0xff] }
 0x626   :  { %3815 = vrot.lane.b32.xlu0 %v8537_v62, %s6578_s15  ;;  %v8555_v62 = vpop.permute.xlu1 %3789 }
 0x627   :  { %11602 = vst [vmem:[#allocation227_spill] sm:$0xff] %v8555_v62 }
 0x62a   :  { %v8567_v35 = vpop.xlane.xlu1 %1687 }
 0x62b   :  { %11605 = vst [vmem:[#allocation63_spill] sm:$0xff] %v8567_v35  ;;  %v11613_v35 = vld [vmem:[#allocation150_spill] sm:$0xff] }
 0x62c   :  { %v8569_v17 = vpop.eup %5970  ;;  %v2261_v62 = vsub.f32 %v11614_v11, %v11613_v35 }
 0x62d   :  { %11606 = vst [vmem:[#allocation229_spill] sm:$0xff] %v8569_v17  ;;  %v8573_v29 = vpop.eup %5972 }
 0x62e   :  { %11607 = vst [vmem:[#allocation230_spill] sm:$0xff] %v8573_v29  ;;  %v8575_v37 = vpop.permute.xlu1 %2504  ;;  %v2356_v21 = vmul.f32 1.442695, %v2261_v62 }
 0x641   :  { %1735 = vadd.xlane.f32.xlu1 %v1734_v13  ;;  %v3541_v13 = vsub.f32 %v11604_v14, %v7983_v25  ;;  %v8581_v25 = vpop.eup %5974 }
 0x643   :  { %v3635_v27 = vmul.f32 1.442695, %v3541_v13  ;;  %v1575_v13 = vmul.f32 1.442695, %v1486_v9  ;;  %v11618_v9 = vld [vmem:[#allocation153_spill] sm:$0xff] }
 0x645   :  { %1726 = vadd.xlane.f32.xlu0 %v1725_v23  ;;  %5976 = vpow2.f32 %v3635_v27  ;;  %v11611_v27 = vld [vmem:[#allocation141_spill] sm:$0xff] }
 0x646   :  { %v1491_v45 = vsub.f32 %v11604_v14, %v11611_v27  ;;  %5978 = vpow2.f32 %v1575_v13  ;;  %v3542_v14 = vsub.f32 %v11614_v11, %v11617_v34  ;;  %v11619_v13 = vld [vmem:[#allocation64_spill] sm:$0xff] }
 0x647   :  { %v2258_v27 = vsub.f32 %v11619_v13, %v11618_v9  ;;  %v11626_v9 = vld [vmem:[#allocation147_spill] sm:$0xff] }
 0x648   :  { %v1585_v30 = vmul.f32 1.442695, %v1491_v45  ;;  %v3637_v35 = vmul.f32 1.442695, %v3542_v14 }
 0x64a   :  { %5980 = vpow2.f32 %v1585_v30  ;;  %v8609_v30 = vpop.xlane.xlu0 %2189 }
 0x64b   :  { %5982 = vpow2.f32 %v2356_v21 }
 0x64c   :  { %5984 = vpow2.f32 %v3637_v35 }
 0x64f   :  { %v8585_v23 = vpop.eup %5976 }
 0x650   :  { %11609 = vst [vmem:[#allocation232_spill] sm:$0xff] %v8585_v23 }
 0x652   :  { %2536 = vrot.lane.b32.xlu1 %v8569_v17, %s6577_s3 }
 0x656   :  { %3817 = vrot.lane.b32.xlu1 %v8573_v29, %s6578_s15  ;;  %v8595_v29 = vpop.eup %5978 }
 0x657   :  { %11612 = vst [vmem:[#allocation139_spill] sm:$0xff] %v8595_v29  ;;  %v1728_v63 = vsel %vm1268_vm2, %v8595_v29, 0.0  ;;  %v8601_v17 = vpop.eup %5980  ;;  %v2350_v29 = vmul.f32 1.442695, %v2258_v27  ;;  %v1492_v27 = vsub.f32 %v11614_v11, %v11626_v9 }
 0x658   :  { %11615 = vst [vmem:[#allocation141_spill] sm:$0xff] %v8601_v17  ;;  %v1743_v45 = vsel %vm1268_vm2, %v8601_v17, 0.0  ;;  %v8617_v34 = vpop.eup %5982 }
 0x659   :  { %5986 = vpow2.f32 %v2350_v29  ;;  %11621 = vst [vmem:[#allocation154_spill] sm:$0xff] %v8617_v34  ;;  %v8621_v21 = vpop.eup %5984 }
 0x65a   :  { %11622 = vst [vmem:[#allocation153_spill] sm:$0xff] %v8621_v21 }
 0x65b   :  { %2546 = vrot.lane.b32.xlu0 %v8581_v25, %s6577_s3 }
 0x65f   :  { %3827 = vrot.lane.b32.xlu0 %v8585_v23, %s6578_s15  ;;  %v8603_v23 = vpop.permute.xlu1 %3785 }
 0x660   :  { %11616 = vst [vmem:[#allocation150_spill] sm:$0xff] %v8603_v23 }
 0x663   :  { %v8615_v23 = vpop.xlane.xlu1 %1681 }
 0x664   :  { %11620 = vst [vmem:[#allocation65_spill] sm:$0xff] %v8615_v23 }
 0x667   :  { %v8623_v14 = vpop.xlane.xlu1 %1423 }
 0x66b   :  { %v8653_v11 = vpop.xlane.xlu1 %2192 }
 0x67a   :  { %1729 = vadd.xlane.f32.xlu1 %v1728_v63  ;;  %v3539_v63 = vsub.f32 %v11619_v13, %v8065_v42  ;;  %v8629_v42 = vpop.eup %5986 }
 0x67b   :  { %11624 = vst [vmem:[#allocation233_spill] sm:$0xff] %v8629_v42 }
 0x67c   :  { %v3631_v62 = vmul.f32 1.442695, %v3539_v63  ;;  %v1587_v63 = vmul.f32 1.442695, %v1492_v27  ;;  %v2684_v27 = vsel %vm1268_vm2, %v8211_v22, 0.0  ;;  %v11634_v22 = vld [vmem:[#allocation67_spill] sm:$0xff] }
 0x67e   :  { %1744 = vadd.xlane.f32.xlu0 %v1743_v45  ;;  %5988 = vpow2.f32 %v3631_v62  ;;  %v8627_v45 = vpop.xlane.xlu0 %3470  ;;  %v11627_v62 = vld [vmem:[#allocation148_spill] sm:$0xff] }
 0x67f   :  { %11623 = vst [vmem:[#allocation64_spill] sm:$0xff] %v8627_v45  ;;  %v1489_v17 = vsub.f32 %v11619_v13, %v11627_v62  ;;  %5990 = vpow2.f32 %v1587_v63  ;;  %v11629_v45 = vld [vmem:[#allocation66_spill] sm:$0xff] }
 0x682   :  { %v8635_v35 = vpop.xlane.xlu0 %1414 }
 0x686   :  { %v8647_v2 = vpop.xlane.xlu0 %2183 }
 0x688   :  { %v8633_v29 = vpop.eup %5988 }
 0x689   :  { %11625 = vst [vmem:[#allocation234_spill] sm:$0xff] %v8633_v29  ;;  %v8643_v23 = vpop.eup %5990 }
 0x68a   :  { %11628 = vst [vmem:[#allocation147_spill] sm:$0xff] %v8643_v23 }
 0x68b   :  { %2548 = vrot.lane.b32.xlu1 %v8617_v34, %s6577_s3  ;;  %v2259_v34 = vsub.f32 %v11629_v45, %v8032_v60 }
 0x68d   :  { %v2352_v9 = vmul.f32 1.442695, %v2259_v34  ;;  %v2678_v34 = vsel %vm1268_vm2, %v8243_v61, 0.0 }
 0x68f   :  { %3829 = vrot.lane.b32.xlu1 %v8621_v21, %s6578_s15  ;;  %v1581_v21 = vmul.f32 1.442695, %v1489_v17  ;;  %v3540_v17 = vsub.f32 %v11629_v45, %v8047_v41  ;;  %v8667_v41 = vpop.xlane.xlu1 %3473 }
 0x690   :  { %11632 = vst [vmem:[#allocation235_spill] sm:$0xff] %v8667_v41 }
 0x691   :  { %5992 = vpow2.f32 %v1581_v21  ;;  %v8659_v21 = vpop.xlane.xlu0 %3464  ;;  %v3633_v60 = vmul.f32 1.442695, %v3540_v17  ;;  %v2264_v17 = vsub.f32 %v11634_v22, %v8091_v10 }
 0x692   :  { %11631 = vst [vmem:[#allocation66_spill] sm:$0xff] %v8659_v21  ;;  %5994 = vpow2.f32 %v2352_v9 }
 0x693   :  { %5996 = vpow2.f32 %v3633_v60  ;;  %v8681_v61 = vpop.xlane.xlu1 %1417  ;;  %v2362_v60 = vmul.f32 1.442695, %v2264_v17 }
 0x694   :  { %2542 = vrot.lane.b32.xlu0 %v8629_v42, %s6577_s3 }
 0x695   :  { %v8663_v63 = vpop.permute.xlu0 %2514  ;;  %5998 = vpow2.f32 %v2362_v60  ;;  %v11639_v60 = vld [vmem:[#allocation69_spill] sm:$0xff] }
 0x697   :  { %v8697_v17 = vpop.xlane.xlu1 %2186 }
 0x698   :  { %3823 = vrot.lane.b32.xlu0 %v8633_v29, %s6578_s15  ;;  %v1746_v29 = vsel %vm1268_vm2, %v8643_v23, 0.0  ;;  %v1495_v23 = vsub.f32 %v11634_v22, %v8083_v46 }
 0x699   :  { %v8673_v9 = vpop.permute.xlu0 %3795 }
 0x69a   :  { %11633 = vst [vmem:[#allocation236_spill] sm:$0xff] %v8673_v9 }
 0x69b   :  { %v8651_v42 = vpop.eup %5992 }
 0x69c   :  { %11630 = vst [vmem:[#allocation148_spill] sm:$0xff] %v8651_v42  ;;  %v1737_v13 = vsel %vm1268_vm2, %v8651_v42, 0.0  ;;  %v8671_v62 = vpop.eup %5994  ;;  %v1593_v42 = vmul.f32 1.442695, %v1495_v23 }
 0x6b3   :  { %1747 = vadd.xlane.f32.xlu1 %v1746_v29  ;;  %v2687_v29 = vsel %vm1268_vm2, %v8231_v57, 0.0  ;;  %v11636_v57 = vld [vmem:[#allocation155_spill] sm:$0xff] }
 0x6b7   :  { %1738 = vadd.xlane.f32.xlu0 %v1737_v13  ;;  %v8679_v13 = vpop.eup %5996 }
 0x6b8   :  { %11635 = vst [vmem:[#allocation67_spill] sm:$0xff] %v8679_v13 }
 0x6bb   :  { %2685 = vadd.xlane.f32.xlu0 %v2684_v27  ;;  %v1490_v27 = vsub.f32 %v11629_v45, %v11636_v57  ;;  %v2265_v57 = vsub.f32 %v11639_v60, %v8071_v40 }
 0x6bd   :  { %v1583_v10 = vmul.f32 1.442695, %v1490_v27  ;;  %v2681_v27 = vsel %vm1268_vm2, %v8299_v59, 0.0  ;;  %v2364_v46 = vmul.f32 1.442695, %v2265_v57 }
 0x6bf   :  { %2679 = vadd.xlane.f32.xlu0 %v2678_v34  ;;  %v8687_v34 = vpop.eup %5998  ;;  %6000 = vpow2.f32 %v1583_v10  ;;  %v8705_v10 = vpop.xlane.xlu1 %3467 }
 0x6c0   :  { %6002 = vpow2.f32 %v1593_v42  ;;  %11640 = vst [vmem:[#allocation238_spill] sm:$0xff] %v8705_v10 }
 0x6c1   :  { %6004 = vpow2.f32 %v2364_v46  ;;  %v1496_v46 = vsub.f32 %v11639_v60, %v8059_v8 }
 0x6c3   :  { %2688 = vadd.xlane.f32.xlu0 %v2687_v29  ;;  %v8689_v29 = vpop.xlane.xlu0 %1696  ;;  %v8717_v59 = vpop.permute.xlu1 %2516 }
 0x6c4   :  { %2544 = vrot.lane.b32.xlu1 %v8671_v62, %s6577_s3  ;;  %11637 = vst [vmem:[#allocation155_spill] sm:$0xff] %v8689_v29 }
 0x6c7   :  { %v8737_v9 = vpop.permute.xlu1 %3797 }
 0x6c8   :  { %3825 = vrot.lane.b32.xlu1 %v8679_v13, %s6578_s15  ;;  %v8711_v13 = vpop.permute.xlu0 %2510 }
 0x6c9   :  { %v8695_v41 = vpop.eup %6000 }
 0x6ca   :  { %11638 = vst [vmem:[#allocation237_spill] sm:$0xff] %v8695_v41  ;;  %v1740_v45 = vsel %vm1268_vm2, %v8695_v41, 0.0  ;;  %v8707_v23 = vpop.eup %6002 }
 0x6cb   :  { %11641 = vst [vmem:[#allocation239_spill] sm:$0xff] %v8707_v23  ;;  %v1755_v42 = vsel %vm1268_vm2, %v8707_v23, 0.0  ;;  %v8715_v29 = vpop.eup %6004 }
 0x6d9   :  { %2554 = vrot.lane.b32.xlu0 %v8687_v34, %s6577_s3 }
 0x6ec   :  { %1741 = vadd.xlane.f32.xlu1 %v1740_v45  ;;  %v11642_v45 = vld [vmem:[#allocation68_spill] sm:$0xff] }
 0x6ed   :  { %v2262_v41 = vsub.f32 %v11642_v45, %v8117_v16  ;;  %v1595_v16 = vmul.f32 1.442695, %v1496_v46 }
 0x6ef   :  { %v2358_v40 = vmul.f32 1.442695, %v2262_v41  ;;  %v1493_v41 = vsub.f32 %v11642_v45, %v8105_v56 }
 0x6f0   :  { %2682 = vadd.xlane.f32.xlu1 %v2681_v27  ;;  %v8723_v27 = vpop.permute.xlu0 %3791 }
 0x6f1   :  { %6006 = vpow2.f32 %v2358_v40  ;;  %11643 = vst [vmem:[#allocation68_spill] sm:$0xff] %v8723_v27  ;;  %v11645_v40 = vld [vmem:[#allocation70_spill] sm:$0xff] }
 0x6f2   :  { %6008 = vpow2.f32 %v1595_v16  ;;  %v2263_v21 = vsub.f32 %v11645_v40, %v8125_v6  ;;  %11646 = vst [vmem:[#allocation70_spill] sm:$0xff] %v8737_v9  ;;  %v2696_v6 = vsel %vm1268_vm2, %v8331_v31, 0.0  ;;  %v1494_v31 = vsub.f32 %v11645_v40, %v8111_v0 }
 0x6f4   :  { %v2360_v27 = vmul.f32 1.442695, %v2263_v21  ;;  %v8741_v46 = vpop.xlane.xlu0 %1690 }
 0x6f5   :  { %11648 = vst [vmem:[#allocation242_spill] sm:$0xff] %v8741_v46 }
 0x6f8   :  { %1756 = vadd.xlane.f32.xlu0 %v1755_v42  ;;  %v1589_v42 = vmul.f32 1.442695, %v1493_v41  ;;  %v8745_v16 = vpop.xlane.xlu0 %1432  ;;  %v2690_v41 = vsel %vm1268_vm2, %v8395_v15, 0.0 }
 0x6fa   :  { %6010 = vpow2.f32 %v1589_v42  ;;  %v8755_v42 = vpop.xlane.xlu1 %1699 }
 0x6fb   :  { %v8721_v57 = vpop.eup %6006  ;;  %6012 = vpow2.f32 %v2360_v27  ;;  %11649 = vst [vmem:[#allocation243_spill] sm:$0xff] %v8755_v42  ;;  %v11650_v27 = vld [vmem:[#allocation71_spill] sm:$0xff] }
 0x6fc   :  { %v8731_v23 = vpop.eup %6008  ;;  %v8753_v21 = vpop.xlane.xlu0 %2201 }
 0x6fd   :  { %11644 = vst [vmem:[#allocation240_spill] sm:$0xff] %v8731_v23  ;;  %v1758_v10 = vsel %vm1268_vm2, %v8731_v23, 0.0 }
 0x701   :  { %2556 = vrot.lane.b32.xlu1 %v8715_v29, %s6577_s3 }
 0x704   :  { %v8739_v8 = vpop.eup %6010 }
 0x705   :  { %11647 = vst [vmem:[#allocation241_spill] sm:$0xff] %v8739_v8  ;;  %v1749_v56 = vsel %vm1268_vm2, %v8739_v8, 0.0  ;;  %v8765_v8 = vpop.xlane.xlu0 %3482 }
 0x706   :  { %11651 = vst [vmem:[#allocation244_spill] sm:$0xff] %v8765_v8 }
 0x70e   :  { %2550 = vrot.lane.b32.xlu0 %v8721_v57, %s6577_s3 }
 0x725   :  { %1759 = vadd.xlane.f32.xlu1 %v1758_v10  ;;  %v8751_v10 = vpop.eup %6012 }
 0x72d   :  { %1750 = vadd.xlane.f32.xlu0 %v1749_v56  ;;  %v2268_v56 = vsub.f32 %v11650_v27, %v8151_v51 }
 0x72f   :  { %v2370_v23 = vmul.f32 1.442695, %v2268_v56  ;;  %v8773_v56 = vpop.permute.xlu1 %2512 }
 0x731   :  { %2697 = vadd.xlane.f32.xlu0 %v2696_v6  ;;  %6014 = vpow2.f32 %v2370_v23  ;;  %v1591_v6 = vmul.f32 1.442695, %v1494_v31  ;;  %v2699_v23 = vsel %vm1268_vm2, %v8383_v12, 0.0  ;;  %v8791_v12 = vpop.xlane.xlu0 %1426 }
 0x733   :  { %6016 = vpow2.f32 %v1591_v6  ;;  %v8779_v31 = vpop.permute.xlu1 %3793  ;;  %v11654_v6 = vld [vmem:[#allocation73_spill] sm:$0xff] }
 0x734   :  { %11653 = vst [vmem:[#allocation246_spill] sm:$0xff] %v8779_v31  ;;  %v2269_v46 = vsub.f32 %v11654_v6, %v8173_v18 }
 0x735   :  { %2691 = vadd.xlane.f32.xlu0 %v2690_v41  ;;  %v1499_v41 = vsub.f32 %v11650_v27, %v8133_v1  ;;  %v2693_v1 = vsel %vm1268_vm2, %v8443_v5, 0.0 }
 0x736   :  { %2552 = vrot.lane.b32.xlu1 %v8751_v10, %s6577_s3  ;;  %v2372_v8 = vmul.f32 1.442695, %v2269_v46 }
 0x737   :  { %v1601_v51 = vmul.f32 1.442695, %v1499_v41  ;;  %v8785_v41 = vpop.xlane.xlu1 %1693 }
 0x738   :  { %11655 = vst [vmem:[#allocation247_spill] sm:$0xff] %v8785_v41 }
 0x739   :  { %6018 = vpow2.f32 %v1601_v51 }
 0x73a   :  { %6020 = vpow2.f32 %v2372_v8  ;;  %v8803_v8 = vpop.xlane.xlu0 %2195 }
 0x73b   :  { %v8763_v15 = vpop.eup %6014  ;;  %v8797_v5 = vpop.xlane.xlu1 %1435 }
 0x73d   :  { %v8771_v42 = vpop.eup %6016 }
 0x73e   :  { %11652 = vst [vmem:[#allocation245_spill] sm:$0xff] %v8771_v42  ;;  %v1752_v0 = vsel %vm1268_vm2, %v8771_v42, 0.0 }
 0x73f   :  { %v8817_v27 = vpop.xlane.xlu1 %2204 }
 0x743   :  { %v8787_v9 = vpop.eup %6018 }
 0x744   :  { %11656 = vst [vmem:[#allocation248_spill] sm:$0xff] %v8787_v9  ;;  %v1767_v51 = vsel %vm1268_vm2, %v8787_v9, 0.0  ;;  %v8795_v42 = vpop.eup %6020 }
 0x74b   :  { %2562 = vrot.lane.b32.xlu0 %v8763_v15, %s6577_s3 }
 0x75a   :  { %1753 = vadd.xlane.f32.xlu1 %v1752_v0  ;;  %v11657_v0 = vld [vmem:[#allocation72_spill] sm:$0xff] }
 0x75e   :  { %2700 = vadd.xlane.f32.xlu1 %v2699_v23  ;;  %v2266_v23 = vsub.f32 %v11657_v0, %v8179_v39 }
 0x760   :  { %v2366_v18 = vmul.f32 1.442695, %v2266_v23 }
 0x762   :  { %2694 = vadd.xlane.f32.xlu1 %v2693_v1  ;;  %6022 = vpow2.f32 %v2366_v18  ;;  %v1500_v1 = vsub.f32 %v11654_v6, %v8165_v36  ;;  %v11659_v18 = vld [vmem:[#allocation74_spill] sm:$0xff] }
 0x763   :  { %v2267_v41 = vsub.f32 %v11659_v18, %v8197_v58  ;;  %v2708_v58 = vsel %vm1268_vm2, %v8475_v33, 0.0  ;;  %v1498_v33 = vsub.f32 %v11659_v18, %v8191_v48 }
 0x764   :  { %v1603_v39 = vmul.f32 1.442695, %v1500_v1  ;;  %v8821_v1 = vpop.xlane.xlu0 %3476 }
 0x765   :  { %v2368_v60 = vmul.f32 1.442695, %v2267_v41  ;;  %11661 = vst [vmem:[#allocation251_spill] sm:$0xff] %v8821_v1 }
 0x766   :  { %6024 = vpow2.f32 %v1603_v39 }
 0x768   :  { %v8825_v39 = vpop.permute.xlu0 %2522 }
 0x76a   :  { %1768 = vadd.xlane.f32.xlu0 %v1767_v51  ;;  %v1497_v51 = vsub.f32 %v11657_v0, %v8167_v20 }
 0x76c   :  { %v8801_v46 = vpop.eup %6022  ;;  %v1597_v23 = vmul.f32 1.442695, %v1497_v51  ;;  %v2702_v51 = vsel %vm1268_vm2, %v8539_v52, 0.0  ;;  %v8833_v41 = vpop.permute.xlu0 %3803 }
 0x76d   :  { %11662 = vst [vmem:[#allocation252_spill] sm:$0xff] %v8833_v41 }
 0x76e   :  { %6026 = vpow2.f32 %v1597_v23  ;;  %v8835_v23 = vpop.xlane.xlu1 %3485 }
 0x76f   :  { %6028 = vpow2.f32 %v2368_v60  ;;  %11663 = vst [vmem:[#allocation253_spill] sm:$0xff] %v8835_v23  ;;  %v11664_v60 = vld [vmem:[#allocation75_spill] sm:$0xff] }
 0x770   :  { %v8811_v9 = vpop.eup %6024 }
 0x771   :  { %11658 = vst [vmem:[#allocation249_spill] sm:$0xff] %v8811_v9  ;;  %v1770_v31 = vsel %vm1268_vm2, %v8811_v9, 0.0 }
 0x773   :  { %2564 = vrot.lane.b32.xlu1 %v8795_v42, %s6577_s3 }
 0x778   :  { %v8819_v36 = vpop.eup %6026 }
 0x779   :  { %11660 = vst [vmem:[#allocation250_spill] sm:$0xff] %v8819_v36  ;;  %v1761_v20 = vsel %vm1268_vm2, %v8819_v36, 0.0  ;;  %v8845_v36 = vpop.xlane.xlu0 %1708 }
 0x77a   :  { %11665 = vst [vmem:[#allocation254_spill] sm:$0xff] %v8845_v36 }
 0x780   :  { %2558 = vrot.lane.b32.xlu0 %v8801_v46, %s6577_s3 }
 0x797   :  { %1771 = vadd.xlane.f32.xlu1 %v1770_v31  ;;  %v8831_v31 = vpop.eup %6028 }
 0x79f   :  { %1762 = vadd.xlane.f32.xlu0 %v1761_v20  ;;  %v2272_v20 = vsub.f32 %v11664_v60, %v8273_v19  ;;  %v8853_v19 = vpop.xlane.xlu1 %1429 }
 0x7a1   :  { %v2378_v9 = vmul.f32 1.442695, %v2272_v20 }
 0x7a3   :  { %2709 = vadd.xlane.f32.xlu0 %v2708_v58  ;;  %6030 = vpow2.f32 %v2378_v9  ;;  %v1599_v58 = vmul.f32 1.442695, %v1498_v33  ;;  %v8857_v20 = vpop.xlane.xlu1 %2198  ;;  %v2711_v33 = vsel %vm1268_vm2, %v8527_v55, 0.0  ;;  %v11670_v55 = vld [vmem:[#allocation76_spill] sm:$0xff] }
 0x7a5   :  { %6032 = vpow2.f32 %v1599_v58  ;;  %v11667_v58 = vld [vmem:[#allocation77_spill] sm:$0xff] }
 0x7a6   :  { %v2273_v36 = vsub.f32 %v11667_v58, %v8343_v53 }
 0x7a7   :  { %2703 = vadd.xlane.f32.xlu0 %v2702_v51  ;;  %v1503_v51 = vsub.f32 %v11664_v60, %v8269_v47  ;;  %v2705_v47 = vsel %vm1268_vm2, %v8575_v37, 0.0  ;;  %v8865_v1 = vpop.xlane.xlu1 %3479  ;;  %v11675_v60 = vld [vmem:[#allocation78_spill] sm:$0xff] }
 0x7a8   :  { %2560 = vrot.lane.b32.xlu1 %v8831_v31, %s6577_s3  ;;  %11668 = vst [vmem:[#allocation256_spill] sm:$0xff] %v8865_v1 }
 0x7a9   :  { %v1609_v9 = vmul.f32 1.442695, %v1503_v51  ;;  %v2380_v51 = vmul.f32 1.442695, %v2273_v36 }
 0x7ab   :  { %6034 = vpow2.f32 %v1609_v9  ;;  %v8877_v37 = vpop.permute.xlu1 %2524 }
 0x7ac   :  { %6036 = vpow2.f32 %v2380_v51  ;;  %v1504_v51 = vsub.f32 %v11667_v58, %v8337_v28 }
 0x7ad   :  { %v8843_v52 = vpop.eup %6030 }
 0x7af   :  { %v8851_v23 = vpop.eup %6032  ;;  %v8897_v0 = vpop.permute.xlu1 %3805 }
 0x7b0   :  { %11666 = vst [vmem:[#allocation255_spill] sm:$0xff] %v8851_v23  ;;  %v1764_v48 = vsel %vm1268_vm2, %v8851_v23, 0.0 }
 0x7b5   :  { %v8867_v41 = vpop.eup %6034 }
 0x7b6   :  { %11669 = vst [vmem:[#allocation257_spill] sm:$0xff] %v8867_v41  ;;  %v1779_v9 = vsel %vm1268_vm2, %v8867_v41, 0.0  ;;  %v8875_v23 = vpop.eup %6036 }
 0x7bd   :  { %2570 = vrot.lane.b32.xlu0 %v8843_v52, %s6577_s3 }
 0x7cc   :  { %1765 = vadd.xlane.f32.xlu1 %v1764_v48  ;;  %v8871_v48 = vpop.permute.xlu0 %2518 }
 0x7d0   :  { %2712 = vadd.xlane.f32.xlu1 %v2711_v33  ;;  %v2270_v33 = vsub.f32 %v11670_v55, %v8309_v54  ;;  %v1611_v54 = vmul.f32 1.442695, %v1504_v51 }
 0x7d2   :  { %v2374_v53 = vmul.f32 1.442695, %v2270_v33 }
 0x7d4   :  { %2706 = vadd.xlane.f32.xlu1 %v2705_v47  ;;  %6038 = vpow2.f32 %v2374_v53  ;;  %v8883_v47 = vpop.permute.xlu0 %3799  ;;  %v11674_v53 = vld [vmem:[#allocation53_spill] sm:$0xff] }
 0x7d5   :  { %11671 = vst [vmem:[#allocation258_spill] sm:$0xff] %v8883_v47  ;;  %6040 = vpow2.f32 %v1611_v54  ;;  %v2271_v6 = vsub.f32 %v11675_v60, %v11674_v53  ;;  %11676 = vst [vmem:[#allocation53_spill] sm:$0xff] %v8897_v0  ;;  %v8915_v53 = vpop.xlane.xlu1 %1711 }
 0x7d6   :  { %11679 = vst [vmem:[#allocation260_spill] sm:$0xff] %v8915_v53 }
 0x7d7   :  { %v2376_v18 = vmul.f32 1.442695, %v2271_v6 }
 0x7d8   :  { %v8901_v51 = vpop.xlane.xlu0 %1702 }
 0x7d9   :  { %11678 = vst [vmem:[#allocation259_spill] sm:$0xff] %v8901_v51 }
 0x7dc   :  { %1780 = vadd.xlane.f32.xlu0 %v1779_v9  ;;  %v11672_v9 = vld [vmem:[#allocation198_spill] sm:$0xff]  ;;  %v8905_v54 = vpop.xlane.xlu0 %1444 }
 0x7dd   :  { %v1501_v33 = vsub.f32 %v11670_v55, %v11672_v9  ;;  %v2720_v9 = vsel %vm1268_vm2, %v8663_v63, 0.0  ;;  %v11681_v63 = vld [vmem:[#allocation205_spill] sm:$0xff] }
 0x7de   :  { %v8881_v36 = vpop.eup %6038 }
 0x7df   :  { %v1605_v41 = vmul.f32 1.442695, %v1501_v33  ;;  %v8891_v1 = vpop.eup %6040  ;;  %v2714_v33 = vsel %vm1268_vm2, %v8711_v13, 0.0 }
 0x7e0   :  { %11673 = vst [vmem:[#allocation198_spill] sm:$0xff] %v8891_v1  ;;  %v1782_v47 = vsel %vm1268_vm2, %v8891_v1, 0.0  ;;  %v8913_v6 = vpop.xlane.xlu0 %2213 }
 0x7e1   :  { %6042 = vpow2.f32 %v1605_v41 }
 0x7e2   :  { %6044 = vpow2.f32 %v2376_v18  ;;  %v11680_v18 = vld [vmem:[#allocation93_spill] sm:$0xff] }
 0x7e4   :  { %v8925_v51 = vpop.xlane.xlu0 %3494 }
 0x7e5   :  { %2572 = vrot.lane.b32.xlu1 %v8875_v23, %s6577_s3  ;;  %11682 = vst [vmem:[#allocation205_spill] sm:$0xff] %v8925_v51 }
 0x7eb   :  { %v8899_v28 = vpop.eup %6042 }
 0x7ec   :  { %11677 = vst [vmem:[#allocation78_spill] sm:$0xff] %v8899_v28  ;;  %v1773_v41 = vsel %vm1268_vm2, %v8899_v28, 0.0 }
 0x7f2   :  { %2566 = vrot.lane.b32.xlu0 %v8881_v36, %s6577_s3 }
 0x809   :  { %1783 = vadd.xlane.f32.xlu1 %v1782_v47  ;;  %v8911_v47 = vpop.eup %6044 }
 0x811   :  { %1774 = vadd.xlane.f32.xlu0 %v1773_v41  ;;  %v2276_v41 = vsub.f32 %v11680_v18, %v8425_v44 }
 0x813   :  { %v2386_v1 = vmul.f32 1.442695, %v2276_v41  ;;  %v8933_v41 = vpop.permute.xlu1 %2520 }
 0x815   :  { %2721 = vadd.xlane.f32.xlu0 %v2720_v9  ;;  %6046 = vpow2.f32 %v2386_v1  ;;  %v1502_v9 = vsub.f32 %v11675_v60, %v11681_v63  ;;  %v2723_v63 = vsel %vm1268_vm2, %v8717_v59, 0.0  ;;  %v8951_v59 = vpop.xlane.xlu0 %1438 }
 0x817   :  { %v1607_v28 = vmul.f32 1.442695, %v1502_v9  ;;  %v8939_v9 = vpop.permute.xlu1 %3801 }
 0x818   :  { %11684 = vst [vmem:[#allocation262_spill] sm:$0xff] %v8939_v9 }
 0x819   :  { %2715 = vadd.xlane.f32.xlu0 %v2714_v33  ;;  %6048 = vpow2.f32 %v1607_v28  ;;  %v1507_v33 = vsub.f32 %v11680_v18, %v8421_v26  ;;  %v11685_v28 = vld [vmem:[#allocation96_spill] sm:$0xff]  ;;  %v2717_v26 = vsel %vm1268_vm2, %v8773_v56, 0.0 }
 0x81a   :  { %2568 = vrot.lane.b32.xlu1 %v8911_v47, %s6577_s3  ;;  %v2277_v51 = vsub.f32 %v11685_v28, %v8487_v38 }
 0x81b   :  { %v1617_v44 = vmul.f32 1.442695, %v1507_v33  ;;  %v8945_v33 = vpop.xlane.xlu1 %1705 }
 0x81c   :  { %11686 = vst [vmem:[#allocation263_spill] sm:$0xff] %v8945_v33  ;;  %v2388_v0 = vmul.f32 1.442695, %v2277_v51 }
 0x81d   :  { %6050 = vpow2.f32 %v1617_v44 }
 0x81e   :  { %6052 = vpow2.f32 %v2388_v0  ;;  %v8963_v0 = vpop.xlane.xlu0 %2207 }
 0x81f   :  { %v8923_v13 = vpop.eup %6046  ;;  %v8957_v56 = vpop.xlane.xlu1 %1447 }
 0x823   :  { %v8931_v53 = vpop.eup %6048  ;;  %v8977_v58 = vpop.xlane.xlu1 %2216 }
 0x824   :  { %11683 = vst [vmem:[#allocation261_spill] sm:$0xff] %v8931_v53  ;;  %v1776_v1 = vsel %vm1268_vm2, %v8931_v53, 0.0 }
 0x827   :  { %v8947_v18 = vpop.eup %6050 }
 0x828   :  { %11687 = vst [vmem:[#allocation264_spill] sm:$0xff] %v8947_v18  ;;  %v1791_v44 = vsel %vm1268_vm2, %v8947_v18, 0.0  ;;  %v8955_v53 = vpop.eup %6052 }
 0x82f   :  { %2578 = vrot.lane.b32.xlu0 %v8923_v13, %s6577_s3 }
 0x83e   :  { %1777 = vadd.xlane.f32.xlu1 %v1776_v1  ;;  %v11688_v1 = vld [vmem:[#allocation95_spill] sm:$0xff] }
 0x842   :  { %2724 = vadd.xlane.f32.xlu1 %v2723_v63  ;;  %v2274_v63 = vsub.f32 %v11688_v1, %v8453_v3 }
 0x844   :  { %v2382_v38 = vmul.f32 1.442695, %v2274_v63 }
 0x846   :  { %2718 = vadd.xlane.f32.xlu1 %v2717_v26  ;;  %6054 = vpow2.f32 %v2382_v38  ;;  %v1508_v26 = vsub.f32 %v11685_v28, %v8481_v4  ;;  %v11690_v38 = vld [vmem:[#allocation97_spill] sm:$0xff] }
 0x847   :  { %v2275_v33 = vsub.f32 %v11690_v38, %v8507_v43  ;;  %v2732_v43 = vsel %vm1268_vm2, %v8825_v39, 0.0  ;;  %v1506_v39 = vsub.f32 %v11690_v38, %v8497_v7 }
 0x848   :  { %v1619_v3 = vmul.f32 1.442695, %v1508_v26  ;;  %v8981_v26 = vpop.xlane.xlu0 %3488 }
 0x849   :  { %v2384_v55 = vmul.f32 1.442695, %v2275_v33  ;;  %11692 = vst [vmem:[#allocation265_spill] sm:$0xff] %v8981_v26 }
 0x84a   :  { %6056 = vpow2.f32 %v1619_v3 }
 0x84c   :  { %v8985_v3 = vpop.permute.xlu0 %2530 }
 0x84e   :  { %1792 = vadd.xlane.f32.xlu0 %v1791_v44  ;;  %v1505_v44 = vsub.f32 %v11688_v1, %v8447_v32 }
 0x850   :  { %v8961_v51 = vpop.eup %6054  ;;  %v1613_v63 = vmul.f32 1.442695, %v1505_v44  ;;  %v2726_v44 = vsel %vm1268_vm2, %v8871_v48, 0.0  ;;  %v8993_v33 = vpop.permute.xlu0 %3811 }
 0x851   :  { %11693 = vst [vmem:[#allocation266_spill] sm:$0xff] %v8993_v33 }
 0x852   :  { %6058 = vpow2.f32 %v1613_v63  ;;  %v8995_v63 = vpop.xlane.xlu1 %3497 }
 0x853   :  { %6060 = vpow2.f32 %v2384_v55  ;;  %11694 = vst [vmem:[#allocation267_spill] sm:$0xff] %v8995_v63  ;;  %v11695_v55 = vld [vmem:[#allocation114_spill] sm:$0xff] }
 0x854   :  { %v8971_v18 = vpop.eup %6056 }
 0x855   :  { %11689 = vst [vmem:[#allocation95_spill] sm:$0xff] %v8971_v18  ;;  %v1794_v9 = vsel %vm1268_vm2, %v8971_v18, 0.0 }
 0x857   :  { %2580 = vrot.lane.b32.xlu1 %v8955_v53, %s6577_s3 }
 0x85c   :  { %v8979_v4 = vpop.eup %6058 }
 0x85d   :  { %11691 = vst [vmem:[#allocation97_spill] sm:$0xff] %v8979_v4  ;;  %v1785_v32 = vsel %vm1268_vm2, %v8979_v4, 0.0  ;;  %v9005_v4 = vpop.xlane.xlu0 %1720 }
 0x85e   :  { %11696 = vst [vmem:[#allocation268_spill] sm:$0xff] %v9005_v4 }
 0x864   :  { %2574 = vrot.lane.b32.xlu0 %v8961_v51, %s6577_s3 }
 0x87b   :  { %1795 = vadd.xlane.f32.xlu1 %v1794_v9  ;;  %v8991_v9 = vpop.eup %6060 }
 0x883   :  { %1786 = vadd.xlane.f32.xlu0 %v1785_v32  ;;  %v2280_v32 = vsub.f32 %v11695_v55, %v8609_v30  ;;  %v9013_v30 = vpop.xlane.xlu1 %1441 }
 0x885   :  { %v2394_v18 = vmul.f32 1.442695, %v2280_v32 }
 0x887   :  { %2733 = vadd.xlane.f32.xlu0 %v2732_v43  ;;  %6062 = vpow2.f32 %v2394_v18  ;;  %v1615_v43 = vmul.f32 1.442695, %v1506_v39  ;;  %v9017_v32 = vpop.xlane.xlu1 %2210  ;;  %v2735_v39 = vsel %vm1268_vm2, %v8877_v37, 0.0  ;;  %v11701_v37 = vld [vmem:[#allocation115_spill] sm:$0xff] }
 0x889   :  { %6064 = vpow2.f32 %v1615_v43  ;;  %v11698_v43 = vld [vmem:[#allocation117_spill] sm:$0xff] }
 0x88a   :  { %v2281_v4 = vsub.f32 %v11698_v43, %v8653_v11 }
 0x88b   :  { %2727 = vadd.xlane.f32.xlu0 %v2726_v44  ;;  %v1511_v44 = vsub.f32 %v11695_v55, %v8587_v24  ;;  %v2729_v24 = vsel %vm1268_vm2, %v8933_v41, 0.0  ;;  %v9025_v26 = vpop.xlane.xlu1 %3491 }
 0x88c   :  { %2576 = vrot.lane.b32.xlu1 %v8991_v9, %s6577_s3  ;;  %11699 = vst [vmem:[#allocation270_spill] sm:$0xff] %v9025_v26 }
 0x88d   :  { %v1625_v18 = vmul.f32 1.442695, %v1511_v44  ;;  %v2396_v44 = vmul.f32 1.442695, %v2281_v4 }
 0x88f   :  { %6066 = vpow2.f32 %v1625_v18  ;;  %v2533_v55 = vpop.permute.xlu1 %2532 }
 0x890   :  { %6068 = vpow2.f32 %v2396_v44 }
 0x891   :  { %v9003_v48 = vpop.eup %6062 }
 0x893   :  { %v9011_v63 = vpop.eup %6064 }
 0x894   :  { %11697 = vst [vmem:[#allocation269_spill] sm:$0xff] %v9011_v63  ;;  %v1788_v7 = vsel %vm1268_vm2, %v9011_v63, 0.0 }
 0x899   :  { %v9027_v33 = vpop.eup %6066 }
 0x89a   :  { %11700 = vst [vmem:[#allocation271_spill] sm:$0xff] %v9027_v33  ;;  %v1803_v18 = vsel %vm1268_vm2, %v9027_v33, 0.0  ;;  %v9033_v11 = vpop.eup %6068 }
 0x8a1   :  { %2586 = vrot.lane.b32.xlu0 %v9003_v48, %s6577_s3 }
 0x8b0   :  { %1789 = vadd.xlane.f32.xlu1 %v1788_v7  ;;  %v2527_v7 = vpop.permute.xlu0 %2526 }
 0x8b4   :  { %2736 = vadd.xlane.f32.xlu1 %v2735_v39  ;;  %v2278_v39 = vsub.f32 %v11701_v37, %v8647_v2  ;;  %v9039_v4 = vpop.permute.xlu0 %3807  ;;  %v1509_v2 = vsub.f32 %v11701_v37, %v8635_v35 }
 0x8b5   :  { %11702 = vst [vmem:[#allocation272_spill] sm:$0xff] %v9039_v4  ;;  %v9053_v4 = vpop.permute.xlu1 %3813 }
 0x8b6   :  { %v2390_v63 = vmul.f32 1.442695, %v2278_v39 }
 0x8b8   :  { %2730 = vadd.xlane.f32.xlu1 %v2729_v24  ;;  %6070 = vpow2.f32 %v2390_v63  ;;  %v1512_v24 = vsub.f32 %v11698_v43, %v8623_v14  ;;  %v11704_v63 = vld [vmem:[#allocation118_spill] sm:$0xff] }
 0x8b9   :  { %v2279_v33 = vsub.f32 %v11704_v63, %v8697_v17  ;;  %11705 = vst [vmem:[#allocation118_spill] sm:$0xff] %v9053_v4  ;;  %v2744_v17 = vsel %vm1268_vm2, %v8985_v3, 0.0  ;;  %v1510_v3 = vsub.f32 %v11704_v63, %v8681_v61  ;;  %v2747_v61 = vsel %vm1268_vm2, %v2533_v55, 0.0  ;;  %v11716_v55 = vld [vmem:[#allocation143_spill] sm:$0xff] }
 0x8ba   :  { %v1627_v44 = vmul.f32 1.442695, %v1512_v24  ;;  %v9057_v24 = vpop.xlane.xlu0 %1714 }
 0x8bb   :  { %v2392_v28 = vmul.f32 1.442695, %v2279_v33  ;;  %11707 = vst [vmem:[#allocation275_spill] sm:$0xff] %v9057_v24  ;;  %v9070_v33 = vpop.xlane.xlu1 %1723  ;;  %v11713_v24 = vld [vmem:[#allocation144_spill] sm:$0xff] }
 0x8bc   :  { %6072 = vpow2.f32 %v1627_v44  ;;  %11708 = vst [vmem:[#allocation276_spill] sm:$0xff] %v9070_v33 }
 0x8be   :  { %v9061_v44 = vpop.xlane.xlu0 %1456 }
 0x8c0   :  { %1804 = vadd.xlane.f32.xlu0 %v1803_v18  ;;  %v1621_v18 = vmul.f32 1.442695, %v1509_v2  ;;  %v2738_v2 = vsel %vm1268_vm2, %v2527_v7, 0.0 }
 0x8c2   :  { %v9037_v41 = vpop.eup %6070  ;;  %6074 = vpow2.f32 %v1621_v18 }
 0x8c3   :  { %6076 = vpow2.f32 %v2392_v28  ;;  %v11709_v28 = vld [vmem:[#allocation142_spill] sm:$0xff] }
 0x8c6   :  { %v9047_v39 = vpop.eup %6072 }
 0x8c7   :  { %11703 = vst [vmem:[#allocation273_spill] sm:$0xff] %v9047_v39  ;;  %v1806_v26 = vsel %vm1268_vm2, %v9047_v39, 0.0 }
 0x8c9   :  { %2588 = vrot.lane.b32.xlu1 %v9033_v11, %s6577_s3 }
 0x8cc   :  { %v9055_v14 = vpop.eup %6074 }
 0x8cd   :  { %11706 = vst [vmem:[#allocation274_spill] sm:$0xff] %v9055_v14  ;;  %v1797_v35 = vsel %vm1268_vm2, %v9055_v14, 0.0  ;;  %v9066_v18 = vpop.eup %6076 }
 0x8d6   :  { %2582 = vrot.lane.b32.xlu0 %v9037_v41, %s6577_s3 }
 0x8ed   :  { %1807 = vadd.xlane.f32.xlu1 %v1806_v26  ;;  %v9068_v26 = vpop.xlane.xlu0 %2225 }
 0x8f1   :  { %v9080_v14 = vpop.xlane.xlu0 %3506 }
 0x8f2   :  { %11710 = vst [vmem:[#allocation277_spill] sm:$0xff] %v9080_v14 }
 0x8f5   :  { %1798 = vadd.xlane.f32.xlu0 %v1797_v35  ;;  %v2284_v35 = vsub.f32 %v11709_v28, %v8753_v21 }
 0x8f7   :  { %v2402_v39 = vmul.f32 1.442695, %v2284_v35  ;;  %v2529_v35 = vpop.permute.xlu1 %2528 }
 0x8f8   :  { %v2741_v14 = vsel %vm1268_vm2, %v2529_v35, 0.0 }
 0x8f9   :  { %2745 = vadd.xlane.f32.xlu0 %v2744_v17  ;;  %6078 = vpow2.f32 %v2402_v39  ;;  %v1623_v17 = vmul.f32 1.442695, %v1510_v3 }
 0x8fb   :  { %6080 = vpow2.f32 %v1623_v17  ;;  %v9091_v3 = vpop.permute.xlu1 %3809  ;;  %v2285_v17 = vsub.f32 %v11713_v24, %v8817_v27 }
 0x8fc   :  { %11712 = vst [vmem:[#allocation279_spill] sm:$0xff] %v9091_v3  ;;  %v11719_v3 = vld [vmem:[#allocation146_spill] sm:$0xff] }
 0x8fd   :  { %2739 = vadd.xlane.f32.xlu0 %v2738_v2  ;;  %v1515_v2 = vsub.f32 %v11709_v28, %v8745_v16  ;;  %v2283_v4 = vsub.f32 %v11719_v3, %v8857_v20 }
 0x8fe   :  { %2584 = vrot.lane.b32.xlu1 %v9066_v18, %s6577_s3 }
 0x8ff   :  { %v1633_v21 = vmul.f32 1.442695, %v1515_v2  ;;  %v9096_v16 = vpop.xlane.xlu1 %1717  ;;  %v2404_v2 = vmul.f32 1.442695, %v2285_v17 }
 0x900   :  { %11714 = vst [vmem:[#allocation280_spill] sm:$0xff] %v9096_v16 }
 0x901   :  { %6082 = vpow2.f32 %v1633_v21 }
 0x902   :  { %6084 = vpow2.f32 %v2404_v2  ;;  %v1516_v2 = vsub.f32 %v11713_v24, %v8797_v5  ;;  %v2400_v5 = vmul.f32 1.442695, %v2283_v4  ;;  %v11724_v4 = vld [vmem:[#allocation169_spill] sm:$0xff] }
 0x903   :  { %v9078_v7 = vpop.eup %6078  ;;  %v9108_v35 = vpop.xlane.xlu1 %1459 }
 0x905   :  { %v9086_v33 = vpop.eup %6080 }
 0x906   :  { %11711 = vst [vmem:[#allocation278_spill] sm:$0xff] %v9086_v33  ;;  %v1800_v39 = vsel %vm1268_vm2, %v9086_v33, 0.0 }
 0x907   :  { %v9130_v37 = vpop.xlane.xlu1 %2228 }
 0x90b   :  { %v9098_v28 = vpop.eup %6082 }
 0x90c   :  { %11715 = vst [vmem:[#allocation281_spill] sm:$0xff] %v9098_v28  ;;  %v1815_v21 = vsel %vm1268_vm2, %v9098_v28, 0.0  ;;  %v9106_v27 = vpop.eup %6084 }
 0x913   :  { %2594 = vrot.lane.b32.xlu0 %v9078_v7, %s6577_s3 }
 0x922   :  { %1801 = vadd.xlane.f32.xlu1 %v1800_v39  ;;  %v9102_v39 = vpop.xlane.xlu0 %1450 }
 0x926   :  { %2748 = vadd.xlane.f32.xlu1 %v2747_v61  ;;  %v2282_v61 = vsub.f32 %v11716_v55, %v8803_v8  ;;  %v9114_v17 = vpop.xlane.xlu0 %2219  ;;  %v1635_v8 = vmul.f32 1.442695, %v1516_v2 }
 0x928   :  { %v2398_v33 = vmul.f32 1.442695, %v2282_v61 }
 0x92a   :  { %2742 = vadd.xlane.f32.xlu1 %v2741_v14  ;;  %6086 = vpow2.f32 %v2398_v33  ;;  %v9122_v28 = vpop.xlane.xlu0 %3500 }
 0x92b   :  { %6088 = vpow2.f32 %v1635_v8  ;;  %11717 = vst [vmem:[#allocation282_spill] sm:$0xff] %v9122_v28 }
 0x92e   :  { %v2539_v16 = vpop.permute.xlu0 %2538 }
 0x92f   :  { %v2756_v20 = vsel %vm1268_vm2, %v2539_v16, 0.0 }
 0x932   :  { %1816 = vadd.xlane.f32.xlu0 %v1815_v21  ;;  %v1513_v21 = vsub.f32 %v11716_v55, %v8791_v12  ;;  %v9132_v2 = vpop.permute.xlu0 %3819 }
 0x933   :  { %11720 = vst [vmem:[#allocation146_spill] sm:$0xff] %v9132_v2 }
 0x934   :  { %v9112_v14 = vpop.eup %6086  ;;  %v1629_v61 = vmul.f32 1.442695, %v1513_v21 }
 0x935   :  { %v9124_v33 = vpop.eup %6088 }
 0x936   :  { %6090 = vpow2.f32 %v1629_v61  ;;  %11718 = vst [vmem:[#allocation283_spill] sm:$0xff] %v9124_v33  ;;  %v1818_v43 = vsel %vm1268_vm2, %v9124_v33, 0.0  ;;  %v9136_v8 = vpop.xlane.xlu0 %1732 }
 0x937   :  { %6092 = vpow2.f32 %v2400_v5  ;;  %11722 = vst [vmem:[#allocation285_spill] sm:$0xff] %v9136_v8  ;;  %v2288_v5 = vsub.f32 %v11724_v4, %v8913_v6  ;;  %v1519_v6 = vsub.f32 %v11724_v4, %v8905_v54 }
 0x939   :  { %v2410_v8 = vmul.f32 1.442695, %v2288_v5  ;;  %v1641_v2 = vmul.f32 1.442695, %v1519_v6 }
 0x93a   :  { %v2535_v61 = vpop.permute.xlu0 %2534 }
 0x93b   :  { %2596 = vrot.lane.b32.xlu1 %v9106_v27, %s6577_s3  ;;  %v2750_v33 = vsel %vm1268_vm2, %v2535_v61, 0.0  ;;  %6094 = vpow2.f32 %v2410_v8 }
 0x940   :  { %v9134_v12 = vpop.eup %6090 }
 0x941   :  { %11721 = vst [vmem:[#allocation284_spill] sm:$0xff] %v9134_v12  ;;  %v1809_v21 = vsel %vm1268_vm2, %v9134_v12, 0.0  ;;  %v9142_v28 = vpop.eup %6092 }
 0x948   :  { %2590 = vrot.lane.b32.xlu0 %v9112_v14, %s6577_s3 }
 0x95f   :  { %1819 = vadd.xlane.f32.xlu1 %v1818_v43  ;;  %v9144_v43 = vpop.xlane.xlu1 %3509 }
 0x960   :  { %11723 = vst [vmem:[#allocation286_spill] sm:$0xff] %v9144_v43 }
 0x963   :  { %v9150_v12 = vpop.xlane.xlu1 %1453 }
 0x967   :  { %1810 = vadd.xlane.f32.xlu0 %v1809_v21  ;;  %v9152_v16 = vpop.xlane.xlu1 %2222  ;;  %v1514_v21 = vsub.f32 %v11719_v3, %v8853_v19 }
 0x96b   :  { %2757 = vadd.xlane.f32.xlu0 %v2756_v20  ;;  %v1631_v20 = vmul.f32 1.442695, %v1514_v21  ;;  %v9156_v61 = vpop.xlane.xlu1 %3503 }
 0x96c   :  { %11725 = vst [vmem:[#allocation287_spill] sm:$0xff] %v9156_v61 }
 0x96d   :  { %6096 = vpow2.f32 %v1631_v20  ;;  %v11729_v20 = vld [vmem:[#allocation172_spill] sm:$0xff] }
 0x96e   :  { %6098 = vpow2.f32 %v1641_v2  ;;  %v2289_v55 = vsub.f32 %v11729_v20, %v8977_v58  ;;  %v11731_v2 = vld [vmem:[#allocation171_spill] sm:$0xff] }
 0x96f   :  { %2751 = vadd.xlane.f32.xlu0 %v2750_v33  ;;  %v9158_v33 = vpop.eup %6094  ;;  %v2541_v43 = vpop.permute.xlu1 %2540 }
 0x970   :  { %2592 = vrot.lane.b32.xlu1 %v9142_v28, %s6577_s3  ;;  %v2759_v21 = vsel %vm1268_vm2, %v2541_v43, 0.0  ;;  %v2412_v4 = vmul.f32 1.442695, %v2289_v55  ;;  %v9188_v55 = vpop.permute.xlu0 %3815 }
 0x971   :  { %11732 = vst [vmem:[#allocation292_spill] sm:$0xff] %v9188_v55 }
 0x972   :  { %6100 = vpow2.f32 %v2412_v4  ;;  %v1520_v4 = vsub.f32 %v11729_v20, %v8957_v56 }
 0x973   :  { %v9164_v5 = vpop.permute.xlu1 %3821 }
 0x974   :  { %11726 = vst [vmem:[#allocation288_spill] sm:$0xff] %v9164_v5 }
 0x977   :  { %v9166_v8 = vpop.eup %6096  ;;  %v9168_v24 = vpop.xlane.xlu1 %1735 }
 0x978   :  { %11727 = vst [vmem:[#allocation289_spill] sm:$0xff] %v9166_v8  ;;  %11728 = vst [vmem:[#allocation290_spill] sm:$0xff] %v9168_v24  ;;  %v1812_v19 = vsel %vm1268_vm2, %v9166_v8, 0.0  ;;  %v9176_v5 = vpop.eup %6098 }
 0x979   :  { %11730 = vst [vmem:[#allocation291_spill] sm:$0xff] %v9176_v5  ;;  %v1827_v6 = vsel %vm1268_vm2, %v9176_v5, 0.0 }
 0x97b   :  { %v2537_v61 = vpop.permute.xlu1 %2536 }
 0x97c   :  { %v2753_v54 = vsel %vm1268_vm2, %v2537_v61, 0.0  ;;  %v9182_v8 = vpop.eup %6100  ;;  %v1643_v61 = vmul.f32 1.442695, %v1520_v4 }
 0x985   :  { %2602 = vrot.lane.b32.xlu0 %v9158_v33, %s6577_s3 }
 0x994   :  { %1813 = vadd.xlane.f32.xlu1 %v1812_v19  ;;  %v2286_v19 = vsub.f32 %v11731_v2, %v8963_v0  ;;  %v1517_v0 = vsub.f32 %v11731_v2, %v8951_v59  ;;  %v11752_v2 = vld [vmem:[#allocation196_spill] sm:$0xff] }
 0x996   :  { %v2406_v43 = vmul.f32 1.442695, %v2286_v19 }
 0x998   :  { %2760 = vadd.xlane.f32.xlu1 %v2759_v21  ;;  %6102 = vpow2.f32 %v2406_v43  ;;  %v1637_v21 = vmul.f32 1.442695, %v1517_v0  ;;  %v11735_v43 = vld [vmem:[#allocation173_spill] sm:$0xff] }
 0x999   :  { %6104 = vpow2.f32 %v1643_v61  ;;  %v2287_v5 = vsub.f32 %v11735_v43, %v9017_v32 }
 0x99a   :  { %6106 = vpow2.f32 %v1637_v21 }
 0x99b   :  { %v2408_v56 = vmul.f32 1.442695, %v2287_v5 }
 0x99c   :  { %2754 = vadd.xlane.f32.xlu1 %v2753_v54  ;;  %v9196_v54 = vpop.xlane.xlu0 %1726 }
 0x99d   :  { %11733 = vst [vmem:[#allocation293_spill] sm:$0xff] %v9196_v54  ;;  %6108 = vpow2.f32 %v2408_v56  ;;  %v1518_v56 = vsub.f32 %v11735_v43, %v9013_v30 }
 0x9a0   :  { %v2547_v19 = vpop.permute.xlu0 %2546 }
 0x9a1   :  { %v2768_v0 = vsel %vm1268_vm2, %v2547_v19, 0.0  ;;  %v1639_v19 = vmul.f32 1.442695, %v1518_v56 }
 0x9a2   :  { %v9186_v58 = vpop.eup %6102 }
 0x9a4   :  { %1828 = vadd.xlane.f32.xlu0 %v1827_v6  ;;  %v9198_v6 = vpop.eup %6104  ;;  %v9204_v4 = vpop.permute.xlu0 %3827 }
 0x9a5   :  { %11734 = vst [vmem:[#allocation294_spill] sm:$0xff] %v9198_v6  ;;  %v1830_v24 = vsel %vm1268_vm2, %v9198_v6, 0.0  ;;  %11736 = vst [vmem:[#allocation295_spill] sm:$0xff] %v9204_v4  ;;  %v9206_v20 = vpop.eup %6106 }
 0x9a6   :  { %11737 = vst [vmem:[#allocation296_spill] sm:$0xff] %v9206_v20  ;;  %v1821_v61 = vsel %vm1268_vm2, %v9206_v20, 0.0 }
 0x9a7   :  { %v9214_v6 = vpop.eup %6108 }
 0x9a8   :  { %v9208_v59 = vpop.xlane.xlu0 %1744 }
 0x9a9   :  { %11738 = vst [vmem:[#allocation297_spill] sm:$0xff] %v9208_v59 }
 0x9ac   :  { %v2543_v21 = vpop.permute.xlu0 %2542 }
 0x9ad   :  { %2604 = vrot.lane.b32.xlu1 %v9182_v8, %s6577_s3  ;;  %v2762_v32 = vsel %vm1268_vm2, %v2543_v21, 0.0 }
 0x9ba   :  { %2598 = vrot.lane.b32.xlu0 %v9186_v58, %s6577_s3 }
 0x9d1   :  { %1831 = vadd.xlane.f32.xlu1 %v1830_v24  ;;  %v2292_v24 = vsub.f32 %v8281_v50, %v9068_v26  ;;  %v1523_v26 = vsub.f32 %v8281_v50, %v9061_v44 }
 0x9d3   :  { %v2418_v5 = vmul.f32 1.442695, %v2292_v24  ;;  %v1649_v30 = vmul.f32 1.442695, %v1523_v26 }
 0x9d5   :  { %6110 = vpow2.f32 %v2418_v5 }
 0x9d6   :  { %6112 = vpow2.f32 %v1639_v19  ;;  %v11744_v19 = vld [vmem:[#allocation195_spill] sm:$0xff] }
 0x9d7   :  { %6114 = vpow2.f32 %v1649_v30  ;;  %v2293_v54 = vsub.f32 %v11744_v19, %v9130_v37 }
 0x9d9   :  { %1822 = vadd.xlane.f32.xlu0 %v1821_v61  ;;  %v9222_v61 = vpop.permute.xlu1 %3817  ;;  %v2420_v50 = vmul.f32 1.442695, %v2293_v54 }
 0x9da   :  { %11739 = vst [vmem:[#allocation298_spill] sm:$0xff] %v9222_v61  ;;  %v2291_v61 = vsub.f32 %v11752_v2, %v9152_v16 }
 0x9db   :  { %6116 = vpow2.f32 %v2420_v50 }
 0x9dd   :  { %2769 = vadd.xlane.f32.xlu0 %v2768_v0  ;;  %v9224_v0 = vpop.xlane.xlu1 %1729 }
 0x9de   :  { %11740 = vst [vmem:[#allocation299_spill] sm:$0xff] %v9224_v0 }
 0x9df   :  { %v9226_v21 = vpop.eup %6110 }
 0x9e0   :  { %v9234_v5 = vpop.eup %6112 }
 0x9e1   :  { %2763 = vadd.xlane.f32.xlu0 %v2762_v32  ;;  %v2549_v32 = vpop.permute.xlu1 %2548  ;;  %11742 = vst [vmem:[#allocation301_spill] sm:$0xff] %v9234_v5  ;;  %v1824_v56 = vsel %vm1268_vm2, %v9234_v5, 0.0  ;;  %v9246_v26 = vpop.eup %6114 }
 0x9e2   :  { %2600 = vrot.lane.b32.xlu1 %v9214_v6, %s6577_s3  ;;  %v2771_v59 = vsel %vm1268_vm2, %v2549_v32, 0.0  ;;  %11746 = vst [vmem:[#allocation304_spill] sm:$0xff] %v9246_v26  ;;  %v1839_v30 = vsel %vm1268_vm2, %v9246_v26, 0.0 }
 0x9e5   :  { %v9232_v24 = vpop.permute.xlu1 %3829 }
 0x9e6   :  { %11741 = vst [vmem:[#allocation300_spill] sm:$0xff] %v9232_v24  ;;  %v9244_v24 = vpop.permute.xlu0 %3823 }
 0x9e7   :  { %11745 = vst [vmem:[#allocation303_spill] sm:$0xff] %v9244_v24 }
 0x9e9   :  { %v9236_v20 = vpop.xlane.xlu1 %1747 }
 0x9ea   :  { %11743 = vst [vmem:[#allocation302_spill] sm:$0xff] %v9236_v20  ;;  %v9248_v20 = vpop.xlane.xlu0 %1738 }
 0x9eb   :  { %11747 = vst [vmem:[#allocation305_spill] sm:$0xff] %v9248_v20 }
 0x9ed   :  { %v2545_v0 = vpop.permute.xlu1 %2544 }
 0x9ee   :  { %v2765_v44 = vsel %vm1268_vm2, %v2545_v0, 0.0  ;;  %v9256_v0 = vpop.eup %6116 }
 0x9f7   :  { %2610 = vrot.lane.b32.xlu0 %v9226_v21, %s6577_s3 }
 0xa06   :  { %1825 = vadd.xlane.f32.xlu1 %v1824_v56  ;;  %v9254_v56 = vpop.xlane.xlu0 %2685 }
 0xa0a   :  { %2772 = vadd.xlane.f32.xlu1 %v2771_v59  ;;  %v11748_v59 = vld [vmem:[#allocation194_spill] sm:$0xff]  ;;  %v2680_v54 = vpop.xlane.xlu0 %2679 }
 0xa0b   :  { %v2290_v32 = vsub.f32 %v11748_v59, %v9114_v17  ;;  %v1524_v17 = vsub.f32 %v11744_v19, %v9108_v35  ;;  %v1521_v5 = vsub.f32 %v11748_v59, %v9102_v39 }
 0xa0d   :  { %v2414_v37 = vmul.f32 1.442695, %v2290_v32  ;;  %v1651_v26 = vmul.f32 1.442695, %v1524_v17  ;;  %v1645_v20 = vmul.f32 1.442695, %v1521_v5  ;;  %v9286_v5 = vpop.permute.xlu1 %3825 }
 0xa0e   :  { %2766 = vadd.xlane.f32.xlu1 %v2765_v44  ;;  %v9260_v50 = vpop.xlane.xlu0 %2688  ;;  %v2416_v17 = vmul.f32 1.442695, %v2291_v61  ;;  %11754 = vst [vmem:[#allocation310_spill] sm:$0xff] %v9286_v5 }
 0xa0f   :  { %6118 = vpow2.f32 %v2414_v37 }
 0xa10   :  { %6120 = vpow2.f32 %v1651_v26 }
 0xa11   :  { %6122 = vpow2.f32 %v1645_v20  ;;  %v9290_v16 = vpop.xlane.xlu1 %1741 }
 0xa12   :  { %6124 = vpow2.f32 %v2416_v17  ;;  %11755 = vst [vmem:[#allocation311_spill] sm:$0xff] %v9290_v16 }
 0xa13   :  { %6126 = vrcp.f32 %v2680_v54 }
 0xa15   :  { %v2683_v17 = vpop.xlane.xlu1 %2682 }
 0xa16   :  { %1840 = vadd.xlane.f32.xlu0 %v1839_v30  ;;  %v2555_v30 = vpop.permute.xlu0 %2554 }
 0xa19   :  { %v9262_v44 = vpop.eup %6118  ;;  %v2557_v19 = vpop.permute.xlu1 %2556 }
 0xa1a   :  { %v9268_v32 = vpop.xlane.xlu0 %1756  ;;  %v9274_v24 = vpop.eup %6120 }
 0xa1b   :  { %11749 = vst [vmem:[#allocation306_spill] sm:$0xff] %v9268_v32  ;;  %11751 = vst [vmem:[#allocation308_spill] sm:$0xff] %v9274_v24  ;;  %v1842_v35 = vsel %vm1268_vm2, %v9274_v24, 0.0  ;;  %v9282_v32 = vpop.eup %6122 }
 0xa1c   :  { %11753 = vst [vmem:[#allocation309_spill] sm:$0xff] %v9282_v32  ;;  %v1833_v20 = vsel %vm1268_vm2, %v9282_v32, 0.0 }
 0xa1e   :  { %v2551_v37 = vpop.permute.xlu0 %2550 }
 0xa1f   :  { %2612 = vrot.lane.b32.xlu1 %v9256_v0, %s6577_s3  ;;  %v2774_v61 = vsel %vm1268_vm2, %v2551_v37, 0.0 }
 0xa22   :  { %v9272_v4 = vpop.xlane.xlu0 %1750 }
 0xa23   :  { %11750 = vst [vmem:[#allocation307_spill] sm:$0xff] %v9272_v4  ;;  %v2780_v4 = vsel %vm1268_vm2, %v2555_v30, 0.0  ;;  %v1522_v30 = vsub.f32 %v11752_v2, %v9150_v12 }
 0xa26   :  { %v9278_v43 = vpop.xlane.xlu0 %2697 }
 0xa2a   :  { %v9284_v39 = vpop.xlane.xlu0 %2691 }
 0xa2c   :  { %2606 = vrot.lane.b32.xlu0 %v9262_v44, %s6577_s3 }
 0xa2e   :  { %v2563_v26 = vpop.permute.xlu0 %2562 }
 0xa2f   :  { %v2792_v32 = vsel %vm1268_vm2, %v2563_v26, 0.0  ;;  %v11759_v26 = vld [vmem:[#allocation88_spill] sm:$0xff] }
 0xa32   :  { %v9293_v24 = vpop.xlane.xlu0 %1768 }
 0xa33   :  { %11756 = vst [vmem:[#allocation312_spill] sm:$0xff] %v9293_v24 }
 0xa43   :  { %1843 = vadd.xlane.f32.xlu1 %v1842_v35  ;;  %v9296_v35 = vpop.eup %6124 }
 0xa44   :  { %v6127_v59 = vpop.eup %6126 }
 0xa45   :  { %v2934_v55 = vmul.f32 %v6127_v59, %v11759_v26 }
 0xa4b   :  { %1834 = vadd.xlane.f32.xlu0 %v1833_v20  ;;  %v2559_v20 = vpop.permute.xlu0 %2558 }
 0xa4c   :  { %v2786_v16 = vsel %vm1268_vm2, %v2559_v20, 0.0 }
 0xa4f   :  { %2781 = vadd.xlane.f32.xlu0 %v2780_v4  ;;  %v9302_v4 = vpop.xlane.xlu1 %1759  ;;  %v9312_v20 = vpop.xlane.xlu0 %1762 }
 0xa50   :  { %11757 = vst [vmem:[#allocation313_spill] sm:$0xff] %v9302_v4  ;;  %11761 = vst [vmem:[#allocation315_spill] sm:$0xff] %v9312_v20  ;;  %v2783_v4 = vsel %vm1268_vm2, %v2557_v19, 0.0 }
 0xa53   :  { %2775 = vadd.xlane.f32.xlu0 %v2774_v61  ;;  %v2553_v37 = vpop.permute.xlu1 %2552  ;;  %v1647_v61 = vmul.f32 1.442695, %v1522_v30  ;;  %v2710_v30 = vpop.xlane.xlu0 %2709 }
 0xa54   :  { %2608 = vrot.lane.b32.xlu1 %v9296_v35, %s6577_s3  ;;  %v2777_v59 = vsel %vm1268_vm2, %v2553_v37, 0.0 }
 0xa55   :  { %6128 = vpow2.f32 %v1647_v61 }
 0xa56   :  { %6130 = vrcp.f32 %v9254_v56 }
 0xa57   :  { %2793 = vadd.xlane.f32.xlu0 %v2792_v32  ;;  %v9306_v24 = vpop.xlane.xlu1 %1753  ;;  %v2704_v26 = vpop.xlane.xlu0 %2703  ;;  %6132 = vrcp.f32 %v9260_v50  ;;  %v11766_v50 = vld [vmem:[#allocation92_spill] sm:$0xff] }
 0xa58   :  { %11758 = vst [vmem:[#allocation314_spill] sm:$0xff] %v9306_v24  ;;  %6134 = vrcp.f32 %v2683_v17 }
 0xa59   :  { %6136 = vrcp.f32 %v9278_v43  ;;  %v11769_v43 = vld [vmem:[#allocation109_spill] sm:$0xff] }
 0xa5a   :  { %6138 = vrcp.f32 %v9284_v39 }
 0xa5b   :  { %2787 = vadd.xlane.f32.xlu0 %v2786_v16  ;;  %v2701_v5 = vpop.xlane.xlu1 %2700  ;;  %v2571_v20 = vpop.permute.xlu0 %2570 }
 0xa5c   :  { %v2804_v19 = vsel %vm1268_vm2, %v2571_v20, 0.0  ;;  %6140 = vrcp.f32 %v2701_v5 }
 0xa5f   :  { %v9310_v32 = vpop.eup %6128  ;;  %v2695_v16 = vpop.xlane.xlu1 %2694 }
 0xa60   :  { %11760 = vst [vmem:[#allocation88_spill] sm:$0xff] %v9310_v32  ;;  %v1836_v12 = vsel %vm1268_vm2, %v9310_v32, 0.0  ;;  %6142 = vrcp.f32 %v2695_v16 }
 0xa61   :  { %6144 = vrcp.f32 %v2710_v30 }
 0xa62   :  { %6146 = vrcp.f32 %v2704_v26 }
 0xa63   :  { %v2565_v54 = vpop.permute.xlu1 %2564 }
 0xa67   :  { %v9317_v61 = vpop.xlane.xlu1 %1771 }
 0xa68   :  { %11762 = vst [vmem:[#allocation316_spill] sm:$0xff] %v9317_v61 }
 0xa6b   :  { %v2561_v24 = vpop.permute.xlu1 %2560 }
 0xa6c   :  { %v2789_v2 = vsel %vm1268_vm2, %v2561_v24, 0.0 }
 0xa71   :  { %3062 = vrot.lane.b32.xlu0 %v2934_v55, %s6577_s3  ;;  %v2795_v55 = vsel %vm1268_vm2, %v2565_v54, 0.0  ;;  %v6131_v54 = vpop.eup %6130 }
 0xa72   :  { %v6133_v32 = vpop.eup %6132 }
 0xa73   :  { %v6135_v56 = vpop.eup %6134 }
 0xa74   :  { %v2935_v17 = vmul.f32 %v6135_v56, %v11766_v50  ;;  %v6137_v20 = vpop.eup %6136 }
 0xa78   :  { %1837 = vadd.xlane.f32.xlu1 %v1836_v12  ;;  %v9323_v12 = vpop.xlane.xlu0 %1780 }
 0xa79   :  { %11763 = vst [vmem:[#allocation317_spill] sm:$0xff] %v9323_v12 }
 0xa7c   :  { %2784 = vadd.xlane.f32.xlu1 %v2783_v4  ;;  %v2567_v4 = vpop.permute.xlu0 %2566 }
 0xa7d   :  { %v2798_v37 = vsel %vm1268_vm2, %v2567_v4, 0.0 }
 0xa80   :  { %2778 = vadd.xlane.f32.xlu1 %v2777_v59  ;;  %v11764_v59 = vld [vmem:[#allocation84_spill] sm:$0xff] }
 0xa84   :  { %2796 = vadd.xlane.f32.xlu1 %v2795_v55  ;;  %v2936_v55 = vmul.f32 %v6131_v54, %v11764_v59  ;;  %v9337_v54 = vpop.xlane.xlu1 %1765 }
 0xa85   :  { %11768 = vst [vmem:[#allocation84_spill] sm:$0xff] %v9337_v54 }
 0xa88   :  { %2790 = vadd.xlane.f32.xlu1 %v2789_v2  ;;  %v11765_v2 = vld [vmem:[#allocation86_spill] sm:$0xff] }
 0xa89   :  { %v2937_v24 = vmul.f32 %v6133_v32, %v11765_v2  ;;  %v2713_v32 = vpop.xlane.xlu1 %2712 }
 0xa8a   :  { %6148 = vrcp.f32 %v2713_v32 }
 0xa8d   :  { %v2707_v39 = vpop.xlane.xlu1 %2706 }
 0xa8e   :  { %6150 = vrcp.f32 %v2707_v39 }
 0xa90   :  { %2805 = vadd.xlane.f32.xlu0 %v2804_v19  ;;  %v11767_v19 = vld [vmem:[#allocation98_spill] sm:$0xff] }
 0xa91   :  { %v2940_v4 = vmul.f32 %v6137_v20, %v11767_v19 }
 0xa94   :  { %2799 = vadd.xlane.f32.xlu0 %v2798_v37  ;;  %v6139_v37 = vpop.eup %6138 }
 0xa95   :  { %v2938_v59 = vmul.f32 %v6139_v37, %v11769_v43 }
 0xa99   :  { %3066 = vrot.lane.b32.xlu1 %v2936_v55, %s6577_s3  ;;  %v9342_v55 = vpop.xlane.xlu0 %1774 }
 0xa9a   :  { %11770 = vst [vmem:[#allocation86_spill] sm:$0xff] %v9342_v55  ;;  %v11773_v55 = vld [vmem:[#allocation107_spill] sm:$0xff] }
 0xa9d   :  { %3068 = vrot.lane.b32.xlu1 %v2937_v24, %s6577_s3  ;;  %v2722_v2 = vpop.xlane.xlu0 %2721  ;;  %v2573_v24 = vpop.permute.xlu1 %2572 }
 0xa9e   :  { %v2807_v20 = vsel %vm1268_vm2, %v2573_v24, 0.0  ;;  %6152 = vrcp.f32 %v2722_v2 }
 0xaa1   :  { %3064 = vrot.lane.b32.xlu1 %v2935_v17, %s6577_s3  ;;  %v2716_v56 = vpop.xlane.xlu0 %2715  ;;  %v9344_v50 = vpop.xlane.xlu1 %1783 }
 0xaa2   :  { %11771 = vst [vmem:[#allocation92_spill] sm:$0xff] %v9344_v50  ;;  %v6141_v50 = vpop.eup %6140  ;;  %6154 = vrcp.f32 %v2716_v56 }
 0xaa3   :  { %v2941_v24 = vmul.f32 %v6141_v50, %v11773_v55  ;;  %v6143_v61 = vpop.eup %6142 }
 0xaa4   :  { %v6145_v5 = vpop.eup %6144 }
 0xaa5   :  { %v2579_v17 = vpop.permute.xlu0 %2578  ;;  %v2569_v19 = vpop.permute.xlu1 %2568 }
 0xaa6   :  { %v2816_v37 = vsel %vm1268_vm2, %v2579_v17, 0.0  ;;  %v11775_v17 = vld [vmem:[#allocation121_spill] sm:$0xff] }
 0xaa9   :  { %v9347_v12 = vpop.xlane.xlu0 %1792  ;;  %v9357_v16 = vpop.xlane.xlu1 %1777 }
 0xaaa   :  { %3074 = vrot.lane.b32.xlu0 %v2940_v4, %s6577_s3  ;;  %11772 = vst [vmem:[#allocation98_spill] sm:$0xff] %v9347_v12  ;;  %v2801_v4 = vsel %vm1268_vm2, %v2569_v19, 0.0  ;;  %11776 = vst [vmem:[#allocation109_spill] sm:$0xff] %v9357_v16 }
 0xaad   :  { %v2575_v43 = vpop.permute.xlu0 %2574  ;;  %v2725_v55 = vpop.xlane.xlu1 %2724 }
 0xaae   :  { %3070 = vrot.lane.b32.xlu0 %v2938_v59, %s6577_s3  ;;  %v2810_v59 = vsel %vm1268_vm2, %v2575_v43, 0.0  ;;  %v11777_v43 = vld [vmem:[#allocation135_spill] sm:$0xff]  ;;  %6156 = vrcp.f32 %v2725_v55 }
 0xab1   :  { %v9362_v50 = vpop.xlane.xlu0 %1786  ;;  %v2719_v26 = vpop.xlane.xlu1 %2718 }
 0xab2   :  { %11778 = vst [vmem:[#allocation107_spill] sm:$0xff] %v9362_v50  ;;  %v11781_v50 = vld [vmem:[#allocation133_spill] sm:$0xff]  ;;  %6158 = vrcp.f32 %v2719_v26 }
 0xac5   :  { %2808 = vadd.xlane.f32.xlu1 %v2807_v20  ;;  %v11774_v20 = vld [vmem:[#allocation113_spill] sm:$0xff] }
 0xac6   :  { %v2939_v19 = vmul.f32 %v6143_v61, %v11774_v20  ;;  %v2581_v61 = vpop.permute.xlu1 %2580 }
 0xac9   :  { %2802 = vadd.xlane.f32.xlu1 %v2801_v4  ;;  %v2944_v4 = vmul.f32 %v6145_v5, %v11775_v17  ;;  %v2819_v5 = vsel %vm1268_vm2, %v2581_v61, 0.0 }
 0xaca   :  { %v9364_v20 = vpop.xlane.xlu1 %1795 }
 0xacb   :  { %11779 = vst [vmem:[#allocation113_spill] sm:$0xff] %v9364_v20 }
 0xacd   :  { %2817 = vadd.xlane.f32.xlu0 %v2816_v37  ;;  %v6147_v37 = vpop.eup %6146 }
 0xace   :  { %v2942_v30 = vmul.f32 %v6147_v37, %v11777_v43  ;;  %v2577_v17 = vpop.permute.xlu1 %2576  ;;  %v6149_v20 = vpop.eup %6148 }
 0xacf   :  { %v2945_v61 = vmul.f32 %v6149_v20, %v11781_v50  ;;  %v6151_v16 = vpop.eup %6150 }
 0xad0   :  { %v6153_v32 = vpop.eup %6152 }
 0xad1   :  { %2811 = vadd.xlane.f32.xlu0 %v2810_v59  ;;  %v2734_v59 = vpop.xlane.xlu0 %2733 }
 0xad2   :  { %v9377_v39 = vpop.xlane.xlu1 %1789  ;;  %6160 = vrcp.f32 %v2734_v59 }
 0xad3   :  { %11784 = vst [vmem:[#allocation135_spill] sm:$0xff] %v9377_v39 }
 0xad6   :  { %v2737_v50 = vpop.xlane.xlu1 %2736 }
 0xada   :  { %3076 = vrot.lane.b32.xlu1 %v2941_v24, %s6577_s3  ;;  %v2728_v24 = vpop.xlane.xlu0 %2727  ;;  %v2731_v56 = vpop.xlane.xlu1 %2730 }
 0xadb   :  { %6162 = vrcp.f32 %v2728_v24 }
 0xadc   :  { %6164 = vrcp.f32 %v2737_v50 }
 0xadd   :  { %6166 = vrcp.f32 %v2731_v56 }
 0xade   :  { %3072 = vrot.lane.b32.xlu1 %v2939_v19, %s6577_s3  ;;  %v2587_v19 = vpop.permute.xlu0 %2586 }
 0xadf   :  { %v2828_v37 = vsel %vm1268_vm2, %v2587_v19, 0.0  ;;  %v11783_v19 = vld [vmem:[#allocation149_spill] sm:$0xff] }
 0xae2   :  { %v9367_v12 = vpop.xlane.xlu0 %1804 }
 0xae3   :  { %11780 = vst [vmem:[#allocation121_spill] sm:$0xff] %v9367_v12 }
 0xae6   :  { %v2583_v43 = vpop.permute.xlu0 %2582 }
 0xae7   :  { %3082 = vrot.lane.b32.xlu0 %v2944_v4, %s6577_s3  ;;  %v2813_v4 = vsel %vm1268_vm2, %v2577_v17, 0.0 }
 0xaea   :  { %v9382_v20 = vpop.xlane.xlu0 %1798 }
 0xaeb   :  { %3078 = vrot.lane.b32.xlu0 %v2942_v30, %s6577_s3  ;;  %v2822_v30 = vsel %vm1268_vm2, %v2583_v43, 0.0  ;;  %v11785_v43 = vld [vmem:[#allocation164_spill] sm:$0xff]  ;;  %11786 = vst [vmem:[#allocation133_spill] sm:$0xff] %v9382_v20  ;;  %v11789_v20 = vld [vmem:[#allocation161_spill] sm:$0xff] }
 0xb02   :  { %2820 = vadd.xlane.f32.xlu1 %v2819_v5  ;;  %v11782_v5 = vld [vmem:[#allocation140_spill] sm:$0xff] }
 0xb03   :  { %v2943_v17 = vmul.f32 %v6151_v16, %v11782_v5  ;;  %v2589_v16 = vpop.permute.xlu1 %2588 }
 0xb06   :  { %2814 = vadd.xlane.f32.xlu1 %v2813_v4  ;;  %v2948_v4 = vmul.f32 %v6153_v32, %v11783_v19  ;;  %v2831_v32 = vsel %vm1268_vm2, %v2589_v16, 0.0 }
 0xb07   :  { %v9384_v5 = vpop.xlane.xlu1 %1807 }
 0xb08   :  { %11787 = vst [vmem:[#allocation140_spill] sm:$0xff] %v9384_v5 }
 0xb0a   :  { %2829 = vadd.xlane.f32.xlu0 %v2828_v37  ;;  %v6155_v37 = vpop.eup %6154 }
 0xb0b   :  { %v2946_v2 = vmul.f32 %v6155_v37, %v11785_v43  ;;  %v2585_v19 = vpop.permute.xlu1 %2584  ;;  %v6157_v5 = vpop.eup %6156 }
 0xb0c   :  { %v2949_v16 = vmul.f32 %v6157_v5, %v11789_v20  ;;  %v6159_v39 = vpop.eup %6158 }
 0xb0d   :  { %v6161_v55 = vpop.eup %6160 }
 0xb0e   :  { %2823 = vadd.xlane.f32.xlu0 %v2822_v30  ;;  %v2746_v30 = vpop.xlane.xlu0 %2745 }
 0xb0f   :  { %v9397_v26 = vpop.xlane.xlu1 %1801  ;;  %6168 = vrcp.f32 %v2746_v30 }
 0xb10   :  { %11792 = vst [vmem:[#allocation164_spill] sm:$0xff] %v9397_v26 }
 0xb13   :  { %v2749_v20 = vpop.xlane.xlu1 %2748 }
 0xb17   :  { %3084 = vrot.lane.b32.xlu1 %v2945_v61, %s6577_s3  ;;  %v2740_v61 = vpop.xlane.xlu0 %2739  ;;  %v2743_v24 = vpop.xlane.xlu1 %2742 }
 0xb18   :  { %6170 = vrcp.f32 %v2740_v61 }
 0xb19   :  { %6172 = vrcp.f32 %v2749_v20  ;;  %v11807_v20 = vld [vmem:[#allocation213_spill] sm:$0xff] }
 0xb1a   :  { %6174 = vrcp.f32 %v2743_v24 }
 0xb1b   :  { %3080 = vrot.lane.b32.xlu1 %v2943_v17, %s6577_s3  ;;  %v2595_v17 = vpop.permute.xlu0 %2594 }
 0xb1c   :  { %v2840_v37 = vsel %vm1268_vm2, %v2595_v17, 0.0  ;;  %v11791_v17 = vld [vmem:[#allocation47_spill] sm:$0xff] }
 0xb1f   :  { %v9387_v12 = vpop.xlane.xlu0 %1816 }
 0xb20   :  { %11788 = vst [vmem:[#allocation149_spill] sm:$0xff] %v9387_v12 }
 0xb23   :  { %v2591_v43 = vpop.permute.xlu0 %2590 }
 0xb24   :  { %3090 = vrot.lane.b32.xlu0 %v2948_v4, %s6577_s3  ;;  %v2825_v4 = vsel %vm1268_vm2, %v2585_v19, 0.0 }
 0xb27   :  { %v9402_v5 = vpop.xlane.xlu0 %1810 }
 0xb28   :  { %3086 = vrot.lane.b32.xlu0 %v2946_v2, %s6577_s3  ;;  %v2834_v2 = vsel %vm1268_vm2, %v2591_v43, 0.0  ;;  %v11793_v43 = vld [vmem:[#allocation184_spill] sm:$0xff]  ;;  %11794 = vst [vmem:[#allocation161_spill] sm:$0xff] %v9402_v5  ;;  %v11797_v5 = vld [vmem:[#allocation181_spill] sm:$0xff] }
 0xb3f   :  { %2832 = vadd.xlane.f32.xlu1 %v2831_v32  ;;  %v11790_v32 = vld [vmem:[#allocation170_spill] sm:$0xff] }
 0xb40   :  { %v2947_v19 = vmul.f32 %v6159_v39, %v11790_v32  ;;  %v2597_v39 = vpop.permute.xlu1 %2596 }
 0xb43   :  { %2826 = vadd.xlane.f32.xlu1 %v2825_v4  ;;  %v2952_v4 = vmul.f32 %v6161_v55, %v11791_v17  ;;  %v2843_v55 = vsel %vm1268_vm2, %v2597_v39, 0.0 }
 0xb44   :  { %v9404_v32 = vpop.xlane.xlu1 %1819 }
 0xb45   :  { %11795 = vst [vmem:[#allocation170_spill] sm:$0xff] %v9404_v32 }
 0xb47   :  { %2841 = vadd.xlane.f32.xlu0 %v2840_v37  ;;  %v6163_v37 = vpop.eup %6162 }
 0xb48   :  { %v2950_v59 = vmul.f32 %v6163_v37, %v11793_v43  ;;  %v2593_v17 = vpop.permute.xlu1 %2592  ;;  %v6165_v32 = vpop.eup %6164 }
 0xb49   :  { %v2953_v39 = vmul.f32 %v6165_v32, %v11797_v5  ;;  %v6167_v26 = vpop.eup %6166 }
 0xb4a   :  { %v6169_v50 = vpop.eup %6168 }
 0xb4b   :  { %2835 = vadd.xlane.f32.xlu0 %v2834_v2  ;;  %v2758_v2 = vpop.xlane.xlu0 %2757 }
 0xb4c   :  { %v9417_v56 = vpop.xlane.xlu1 %1813  ;;  %6176 = vrcp.f32 %v2758_v2 }
 0xb4d   :  { %11800 = vst [vmem:[#allocation184_spill] sm:$0xff] %v9417_v56 }
 0xb50   :  { %v2761_v5 = vpop.xlane.xlu1 %2760 }
 0xb54   :  { %3092 = vrot.lane.b32.xlu1 %v2949_v16, %s6577_s3  ;;  %v2752_v16 = vpop.xlane.xlu0 %2751  ;;  %v2755_v61 = vpop.xlane.xlu1 %2754 }
 0xb55   :  { %6178 = vrcp.f32 %v2752_v16 }
 0xb58   :  { %3088 = vrot.lane.b32.xlu1 %v2947_v19, %s6577_s3  ;;  %v2603_v19 = vpop.permute.xlu0 %2602 }
 0xb59   :  { %v2852_v37 = vsel %vm1268_vm2, %v2603_v19, 0.0  ;;  %v11799_v19 = vld [vmem:[#allocation200_spill] sm:$0xff] }
 0xb5c   :  { %v9407_v12 = vpop.xlane.xlu0 %1828 }
 0xb5d   :  { %11796 = vst [vmem:[#allocation47_spill] sm:$0xff] %v9407_v12 }
 0xb60   :  { %v2599_v43 = vpop.permute.xlu0 %2598 }
 0xb61   :  { %3098 = vrot.lane.b32.xlu0 %v2952_v4, %s6577_s3  ;;  %v2837_v4 = vsel %vm1268_vm2, %v2593_v17, 0.0 }
 0xb64   :  { %v9422_v32 = vpop.xlane.xlu0 %1822 }
 0xb65   :  { %3094 = vrot.lane.b32.xlu0 %v2950_v59, %s6577_s3  ;;  %v2846_v59 = vsel %vm1268_vm2, %v2599_v43, 0.0  ;;  %v11801_v43 = vld [vmem:[#allocation208_spill] sm:$0xff]  ;;  %11802 = vst [vmem:[#allocation181_spill] sm:$0xff] %v9422_v32 }
 0xb7c   :  { %2844 = vadd.xlane.f32.xlu1 %v2843_v55  ;;  %v11798_v55 = vld [vmem:[#allocation192_spill] sm:$0xff] }
 0xb7d   :  { %v2951_v17 = vmul.f32 %v6167_v26, %v11798_v55  ;;  %v2605_v26 = vpop.permute.xlu1 %2604 }
 0xb80   :  { %2838 = vadd.xlane.f32.xlu1 %v2837_v4  ;;  %v2956_v4 = vmul.f32 %v6169_v50, %v11799_v19  ;;  %v2855_v50 = vsel %vm1268_vm2, %v2605_v26, 0.0  ;;  %v11806_v26 = vld [vmem:[#allocation52_spill] sm:$0xff] }
 0xb81   :  { %v9424_v55 = vpop.xlane.xlu1 %1831 }
 0xb82   :  { %11803 = vst [vmem:[#allocation192_spill] sm:$0xff] %v9424_v55 }
 0xb84   :  { %2853 = vadd.xlane.f32.xlu0 %v2852_v37  ;;  %v6171_v37 = vpop.eup %6170 }
 0xb85   :  { %v2954_v30 = vmul.f32 %v6171_v37, %v11801_v43  ;;  %v2601_v19 = vpop.permute.xlu1 %2600  ;;  %v6173_v32 = vpop.eup %6172 }
 0xb86   :  { %v6175_v56 = vpop.eup %6174 }
 0xb87   :  { %v6177_v24 = vpop.eup %6176 }
 0xb88   :  { %2847 = vadd.xlane.f32.xlu0 %v2846_v59  ;;  %v2770_v59 = vpop.xlane.xlu0 %2769 }
 0xb89   :  { %v9432_v55 = vpop.xlane.xlu1 %1825  ;;  %6180 = vrcp.f32 %v2770_v59  ;;  %v11810_v59 = vld [vmem:[#allocation233_spill] sm:$0xff] }
 0xb8a   :  { %11805 = vst [vmem:[#allocation208_spill] sm:$0xff] %v9432_v55 }
 0xb91   :  { %3100 = vrot.lane.b32.xlu1 %v2953_v39, %s6577_s3  ;;  %v2764_v39 = vpop.xlane.xlu0 %2763 }
 0xb92   :  { %6182 = vrcp.f32 %v2764_v39 }
 0xb93   :  { %6184 = vrcp.f32 %v2761_v5 }
 0xb94   :  { %6186 = vrcp.f32 %v2755_v61 }
 0xb95   :  { %3096 = vrot.lane.b32.xlu1 %v2951_v17, %s6577_s3  ;;  %v2611_v17 = vpop.permute.xlu0 %2610 }
 0xb96   :  { %v2864_v37 = vsel %vm1268_vm2, %v2611_v17, 0.0 }
 0xb99   :  { %v9427_v12 = vpop.xlane.xlu0 %1840 }
 0xb9a   :  { %11804 = vst [vmem:[#allocation200_spill] sm:$0xff] %v9427_v12  ;;  %v2773_v12 = vpop.xlane.xlu1 %2772 }
 0xb9b   :  { %6188 = vrcp.f32 %v2773_v12  ;;  %v11816_v12 = vld [vmem:[#allocation229_spill] sm:$0xff] }
 0xb9d   :  { %v2607_v43 = vpop.permute.xlu0 %2606 }
 0xb9e   :  { %3106 = vrot.lane.b32.xlu0 %v2956_v4, %s6577_s3  ;;  %v2849_v4 = vsel %vm1268_vm2, %v2601_v19, 0.0  ;;  %v2955_v19 = vmul.f32 %v6175_v56, %v11807_v20  ;;  %v2767_v17 = vpop.xlane.xlu1 %2766 }
 0xb9f   :  { %6190 = vrcp.f32 %v2767_v17 }
 0xba2   :  { %3102 = vrot.lane.b32.xlu0 %v2954_v30, %s6577_s3  ;;  %v2858_v30 = vsel %vm1268_vm2, %v2607_v43, 0.0 }
 0xbb9   :  { %2856 = vadd.xlane.f32.xlu1 %v2855_v50  ;;  %v2957_v50 = vmul.f32 %v6173_v32, %v11806_v26 }
 0xbbd   :  { %2850 = vadd.xlane.f32.xlu1 %v2849_v4  ;;  %v2613_v4 = vpop.permute.xlu1 %2612 }
 0xbc1   :  { %2865 = vadd.xlane.f32.xlu0 %v2864_v37  ;;  %v11808_v37 = vld [vmem:[#allocation216_spill] sm:$0xff]  ;;  %v9440_v2 = vpop.xlane.xlu1 %1843 }
 0xbc2   :  { %v2960_v43 = vmul.f32 %v6177_v24, %v11808_v37  ;;  %11809 = vst [vmem:[#allocation52_spill] sm:$0xff] %v9440_v2 }
 0xbc5   :  { %2859 = vadd.xlane.f32.xlu0 %v2858_v30  ;;  %v6179_v30 = vpop.eup %6178 }
 0xbc6   :  { %v2958_v32 = vmul.f32 %v6179_v30, %v8533_v49  ;;  %v6181_v26 = vpop.eup %6180  ;;  %v2867_v30 = vsel %vm1268_vm2, %v2613_v4, 0.0 }
 0xbc7   :  { %v2964_v16 = vmul.f32 %v6181_v26, %v8581_v25  ;;  %v6183_v56 = vpop.eup %6182 }
 0xbc8   :  { %v2962_v39 = vmul.f32 %v6183_v56, %v11810_v59 }
 0xbce   :  { %3108 = vrot.lane.b32.xlu1 %v2957_v50, %s6577_s3  ;;  %v2609_v50 = vpop.permute.xlu1 %2608 }
 0xbd2   :  { %3104 = vrot.lane.b32.xlu1 %v2955_v19, %s6577_s3  ;;  %v9447_v20 = vpop.xlane.xlu1 %1837  ;;  %v9450_v19 = vpop.xlane.xlu0 %1834 }
 0xbd3   :  { %11811 = vst [vmem:[#allocation213_spill] sm:$0xff] %v9447_v20  ;;  %11812 = vst [vmem:[#allocation216_spill] sm:$0xff] %v9450_v19 }
 0xbd6   :  { %v2785_v24 = vpop.xlane.xlu1 %2784  ;;  %v2782_v37 = vpop.xlane.xlu0 %2781 }
 0xbd7   :  { %6192 = vrcp.f32 %v2785_v24 }
 0xbd8   :  { %6194 = vrcp.f32 %v2782_v37 }
 0xbda   :  { %v2779_v49 = vpop.xlane.xlu1 %2778 }
 0xbdb   :  { %3114 = vrot.lane.b32.xlu0 %v2960_v43, %s6577_s3  ;;  %v2776_v43 = vpop.xlane.xlu0 %2775  ;;  %6196 = vrcp.f32 %v2779_v49 }
 0xbdc   :  { %6198 = vrcp.f32 %v2776_v43 }
 0xbde   :  { %v9453_v25 = vpop.xlane.xlu1 %2796 }
 0xbdf   :  { %3110 = vrot.lane.b32.xlu0 %v2958_v32, %s6577_s3  ;;  %v2861_v32 = vsel %vm1268_vm2, %v2609_v50, 0.0  ;;  %v9456_v26 = vpop.xlane.xlu0 %2793  ;;  %v11814_v50 = vld [vmem:[#allocation222_spill] sm:$0xff]  ;;  %6200 = vrcp.f32 %v9453_v25 }
 0xbe3   :  { %3122 = vrot.lane.b32.xlu0 %v2964_v16, %s6577_s3  ;;  %v9458_v16 = vpop.xlane.xlu1 %2790  ;;  %v9460_v56 = vpop.xlane.xlu0 %2787 }
 0xbe4   :  { %6202 = vrcp.f32 %v9458_v16 }
 0xbe5   :  { %6204 = vrcp.f32 %v9456_v26 }
 0xbe7   :  { %3118 = vrot.lane.b32.xlu0 %v2962_v39, %s6577_s3  ;;  %v9462_v59 = vpop.permute.xlu1 %3066  ;;  %v11813_v39 = vld [vmem:[#allocation186_spill] sm:$0xff]  ;;  %v9466_v2 = vpop.permute.xlu0 %3062 }
 0xbe8   :  { %v3959_v4 = vsel %vm1268_vm2, %v11813_v39, 0.0 }
 0xbeb   :  { %v9469_v5 = vpop.xlane.xlu0 %2805  ;;  %v9471_v19 = vpop.permute.xlu1 %3068 }
 0xbec   :  { %11815 = vst [vmem:[#allocation233_spill] sm:$0xff] %v9471_v19 }
 0xbef   :  { %v2800_v39 = vpop.xlane.xlu0 %2799  ;;  %v9476_v17 = vpop.permute.xlu1 %3064 }
 0xbf3   :  { %v2809_v54 = vpop.xlane.xlu1 %2808  ;;  %v9481_v19 = vpop.permute.xlu0 %3074 }
 0xbf4   :  { %11818 = vst [vmem:[#allocation186_spill] sm:$0xff] %v9481_v19  ;;  %v11827_v19 = vld [vmem:[#allocation51_spill] sm:$0xff]  ;;  %6206 = vrcp.f32 %v2809_v54 }
 0xbf5   :  { %6208 = vrcp.f32 %v9460_v56 }
 0xbf6   :  { %2868 = vadd.xlane.f32.xlu1 %v2867_v30  ;;  %v6185_v30 = vpop.eup %6184 }
 0xbf7   :  { %v6187_v20 = vpop.eup %6186 }
 0xbf8   :  { %v2959_v61 = vmul.f32 %v6187_v20, %v11816_v12  ;;  %v6189_v55 = vpop.eup %6188 }
 0xbfa   :  { %2862 = vadd.xlane.f32.xlu1 %v2861_v32  ;;  %v2961_v32 = vmul.f32 %v6185_v30, %v11814_v50  ;;  %v6191_v50 = vpop.eup %6190 }
 0xbfb   :  { %v6193_v24 = vpop.eup %6192 }
 0xbfc   :  { %v6195_v37 = vpop.eup %6194  ;;  %v2969_v20 = vmul.f32 %v6193_v24, %v8715_v29 }
 0xbfd   :  { %v6197_v49 = vpop.eup %6196  ;;  %v2968_v43 = vmul.f32 %v6195_v37, %v8687_v34 }
 0xbfe   :  { %v6199_v12 = vpop.eup %6198 }
 0xc06   :  { %3960 = vadd.xlane.f32.xlu0 %v3959_v4  ;;  %v11817_v4 = vld [vmem:[#allocation154_spill] sm:$0xff] }
 0xc07   :  { %v2965_v30 = vmul.f32 %v6189_v55, %v11817_v4  ;;  %v9488_v55 = vpop.permute.xlu0 %3070  ;;  %v2966_v4 = vmul.f32 %v6199_v12, %v8721_v57  ;;  %v11825_v12 = vld [vmem:[#allocation48_spill] sm:$0xff] }
 0xc0b   :  { %3116 = vrot.lane.b32.xlu1 %v2961_v32, %s6577_s3  ;;  %v2963_v32 = vmul.f32 %v6191_v50, %v8671_v62  ;;  %v2967_v62 = vmul.f32 %v6197_v49, %v8751_v10  ;;  %v2818_v29 = vpop.xlane.xlu0 %2817 }
 0xc0f   :  { %3112 = vrot.lane.b32.xlu1 %v2959_v61, %s6577_s3  ;;  %v2803_v61 = vpop.xlane.xlu1 %2802  ;;  %v2812_v34 = vpop.xlane.xlu0 %2811 }
 0xc10   :  { %6210 = vrcp.f32 %v2803_v61 }
 0xc11   :  { %6212 = vrcp.f32 %v9469_v5 }
 0xc12   :  { %6214 = vrcp.f32 %v2800_v39 }
 0xc13   :  { %3124 = vrot.lane.b32.xlu1 %v2965_v30, %s6577_s3  ;;  %v9494_v30 = vpop.permute.xlu1 %3076  ;;  %v9498_v24 = vpop.permute.xlu0 %3082 }
 0xc14   :  { %11819 = vst [vmem:[#allocation222_spill] sm:$0xff] %v9494_v30  ;;  %11821 = vst [vmem:[#allocation154_spill] sm:$0xff] %v9498_v24  ;;  %v11826_v30 = vld [vmem:[#allocation189_spill] sm:$0xff] }
 0xc15   :  { %v3968_v24 = vsel %vm1268_vm2, %v11826_v30, 0.0 }
 0xc17   :  { %3120 = vrot.lane.b32.xlu1 %v2963_v32, %s6577_s3  ;;  %v9496_v50 = vpop.permute.xlu1 %3072 }
 0xc18   :  { %11820 = vst [vmem:[#allocation229_spill] sm:$0xff] %v9496_v50 }
 0xc1b   :  { %3132 = vrot.lane.b32.xlu1 %v2969_v20, %s6577_s3  ;;  %v2821_v32 = vpop.xlane.xlu1 %2820  ;;  %v9500_v20 = vpop.permute.xlu0 %3078 }
 0xc1c   :  { %3130 = vrot.lane.b32.xlu0 %v2968_v43, %s6577_s3  ;;  %11822 = vst [vmem:[#allocation318_spill] sm:$0xff] %v9500_v20  ;;  %v3962_v20 = vsel %vm1268_vm2, %v11827_v19, 0.0  ;;  %v6201_v19 = vpop.eup %6200 }
 0xc1d   :  { %v2973_v25 = vmul.f32 %v6201_v19, %v8795_v42  ;;  %v6203_v16 = vpop.eup %6202 }
 0xc1e   :  { %v6205_v54 = vpop.eup %6204  ;;  %v2971_v56 = vmul.f32 %v6203_v16, %v8831_v31  ;;  %v11837_v16 = vld [vmem:[#allocation69_spill] sm:$0xff] }
 0xc1f   :  { %3128 = vrot.lane.b32.xlu1 %v2967_v62, %s6577_s3  ;;  %v2815_v37 = vpop.xlane.xlu1 %2814  ;;  %v9502_v43 = vpop.xlane.xlu0 %2829  ;;  %v3965_v62 = vsel %vm1268_vm2, %v11825_v12, 0.0 }
 0xc20   :  { %3126 = vrot.lane.b32.xlu0 %v2966_v4, %s6577_s3 }
 0xc23   :  { %v9504_v10 = vpop.permute.xlu1 %3084  ;;  %v9506_v57 = vpop.xlane.xlu0 %2823 }
 0xc24   :  { %11823 = vst [vmem:[#allocation319_spill] sm:$0xff] %v9504_v10 }
 0xc27   :  { %v9508_v49 = vpop.permute.xlu1 %3080  ;;  %v9518_v50 = vpop.permute.xlu0 %3090 }
 0xc28   :  { %11824 = vst [vmem:[#allocation320_spill] sm:$0xff] %v9508_v49  ;;  %11828 = vst [vmem:[#allocation48_spill] sm:$0xff] %v9518_v50 }
 0xc2b   :  { %v9512_v4 = vpop.xlane.xlu1 %2832  ;;  %v9524_v12 = vpop.permute.xlu0 %3086 }
 0xc2c   :  { %11829 = vst [vmem:[#allocation189_spill] sm:$0xff] %v9524_v12 }
 0xc2f   :  { %v9521_v10 = vpop.xlane.xlu1 %2826 }
 0xc33   :  { %v9529_v30 = vpop.permute.xlu1 %3092 }
 0xc34   :  { %11830 = vst [vmem:[#allocation51_spill] sm:$0xff] %v9529_v30  ;;  %v6207_v30 = vpop.eup %6206 }
 0xc35   :  { %v6209_v5 = vpop.eup %6208  ;;  %v2977_v61 = vmul.f32 %v6207_v30, %v8875_v23 }
 0xc36   :  { %v6211_v39 = vpop.eup %6210  ;;  %v2970_v31 = vmul.f32 %v6209_v5, %v8801_v46 }
 0xc37   :  { %v9538_v26 = vpop.permute.xlu1 %3088  ;;  %v6213_v19 = vpop.eup %6212 }
 0xc38   :  { %v2976_v46 = vmul.f32 %v6213_v19, %v8843_v52  ;;  %v6215_v30 = vpop.eup %6214 }
 0xc3b   :  { %v9542_v49 = vpop.xlane.xlu1 %2844 }
 0xc3f   :  { %3966 = vadd.xlane.f32.xlu0 %v3965_v62  ;;  %v9527_v62 = vpop.xlane.xlu0 %2841 }
 0xc43   :  { %3969 = vadd.xlane.f32.xlu0 %v3968_v24  ;;  %3963 = vadd.xlane.f32.xlu1 %v3962_v20  ;;  %v11831_v24 = vld [vmem:[#allocation175_spill] sm:$0xff]  ;;  %v9536_v50 = vpop.xlane.xlu0 %2835 }
 0xc44   :  { %v3544_v20 = vsub.f32 %v11645_v40, %v11831_v24  ;;  %v2972_v40 = vmul.f32 %v6205_v54, %v8763_v15  ;;  %v11833_v24 = vld [vmem:[#allocation166_spill] sm:$0xff]  ;;  %v11834_v15 = vld [vmem:[#allocation168_spill] sm:$0xff] }
 0xc46   :  { %v3641_v12 = vmul.f32 1.442695, %v3544_v20  ;;  %v3545_v20 = vsub.f32 %v11634_v22, %v11833_v24 }
 0xc47   :  { %v9546_v42 = vpop.permute.xlu0 %3098 }
 0xc48   :  { %6216 = vpow2.f32 %v3641_v12  ;;  %11832 = vst [vmem:[#allocation175_spill] sm:$0xff] %v9546_v42  ;;  %v3543_v12 = vsub.f32 %v11642_v45, %v11834_v15  ;;  %v3643_v54 = vmul.f32 1.442695, %v3545_v20 }
 0xc49   :  { %6218 = vrcp.f32 %v2821_v32  ;;  %v2839_v32 = vpop.xlane.xlu1 %2838 }
 0xc4a   :  { %6220 = vrcp.f32 %v2818_v29  ;;  %v2975_v29 = vmul.f32 %v6211_v39, %v8911_v47  ;;  %v2974_v47 = vmul.f32 %v6215_v30, %v8881_v36 }
 0xc4b   :  { %6222 = vrcp.f32 %v2815_v37  ;;  %v9558_v23 = vpop.permute.xlu0 %3094 }
 0xc4c   :  { %6224 = vrcp.f32 %v2812_v34  ;;  %11835 = vst [vmem:[#allocation166_spill] sm:$0xff] %v9558_v23 }
 0xc4d   :  { %6226 = vpow2.f32 %v3643_v54 }
 0xc4f   :  { %v2854_v34 = vpop.xlane.xlu0 %2853 }
 0xc52   :  { %v9565_v45 = vpop.eup %6216 }
 0xc53   :  { %11838 = vst [vmem:[#allocation168_spill] sm:$0xff] %v9565_v45  ;;  %v6219_v37 = vpop.eup %6218  ;;  %v2848_v36 = vpop.xlane.xlu0 %2847 }
 0xc54   :  { %3140 = vrot.lane.b32.xlu1 %v2973_v25, %s6577_s3  ;;  %v11836_v25 = vld [vmem:[#allocation163_spill] sm:$0xff]  ;;  %v6221_v5 = vpop.eup %6220 }
 0xc55   :  { %v3546_v22 = vsub.f32 %v11837_v16, %v11836_v25  ;;  %v6223_v39 = vpop.eup %6222 }
 0xc56   :  { %v6225_v19 = vpop.eup %6224 }
 0xc57   :  { %v3645_v52 = vmul.f32 1.442695, %v3546_v22  ;;  %v9587_v20 = vpop.eup %6226  ;;  %v9592_v15 = vpop.permute.xlu0 %3106 }
 0xc58   :  { %3136 = vrot.lane.b32.xlu1 %v2971_v56, %s6577_s3  ;;  %v3639_v56 = vmul.f32 1.442695, %v3543_v12  ;;  %11841 = vst [vmem:[#allocation321_spill] sm:$0xff] %v9587_v20  ;;  %11842 = vst [vmem:[#allocation322_spill] sm:$0xff] %v9592_v15  ;;  %v11980_v15 = vld [vmem:[#allocation286_spill] sm:$0xff] }
 0xc59   :  { %3138 = vrot.lane.b32.xlu0 %v2972_v40, %s6577_s3  ;;  %v9567_v40 = vpop.permute.xlu1 %3100 }
 0xc5a   :  { %11839 = vst [vmem:[#allocation163_spill] sm:$0xff] %v9567_v40  ;;  %6228 = vpow2.f32 %v3639_v56 }
 0xc5b   :  { %6230 = vrcp.f32 %v9502_v43  ;;  %v2979_v43 = vmul.f32 %v6223_v39, %v8991_v9 }
 0xc5c   :  { %3148 = vrot.lane.b32.xlu1 %v2977_v61, %s6577_s3  ;;  %v2981_v61 = vmul.f32 %v6219_v37, %v8955_v53  ;;  %6232 = vpow2.f32 %v3645_v52  ;;  %v2978_v53 = vmul.f32 %v6225_v19, %v8961_v51 }
 0xc5d   :  { %3134 = vrot.lane.b32.xlu0 %v2970_v31, %s6577_s3  ;;  %v2980_v31 = vmul.f32 %v6221_v5, %v8923_v13  ;;  %6234 = vrcp.f32 %v9512_v4  ;;  %v9578_v24 = vpop.permute.xlu1 %3096 }
 0xc5e   :  { %11840 = vst [vmem:[#allocation69_spill] sm:$0xff] %v9578_v24  ;;  %6236 = vrcp.f32 %v9506_v57 }
 0xc5f   :  { %6238 = vrcp.f32 %v9521_v10 }
 0xc60   :  { %3144 = vrot.lane.b32.xlu1 %v2975_v29, %s6577_s3  ;;  %6240 = vrcp.f32 %v9527_v62  ;;  %v9605_v29 = vpop.permute.xlu0 %3102 }
 0xc61   :  { %3146 = vrot.lane.b32.xlu0 %v2976_v46, %s6577_s3  ;;  %v2857_v13 = vpop.xlane.xlu1 %2856  ;;  %6242 = vrcp.f32 %v9542_v49  ;;  %11844 = vst [vmem:[#allocation324_spill] sm:$0xff] %v9605_v29 }
 0xc62   :  { %6244 = vrcp.f32 %v9536_v50 }
 0xc63   :  { %6246 = vrcp.f32 %v2839_v32 }
 0xc64   :  { %3833 = vrot.lane.b32.xlu1 %v9565_v45, %s6578_s15  ;;  %v9590_v4 = vpop.eup %6228  ;;  %6248 = vrcp.f32 %v2854_v34  ;;  %v12014_v45 = vld [vmem:[#allocation136_spill] sm:$0xff] }
 0xc65   :  { %3142 = vrot.lane.b32.xlu0 %v2974_v47, %s6577_s3  ;;  %v6231_v57 = vpop.eup %6230  ;;  %v2851_v10 = vpop.xlane.xlu1 %2850  ;;  %6250 = vrcp.f32 %v2857_v13 }
 0xc66   :  { %v9599_v51 = vpop.eup %6232  ;;  %v2984_v62 = vmul.f32 %v6231_v57, %v9003_v48  ;;  %v2866_v48 = vpop.xlane.xlu0 %2865  ;;  %6252 = vrcp.f32 %v2848_v36  ;;  %v11848_v57 = vld [vmem:[#allocation126_spill] sm:$0xff] }
 0xc67   :  { %11843 = vst [vmem:[#allocation323_spill] sm:$0xff] %v9599_v51  ;;  %v6235_v9 = vpop.eup %6234  ;;  %6254 = vrcp.f32 %v2851_v10  ;;  %v11850_v10 = vld [vmem:[#allocation74_spill] sm:$0xff] }
 0xc68   :  { %3156 = vrot.lane.b32.xlu1 %v2981_v61, %s6577_s3  ;;  %v6237_v12 = vpop.eup %6236  ;;  %v2985_v49 = vmul.f32 %v6235_v9, %v9033_v11  ;;  %6256 = vrcp.f32 %v2866_v48  ;;  %v3977_v9 = vsel %vm1268_vm2, %v11848_v57, 0.0 }
 0xc69   :  { %3154 = vrot.lane.b32.xlu0 %v2980_v31, %s6577_s3  ;;  %v6239_v46 = vpop.eup %6238  ;;  %v2982_v30 = vmul.f32 %v6237_v12, %v9037_v41  ;;  %v9611_v25 = vpop.permute.xlu1 %3108 }
 0xc6a   :  { %v6241_v50 = vpop.eup %6240  ;;  %11845 = vst [vmem:[#allocation325_spill] sm:$0xff] %v9611_v25  ;;  %v2983_v32 = vmul.f32 %v6239_v46, %v9066_v18  ;;  %v2860_v56 = vpop.xlane.xlu0 %2859  ;;  %v11853_v46 = vld [vmem:[#allocation176_spill] sm:$0xff] }
 0xc6b   :  { %v6243_v16 = vpop.eup %6242  ;;  %v2988_v22 = vmul.f32 %v6241_v50, %v9078_v7  ;;  %6258 = vrcp.f32 %v2860_v56 }
 0xc6c   :  { %3152 = vrot.lane.b32.xlu1 %v2979_v43, %s6577_s3  ;;  %v6245_v54 = vpop.eup %6244  ;;  %v2989_v11 = vmul.f32 %v6243_v16, %v9106_v27  ;;  %v11856_v16 = vld [vmem:[#allocation72_spill] sm:$0xff] }
 0xc6d   :  { %3150 = vrot.lane.b32.xlu0 %v2978_v53, %s6577_s3  ;;  %v6247_v41 = vpop.eup %6246  ;;  %v9619_v37 = vpop.permute.xlu1 %3104  ;;  %v2986_v34 = vmul.f32 %v6245_v54, %v9112_v14 }
 0xc6e   :  { %11846 = vst [vmem:[#allocation326_spill] sm:$0xff] %v9619_v37  ;;  %v6249_v47 = vpop.eup %6248  ;;  %v2987_v18 = vmul.f32 %v6247_v41, %v9142_v28  ;;  %v11858_v41 = vld [vmem:[#allocation73_spill] sm:$0xff] }
 0xc6f   :  { %v6251_v7 = vpop.eup %6250  ;;  %v2992_v52 = vmul.f32 %v6249_v47, %v9158_v33 }
 0xc70   :  { %3835 = vrot.lane.b32.xlu1 %v9587_v20, %s6578_s15  ;;  %v6253_v61 = vpop.eup %6252  ;;  %v2993_v27 = vmul.f32 %v6251_v7, %v9182_v8 }
 0xc71   :  { %3831 = vrot.lane.b32.xlu0 %v9590_v4, %s6578_s15  ;;  %v6255_v14 = vpop.eup %6254  ;;  %v2990_v31 = vmul.f32 %v6253_v61, %v9186_v58  ;;  %v11863_v61 = vld [vmem:[#allocation228_spill] sm:$0xff] }
 0xc72   :  { %v6257_v19 = vpop.eup %6256  ;;  %v2991_v28 = vmul.f32 %v6255_v14, %v9214_v6  ;;  %v11847_v6 = vld [vmem:[#allocation119_spill] sm:$0xff]  ;;  %v11864_v14 = vld [vmem:[#allocation221_spill] sm:$0xff] }
 0xc73   :  { %v2996_v33 = vmul.f32 %v6257_v19, %v9226_v21  ;;  %v3971_v21 = vsel %vm1268_vm2, %v11847_v6, 0.0  ;;  %v11871_v6 = vld [vmem:[#allocation76_spill] sm:$0xff] }
 0xc74   :  { %3837 = vrot.lane.b32.xlu1 %v9599_v51, %s6578_s15 }
 0xc75   :  { %3162 = vrot.lane.b32.xlu0 %v2984_v62, %s6577_s3  ;;  %v6259_v36 = vpop.eup %6258  ;;  %v11851_v62 = vld [vmem:[#allocation211_spill] sm:$0xff] }
 0xc76   :  { %v2994_v43 = vmul.f32 %v6259_v36, %v9262_v44  ;;  %v11849_v44 = vld [vmem:[#allocation179_spill] sm:$0xff]  ;;  %v3980_v12 = vsel %vm1268_vm2, %v11851_v62, 0.0  ;;  %v11867_v36 = vld [vmem:[#allocation150_spill] sm:$0xff] }
 0xc78   :  { %3164 = vrot.lane.b32.xlu1 %v2985_v49, %s6577_s3  ;;  %v11852_v49 = vld [vmem:[#allocation57_spill] sm:$0xff] }
 0xc79   :  { %3158 = vrot.lane.b32.xlu0 %v2982_v30, %s6577_s3  ;;  %v11854_v30 = vld [vmem:[#allocation71_spill] sm:$0xff] }
 0xc7a   :  { %v3549_v50 = vsub.f32 %v11854_v30, %v11853_v46  ;;  %v11878_v30 = vld [vmem:[#allocation68_spill] sm:$0xff] }
 0xc7c   :  { %3160 = vrot.lane.b32.xlu1 %v2983_v32, %s6577_s3  ;;  %v11855_v32 = vld [vmem:[#allocation180_spill] sm:$0xff]  ;;  %v3651_v54 = vmul.f32 1.442695, %v3549_v50  ;;  %v3995_v50 = vsel %vm1268_vm2, %v11878_v30, 0.0  ;;  %v11898_v30 = vld [vmem:[#allocation114_spill] sm:$0xff] }
 0xc7d   :  { %3170 = vrot.lane.b32.xlu0 %v2988_v22, %s6577_s3  ;;  %v3547_v22 = vsub.f32 %v11856_v16, %v11855_v32  ;;  %v11880_v16 = vld [vmem:[#allocation58_spill] sm:$0xff] }
 0xc80   :  { %3172 = vrot.lane.b32.xlu1 %v2989_v11, %s6577_s3  ;;  %v11857_v11 = vld [vmem:[#allocation178_spill] sm:$0xff] }
 0xc81   :  { %3166 = vrot.lane.b32.xlu0 %v2986_v34, %s6577_s3  ;;  %v3550_v56 = vsub.f32 %v11858_v41, %v11857_v11  ;;  %v3647_v34 = vmul.f32 1.442695, %v3547_v22  ;;  %v3556_v22 = vsub.f32 %v11690_v38, %v11880_v16  ;;  %v11882_v41 = vld [vmem:[#allocation246_spill] sm:$0xff] }
 0xc83   :  { %v2869_v5 = vpop.xlane.xlu1 %2868  ;;  %v3653_v47 = vmul.f32 1.442695, %v3550_v56  ;;  %v3998_v56 = vsel %vm1268_vm2, %v11882_v41, 0.0  ;;  %v11901_v41 = vld [vmem:[#allocation235_spill] sm:$0xff] }
 0xc84   :  { %6260 = vrcp.f32 %v2869_v5  ;;  %3168 = vrot.lane.b32.xlu1 %v2987_v18, %s6577_s3 }
 0xc85   :  { %3178 = vrot.lane.b32.xlu0 %v2992_v52, %s6577_s3 }
 0xc87   :  { %v2863_v39 = vpop.xlane.xlu1 %2862 }
 0xc88   :  { %6262 = vrcp.f32 %v2863_v39  ;;  %3180 = vrot.lane.b32.xlu1 %v2993_v27, %s6577_s3  ;;  %v3983_v27 = vsel %vm1268_vm2, %v11863_v61, 0.0  ;;  %v3989_v39 = vsel %vm1268_vm2, %v11864_v14, 0.0 }
 0xc89   :  { %3174 = vrot.lane.b32.xlu0 %v2990_v31, %s6577_s3  ;;  %v11865_v31 = vld [vmem:[#allocation125_spill] sm:$0xff] }
 0xc8a   :  { %v3552_v19 = vsub.f32 %v11675_v60, %v11865_v31 }
 0xc8c   :  { %3176 = vrot.lane.b32.xlu1 %v2991_v28, %s6577_s3  ;;  %v11866_v28 = vld [vmem:[#allocation227_spill] sm:$0xff]  ;;  %v3657_v57 = vmul.f32 1.442695, %v3552_v19 }
 0xc8d   :  { %3186 = vrot.lane.b32.xlu0 %v2996_v33, %s6577_s3  ;;  %v3992_v33 = vsel %vm1268_vm2, %v11866_v28, 0.0  ;;  %v11886_v28 = vld [vmem:[#allocation220_spill] sm:$0xff] }
 0xc8e   :  { %v6261_v8 = vpop.eup %6260 }
 0xc8f   :  { %v2997_v58 = vmul.f32 %v6261_v8, %v9256_v0  ;;  %v3548_v0 = vsub.f32 %v11850_v10, %v11849_v44  ;;  %v3986_v8 = vsel %vm1268_vm2, %v11867_v36, 0.0  ;;  %v11872_v10 = vld [vmem:[#allocation204_spill] sm:$0xff] }
 0xc91   :  { %3182 = vrot.lane.b32.xlu0 %v2994_v43, %s6577_s3  ;;  %3188 = vrot.lane.b32.xlu1 %v2997_v58, %s6577_s3  ;;  %v3649_v48 = vmul.f32 1.442695, %v3548_v0  ;;  %v11868_v43 = vld [vmem:[#allocation193_spill] sm:$0xff]  ;;  %v11869_v58 = vld [vmem:[#allocation75_spill] sm:$0xff] }
 0xc92   :  { %v6263_v53 = vpop.eup %6262  ;;  %v11873_v0 = vld [vmem:[#allocation77_spill] sm:$0xff] }
 0xc93   :  { %v2995_v13 = vmul.f32 %v6263_v53, %v9296_v35  ;;  %v3974_v35 = vsel %vm1268_vm2, %v11852_v49, 0.0  ;;  %6264 = vpow2.f32 %v3649_v48  ;;  %v3553_v53 = vsub.f32 %v11869_v58, %v11868_v43  ;;  %v11879_v48 = vld [vmem:[#allocation236_spill] sm:$0xff] }
 0xc94   :  { %6266 = vpow2.f32 %v3651_v54  ;;  %v3554_v60 = vsub.f32 %v11873_v0, %v11872_v10  ;;  %v4001_v32 = vsel %vm1268_vm2, %v11879_v48, 0.0  ;;  %v11881_v54 = vld [vmem:[#allocation70_spill] sm:$0xff] }
 0xc95   :  { %3184 = vrot.lane.b32.xlu1 %v2995_v13, %s6577_s3  ;;  %6268 = vpow2.f32 %v3647_v34  ;;  %v11870_v13 = vld [vmem:[#allocation199_spill] sm:$0xff]  ;;  %v4004_v11 = vsel %vm1268_vm2, %v11881_v54, 0.0  ;;  %v11883_v34 = vld [vmem:[#allocation214_spill] sm:$0xff] }
 0xc96   :  { %6270 = vpow2.f32 %v3653_v47  ;;  %v3661_v62 = vmul.f32 1.442695, %v3554_v60  ;;  %v11884_v47 = vld [vmem:[#allocation93_spill] sm:$0xff]  ;;  %v11896_v0 = vld [vmem:[#allocation262_spill] sm:$0xff] }
 0xc97   :  { %6272 = vpow2.f32 %v3657_v57  ;;  %v3557_v61 = vsub.f32 %v11884_v47, %v11883_v34  ;;  %v11894_v57 = vld [vmem:[#allocation238_spill] sm:$0xff]  ;;  %v4010_v60 = vsel %vm1268_vm2, %v11896_v0, 0.0 }
 0xc98   :  { %v11899_v48 = vld [vmem:[#allocation66_spill] sm:$0xff] }
 0xc99   :  { %v3667_v31 = vmul.f32 1.442695, %v3557_v61 }
 0xc9d   :  { %v9658_v18 = vpop.eup %6264 }
 0xc9e   :  { %11859 = vst [vmem:[#allocation119_spill] sm:$0xff] %v9658_v18  ;;  %v9662_v7 = vpop.eup %6266 }
 0xc9f   :  { %11860 = vst [vmem:[#allocation126_spill] sm:$0xff] %v9662_v7  ;;  %v9664_v5 = vpop.eup %6268 }
 0xca0   :  { %11861 = vst [vmem:[#allocation179_spill] sm:$0xff] %v9664_v5  ;;  %v9670_v52 = vpop.eup %6270 }
 0xca1   :  { %11862 = vst [vmem:[#allocation74_spill] sm:$0xff] %v9670_v52 }
 0xcb0   :  { %3972 = vadd.xlane.f32.xlu0 %v3971_v21  ;;  %v3551_v21 = vsub.f32 %v11871_v6, %v11870_v13  ;;  %v11893_v6 = vld [vmem:[#allocation252_spill] sm:$0xff] }
 0xcb2   :  { %v3655_v44 = vmul.f32 1.442695, %v3551_v21  ;;  %v4013_v21 = vsel %vm1268_vm2, %v11893_v6, 0.0 }
 0xcb4   :  { %3978 = vadd.xlane.f32.xlu0 %v3977_v9  ;;  %v3659_v9 = vmul.f32 1.442695, %v3553_v53  ;;  %v11892_v53 = vld [vmem:[#allocation258_spill] sm:$0xff] }
 0xcb5   :  { %v4007_v13 = vsel %vm1268_vm2, %v11892_v53, 0.0 }
 0xcb6   :  { %6274 = vpow2.f32 %v3659_v9  ;;  %v3560_v9 = vsub.f32 %v11704_v63, %v11894_v57  ;;  %v11913_v57 = vld [vmem:[#allocation142_spill] sm:$0xff] }
 0xcb7   :  { %6276 = vpow2.f32 %v3655_v44  ;;  %v11895_v44 = vld [vmem:[#allocation53_spill] sm:$0xff] }
 0xcb8   :  { %3981 = vadd.xlane.f32.xlu0 %v3980_v12  ;;  %6278 = vpow2.f32 %v3661_v62  ;;  %v9690_v12 = vpop.eup %6272  ;;  %v4016_v10 = vsel %vm1268_vm2, %v11895_v44, 0.0  ;;  %v11897_v62 = vld [vmem:[#allocation64_spill] sm:$0xff]  ;;  %v11914_v44 = vld [vmem:[#allocation251_spill] sm:$0xff] }
 0xcb9   :  { %3975 = vadd.xlane.f32.xlu1 %v3974_v35  ;;  %11874 = vst [vmem:[#allocation211_spill] sm:$0xff] %v9690_v12 }
 0xcc0   :  { %v9694_v49 = vpop.eup %6274 }
 0xcc1   :  { %11875 = vst [vmem:[#allocation57_spill] sm:$0xff] %v9694_v49  ;;  %v9696_v35 = vpop.eup %6276 }
 0xcc2   :  { %11876 = vst [vmem:[#allocation176_spill] sm:$0xff] %v9696_v35  ;;  %v9702_v46 = vpop.eup %6278 }
 0xcc3   :  { %11877 = vst [vmem:[#allocation71_spill] sm:$0xff] %v9702_v46 }
 0xcca   :  { %3841 = vrot.lane.b32.xlu1 %v9658_v18, %s6578_s15  ;;  %v12011_v18 = vld [vmem:[#allocation91_spill] sm:$0xff] }
 0xcce   :  { %3839 = vrot.lane.b32.xlu0 %v9664_v5, %s6578_s15  ;;  %3843 = vrot.lane.b32.xlu1 %v9662_v7, %s6578_s15 }
 0xcd2   :  { %3845 = vrot.lane.b32.xlu1 %v9670_v52, %s6578_s15 }
 0xced   :  { %3984 = vadd.xlane.f32.xlu0 %v3983_v27  ;;  %v11885_v27 = vld [vmem:[#allocation127_spill] sm:$0xff] }
 0xcee   :  { %v3555_v14 = vsub.f32 %v11688_v1, %v11885_v27 }
 0xcf0   :  { %v3663_v19 = vmul.f32 1.442695, %v3555_v14 }
 0xcf1   :  { %3990 = vadd.xlane.f32.xlu0 %v3989_v39  ;;  %v3665_v39 = vmul.f32 1.442695, %v3556_v22  ;;  %v3673_v22 = vmul.f32 1.442695, %v3560_v9 }
 0xcf3   :  { %6280 = vpow2.f32 %v3665_v39  ;;  %v11907_v39 = vld [vmem:[#allocation272_spill] sm:$0xff] }
 0xcf4   :  { %6282 = vpow2.f32 %v3667_v31  ;;  %v4019_v31 = vsel %vm1268_vm2, %v11907_v39, 0.0 }
 0xcf5   :  { %3993 = vadd.xlane.f32.xlu0 %v3992_v33  ;;  %v11887_v33 = vld [vmem:[#allocation96_spill] sm:$0xff]  ;;  %6284 = vpow2.f32 %v3663_v19  ;;  %v11908_v19 = vld [vmem:[#allocation266_spill] sm:$0xff] }
 0xcf6   :  { %3987 = vadd.xlane.f32.xlu1 %v3986_v8  ;;  %v3558_v38 = vsub.f32 %v11887_v33, %v11886_v28  ;;  %v4025_v28 = vsel %vm1268_vm2, %v11908_v19, 0.0  ;;  %v11909_v33 = vld [vmem:[#allocation256_spill] sm:$0xff] }
 0xcf8   :  { %v3669_v36 = vmul.f32 1.442695, %v3558_v38  ;;  %v3564_v38 = vsub.f32 %v11719_v3, %v11909_v33 }
 0xcfa   :  { %6286 = vpow2.f32 %v3669_v36  ;;  %v11910_v36 = vld [vmem:[#allocation118_spill] sm:$0xff] }
 0xcfb   :  { %6288 = vpow2.f32 %v3673_v22  ;;  %v4028_v53 = vsel %vm1268_vm2, %v11910_v36, 0.0  ;;  %v9788_v22 = vpop.permute.xlu1 %3116 }
 0xcfc   :  { %11919 = vst [vmem:[#allocation193_spill] sm:$0xff] %v9788_v22 }
 0xcfd   :  { %v9722_v8 = vpop.eup %6280 }
 0xcfe   :  { %11888 = vst [vmem:[#allocation180_spill] sm:$0xff] %v9722_v8  ;;  %v9726_v43 = vpop.eup %6282 }
 0xcff   :  { %11889 = vst [vmem:[#allocation72_spill] sm:$0xff] %v9726_v43  ;;  %v9728_v58 = vpop.eup %6284 }
 0xd00   :  { %11890 = vst [vmem:[#allocation178_spill] sm:$0xff] %v9728_v58 }
 0xd04   :  { %v9734_v1 = vpop.eup %6286 }
 0xd05   :  { %11891 = vst [vmem:[#allocation73_spill] sm:$0xff] %v9734_v1  ;;  %v9754_v47 = vpop.eup %6288 }
 0xd06   :  { %11903 = vst [vmem:[#allocation228_spill] sm:$0xff] %v9754_v47 }
 0xd07   :  { %3849 = vrot.lane.b32.xlu1 %v9690_v12, %s6578_s15 }
 0xd0b   :  { %3847 = vrot.lane.b32.xlu0 %v9696_v35, %s6578_s15  ;;  %3851 = vrot.lane.b32.xlu1 %v9694_v49, %s6578_s15 }
 0xd0f   :  { %3853 = vrot.lane.b32.xlu1 %v9702_v46, %s6578_s15  ;;  %v12002_v46 = vld [vmem:[#allocation50_spill] sm:$0xff] }
 0xd2a   :  { %3996 = vadd.xlane.f32.xlu0 %v3995_v50  ;;  %v3561_v50 = vsub.f32 %v11898_v30, %v11897_v62 }
 0xd2c   :  { %v3675_v54 = vmul.f32 1.442695, %v3561_v50  ;;  %v11916_v50 = vld [vmem:[#allocation253_spill] sm:$0xff] }
 0xd2e   :  { %4002 = vadd.xlane.f32.xlu0 %v4001_v32  ;;  %v11900_v32 = vld [vmem:[#allocation115_spill] sm:$0xff]  ;;  %6290 = vpow2.f32 %v3675_v54 }
 0xd2f   :  { %v3559_v16 = vsub.f32 %v11900_v32, %v11899_v48  ;;  %v11917_v48 = vld [vmem:[#allocation144_spill] sm:$0xff] }
 0xd30   :  { %v3566_v3 = vsub.f32 %v11917_v48, %v11916_v50  ;;  %v11939_v48 = vld [vmem:[#allocation288_spill] sm:$0xff] }
 0xd32   :  { %4005 = vadd.xlane.f32.xlu0 %v4004_v11  ;;  %v3671_v11 = vmul.f32 1.442695, %v3559_v16  ;;  %v3685_v32 = vmul.f32 1.442695, %v3566_v3  ;;  %v9786_v16 = vpop.permute.xlu0 %3114  ;;  %v4040_v3 = vsel %vm1268_vm2, %v11939_v48, 0.0  ;;  %v11948_v48 = vld [vmem:[#allocation172_spill] sm:$0xff] }
 0xd33   :  { %3999 = vadd.xlane.f32.xlu1 %v3998_v56  ;;  %v11902_v56 = vld [vmem:[#allocation117_spill] sm:$0xff]  ;;  %11918 = vst [vmem:[#allocation150_spill] sm:$0xff] %v9786_v16 }
 0xd34   :  { %v3562_v63 = vsub.f32 %v11902_v56, %v11901_v41  ;;  %6292 = vpow2.f32 %v3671_v11 }
 0xd36   :  { %v3677_v34 = vmul.f32 1.442695, %v3562_v63  ;;  %v9794_v11 = vpop.permute.xlu0 %3110  ;;  %v9800_v63 = vpop.permute.xlu1 %3112 }
 0xd37   :  { %11921 = vst [vmem:[#allocation199_spill] sm:$0xff] %v9794_v11  ;;  %11924 = vst [vmem:[#allocation77_spill] sm:$0xff] %v9800_v63 }
 0xd38   :  { %6294 = vpow2.f32 %v3677_v34  ;;  %v9758_v61 = vpop.eup %6290 }
 0xd39   :  { %11904 = vst [vmem:[#allocation221_spill] sm:$0xff] %v9758_v61 }
 0xd3a   :  { %v9808_v39 = vpop.permute.xlu0 %3122 }
 0xd3b   :  { %11926 = vst [vmem:[#allocation236_spill] sm:$0xff] %v9808_v39  ;;  %v11947_v39 = vld [vmem:[#allocation267_spill] sm:$0xff] }
 0xd3e   :  { %v9760_v27 = vpop.eup %6292  ;;  %v9814_v19 = vpop.permute.xlu0 %3118 }
 0xd3f   :  { %11905 = vst [vmem:[#allocation125_spill] sm:$0xff] %v9760_v27  ;;  %11928 = vst [vmem:[#allocation70_spill] sm:$0xff] %v9814_v19  ;;  %v11970_v19 = vld [vmem:[#allocation196_spill] sm:$0xff] }
 0xd42   :  { %v9766_v14 = vpop.eup %6294  ;;  %v9818_v33 = vpop.xlane.xlu0 %3960 }
 0xd43   :  { %11906 = vst [vmem:[#allocation227_spill] sm:$0xff] %v9766_v14 }
 0xd44   :  { %3857 = vrot.lane.b32.xlu1 %v9722_v8, %s6578_s15 }
 0xd46   :  { %v9822_v36 = vpop.permute.xlu0 %3130 }
 0xd47   :  { %11931 = vst [vmem:[#allocation93_spill] sm:$0xff] %v9822_v36 }
 0xd48   :  { %3855 = vrot.lane.b32.xlu0 %v9728_v58, %s6578_s15  ;;  %3859 = vrot.lane.b32.xlu1 %v9726_v43, %s6578_s15  ;;  %v12005_v58 = vld [vmem:[#allocation183_spill] sm:$0xff] }
 0xd4c   :  { %3861 = vrot.lane.b32.xlu1 %v9734_v1, %s6578_s15 }
 0xd67   :  { %4008 = vadd.xlane.f32.xlu0 %v4007_v13  ;;  %v11911_v13 = vld [vmem:[#allocation279_spill] sm:$0xff] }
 0xd68   :  { %v4022_v6 = vsel %vm1268_vm2, %v11911_v13, 0.0  ;;  %v9826_v13 = vpop.permute.xlu0 %3126 }
 0xd69   :  { %11933 = vst [vmem:[#allocation220_spill] sm:$0xff] %v9826_v13 }
 0xd6b   :  { %4014 = vadd.xlane.f32.xlu0 %v4013_v21  ;;  %v11912_v21 = vld [vmem:[#allocation244_spill] sm:$0xff] }
 0xd6c   :  { %v3565_v9 = vsub.f32 %v11913_v57, %v11912_v21  ;;  %v9830_v21 = vpop.xlane.xlu0 %3966  ;;  %v11934_v57 = vld [vmem:[#allocation292_spill] sm:$0xff] }
 0xd6e   :  { %v3683_v62 = vmul.f32 1.442695, %v3565_v9  ;;  %v4031_v9 = vsel %vm1268_vm2, %v11934_v57, 0.0 }
 0xd6f   :  { %4017 = vadd.xlane.f32.xlu0 %v4016_v10  ;;  %v11915_v10 = vld [vmem:[#allocation143_spill] sm:$0xff] }
 0xd70   :  { %4011 = vadd.xlane.f32.xlu1 %v4010_v60  ;;  %v3563_v0 = vsub.f32 %v11915_v10, %v11914_v44  ;;  %v3681_v60 = vmul.f32 1.442695, %v3564_v38  ;;  %v11936_v10 = vld [vmem:[#allocation146_spill] sm:$0xff] }
 0xd72   :  { %v3679_v30 = vmul.f32 1.442695, %v3563_v0  ;;  %6296 = vpow2.f32 %v3681_v60  ;;  %v4037_v0 = vsel %vm1268_vm2, %v11936_v10, 0.0  ;;  %v9838_v60 = vpop.xlane.xlu0 %3969 }
 0xd73   :  { %6298 = vpow2.f32 %v3683_v62  ;;  %v11937_v62 = vld [vmem:[#allocation270_spill] sm:$0xff] }
 0xd74   :  { %6300 = vpow2.f32 %v3679_v30  ;;  %v11938_v30 = vld [vmem:[#allocation173_spill] sm:$0xff] }
 0xd75   :  { %6302 = vpow2.f32 %v3685_v32  ;;  %v3568_v50 = vsub.f32 %v11938_v30, %v11937_v62  ;;  %v11940_v32 = vld [vmem:[#allocation298_spill] sm:$0xff] }
 0xd76   :  { %v9850_v10 = vpop.permute.xlu0 %3138 }
 0xd77   :  { %11944 = vst [vmem:[#allocation252_spill] sm:$0xff] %v9850_v10  ;;  %v11965_v10 = vld [vmem:[#allocation303_spill] sm:$0xff] }
 0xd7c   :  { %v9790_v54 = vpop.eup %6296 }
 0xd7d   :  { %11920 = vst [vmem:[#allocation75_spill] sm:$0xff] %v9790_v54  ;;  %v9796_v41 = vpop.eup %6298 }
 0xd7e   :  { %11922 = vst [vmem:[#allocation76_spill] sm:$0xff] %v9796_v41  ;;  %v9798_v56 = vpop.eup %6300 }
 0xd7f   :  { %11923 = vst [vmem:[#allocation204_spill] sm:$0xff] %v9798_v56  ;;  %v9806_v34 = vpop.eup %6302 }
 0xd80   :  { %11925 = vst [vmem:[#allocation68_spill] sm:$0xff] %v9806_v34 }
 0xd81   :  { %3865 = vrot.lane.b32.xlu1 %v9754_v47, %s6578_s15 }
 0xd85   :  { %3863 = vrot.lane.b32.xlu0 %v9760_v27, %s6578_s15  ;;  %3867 = vrot.lane.b32.xlu1 %v9758_v61, %s6578_s15 }
 0xd89   :  { %3869 = vrot.lane.b32.xlu1 %v9766_v14, %s6578_s15 }
 0xda4   :  { %4020 = vadd.xlane.f32.xlu0 %v4019_v31  ;;  %v9812_v31 = vpop.permute.xlu1 %3124 }
 0xda5   :  { %11927 = vst [vmem:[#allocation58_spill] sm:$0xff] %v9812_v31  ;;  %v3689_v31 = vmul.f32 1.442695, %v3568_v50 }
 0xda7   :  { %6304 = vpow2.f32 %v3689_v31 }
 0xda8   :  { %4026 = vadd.xlane.f32.xlu0 %v4025_v28  ;;  %v9816_v28 = vpop.permute.xlu1 %3120 }
 0xda9   :  { %11929 = vst [vmem:[#allocation246_spill] sm:$0xff] %v9816_v28 }
 0xdac   :  { %4029 = vadd.xlane.f32.xlu0 %v4028_v53  ;;  %v9820_v38 = vpop.permute.xlu1 %3132 }
 0xdad   :  { %4023 = vadd.xlane.f32.xlu1 %v4022_v6  ;;  %11930 = vst [vmem:[#allocation214_spill] sm:$0xff] %v9820_v38  ;;  %v4034_v38 = vsel %vm1268_vm2, %v11940_v32, 0.0  ;;  %v9858_v32 = vpop.permute.xlu0 %3134 }
 0xdae   :  { %11950 = vst [vmem:[#allocation53_spill] sm:$0xff] %v9858_v32  ;;  %v11969_v32 = vld [vmem:[#allocation287_spill] sm:$0xff] }
 0xdaf   :  { %v3572_v22 = vsub.f32 %v11970_v19, %v11969_v32 }
 0xdb0   :  { %v9824_v53 = vpop.permute.xlu1 %3128 }
 0xdb1   :  { %11932 = vst [vmem:[#allocation127_spill] sm:$0xff] %v9824_v53  ;;  %v11945_v53 = vld [vmem:[#allocation265_spill] sm:$0xff]  ;;  %v3697_v25 = vmul.f32 1.442695, %v3572_v22 }
 0xdb4   :  { %v9828_v6 = vpop.xlane.xlu1 %3963 }
 0xdb8   :  { %v9834_v44 = vpop.permute.xlu1 %3140 }
 0xdb9   :  { %11935 = vst [vmem:[#allocation96_spill] sm:$0xff] %v9834_v44  ;;  %v11943_v44 = vld [vmem:[#allocation169_spill] sm:$0xff] }
 0xdbc   :  { %v9846_v57 = vpop.permute.xlu1 %3136 }
 0xdbd   :  { %11941 = vst [vmem:[#allocation258_spill] sm:$0xff] %v9846_v57 }
 0xdbe   :  { %3873 = vrot.lane.b32.xlu1 %v9790_v54, %s6578_s15  ;;  %v12000_v54 = vld [vmem:[#allocation110_spill] sm:$0xff] }
 0xdc0   :  { %v9856_v28 = vpop.permute.xlu1 %3148 }
 0xdc1   :  { %11949 = vst [vmem:[#allocation238_spill] sm:$0xff] %v9856_v28 }
 0xdc2   :  { %3871 = vrot.lane.b32.xlu0 %v9798_v56, %s6578_s15  ;;  %3875 = vrot.lane.b32.xlu1 %v9796_v41, %s6578_s15 }
 0xdc6   :  { %3877 = vrot.lane.b32.xlu1 %v9806_v34, %s6578_s15 }
 0xde1   :  { %4032 = vadd.xlane.f32.xlu0 %v4031_v9  ;;  %v11942_v9 = vld [vmem:[#allocation205_spill] sm:$0xff] }
 0xde2   :  { %v3569_v36 = vsub.f32 %v11943_v44, %v11942_v9  ;;  %v9860_v44 = vpop.permute.xlu1 %3144  ;;  %v9862_v9 = vpop.permute.xlu0 %3146 }
 0xde3   :  { %11951 = vst [vmem:[#allocation262_spill] sm:$0xff] %v9860_v44  ;;  %11952 = vst [vmem:[#allocation64_spill] sm:$0xff] %v9862_v9 }
 0xde4   :  { %v3691_v62 = vmul.f32 1.442695, %v3569_v36 }
 0xde5   :  { %4038 = vadd.xlane.f32.xlu0 %v4037_v0  ;;  %v11946_v0 = vld [vmem:[#allocation171_spill] sm:$0xff] }
 0xde6   :  { %v3567_v13 = vsub.f32 %v11946_v0, %v11945_v53  ;;  %6306 = vpow2.f32 %v3691_v62  ;;  %v9864_v53 = vpop.eup %6304  ;;  %v9868_v36 = vpop.permute.xlu1 %3833 }
 0xde7   :  { %11953 = vst [vmem:[#allocation114_spill] sm:$0xff] %v9864_v53  ;;  %v9872_v31 = vpop.permute.xlu0 %3142 }
 0xde8   :  { %v3687_v30 = vmul.f32 1.442695, %v3567_v13  ;;  %11955 = vst [vmem:[#allocation115_spill] sm:$0xff] %v9872_v31 }
 0xde9   :  { %4041 = vadd.xlane.f32.xlu0 %v4040_v3  ;;  %v3570_v3 = vsub.f32 %v11948_v48, %v11947_v39 }
 0xdea   :  { %4035 = vadd.xlane.f32.xlu1 %v4034_v38  ;;  %6308 = vpow2.f32 %v3687_v30  ;;  %v9882_v0 = vpop.permute.xlu1 %3156 }
 0xdeb   :  { %v3693_v38 = vmul.f32 1.442695, %v3570_v3  ;;  %11958 = vst [vmem:[#allocation272_spill] sm:$0xff] %v9882_v0  ;;  %v9884_v62 = vpop.permute.xlu0 %3154  ;;  %v4043_v0 = vsel %vm1268_vm2, %v11965_v10, 0.0 }
 0xdec   :  { %11959 = vst [vmem:[#allocation266_spill] sm:$0xff] %v9884_v62 }
 0xded   :  { %6310 = vpow2.f32 %v3693_v38 }
 0xdee   :  { %v9888_v30 = vpop.permute.xlu1 %3152  ;;  %6312 = vpow2.f32 %v3697_v25 }
 0xdef   :  { %11960 = vst [vmem:[#allocation256_spill] sm:$0xff] %v9888_v30  ;;  %v9890_v48 = vpop.permute.xlu0 %3150  ;;  %v11968_v30 = vld [vmem:[#allocation295_spill] sm:$0xff] }
 0xdf0   :  { %v9870_v39 = vpop.eup %6306  ;;  %11961 = vst [vmem:[#allocation118_spill] sm:$0xff] %v9890_v48  ;;  %v4049_v48 = vsel %vm1268_vm2, %v11968_v30, 0.0  ;;  %v11977_v30 = vld [vmem:[#allocation282_spill] sm:$0xff] }
 0xdf1   :  { %11954 = vst [vmem:[#allocation66_spill] sm:$0xff] %v9870_v39 }
 0xdf2   :  { %v3836_v3 = vpop.permute.xlu1 %3835 }
 0xdf3   :  { %v3832_v38 = vpop.permute.xlu0 %3831 }
 0xdf4   :  { %v9874_v13 = vpop.eup %6308 }
 0xdf5   :  { %11956 = vst [vmem:[#allocation235_spill] sm:$0xff] %v9874_v13 }
 0xdf6   :  { %v3838_v28 = vpop.permute.xlu1 %3837 }
 0xdf7   :  { %v9880_v50 = vpop.eup %6310  ;;  %v9892_v9 = vpop.permute.xlu0 %3162 }
 0xdf8   :  { %11957 = vst [vmem:[#allocation117_spill] sm:$0xff] %v9880_v50  ;;  %11962 = vst [vmem:[#allocation279_spill] sm:$0xff] %v9892_v9  ;;  %v11971_v9 = vld [vmem:[#allocation300_spill] sm:$0xff] }
 0xdfa   :  { %v9894_v44 = vpop.permute.xlu1 %3164 }
 0xdfb   :  { %3881 = vrot.lane.b32.xlu1 %v9864_v53, %s6578_s15  ;;  %11963 = vst [vmem:[#allocation244_spill] sm:$0xff] %v9894_v44  ;;  %v9896_v31 = vpop.permute.xlu0 %3158  ;;  %v4052_v44 = vsel %vm1268_vm2, %v11971_v9, 0.0 }
 0xdfc   :  { %11964 = vst [vmem:[#allocation142_spill] sm:$0xff] %v9896_v31  ;;  %v11973_v31 = vld [vmem:[#allocation310_spill] sm:$0xff] }
 0xdfd   :  { %v4046_v10 = vsel %vm1268_vm2, %v11973_v31, 0.0 }
 0xdfe   :  { %v9900_v62 = vpop.permute.xlu1 %3160 }
 0xdff   :  { %3879 = vrot.lane.b32.xlu0 %v9874_v13, %s6578_s15  ;;  %3883 = vrot.lane.b32.xlu1 %v9870_v39, %s6578_s15  ;;  %11966 = vst [vmem:[#allocation251_spill] sm:$0xff] %v9900_v62  ;;  %v9902_v57 = vpop.permute.xlu0 %3170  ;;  %v11976_v62 = vld [vmem:[#allocation191_spill] sm:$0xff] }
 0xe00   :  { %11967 = vst [vmem:[#allocation143_spill] sm:$0xff] %v9902_v57  ;;  %v11975_v57 = vld [vmem:[#allocation277_spill] sm:$0xff] }
 0xe01   :  { %v3573_v63 = vsub.f32 %v11976_v62, %v11975_v57  ;;  %v9930_v62 = vpop.eup %6312 }
 0xe02   :  { %v9910_v16 = vpop.permute.xlu1 %3172  ;;  %11985 = vst [vmem:[#allocation288_spill] sm:$0xff] %v9930_v62 }
 0xe03   :  { %3885 = vrot.lane.b32.xlu1 %v9880_v50, %s6578_s15  ;;  %11972 = vst [vmem:[#allocation253_spill] sm:$0xff] %v9910_v16  ;;  %v3699_v19 = vmul.f32 1.442695, %v3573_v63  ;;  %v11981_v16 = vld [vmem:[#allocation195_spill] sm:$0xff] }
 0xe05   :  { %6314 = vpow2.f32 %v3699_v19 }
 0xe06   :  { %v9920_v32 = vpop.permute.xlu1 %3168 }
 0xe07   :  { %11979 = vst [vmem:[#allocation292_spill] sm:$0xff] %v9920_v32  ;;  %v4061_v32 = vsel %vm1268_vm2, %v3836_v3, 0.0 }
 0xe1e   :  { %4044 = vadd.xlane.f32.xlu0 %v4043_v0  ;;  %v9914_v0 = vpop.permute.xlu0 %3166 }
 0xe1f   :  { %11974 = vst [vmem:[#allocation144_spill] sm:$0xff] %v9914_v0  ;;  %v4064_v0 = vsel %vm1268_vm2, %v3838_v28, 0.0 }
 0xe22   :  { %4050 = vadd.xlane.f32.xlu0 %v4049_v48  ;;  %v11978_v48 = vld [vmem:[#allocation194_spill] sm:$0xff]  ;;  %v9924_v37 = vpop.permute.xlu0 %3178 }
 0xe23   :  { %v3571_v11 = vsub.f32 %v11978_v48, %v11977_v30  ;;  %11982 = vst [vmem:[#allocation146_spill] sm:$0xff] %v9924_v37 }
 0xe25   :  { %v3695_v9 = vmul.f32 1.442695, %v3571_v11 }
 0xe26   :  { %4053 = vadd.xlane.f32.xlu0 %v4052_v44  ;;  %v3574_v44 = vsub.f32 %v11981_v16, %v11980_v15  ;;  %v9928_v57 = vpop.permute.xlu0 %3174  ;;  %v9938_v15 = vpop.eup %6314 }
 0xe27   :  { %4047 = vadd.xlane.f32.xlu1 %v4046_v10  ;;  %6316 = vpow2.f32 %v3695_v9  ;;  %v9926_v10 = vpop.permute.xlu1 %3180  ;;  %11984 = vst [vmem:[#allocation173_spill] sm:$0xff] %v9928_v57  ;;  %11988 = vst [vmem:[#allocation169_spill] sm:$0xff] %v9938_v15 }
 0xe28   :  { %v3701_v31 = vmul.f32 1.442695, %v3574_v44  ;;  %11983 = vst [vmem:[#allocation270_spill] sm:$0xff] %v9926_v10 }
 0xe2a   :  { %6318 = vpow2.f32 %v3701_v31  ;;  %v9936_v11 = vpop.permute.xlu0 %3186 }
 0xe2b   :  { %v9932_v22 = vpop.permute.xlu1 %3176  ;;  %11987 = vst [vmem:[#allocation205_spill] sm:$0xff] %v9936_v11  ;;  %6320 = vrcp.f32 %v9828_v6 }
 0xe2c   :  { %11986 = vst [vmem:[#allocation298_spill] sm:$0xff] %v9932_v22  ;;  %6322 = vrcp.f32 %v9818_v33  ;;  %v11995_v33 = vld [vmem:[#allocation89_spill] sm:$0xff] }
 0xe2d   :  { %6324 = vrcp.f32 %v9830_v21  ;;  %v11996_v21 = vld [vmem:[#allocation85_spill] sm:$0xff] }
 0xe2e   :  { %v9950_v30 = vpop.permute.xlu0 %3182  ;;  %6326 = vrcp.f32 %v9838_v60  ;;  %v11997_v60 = vld [vmem:[#allocation87_spill] sm:$0xff] }
 0xe2f   :  { %v9946_v16 = vpop.permute.xlu1 %3188  ;;  %11992 = vst [vmem:[#allocation172_spill] sm:$0xff] %v9950_v30  ;;  %v4055_v30 = vsel %vm1268_vm2, %v3832_v38, 0.0 }
 0xe30   :  { %11990 = vst [vmem:[#allocation171_spill] sm:$0xff] %v9946_v16 }
 0xe31   :  { %v9940_v25 = vpop.eup %6316 }
 0xe32   :  { %11989 = vst [vmem:[#allocation265_spill] sm:$0xff] %v9940_v25  ;;  %v9954_v48 = vpop.xlane.xlu0 %3972 }
 0xe33   :  { %v9956_v19 = vpop.permute.xlu1 %3184 }
 0xe34   :  { %v9948_v63 = vpop.eup %6318  ;;  %11993 = vst [vmem:[#allocation303_spill] sm:$0xff] %v9956_v19 }
 0xe35   :  { %11991 = vst [vmem:[#allocation267_spill] sm:$0xff] %v9948_v63 }
 0xe36   :  { %v9960_v44 = vpop.xlane.xlu0 %3978 }
 0xe37   :  { %v9958_v9 = vpop.xlane.xlu1 %3975 }
 0xe38   :  { %3889 = vrot.lane.b32.xlu1 %v9930_v62, %s6578_s15  ;;  %6328 = vrcp.f32 %v9958_v9 }
 0xe39   :  { %6330 = vrcp.f32 %v9954_v48  ;;  %v11999_v48 = vld [vmem:[#allocation100_spill] sm:$0xff] }
 0xe3a   :  { %v9962_v11 = vpop.xlane.xlu0 %3981  ;;  %6332 = vrcp.f32 %v9960_v44 }
 0xe3b   :  { %v3842_v31 = vpop.permute.xlu1 %3841  ;;  %6334 = vrcp.f32 %v9962_v11 }
 0xe3c   :  { %3887 = vrot.lane.b32.xlu0 %v9940_v25, %s6578_s15  ;;  %3891 = vrot.lane.b32.xlu1 %v9938_v15, %s6578_s15 }
 0xe3e   :  { %v3840_v16 = vpop.permute.xlu0 %3839 }
 0xe3f   :  { %v3844_v10 = vpop.permute.xlu1 %3843  ;;  %v4067_v38 = vsel %vm1268_vm2, %v3840_v16, 0.0 }
 0xe40   :  { %3893 = vrot.lane.b32.xlu1 %v9948_v63, %s6578_s15  ;;  %v4058_v63 = vsel %vm1268_vm2, %v9868_v36, 0.0  ;;  %v4073_v25 = vsel %vm1268_vm2, %v3844_v10, 0.0 }
 0xe42   :  { %v9964_v37 = vpop.xlane.xlu0 %3984 }
 0xe43   :  { %v3846_v22 = vpop.permute.xlu1 %3845 }
 0xe44   :  { %v4076_v28 = vsel %vm1268_vm2, %v3846_v22, 0.0  ;;  %v6321_v22 = vpop.eup %6320 }
 0xe46   :  { %v9970_v19 = vpop.xlane.xlu0 %3990 }
 0xe47   :  { %v9967_v57 = vpop.xlane.xlu1 %3987 }
 0xe48   :  { %6336 = vrcp.f32 %v9967_v57 }
 0xe49   :  { %6338 = vrcp.f32 %v12002_v46 }
 0xe4a   :  { %v9975_v15 = vpop.xlane.xlu0 %3993  ;;  %6340 = vrcp.f32 %v9964_v37 }
 0xe4b   :  { %v3850_v62 = vpop.permute.xlu1 %3849  ;;  %6342 = vrcp.f32 %v9970_v19  ;;  %v12007_v19 = vld [vmem:[#allocation190_spill] sm:$0xff] }
 0xe4f   :  { %v3852_v3 = vpop.permute.xlu1 %3851 }
 0xe50   :  { %v4085_v16 = vsel %vm1268_vm2, %v3852_v3, 0.0 }
 0xe5b   :  { %4056 = vadd.xlane.f32.xlu0 %v4055_v30  ;;  %v4070_v30 = vsel %vm1268_vm2, %v3842_v31, 0.0 }
 0xe5f   :  { %4062 = vadd.xlane.f32.xlu0 %v4061_v32  ;;  %v3848_v32 = vpop.permute.xlu0 %3847 }
 0xe60   :  { %v4079_v36 = vsel %vm1268_vm2, %v3848_v32, 0.0 }
 0xe63   :  { %4065 = vadd.xlane.f32.xlu0 %v4064_v0  ;;  %v4082_v0 = vsel %vm1268_vm2, %v3850_v62, 0.0  ;;  %v9988_v10 = vpop.xlane.xlu0 %3996 }
 0xe64   :  { %4059 = vadd.xlane.f32.xlu1 %v4058_v63  ;;  %v3854_v63 = vpop.permute.xlu1 %3853 }
 0xe65   :  { %v4088_v31 = vsel %vm1268_vm2, %v3854_v63, 0.0 }
 0xe67   :  { %4068 = vadd.xlane.f32.xlu0 %v4067_v38  ;;  %v9991_v62 = vpop.xlane.xlu0 %4002 }
 0xe68   :  { %4071 = vadd.xlane.f32.xlu1 %v4070_v30  ;;  %v9993_v38 = vpop.xlane.xlu1 %3999  ;;  %v11994_v30 = vld [vmem:[#allocation94_spill] sm:$0xff] }
 0xe69   :  { %v4216_v3 = vmul.f32 %v6321_v22, %v11994_v30  ;;  %v4631_v30 = vld [vmem:[%s10976_s4] sm:$0x3]  ;;  %s6579_s4 = smov 32  }
 0xe6a   :  { %5741 = vmatprep.subr.msk.bf16.mxu1 %vm4728_vm4, %v4631_v30 }
 0xe6b   :  { %4074 = vadd.xlane.f32.xlu0 %v4073_v25  ;;  %v6323_v25 = vpop.eup %6322  ;;  %v9997_v6 = vpop.xlane.xlu0 %4005 }
 0xe6c   :  { %4077 = vadd.xlane.f32.xlu1 %v4076_v28  ;;  %v6325_v32 = vpop.eup %6324  ;;  %v4215_v28 = vmul.f32 %v6323_v25, %v11995_v33  ;;  %v3858_v63 = vpop.permute.xlu1 %3857 }
 0xe6d   :  { %v4094_v40 = vsel %vm1268_vm2, %v3858_v63, 0.0 }
 0xe6f   :  { %4080 = vadd.xlane.f32.xlu0 %v4079_v36  ;;  %v4217_v36 = vmul.f32 %v6325_v32, %v11996_v21 }
 0xe70   :  { %4083 = vadd.xlane.f32.xlu1 %v4082_v0  ;;  %v6327_v0 = vpop.eup %6326  ;;  %v3860_v22 = vpop.permute.xlu1 %3859 }
 0xe71   :  { %v4097_v53 = vsel %vm1268_vm2, %v3860_v22, 0.0  ;;  %v6329_v63 = vpop.eup %6328  ;;  %v11998_v22 = vld [vmem:[#allocation116_spill] sm:$0xff] }
 0xe73   :  { %4086 = vadd.xlane.f32.xlu0 %v4085_v16  ;;  %v4218_v16 = vmul.f32 %v6327_v0, %v11997_v60 }
 0xe74   :  { %4089 = vadd.xlane.f32.xlu1 %v4088_v31  ;;  %v3856_v31 = vpop.permute.xlu0 %3855  ;;  %v3862_v32 = vpop.permute.xlu1 %3861 }
 0xe75   :  { %v4091_v29 = vsel %vm1268_vm2, %v3856_v31, 0.0  ;;  %v4100_v39 = vsel %vm1268_vm2, %v3862_v32, 0.0  ;;  %v4220_v32 = vmul.f32 %v6329_v63, %v11998_v22  ;;  %v12001_v63 = vld [vmem:[#allocation108_spill] sm:$0xff] }
 0xe78   :  { %v10008_v25 = vpop.xlane.xlu0 %4008 }
 0xe7c   :  { %v10010_v33 = vpop.xlane.xlu0 %4014 }
 0xe80   :  { %v10014_v21 = vpop.xlane.xlu0 %4017 }
 0xe84   :  { %v3864_v0 = vpop.permute.xlu0 %3863 }
 0xe85   :  { %4345 = vrot.lane.b32.xlu1 %v4216_v3, %s6578_s15  ;;  %v4730_v3 = vsel %vm4728_vm4, %v4631_v30, 0 }
 0xe86   :  { %5676 = vmatpush3.bf16.msra.mxu1 %v4730_v3 }
 0xe89   :  { %4343 = vrot.lane.b32.xlu0 %v4215_v28, %s6578_s15  ;;  %4347 = vrot.lane.b32.xlu1 %v4217_v36, %s6578_s15  ;;  %v10012_v28 = vpop.xlane.xlu1 %4011 }
 0xe8d   :  { %4349 = vrot.lane.b32.xlu1 %v4218_v16, %s6578_s15  ;;  %v3866_v36 = vpop.permute.xlu1 %3865  ;;  %v10016_v16 = vpop.xlane.xlu0 %4020 }
 0xe8e   :  { %v4106_v43 = vsel %vm1268_vm2, %v3866_v36, 0.0 }
 0xe91   :  { %v3868_v60 = vpop.permute.xlu1 %3867  ;;  %v10020_v30 = vpop.xlane.xlu0 %4026 }
 0xe92   :  { %v4109_v61 = vsel %vm1268_vm2, %v3868_v60, 0.0 }
 0xe95   :  { %v3870_v50 = vpop.permute.xlu1 %3869  ;;  %v10026_v42 = vpop.xlane.xlu0 %4029 }
 0xe96   :  { %v4112_v27 = vsel %vm1268_vm2, %v3870_v50, 0.0  ;;  %v12003_v50 = vld [vmem:[#allocation201_spill] sm:$0xff] }
 0xe97   :  { %6344 = vrcp.f32 %v12003_v50  ;;  %v12009_v50 = vld [vmem:[#allocation145_spill] sm:$0xff] }
 0xe98   :  { %6346 = vrcp.f32 %v9975_v15 }
 0xe99   :  { %v10022_v3 = vpop.xlane.xlu1 %4023  ;;  %6348 = vrcp.f32 %v12005_v58  ;;  %v12013_v58 = vld [vmem:[#allocation124_spill] sm:$0xff] }
 0xe9a   :  { %6350 = vrcp.f32 %v12007_v19  ;;  %v12015_v19 = vld [vmem:[#allocation99_spill] sm:$0xff] }
 0xe9b   :  { %6352 = vrcp.f32 %v9993_v38  ;;  %v12023_v38 = vld [vmem:[#allocation212_spill] sm:$0xff] }
 0xe9d   :  { %v10029_v31 = vpop.permute.xlu1 %3873 }
 0xea8   :  { %4092 = vadd.xlane.f32.xlu0 %v4091_v29  ;;  %v10033_v29 = vpop.permute.xlu0 %3871 }
 0xeac   :  { %4098 = vadd.xlane.f32.xlu0 %v4097_v53  ;;  %v10036_v53 = vpop.permute.xlu1 %3875 }
 0xeb0   :  { %4101 = vadd.xlane.f32.xlu0 %v4100_v39  ;;  %v10038_v39 = vpop.xlane.xlu0 %4032  ;;  %v10041_v9 = vpop.permute.xlu1 %3877 }
 0xeb1   :  { %4095 = vadd.xlane.f32.xlu1 %v4094_v40  ;;  %v6331_v40 = vpop.eup %6330 }
 0xeb2   :  { %v6333_v34 = vpop.eup %6332  ;;  %v4219_v41 = vmul.f32 %v6331_v40, %v12000_v54 }
 0xeb3   :  { %v4221_v44 = vmul.f32 %v6333_v34, %v11999_v48  ;;  %v6335_v11 = vpop.eup %6334 }
 0xeb4   :  { %v10043_v13 = vpop.xlane.xlu0 %4038  ;;  %v10048_v24 = vpop.xlane.xlu1 %4035  ;;  %v4222_v22 = vmul.f32 %v6335_v11, %v12001_v63  ;;  %v4103_v63 = vsel %vm1268_vm2, %v3864_v0, 0.0 }
 0xeb5   :  { %v6337_v36 = vpop.eup %6336 }
 0xeb6   :  { %v6339_v60 = vpop.eup %6338  ;;  %v4224_v49 = vmul.f32 %v6337_v36, %v12009_v50 }
 0xeb7   :  { %v6341_v37 = vpop.eup %6340  ;;  %v1909_v7 = vmul.f32 %v6339_v60, %v12011_v18  ;;  %v12016_v60 = vld [vmem:[#allocation134_spill] sm:$0xff] }
 0xeb8   :  { %v10052_v23 = vpop.xlane.xlu0 %4041  ;;  %v10056_v14 = vpop.permute.xlu1 %3881  ;;  %v4223_v20 = vmul.f32 %v6341_v37, %v12014_v45  ;;  %v12017_v37 = vld [vmem:[#allocation83_spill] sm:$0xff] }
 0xeb9   :  { %v6343_v52 = vpop.eup %6342 }
 0xeba   :  { %v6345_v35 = vpop.eup %6344  ;;  %v4225_v5 = vmul.f32 %v6343_v52, %v12013_v58 }
 0xebc   :  { %v10060_v34 = vpop.permute.xlu1 %3883 }
 0xec0   :  { %v10064_v40 = vpop.permute.xlu1 %3885 }
 0xec2   :  { %4353 = vrot.lane.b32.xlu1 %v4220_v32, %s6578_s15  ;;  %v10058_v32 = vpop.permute.xlu0 %3879 }
 0xec6   :  { %4355 = vrot.lane.b32.xlu1 %v4221_v44, %s6578_s15  ;;  %4351 = vrot.lane.b32.xlu0 %v4219_v41, %s6578_s15  ;;  %v10062_v54 = vpop.xlane.xlu0 %4044  ;;  %v10068_v44 = vpop.xlane.xlu1 %4047 }
 0xeca   :  { %4357 = vrot.lane.b32.xlu1 %v4222_v22, %s6578_s15  ;;  %v10066_v48 = vpop.xlane.xlu0 %4050  ;;  %v10072_v56 = vpop.permute.xlu1 %3889 }
 0xece   :  { %v10070_v41 = vpop.xlane.xlu0 %4053  ;;  %v10077_v22 = vpop.permute.xlu1 %3891 }
 0xed2   :  { %v10074_v11 = vpop.permute.xlu0 %3887  ;;  %v10085_v8 = vpop.permute.xlu1 %3893 }
 0xee5   :  { %4104 = vadd.xlane.f32.xlu0 %v4103_v63 }
 0xee8   :  { %v10079_v47 = vpop.xlane.xlu0 %4056 }
 0xee9   :  { %4110 = vadd.xlane.f32.xlu0 %v4109_v61 }
 0xeec   :  { %v10082_v1 = vpop.xlane.xlu0 %4062 }
 0xeed   :  { %4113 = vadd.xlane.f32.xlu0 %v4112_v27 }
 0xeee   :  { %4107 = vadd.xlane.f32.xlu1 %v4106_v43 }
 0xef0   :  { %v10089_v0 = vpop.xlane.xlu0 %4065 }
 0xef1   :  { %v10091_v63 = vpop.xlane.xlu1 %4059 }
 0xef4   :  { %v10096_v61 = vpop.xlane.xlu0 %4068 }
 0xef5   :  { %v10099_v27 = vpop.xlane.xlu1 %4071 }
 0xef8   :  { %v10102_v43 = vpop.xlane.xlu0 %4074 }
 0xef9   :  { %v10104_v57 = vpop.xlane.xlu1 %4077 }
 0xefa   :  { %12004 = vst [vmem:[#allocation295_spill] sm:$0xff] %v10104_v57  ;;  %v1910_v57 = vmul.f32 %v6345_v35, %v12015_v19 }
 0xefc   :  { %v10107_v46 = vpop.xlane.xlu0 %4080 }
 0xefd   :  { %12006 = vst [vmem:[#allocation287_spill] sm:$0xff] %v10107_v46  ;;  %v10110_v12 = vpop.xlane.xlu1 %4083  ;;  %v6347_v46 = vpop.eup %6346 }
 0xefe   :  { %12008 = vst [vmem:[#allocation196_spill] sm:$0xff] %v10110_v12  ;;  %v3254_v12 = vadd.f32 %v9466_v2, %v1909_v7  ;;  %v12018_v7 = vld [vmem:[#allocation90_spill] sm:$0xff] }
 0xeff   :  { %4361 = vrot.lane.b32.xlu1 %v4224_v49, %s6578_s15  ;;  %v3255_v49 = vadd.f32 %v9476_v17, %v1910_v57 }
 0xf00   :  { %v10114_v15 = vpop.xlane.xlu0 %4086 }
 0xf01   :  { %12010 = vst [vmem:[#allocation300_spill] sm:$0xff] %v10114_v15  ;;  %v10117_v51 = vpop.xlane.xlu1 %4089  ;;  %v6349_v15 = vpop.eup %6348 }
 0xf02   :  { %12012 = vst [vmem:[#allocation310_spill] sm:$0xff] %v10117_v51  ;;  %v4226_v51 = vmul.f32 %v6347_v46, %v12016_v60  ;;  %v6351_v58 = vpop.eup %6350  ;;  %v1911_v2 = vmul.f32 %v6349_v15, %v12017_v37  ;;  %v4121_v15 = vsel %vm1268_vm2, %v10036_v53, 0.0  ;;  %v12022_v60 = vld [vmem:[#allocation207_spill] sm:$0xff] }
 0xf03   :  { %4363 = vrot.lane.b32.xlu1 %v4225_v5, %s6578_s15  ;;  %4359 = vrot.lane.b32.xlu0 %v4223_v20, %s6578_s15  ;;  %v1912_v5 = vmul.f32 %v6351_v58, %v12018_v7  ;;  %v12019_v20 = vld [vmem:[#allocation233_spill] sm:$0xff]  ;;  %v12024_v58 = vld [vmem:[#allocation174_spill] sm:$0xff]  ;;  %v12026_v7 = vld [vmem:[#allocation152_spill] sm:$0xff] }
 0xf04   :  { %v4344_v36 = vpop.permute.xlu0 %4343  ;;  %v3256_v17 = vadd.f32 %v9462_v59, %v1911_v2  ;;  %v4118_v59 = vsel %vm1268_vm2, %v10029_v31, 0.0 }
 0xf05   :  { %v4535_v50 = vadd.f32 %v4344_v36, %v3254_v12  ;;  %v4346_v18 = vpop.permute.xlu1 %4345  ;;  %v3257_v12 = vadd.f32 %v12019_v20, %v1912_v5 }
 0xf06   :  { %v4536_v52 = vadd.f32 %v4346_v18, %v3255_v49  ;;  %v4124_v49 = vsel %vm1268_vm2, %v10041_v9, 0.0  ;;  %v6353_v9 = vpop.eup %6352 }
 0xf07   :  { %4365 = vrot.lane.b32.xlu1 %v4226_v51, %s6578_s15  ;;  %v4115_v51 = vsel %vm1268_vm2, %v10033_v29, 0.0  ;;  %v12021_v29 = vld [vmem:[#allocation217_spill] sm:$0xff] }
 0xf08   :  { %v4599_v45 = vpack.c.bf16 %v4536_v52, %v4535_v50  ;;  %v12020_v50 = vld [vmem:[#allocation54_spill] sm:$0xff] }
 0xf09   :  { %v4348_v35 = vpop.permute.xlu1 %4347  ;;  %6354 = vrcp.f32 %v12020_v50  ;;  %v12030_v50 = vld [vmem:[#allocation162_spill] sm:$0xff] }
 0xf0a   :  { %5677 = vmatprep.mubr.msk.bf16.mxu1 %vm1268_vm2, %v4599_v45  ;;  %v4537_v19 = vadd.f32 %v4348_v35, %v3256_v17  ;;  %6356 = vrcp.f32 %v9988_v10  ;;  %v4228_v45 = vmul.f32 %v6353_v9, %v12024_v58  ;;  %v12027_v17 = vld [vmem:[#allocation165_spill] sm:$0xff]  ;;  %v12031_v58 = vld [vmem:[#allocation106_spill] sm:$0xff] }
 0xf0b   :  { %6358 = vrcp.f32 %v9991_v62 }
 0xf0c   :  { %6360 = vrcp.f32 %v12021_v29 }
 0xf0d   :  { %v4350_v57 = vpop.permute.xlu1 %4349  ;;  %6362 = vrcp.f32 %v9997_v6  ;;  %v12025_v6 = vld [vmem:[#allocation112_spill] sm:$0xff] }
 0xf0e   :  { %v4538_v46 = vadd.f32 %v4350_v57, %v3257_v12  ;;  %6364 = vrcp.f32 %v12022_v60  ;;  %v12028_v57 = vld [vmem:[#allocation123_spill] sm:$0xff] }
 0xf0f   :  { %6366 = vrcp.f32 %v12023_v38 }
 0xf10   :  { %v4600_v36 = vpack.c.bf16 %v4538_v46, %v4537_v19  ;;  %6368 = vrcp.f32 %v10012_v28  ;;  %v12038_v28 = vld [vmem:[#allocation63_spill] sm:$0xff] }
 0xf12   :  { %5678 = vmatmul.mubr.msk.bf16.vlgmr.msra.gmra.mrb[64].mxu1 %vm1268_vm2, %v4600_v36  ;;  %v12029_v36 = vld [vmem:[#allocation229_spill] sm:$0xff] }
 0xf13   :  { %v6355_v18 = vpop.eup %6354 }
 0xf14   :  { %v6357_v52 = vpop.eup %6356  ;;  %v1913_v37 = vmul.f32 %v6355_v18, %v12025_v6 }
 0xf15   :  { %v6359_v10 = vpop.eup %6358  ;;  %v4227_v20 = vmul.f32 %v6357_v52, %v12027_v17 }
 0xf16   :  { %v6361_v35 = vpop.eup %6360  ;;  %v4229_v5 = vmul.f32 %v6359_v10, %v12026_v7  ;;  %v3258_v46 = vadd.f32 %v9488_v55, %v1913_v37  ;;  %v12034_v37 = vld [vmem:[#allocation222_spill] sm:$0xff] }
 0xf17   :  { %v6363_v12 = vpop.eup %6362  ;;  %v1914_v19 = vmul.f32 %v6361_v35, %v12028_v57  ;;  %v12033_v35 = vld [vmem:[#allocation186_spill] sm:$0xff]  ;;  %v4127_v57 = vsel %vm1268_vm2, %v10058_v32, 0.0  ;;  %v12036_v32 = vld [vmem:[#allocation65_spill] sm:$0xff] }
 0xf18   :  { %v4230_v29 = vmul.f32 %v6363_v12, %v12030_v50  ;;  %v6365_v9 = vpop.eup %6364  ;;  %v12039_v50 = vld [vmem:[#allocation197_spill] sm:$0xff] }
 0xf19   :  { %v6367_v60 = vpop.eup %6366  ;;  %v1915_v55 = vmul.f32 %v6365_v9, %v12031_v58  ;;  %v12042_v58 = vld [vmem:[#allocation185_spill] sm:$0xff] }
 0xf1b   :  { %v3260_v6 = vadd.f32 %v12033_v35, %v1915_v55 }
 0xf22   :  { %4116 = vadd.xlane.f32.xlu0 %v4115_v51  ;;  %v3259_v51 = vadd.f32 %v12029_v36, %v1914_v19  ;;  %v4133_v19 = vsel %vm1268_vm2, %v10060_v34, 0.0  ;;  %v4130_v36 = vsel %vm1268_vm2, %v10056_v14, 0.0 }
 0xf26   :  { %4122 = vadd.xlane.f32.xlu0 %v4121_v15 }
 0xf2a   :  { %4125 = vadd.xlane.f32.xlu0 %v4124_v49 }
 0xf2b   :  { %4119 = vadd.xlane.f32.xlu1 %v4118_v59 }
 0xf35   :  { %v10148_v53 = vpop.xlane.xlu0 %4092 }
 0xf39   :  { %v10151_v31 = vpop.xlane.xlu0 %4098 }
 0xf3c   :  { %4369 = vrot.lane.b32.xlu1 %v4228_v45, %s6578_s15  ;;  %v12032_v45 = vld [vmem:[#allocation111_spill] sm:$0xff] }
 0xf3d   :  { %v10156_v62 = vpop.xlane.xlu0 %4101  ;;  %v1916_v10 = vmul.f32 %v6367_v60, %v12032_v45 }
 0xf3e   :  { %v10159_v2 = vpop.xlane.xlu1 %4095 }
 0xf3f   :  { %v3261_v7 = vadd.f32 %v12034_v37, %v1916_v10  ;;  %v12043_v10 = vld [vmem:[#allocation151_spill] sm:$0xff] }
 0xf40   :  { %4371 = vrot.lane.b32.xlu1 %v4229_v5, %s6578_s15  ;;  %4367 = vrot.lane.b32.xlu0 %v4227_v20, %s6578_s15 }
 0xf41   :  { %v4352_v15 = vpop.permute.xlu0 %4351 }
 0xf42   :  { %v4539_v49 = vadd.f32 %v4352_v15, %v3258_v46  ;;  %v4354_v59 = vpop.permute.xlu1 %4353  ;;  %v4136_v46 = vsel %vm1268_vm2, %v10064_v40, 0.0  ;;  %v6369_v40 = vpop.eup %6368 }
 0xf43   :  { %v4540_v18 = vadd.f32 %v4354_v59, %v3259_v51  ;;  %v12035_v51 = vld [vmem:[#allocation231_spill] sm:$0xff] }
 0xf44   :  { %4373 = vrot.lane.b32.xlu1 %v4230_v29, %s6578_s15  ;;  %6370 = vrcp.f32 %v12035_v51  ;;  %v4232_v29 = vmul.f32 %v6369_v40, %v12039_v50  ;;  %v12049_v50 = vld [vmem:[#allocation154_spill] sm:$0xff] }
 0xf45   :  { %v4601_v52 = vpack.c.bf16 %v4540_v18, %v4539_v49  ;;  %6372 = vrcp.f32 %v10008_v25  ;;  %v12037_v49 = vld [vmem:[#allocation224_spill] sm:$0xff] }
 0xf46   :  { %v4356_v38 = vpop.permute.xlu1 %4355  ;;  %6374 = vrcp.f32 %v10010_v33 }
 0xf47   :  { %5681 = vmatprep.mubr.msk.bf16.mxu1 %vm1268_vm2, %v4601_v52  ;;  %v4541_v17 = vadd.f32 %v4356_v38, %v3260_v6  ;;  %6376 = vrcp.f32 %v12036_v32  ;;  %v12041_v52 = vld [vmem:[#allocation177_spill] sm:$0xff]  ;;  %v12044_v6 = vld [vmem:[#allocation318_spill] sm:$0xff] }
 0xf48   :  { %6378 = vrcp.f32 %v10014_v21  ;;  %v12040_v21 = vld [vmem:[#allocation138_spill] sm:$0xff] }
 0xf49   :  { %6380 = vrcp.f32 %v12037_v49 }
 0xf4a   :  { %v4358_v5 = vpop.permute.xlu1 %4357  ;;  %6382 = vrcp.f32 %v12038_v28 }
 0xf4b   :  { %v4542_v20 = vadd.f32 %v4358_v5, %v3261_v7  ;;  %v12045_v7 = vld [vmem:[#allocation320_spill] sm:$0xff]  ;;  %6384 = vrcp.f32 %v10022_v3 }
 0xf4d   :  { %v4602_v12 = vpack.c.bf16 %v4542_v20, %v4541_v17 }
 0xf4e   :  { %v6371_v15 = vpop.eup %6370 }
 0xf4f   :  { %5682 = vmatmul.mubr.msk.bf16.gmra.mrb[68].mxu1 %vm1268_vm2, %v4602_v12  ;;  %v6373_v59 = vpop.eup %6372  ;;  %v1917_v18 = vmul.f32 %v6371_v15, %v12040_v21  ;;  %v12047_v15 = vld [vmem:[#allocation132_spill] sm:$0xff] }
 0xf50   :  { %v6375_v25 = vpop.eup %6374  ;;  %v4231_v55 = vmul.f32 %v6373_v59, %v12042_v58  ;;  %v12048_v59 = vld [vmem:[#allocation137_spill] sm:$0xff]  ;;  %v4139_v58 = vsel %vm1268_vm2, %v10074_v11, 0.0  ;;  %v12052_v11 = vld [vmem:[#allocation247_spill] sm:$0xff] }
 0xf51   :  { %v6377_v9 = vpop.eup %6376  ;;  %v4233_v38 = vmul.f32 %v6375_v25, %v12041_v52  ;;  %v3262_v37 = vadd.f32 %v12044_v6, %v1917_v18  ;;  %v12050_v25 = vld [vmem:[#allocation319_spill] sm:$0xff] }
 0xf52   :  { %v6379_v45 = vpop.eup %6378  ;;  %v1918_v35 = vmul.f32 %v6377_v9, %v12043_v10  ;;  %v4142_v10 = vsel %vm1268_vm2, %v10072_v56, 0.0  ;;  %v12053_v6 = vld [vmem:[#allocation155_spill] sm:$0xff] }
 0xf54   :  { %v3263_v5 = vadd.f32 %v12045_v7, %v1918_v35  ;;  %v12051_v35 = vld [vmem:[#allocation242_spill] sm:$0xff] }
 0xf55   :  { %6386 = vrcp.f32 %v12051_v35 }
 0xf56   :  { %6388 = vrcp.f32 %v10016_v16 }
 0xf57   :  { %6390 = vrcp.f32 %v10020_v30  ;;  %v12054_v30 = vld [vmem:[#allocation243_spill] sm:$0xff] }
 0xf58   :  { %6392 = vrcp.f32 %v12052_v11  ;;  %v12065_v11 = vld [vmem:[#allocation160_spill] sm:$0xff] }
 0xf59   :  { %6394 = vrcp.f32 %v10026_v42 }
 0xf5a   :  { %6396 = vrcp.f32 %v10038_v39 }
 0xf5b   :  { %6398 = vrcp.f32 %v12053_v6  ;;  %v12066_v6 = vld [vmem:[#allocation167_spill] sm:$0xff] }
 0xf5c   :  { %6400 = vrcp.f32 %v10043_v13 }
 0xf5d   :  { %6402 = vrcp.f32 %v10048_v24 }
 0xf5e   :  { %6404 = vrcp.f32 %v12054_v30 }
 0xf5f   :  { %4128 = vadd.xlane.f32.xlu0 %v4127_v57  ;;  %v12046_v57 = vld [vmem:[#allocation182_spill] sm:$0xff]  ;;  %6406 = vrcp.f32 %v10052_v23 }
 0xf60   :  { %6408 = vrcp.f32 %v10062_v54 }
 0xf61   :  { %6410 = vrcp.f32 %v10066_v48 }
 0xf63   :  { %4134 = vadd.xlane.f32.xlu0 %v4133_v19  ;;  %v4234_v19 = vmul.f32 %v6379_v45, %v12046_v57  ;;  %v4148_v45 = vsel %vm1268_vm2, %v10085_v8, 0.0 }
 0xf67   :  { %4137 = vadd.xlane.f32.xlu0 %v4136_v46  ;;  %v6381_v46 = vpop.eup %6380  ;;  %6412 = vrcp.f32 %v10068_v44 }
 0xf68   :  { %4131 = vadd.xlane.f32.xlu1 %v4130_v36  ;;  %v6383_v51 = vpop.eup %6382  ;;  %v1919_v49 = vmul.f32 %v6381_v46, %v12047_v15  ;;  %6414 = vrcp.f32 %v10070_v41 }
 0xf69   :  { %v1920_v28 = vmul.f32 %v6383_v51, %v12048_v59  ;;  %v12059_v51 = vld [vmem:[#allocation101_spill] sm:$0xff] }
 0xf6b   :  { %v3265_v9 = vadd.f32 %v12050_v25, %v1920_v28 }
 0xf72   :  { %v10190_v34 = vpop.xlane.xlu0 %4104 }
 0xf76   :  { %v10193_v14 = vpop.xlane.xlu0 %4110 }
 0xf79   :  { %4377 = vrot.lane.b32.xlu1 %v4232_v29, %s6578_s15  ;;  %v3264_v29 = vadd.f32 %v12049_v50, %v1919_v49 }
 0xf7a   :  { %v10198_v33 = vpop.xlane.xlu0 %4113 }
 0xf7b   :  { %v10201_v60 = vpop.xlane.xlu1 %4107 }
 0xf7d   :  { %4379 = vrot.lane.b32.xlu1 %v4233_v38, %s6578_s15  ;;  %4375 = vrot.lane.b32.xlu0 %v4231_v55, %s6578_s15  ;;  %v4145_v55 = vsel %vm1268_vm2, %v10077_v22, 0.0  ;;  %v6385_v22 = vpop.eup %6384  ;;  %6416 = vrcp.f32 %v10079_v47  ;;  %v12067_v47 = vld [vmem:[#allocation48_spill] sm:$0xff] }
 0xf7e   :  { %v4360_v17 = vpop.permute.xlu0 %4359  ;;  %v6387_v56 = vpop.eup %6386  ;;  %6418 = vrcp.f32 %v10082_v1 }
 0xf7f   :  { %v4543_v20 = vadd.f32 %v4360_v17, %v3262_v37  ;;  %v4362_v12 = vpop.permute.xlu1 %4361  ;;  %v6389_v16 = vpop.eup %6388  ;;  %v12055_v37 = vld [vmem:[#allocation215_spill] sm:$0xff]  ;;  %v12056_v17 = vld [vmem:[#allocation46_spill] sm:$0xff]  ;;  %6420 = vrcp.f32 %v10091_v63 }
 0xf80   :  { %v4544_v36 = vadd.f32 %v4362_v12, %v3263_v5  ;;  %v4236_v7 = vmul.f32 %v6385_v22, %v12055_v37  ;;  %v6391_v42 = vpop.eup %6390  ;;  %v1921_v24 = vmul.f32 %v6387_v56, %v12056_v17  ;;  %v12057_v12 = vld [vmem:[#allocation203_spill] sm:$0xff]  ;;  %6422 = vrcp.f32 %v10089_v0 }
 0xf81   :  { %4381 = vrot.lane.b32.xlu1 %v4234_v19, %s6578_s15  ;;  %v6393_v5 = vpop.eup %6392  ;;  %v4237_v57 = vmul.f32 %v6391_v42, %v12057_v12  ;;  %v12058_v19 = vld [vmem:[#allocation209_spill] sm:$0xff]  ;;  %v12069_v42 = vld [vmem:[#allocation223_spill] sm:$0xff]  ;;  %6424 = vrcp.f32 %v10096_v61 }
 0xf82   :  { %v4603_v32 = vpack.c.bf16 %v4544_v36, %v4543_v20  ;;  %v6395_v13 = vpop.eup %6394  ;;  %v4235_v46 = vmul.f32 %v6389_v16, %v12058_v19  ;;  %v12068_v16 = vld [vmem:[#allocation51_spill] sm:$0xff]  ;;  %6426 = vrcp.f32 %v10099_v27 }
 0xf83   :  { %v4364_v40 = vpop.permute.xlu1 %4363  ;;  %v6397_v36 = vpop.eup %6396  ;;  %v12071_v63 = vld [vmem:[#allocation67_spill] sm:$0xff]  ;;  %6428 = vrcp.f32 %v10102_v43 }
 0xf84   :  { %5685 = vmatprep.mubr.msk.bf16.mxu1 %vm1268_vm2, %v4603_v32  ;;  %v4545_v18 = vadd.f32 %v4364_v40, %v3264_v29  ;;  %v1922_v32 = vmul.f32 %v6393_v5, %v12059_v51  ;;  %v12060_v40 = vld [vmem:[#allocation189_spill] sm:$0xff]  ;;  %v6399_v54 = vpop.eup %6398  ;;  %v12061_v29 = vld [vmem:[#allocation206_spill] sm:$0xff] }
 0xf85   :  { %v3266_v23 = vadd.f32 %v12060_v40, %v1921_v24  ;;  %v6401_v59 = vpop.eup %6400  ;;  %v4238_v25 = vmul.f32 %v6395_v13, %v12061_v29  ;;  %v1923_v22 = vmul.f32 %v6399_v54, %v12065_v11  ;;  %v12070_v13 = vld [vmem:[#allocation234_spill] sm:$0xff]  ;;  %v12073_v40 = vld [vmem:[#allocation153_spill] sm:$0xff] }
 0xf86   :  { %v3267_v15 = vadd.f32 %v9538_v26, %v1922_v32 }
 0xf87   :  { %v4366_v21 = vpop.permute.xlu1 %4365  ;;  %v3268_v41 = vadd.f32 %v12067_v47, %v1923_v22  ;;  %v12085_v22 = vld [vmem:[#allocation176_spill] sm:$0xff] }
 0xf88   :  { %v4546_v52 = vadd.f32 %v4366_v21, %v3265_v9  ;;  %v12062_v9 = vld [vmem:[#allocation225_spill] sm:$0xff] }
 0xf89   :  { %v4239_v21 = vmul.f32 %v6397_v36, %v12062_v9  ;;  %v12072_v36 = vld [vmem:[#allocation232_spill] sm:$0xff] }
 0xf8a   :  { %v4604_v38 = vpack.c.bf16 %v4546_v52, %v4545_v18  ;;  %v6403_v18 = vpop.eup %6402 }
 0xf8b   :  { %v6405_v48 = vpop.eup %6404 }
 0xf8c   :  { %5686 = vmatmul.mubr.msk.bf16.gmra.mrb[72].mxu1 %vm1268_vm2, %v4604_v38  ;;  %v6407_v44 = vpop.eup %6406  ;;  %v1924_v56 = vmul.f32 %v6405_v48, %v12066_v6 }
 0xf8d   :  { %v6409_v35 = vpop.eup %6408  ;;  %v4242_v5 = vmul.f32 %v6407_v44, %v12069_v42  ;;  %v12082_v44 = vld [vmem:[#allocation310_spill] sm:$0xff] }
 0xf8e   :  { %v3269_v30 = vadd.f32 %v12068_v16, %v1924_v56  ;;  %v6411_v37 = vpop.eup %6410  ;;  %v4243_v17 = vmul.f32 %v6409_v35, %v12070_v13  ;;  %v12086_v56 = vld [vmem:[#allocation74_spill] sm:$0xff] }
 0xf8f   :  { %v6413_v24 = vpop.eup %6412  ;;  %v4245_v51 = vmul.f32 %v6411_v37, %v12072_v36  ;;  %v12094_v36 = vld [vmem:[#allocation263_spill] sm:$0xff] }
 0xf90   :  { %v6415_v19 = vpop.eup %6414 }
 0xf91   :  { %v6417_v32 = vpop.eup %6416  ;;  %v4246_v61 = vmul.f32 %v6415_v19, %v12073_v40  ;;  %v12096_v40 = vld [vmem:[#allocation73_spill] sm:$0xff] }
 0xf92   :  { %v6419_v0 = vpop.eup %6418 }
 0xf93   :  { %v6421_v54 = vpop.eup %6420 }
 0xf94   :  { %v6423_v27 = vpop.eup %6422 }
 0xf95   :  { %v6425_v43 = vpop.eup %6424 }
 0xf96   :  { %v6427_v9 = vpop.eup %6426 }
 0xf9c   :  { %4140 = vadd.xlane.f32.xlu0 %v4139_v58  ;;  %v12063_v58 = vld [vmem:[#allocation230_spill] sm:$0xff] }
 0xfa0   :  { %4146 = vadd.xlane.f32.xlu0 %v4145_v55  ;;  %v4240_v55 = vmul.f32 %v6403_v18, %v12063_v58  ;;  %v12083_v58 = vld [vmem:[#allocation126_spill] sm:$0xff] }
 0xfa4   :  { %4149 = vadd.xlane.f32.xlu0 %v4148_v45  ;;  %v12064_v45 = vld [vmem:[#allocation219_spill] sm:$0xff] }
 0xfa5   :  { %4143 = vadd.xlane.f32.xlu1 %v4142_v10  ;;  %v4241_v10 = vmul.f32 %v6401_v59, %v12064_v45  ;;  %v12076_v59 = vld [vmem:[#allocation321_spill] sm:$0xff]  ;;  %v12084_v45 = vld [vmem:[#allocation119_spill] sm:$0xff] }
 0xfaf   :  { %v10233_v8 = vpop.xlane.xlu0 %4116 }
 0xfb3   :  { %v10238_v3 = vpop.xlane.xlu0 %4122 }
 0xfb6   :  { %4385 = vrot.lane.b32.xlu1 %v4236_v7, %s6578_s15 }
 0xfb7   :  { %v10245_v39 = vpop.xlane.xlu0 %4125 }
 0xfb8   :  { %v10248_v20 = vpop.xlane.xlu1 %4119 }
 0xfba   :  { %4387 = vrot.lane.b32.xlu1 %v4237_v57, %s6578_s15  ;;  %4383 = vrot.lane.b32.xlu0 %v4235_v46, %s6578_s15  ;;  %v4244_v46 = vmul.f32 %v6413_v24, %v12071_v63  ;;  %v12093_v63 = vld [vmem:[#allocation180_spill] sm:$0xff] }
 0xfbb   :  { %v4368_v49 = vpop.permute.xlu0 %4367 }
 0xfbc   :  { %v4547_v28 = vadd.f32 %v4368_v49, %v3266_v23  ;;  %v4370_v50 = vpop.permute.xlu1 %4369  ;;  %v4247_v23 = vmul.f32 %v6417_v32, %v9590_v4  ;;  %v12075_v49 = vld [vmem:[#allocation287_spill] sm:$0xff]  ;;  %v12079_v4 = vld [vmem:[#allocation300_spill] sm:$0xff]  ;;  %v12095_v32 = vld [vmem:[#allocation125_spill] sm:$0xff] }
 0xfbd   :  { %v4548_v52 = vadd.f32 %v4370_v50, %v3267_v15  ;;  %v12074_v15 = vld [vmem:[#allocation295_spill] sm:$0xff]  ;;  %v12077_v50 = vld [vmem:[#allocation168_spill] sm:$0xff] }
 0xfbe   :  { %4389 = vrot.lane.b32.xlu1 %v4238_v25, %s6578_s15  ;;  %4391 = vrot.lane.b32.xlu0 %v4239_v21, %s6578_s15  ;;  %6430 = vrcp.f32 %v12074_v15  ;;  %v4248_v29 = vmul.f32 %v6421_v54, %v12077_v50  ;;  %v12078_v25 = vld [vmem:[#allocation196_spill] sm:$0xff]  ;;  %v12080_v21 = vld [vmem:[#allocation179_spill] sm:$0xff]  ;;  %v12097_v54 = vld [vmem:[#allocation254_spill] sm:$0xff] }
 0xfbf   :  { %v4605_v26 = vpack.c.bf16 %v4548_v52, %v4547_v28  ;;  %6432 = vrcp.f32 %v12075_v49  ;;  %v4249_v28 = vmul.f32 %v6419_v0, %v12076_v59  ;;  %v4251_v18 = vmul.f32 %v6425_v43, %v12080_v21  ;;  %v12081_v52 = vld [vmem:[#allocation323_spill] sm:$0xff]  ;;  %v12098_v49 = vld [vmem:[#allocation221_spill] sm:$0xff]  ;;  %v12100_v50 = vld [vmem:[#allocation260_spill] sm:$0xff] }
 0xfc0   :  { %v4372_v38 = vpop.permute.xlu1 %4371  ;;  %6434 = vrcp.f32 %v12078_v25  ;;  %v4250_v48 = vmul.f32 %v6423_v27, %v12081_v52  ;;  %v12099_v27 = vld [vmem:[#allocation228_spill] sm:$0xff]  ;;  %v12102_v21 = vld [vmem:[#allocation227_spill] sm:$0xff] }
 0xfc1   :  { %5689 = vmatprep.mubr.msk.bf16.mxu1 %vm1268_vm2, %v4605_v26  ;;  %v4549_v12 = vadd.f32 %v4372_v38, %v3268_v41  ;;  %6436 = vrcp.f32 %v12079_v4  ;;  %v6429_v26 = vpop.eup %6428  ;;  %v12087_v41 = vld [vmem:[#allocation57_spill] sm:$0xff]  ;;  %v12101_v4 = vld [vmem:[#allocation204_spill] sm:$0xff] }
 0xfc2   :  { %4393 = vrot.lane.b32.xlu1 %v4240_v55, %s6578_s15  ;;  %4395 = vrot.lane.b32.xlu0 %v4241_v10, %s6578_s15  ;;  %6438 = vrcp.f32 %v12082_v44  ;;  %v4253_v55 = vmul.f32 %v6429_v26, %v12083_v58  ;;  %v4252_v10 = vmul.f32 %v6427_v9, %v12084_v45 }
 0xfc3   :  { %6440 = vrcp.f32 %v10148_v53 }
 0xfc4   :  { %v4374_v7 = vpop.permute.xlu1 %4373  ;;  %6442 = vrcp.f32 %v10151_v31 }
 0xfc5   :  { %v4550_v57 = vadd.f32 %v4374_v7, %v3269_v30  ;;  %6444 = vrcp.f32 %v10159_v2  ;;  %v12088_v30 = vld [vmem:[#allocation211_spill] sm:$0xff]  ;;  %v12089_v7 = vld [vmem:[#allocation178_spill] sm:$0xff] }
 0xfc6   :  { %4397 = vrot.lane.b32.xlu1 %v4242_v5, %s6578_s15  ;;  %4399 = vrot.lane.b32.xlu0 %v4243_v17, %s6578_s15  ;;  %6446 = vrcp.f32 %v10156_v62  ;;  %v12090_v5 = vld [vmem:[#allocation71_spill] sm:$0xff] }
 0xfc7   :  { %v4606_v1 = vpack.c.bf16 %v4550_v57, %v4549_v12  ;;  %6448 = vrcp.f32 %v10190_v34  ;;  %v12091_v12 = vld [vmem:[#allocation259_spill] sm:$0xff] }
 0xfc8   :  { %v6431_v38 = vpop.eup %6430  ;;  %6450 = vrcp.f32 %v10193_v14 }
 0xfc9   :  { %5690 = vmatmul.mubr.msk.bf16.gmra.mrb[76].mxu1 %vm1268_vm2, %v4606_v1  ;;  %v6433_v35 = vpop.eup %6432  ;;  %v4254_v47 = vmul.f32 %v6431_v38, %v12086_v56  ;;  %6452 = vrcp.f32 %v10201_v60  ;;  %v12092_v1 = vld [vmem:[#allocation72_spill] sm:$0xff]  ;;  %v12104_v38 = vld [vmem:[#allocation202_spill] sm:$0xff] }
 0xfca   :  { %4401 = vrot.lane.b32.xlu1 %v4244_v46, %s6578_s15  ;;  %4403 = vrot.lane.b32.xlu0 %v4245_v51, %s6578_s15  ;;  %v6435_v11 = vpop.eup %6434  ;;  %v4255_v6 = vmul.f32 %v6433_v35, %v12085_v22  ;;  %6454 = vrcp.f32 %v10198_v33  ;;  %v12106_v35 = vld [vmem:[#allocation69_spill] sm:$0xff] }
 0xfcb   :  { %v6437_v53 = vpop.eup %6436  ;;  %v4256_v37 = vmul.f32 %v6435_v11, %v12088_v30  ;;  %6456 = vrcp.f32 %v10233_v8 }
 0xfcc   :  { %v6439_v31 = vpop.eup %6438  ;;  %v4257_v16 = vmul.f32 %v6437_v53, %v12087_v41  ;;  %6458 = vrcp.f32 %v12091_v12  ;;  %v12111_v12 = vld [vmem:[#allocation49_spill] sm:$0xff] }
 0xfcd   :  { %v6441_v2 = vpop.eup %6440  ;;  %v4258_v13 = vmul.f32 %v6439_v31, %v12090_v5  ;;  %6460 = vrcp.f32 %v12094_v36  ;;  %v12110_v5 = vld [vmem:[#allocation68_spill] sm:$0xff] }
 0xfce   :  { %4405 = vrot.lane.b32.xlu1 %v4246_v61, %s6578_s15  ;;  %4407 = vrot.lane.b32.xlu0 %v4247_v23, %s6578_s15  ;;  %v6443_v62 = vpop.eup %6442  ;;  %v4259_v42 = vmul.f32 %v6441_v2, %v12089_v7  ;;  %6462 = vrcp.f32 %v10238_v3  ;;  %v12109_v7 = vld [vmem:[#allocation235_spill] sm:$0xff] }
 0xfcf   :  { %v6445_v34 = vpop.eup %6444  ;;  %v4261_v19 = vmul.f32 %v6443_v62, %v12092_v1  ;;  %6464 = vrcp.f32 %v10248_v20 }
 0xfd0   :  { %v6447_v60 = vpop.eup %6446  ;;  %v4260_v46 = vmul.f32 %v6445_v34, %v12093_v63  ;;  %6466 = vrcp.f32 %v10245_v39 }
 0xfd1   :  { %v6449_v33 = vpop.eup %6448  ;;  %v4262_v61 = vmul.f32 %v6447_v60, %v12096_v40 }
 0xfd2   :  { %4411 = vrot.lane.b32.xlu0 %v4249_v28, %s6578_s15  ;;  %4409 = vrot.lane.b32.xlu1 %v4248_v29, %s6578_s15  ;;  %v6451_v8 = vpop.eup %6450  ;;  %v4263_v0 = vmul.f32 %v6449_v33, %v12095_v32  ;;  %v12113_v33 = vld [vmem:[#allocation175_spill] sm:$0xff]  ;;  %v12115_v32 = vld [vmem:[#allocation66_spill] sm:$0xff] }
 0xfd3   :  { %v6453_v23 = vpop.eup %6452  ;;  %v4265_v20 = vmul.f32 %v6451_v8, %v12098_v49  ;;  %v12114_v8 = vld [vmem:[#allocation163_spill] sm:$0xff] }
 0xfd4   :  { %v6455_v3 = vpop.eup %6454  ;;  %v4264_v59 = vmul.f32 %v6453_v23, %v12099_v27 }
 0xfd5   :  { %v6457_v28 = vpop.eup %6456 }
 0xfd6   :  { %4415 = vrot.lane.b32.xlu0 %v4251_v18, %s6578_s15  ;;  %4413 = vrot.lane.b32.xlu1 %v4250_v48, %s6578_s15  ;;  %v6459_v29 = vpop.eup %6458  ;;  %v4267_v9 = vmul.f32 %v6457_v28, %v12101_v4  ;;  %v4266_v18 = vmul.f32 %v6455_v3, %v12102_v21  ;;  %v12103_v48 = vld [vmem:[#allocation188_spill] sm:$0xff] }
 0xfd7   :  { %v6461_v39 = vpop.eup %6460  ;;  %v1925_v26 = vmul.f32 %v6459_v29, %v12103_v48  ;;  %v12118_v29 = vld [vmem:[#allocation275_spill] sm:$0xff]  ;;  %v12120_v4 = vld [vmem:[#allocation268_spill] sm:$0xff]  ;;  %v12122_v48 = vld [vmem:[#allocation293_spill] sm:$0xff] }
 0xfd8   :  { %v6463_v43 = vpop.eup %6462  ;;  %v1926_v58 = vmul.f32 %v6461_v39, %v12104_v38  ;;  %v12124_v38 = vld [vmem:[#allocation210_spill] sm:$0xff] }
 0xfd9   :  { %v6465_v52 = vpop.eup %6464 }
 0xfda   :  { %4419 = vrot.lane.b32.xlu0 %v4253_v55, %s6578_s15  ;;  %4417 = vrot.lane.b32.xlu1 %v4252_v10, %s6578_s15  ;;  %v12105_v55 = vld [vmem:[#allocation166_spill] sm:$0xff]  ;;  %v6467_v10 = vpop.eup %6466  ;;  %v3271_v11 = vadd.f32 %v12106_v35, %v1926_v58 }
 0xfdb   :  { %v3270_v45 = vadd.f32 %v12105_v55, %v1925_v26 }
 0xfde   :  { %4423 = vrot.lane.b32.xlu0 %v4255_v6, %s6578_s15  ;;  %4421 = vrot.lane.b32.xlu1 %v4254_v47, %s6578_s15  ;;  %v12107_v6 = vld [vmem:[#allocation76_spill] sm:$0xff]  ;;  %v12108_v47 = vld [vmem:[#allocation75_spill] sm:$0xff] }
 0xfdf   :  { %v4269_v56 = vmul.f32 %v6463_v43, %v12107_v6  ;;  %v4268_v53 = vmul.f32 %v6465_v52, %v12108_v47  ;;  %v12119_v43 = vld [vmem:[#allocation280_spill] sm:$0xff] }
 0xfe2   :  { %4427 = vrot.lane.b32.xlu0 %v4257_v16, %s6578_s15  ;;  %4425 = vrot.lane.b32.xlu1 %v4256_v37, %s6578_s15 }
 0xfe5   :  { %v10327_v17 = vpop.f32.mrb[64].mxu1 }
 0xfe6   :  { %4431 = vrot.lane.b32.xlu0 %v4259_v42, %s6578_s15  ;;  %4429 = vrot.lane.b32.xlu1 %v4258_v13, %s6578_s15  ;;  %v10332_v14 = vpop.f32.mrb[65].mxu1  ;;  %v4270_v13 = vmul.f32 %v6467_v10, %v12110_v5  ;;  %v12131_v5 = vld [vmem:[#allocation305_spill] sm:$0xff] }
 0xfe7   :  { %v10335_v24 = vpop.f32.mrb[66].mxu1 }
 0xfe8   :  { %v10338_v57 = vpop.f32.mrb[67].mxu1 }
 0xfea   :  { %4435 = vrot.lane.b32.xlu0 %v4261_v19, %s6578_s15  ;;  %4433 = vrot.lane.b32.xlu1 %v4260_v46, %s6578_s15  ;;  %v12112_v19 = vld [vmem:[#allocation187_spill] sm:$0xff] }
 0xfec   :  { %v4129_v51 = vpop.xlane.xlu0 %4128 }
 0xfed   :  { %6468 = vrcp.f32 %v4129_v51 }
 0xfee   :  { %4439 = vrot.lane.b32.xlu0 %v4263_v0, %s6578_s15  ;;  %4437 = vrot.lane.b32.xlu1 %v4262_v61, %s6578_s15  ;;  %6470 = vrcp.f32 %v12097_v54  ;;  %v12116_v61 = vld [vmem:[#allocation114_spill] sm:$0xff] }
 0xfef   :  { %6472 = vrcp.f32 %v12100_v50 }
 0xff0   :  { %v4135_v15 = vpop.xlane.xlu0 %4134 }
 0xff1   :  { %6474 = vrcp.f32 %v4135_v15 }
 0xff2   :  { %4443 = vrot.lane.b32.xlu0 %v4265_v20, %s6578_s15  ;;  %4441 = vrot.lane.b32.xlu1 %v4264_v59, %s6578_s15  ;;  %v12117_v20 = vld [vmem:[#allocation117_spill] sm:$0xff] }
 0xff4   :  { %v4138_v25 = vpop.xlane.xlu0 %4137 }
 0xff5   :  { %v4132_v44 = vpop.xlane.xlu1 %4131 }
 0xff6   :  { %6476 = vrcp.f32 %v4132_v44  ;;  %4447 = vrot.lane.b32.xlu0 %v4267_v9, %s6578_s15  ;;  %4445 = vrot.lane.b32.xlu1 %v4266_v18, %s6578_s15  ;;  %v12121_v9 = vld [vmem:[#allocation276_spill] sm:$0xff]  ;;  %v12123_v44 = vld [vmem:[#allocation299_spill] sm:$0xff] }
 0xff7   :  { %6478 = vrcp.f32 %v4138_v25  ;;  %v6469_v31 = vpop.eup %6468 }
 0xff8   :  { %v4376_v22 = vpop.permute.xlu0 %4375  ;;  %v6471_v30 = vpop.eup %6470  ;;  %v4271_v42 = vmul.f32 %v6469_v31, %v12109_v7  ;;  %6480 = vrcp.f32 %v12118_v29  ;;  %v12129_v31 = vld [vmem:[#allocation265_spill] sm:$0xff] }
 0xff9   :  { %v4551_v41 = vadd.f32 %v4376_v22, %v3270_v45  ;;  %v4378_v16 = vpop.permute.xlu1 %4377  ;;  %v6473_v2 = vpop.eup %6472  ;;  %v1927_v1 = vmul.f32 %v6471_v30, %v12111_v12  ;;  %6482 = vrcp.f32 %v12119_v43  ;;  %v12125_v45 = vld [vmem:[#allocation218_spill] sm:$0xff]  ;;  %v12127_v22 = vld [vmem:[#allocation324_spill] sm:$0xff] }
 0xffa   :  { %v4552_v37 = vadd.f32 %v4378_v16, %v3271_v11  ;;  %4451 = vrot.lane.b32.xlu0 %v4269_v56, %s6578_s15  ;;  %4449 = vrot.lane.b32.xlu1 %v4268_v53, %s6578_s15  ;;  %v1928_v63 = vmul.f32 %v6473_v2, %v12112_v19  ;;  %v12126_v11 = vld [vmem:[#allocation285_spill] sm:$0xff]  ;;  %v12128_v56 = vld [vmem:[#allocation326_spill] sm:$0xff] }
 0xffb   :  { %v6475_v34 = vpop.eup %6474  ;;  %v3272_v36 = vadd.f32 %v12113_v33, %v1927_v1  ;;  %v12130_v30 = vld [vmem:[#allocation290_spill] sm:$0xff]  ;;  %v12133_v1 = vld [vmem:[#allocation311_spill] sm:$0xff] }
 0xffc   :  { %v4607_v62 = vpack.c.bf16 %v4552_v37, %v4551_v41  ;;  %v3273_v51 = vadd.f32 %v12114_v8, %v1928_v63  ;;  %v4273_v0 = vmul.f32 %v6475_v34, %v12115_v32 }
 0xffd   :  { %v4380_v60 = vpop.permute.xlu1 %4379 }
 0xffe   :  { %4455 = vrot.lane.b32.xlu0 %v4271_v42, %s6578_s15  ;;  %4453 = vrot.lane.b32.xlu1 %v4270_v13, %s6578_s15  ;;  %v4553_v54 = vadd.f32 %v4380_v60, %v3272_v36  ;;  %v12132_v60 = vld [vmem:[#allocation169_spill] sm:$0xff]  ;;  %v12135_v36 = vld [vmem:[#allocation120_spill] sm:$0xff] }
 0xfff   :  { %5693 = vmatprep.mubr.msk.bf16.mxu1 %vm1268_vm2, %v4607_v62 }
0x1000   :  { %v6477_v46 = vpop.eup %6476 }
0x1001   :  { %v4382_v40 = vpop.permute.xlu1 %4381  ;;  %v4272_v23 = vmul.f32 %v6477_v46, %v12116_v61  ;;  %v6479_v3 = vpop.eup %6478  ;;  %v12134_v46 = vld [vmem:[#allocation122_spill] sm:$0xff] }
0x1002   :  { %v4554_v15 = vadd.f32 %v4382_v40, %v3273_v51  ;;  %4459 = vrot.lane.b32.xlu0 %v4273_v0, %s6578_s15  ;;  %v4274_v27 = vmul.f32 %v6479_v3, %v12117_v20  ;;  %v6481_v18 = vpop.eup %6480  ;;  %v12136_v0 = vld [vmem:[#allocation297_spill] sm:$0xff]  ;;  %v12137_v40 = vld [vmem:[#allocation322_spill] sm:$0xff] }
0x1003   :  { %4457 = vrot.lane.b32.xlu1 %v4272_v23, %s6578_s15  ;;  %v6483_v52 = vpop.eup %6482  ;;  %v1929_v58 = vmul.f32 %v6481_v18, %v12124_v38  ;;  %v12138_v23 = vld [vmem:[#allocation325_spill] sm:$0xff]  ;;  %v12145_v38 = vld [vmem:[#allocation199_spill] sm:$0xff] }
0x1004   :  { %v4608_v49 = vpack.c.bf16 %v4554_v15, %v4553_v54  ;;  %v1930_v10 = vmul.f32 %v6483_v52, %v12125_v45 }
0x1005   :  { %v3274_v6 = vadd.f32 %v12127_v22, %v1929_v58  ;;  %v12148_v22 = vld [vmem:[#allocation59_spill] sm:$0xff] }
0x1006   :  { %5694 = vmatmul.mubr.msk.bf16.gmra.mrb[80].mxu1 %vm1268_vm2, %v4608_v49  ;;  %v3275_v47 = vadd.f32 %v12128_v56, %v1930_v10  ;;  %v12139_v49 = vld [vmem:[#allocation302_spill] sm:$0xff] }
0x1007   :  { %4461 = vrot.lane.b32.xlu1 %v4274_v27, %s6578_s15  ;;  %v12140_v27 = vld [vmem:[#allocation288_spill] sm:$0xff] }
0x1022   :  { %v10386_v59 = vpop.f32.mrb[68].mxu1 }
0x1023   :  { %v10388_v28 = vpop.f32.mrb[69].mxu1 }
0x1024   :  { %v10390_v50 = vpop.f32.mrb[70].mxu1 }
0x1025   :  { %v10393_v39 = vpop.f32.mrb[71].mxu1 }
0x1029   :  { %v4141_v25 = vpop.xlane.xlu0 %4140 }
0x102a   :  { %6484 = vrcp.f32 %v4141_v25  ;;  %v12141_v25 = vld [vmem:[#allocation61_spill] sm:$0xff] }
0x102b   :  { %6486 = vrcp.f32 %v12120_v4 }
0x102c   :  { %6488 = vrcp.f32 %v12121_v9  ;;  %v12142_v9 = vld [vmem:[#allocation139_spill] sm:$0xff] }
0x102d   :  { %v4147_v21 = vpop.xlane.xlu0 %4146 }
0x102e   :  { %6490 = vrcp.f32 %v4147_v21 }
0x102f   :  { %6492 = vrcp.f32 %v12122_v48  ;;  %v12143_v48 = vld [vmem:[#allocation2_spill] sm:$0xff] }
0x1030   :  { %6494 = vrcp.f32 %v12123_v44  ;;  %v12144_v44 = vld [vmem:[#allocation307_spill] sm:$0xff] }
0x1031   :  { %v4150_v26 = vpop.xlane.xlu0 %4149 }
0x1032   :  { %v4144_v55 = vpop.xlane.xlu1 %4143 }
0x1033   :  { %6496 = vrcp.f32 %v4144_v55  ;;  %v12146_v55 = vld [vmem:[#allocation77_spill] sm:$0xff] }
0x1034   :  { %v6485_v35 = vpop.eup %6484  ;;  %6498 = vrcp.f32 %v12126_v11  ;;  %v12147_v11 = vld [vmem:[#allocation314_spill] sm:$0xff] }
0x1035   :  { %6500 = vrcp.f32 %v4150_v26  ;;  %v4384_v53 = vpop.permute.xlu0 %4383  ;;  %v4275_v41 = vmul.f32 %v6485_v35, %v12129_v31  ;;  %v6487_v16 = vpop.eup %6486 }
0x1036   :  { %6502 = vrcp.f32 %v12130_v30  ;;  %v4555_v37 = vadd.f32 %v4384_v53, %v3274_v6  ;;  %v4386_v2 = vpop.permute.xlu1 %4385  ;;  %v6489_v62 = vpop.eup %6488  ;;  %v1931_v33 = vmul.f32 %v6487_v16, %v12134_v46 }
0x1037   :  { %v4556_v7 = vadd.f32 %v4386_v2, %v3275_v47  ;;  %4463 = vrot.lane.b32.xlu0 %v4275_v41, %s6578_s15  ;;  %6504 = vrcp.f32 %v12131_v5  ;;  %v1932_v8 = vmul.f32 %v6489_v62, %v12135_v36  ;;  %v12149_v47 = vld [vmem:[#allocation267_spill] sm:$0xff]  ;;  %v12150_v41 = vld [vmem:[#allocation226_spill] sm:$0xff]  ;;  %v12151_v2 = vld [vmem:[#allocation4_spill] sm:$0xff] }
0x1038   :  { %v6491_v42 = vpop.eup %6490  ;;  %6506 = vrcp.f32 %v12133_v1  ;;  %v3276_v61 = vadd.f32 %v12137_v40, %v1931_v33  ;;  %v12157_v36 = vld [vmem:[#allocation237_spill] sm:$0xff] }
0x1039   :  { %v4609_v13 = vpack.c.bf16 %v4556_v7, %v4555_v37  ;;  %v4392_v34 = vpop.permute.xlu0 %4391  ;;  %v4277_v12 = vmul.f32 %v6491_v42, %v12132_v60  ;;  %v6493_v63 = vpop.eup %6492  ;;  %6508 = vrcp.f32 %v12136_v0  ;;  %v3277_v3 = vadd.f32 %v12138_v23, %v1932_v8  ;;  %v12152_v7 = vld [vmem:[#allocation306_spill] sm:$0xff]  ;;  %v12160_v23 = vld [vmem:[#allocation315_spill] sm:$0xff] }
0x103a   :  { %v4388_v19 = vpop.permute.xlu1 %4387  ;;  %v6495_v51 = vpop.eup %6494  ;;  %6510 = vrcp.f32 %v12139_v49  ;;  %v1933_v4 = vmul.f32 %v6493_v63, %v12141_v25  ;;  %v12153_v42 = vld [vmem:[#allocation150_spill] sm:$0xff] }
0x103b   :  { %4467 = vrot.lane.b32.xlu0 %v4277_v12, %s6578_s15  ;;  %5697 = vmatprep.mubr.msk.bf16.mxu1 %vm1268_vm2, %v4609_v13  ;;  %v1934_v21 = vmul.f32 %v6495_v51, %v12142_v9  ;;  %v4557_v18 = vadd.f32 %v4388_v19, %v3276_v61  ;;  %6512 = vrcp.f32 %v12144_v44  ;;  %v12154_v13 = vld [vmem:[#allocation193_spill] sm:$0xff]  ;;  %v12158_v0 = vld [vmem:[#allocation6_spill] sm:$0xff]  ;;  %v12159_v61 = vld [vmem:[#allocation3_spill] sm:$0xff] }
0x103c   :  { %v3278_v58 = vadd.f32 %v12145_v38, %v1933_v4  ;;  %6514 = vrcp.f32 %v12147_v11  ;;  %v12155_v19 = vld [vmem:[#allocation313_spill] sm:$0xff]  ;;  %v12162_v49 = vld [vmem:[#allocation246_spill] sm:$0xff] }
0x103d   :  { %v6497_v32 = vpop.eup %6496  ;;  %v4396_v54 = vpop.permute.xlu0 %4395  ;;  %v3279_v45 = vadd.f32 %v12146_v55, %v1934_v21  ;;  %6516 = vrcp.f32 %v12152_v7  ;;  %v12165_v21 = vld [vmem:[#allocation147_spill] sm:$0xff]  ;;  %v12167_v38 = vld [vmem:[#allocation5_spill] sm:$0xff]  ;;  %v12169_v55 = vld [vmem:[#allocation236_spill] sm:$0xff] }
0x103e   :  { %v6499_v15 = vpop.eup %6498  ;;  %v4390_v20 = vpop.permute.xlu1 %4389  ;;  %v4276_v29 = vmul.f32 %v6497_v32, %v12140_v27  ;;  %v4559_v30 = vadd.f32 %v4392_v34, %v3278_v58  ;;  %6518 = vrcp.f32 %v12155_v19  ;;  %v12156_v34 = vld [vmem:[#allocation148_spill] sm:$0xff]  ;;  %v12175_v7 = vld [vmem:[#allocation7_spill] sm:$0xff] }
0x103f   :  { %v6501_v43 = vpop.eup %6500  ;;  %v4558_v52 = vadd.f32 %v4390_v20, %v3277_v3  ;;  %5085 = vrot.lane.b32.xlu0 %v12143_v48, %s6579_s4  ;;  %v1935_v6 = vmul.f32 %v6499_v15, %v12148_v22  ;;  %6520 = vrcp.f32 %v12160_v23  ;;  %v12161_v3 = vld [vmem:[#allocation70_spill] sm:$0xff]  ;;  %v12168_v58 = vld [vmem:[#allocation312_spill] sm:$0xff]  ;;  %v12183_v23 = vld [vmem:[#allocation9_spill] sm:$0xff] }
0x1040   :  { %v6503_v26 = vpop.eup %6502  ;;  %4465 = vrot.lane.b32.xlu1 %v4276_v29, %s6578_s15  ;;  %v4278_v53 = vmul.f32 %v6501_v43, %v12149_v47  ;;  %v12163_v43 = vld [vmem:[#allocation84_spill] sm:$0xff] }
0x1041   :  { %v4610_v10 = vpack.c.bf16 %v4558_v52, %v4557_v18  ;;  %v4400_v35 = vpop.permute.xlu0 %4399  ;;  %v6505_v31 = vpop.eup %6504  ;;  %v1936_v16 = vmul.f32 %v6503_v26, %v12150_v41  ;;  %v3280_v5 = vadd.f32 %v12153_v42, %v1935_v6  ;;  %6522 = vrcp.f32 %v12163_v43  ;;  %v12166_v26 = vld [vmem:[#allocation8_spill] sm:$0xff]  ;;  %v12173_v41 = vld [vmem:[#allocation245_spill] sm:$0xff]  ;;  %v12176_v42 = vld [vmem:[#allocation86_spill] sm:$0xff] }
0x1042   :  { %v4394_v56 = vpop.permute.xlu1 %4393  ;;  %v6507_v62 = vpop.eup %6506  ;;  %v1937_v63 = vmul.f32 %v6505_v31, %v12156_v34  ;;  %6524 = vrcp.f32 %v12168_v58  ;;  %v12191_v58 = vld [vmem:[#allocation11_spill] sm:$0xff] }
0x1043   :  { %v4560_v37 = vadd.f32 %v4394_v56, %v3279_v45  ;;  %5089 = vrot.lane.b32.xlu0 %v12151_v2, %s6579_s4  ;;  %5698 = vmatmul.mubr.msk.bf16.gmra.mrb[84].mxu1 %vm1268_vm2, %v4610_v10  ;;  %v3281_v60 = vadd.f32 %v12154_v13, %v1936_v16  ;;  %v6509_v33 = vpop.eup %6508  ;;  %v1938_v8 = vmul.f32 %v6507_v62, %v12157_v36  ;;  %v12170_v10 = vld [vmem:[#allocation58_spill] sm:$0xff]  ;;  %v12171_v56 = vld [vmem:[#allocation316_spill] sm:$0xff] }
0x1044   :  { %4469 = vrot.lane.b32.xlu1 %v4278_v53, %s6578_s15  ;;  %v4561_v51 = vadd.f32 %v4396_v54, %v3280_v5  ;;  %v6511_v40 = vpop.eup %6510  ;;  %v3282_v15 = vadd.f32 %v12161_v3, %v1937_v63  ;;  %v12164_v54 = vld [vmem:[#allocation141_spill] sm:$0xff]  ;;  %6526 = vrcp.f32 %v12171_v56  ;;  %v12174_v2 = vld [vmem:[#allocation10_spill] sm:$0xff]  ;;  %v12177_v5 = vld [vmem:[#allocation220_spill] sm:$0xff] }
0x1045   :  { %v4611_v12 = vpack.c.bf16 %v4560_v37, %v4559_v30  ;;  %v4404_v1 = vpop.permute.xlu0 %4403  ;;  %v3283_v20 = vadd.f32 %v12162_v49, %v1938_v8  ;;  %v1939_v25 = vmul.f32 %v6509_v33, %v12164_v54  ;;  %v6513_v9 = vpop.eup %6512  ;;  %v1940_v18 = vmul.f32 %v6511_v40, %v12165_v21  ;;  %v12179_v63 = vld [vmem:[#allocation109_spill] sm:$0xff]  ;;  %v12181_v8 = vld [vmem:[#allocation240_spill] sm:$0xff] }
0x1046   :  { %v4398_v46 = vpop.permute.xlu1 %4397  ;;  %v4563_v52 = vadd.f32 %v4400_v35, %v3282_v15  ;;  %v6515_v44 = vpop.eup %6514  ;;  %v12172_v35 = vld [vmem:[#allocation241_spill] sm:$0xff]  ;;  %6528 = vrcp.f32 %v12176_v42  ;;  %v12182_v40 = vld [vmem:[#allocation12_spill] sm:$0xff] }
0x1047   :  { %v4562_v32 = vadd.f32 %v4398_v46, %v3281_v60  ;;  %5093 = vrot.lane.b32.xlu0 %v12158_v0, %s6579_s4  ;;  %5701 = vmatprep.mubr.msk.bf16.mxu1 %vm1268_vm2, %v4611_v12  ;;  %v3284_v45 = vadd.f32 %v12169_v55, %v1939_v25  ;;  %v3285_v11 = vadd.f32 %v12170_v10, %v1940_v18  ;;  %v6517_v31 = vpop.eup %6516  ;;  %v12178_v60 = vld [vmem:[#allocation127_spill] sm:$0xff]  ;;  %6530 = vrcp.f32 %v12179_v63  ;;  %v12184_v3 = vld [vmem:[#allocation317_spill] sm:$0xff]  ;;  %v12187_v25 = vld [vmem:[#allocation92_spill] sm:$0xff] }
0x1048   :  { %5087 = vrot.lane.b32.xlu1 %v12159_v61, %s6579_s4  ;;  %v1941_v47 = vmul.f32 %v6513_v9, %v12172_v35  ;;  %v1942_v16 = vmul.f32 %v6515_v44, %v12173_v41  ;;  %v6519_v62 = vpop.eup %6518  ;;  %6532 = vrcp.f32 %v12184_v3  ;;  %v12185_v15 = vld [vmem:[#allocation93_spill] sm:$0xff]  ;;  %v12189_v18 = vld [vmem:[#allocation255_spill] sm:$0xff]  ;;  %v12190_v44 = vld [vmem:[#allocation14_spill] sm:$0xff] }
0x1049   :  { %v4612_v27 = vpack.c.bf16 %v4562_v32, %v4561_v51  ;;  %v4408_v29 = vpop.permute.xlu0 %4407  ;;  %v4565_v30 = vadd.f32 %v4404_v1, %v3284_v45  ;;  %v12180_v1 = vld [vmem:[#allocation239_spill] sm:$0xff]  ;;  %v6521_v36 = vpop.eup %6520  ;;  %v1944_v51 = vmul.f32 %v6519_v62, %v12181_v8  ;;  %6534 = vrcp.f32 %v12187_v25  ;;  %v12193_v45 = vld [vmem:[#allocation53_spill] sm:$0xff]  ;;  %v12198_v62 = vld [vmem:[#allocation16_spill] sm:$0xff] }
0x104a   :  { %v4402_v4 = vpop.permute.xlu1 %4401  ;;  %v3286_v13 = vadd.f32 %v12177_v5, %v1941_v47  ;;  %v3287_v12 = vadd.f32 %v12178_v60, %v1942_v16  ;;  %v1943_v46 = vmul.f32 %v6517_v31, %v12180_v1  ;;  %v12192_v55 = vld [vmem:[#allocation107_spill] sm:$0xff]  ;;  %v12197_v16 = vld [vmem:[#allocation249_spill] sm:$0xff]  ;;  %v12200_v5 = vld [vmem:[#allocation98_spill] sm:$0xff] }
0x104b   :  { %v4564_v48 = vadd.f32 %v4402_v4, %v3283_v20  ;;  %5097 = vrot.lane.b32.xlu0 %v12166_v26, %s6579_s4  ;;  %5702 = vmatmul.mubr.msk.bf16.gmra.mrb[88].mxu1 %vm1268_vm2, %v4612_v27  ;;  %v6523_v61 = vpop.eup %6522  ;;  %v12186_v20 = vld [vmem:[#allocation214_spill] sm:$0xff]  ;;  %6536 = vrcp.f32 %v12192_v55  ;;  %v12195_v47 = vld [vmem:[#allocation135_spill] sm:$0xff]  ;;  %v12199_v42 = vld [vmem:[#allocation13_spill] sm:$0xff] }
0x104c   :  { %5091 = vrot.lane.b32.xlu1 %v12167_v38, %s6579_s4  ;;  %v4567_v32 = vadd.f32 %v4408_v29, %v3286_v13  ;;  %v3288_v49 = vadd.f32 %v12185_v15, %v1943_v46  ;;  %v3289_v27 = vadd.f32 %v12186_v20, %v1944_v51  ;;  %v12188_v29 = vld [vmem:[#allocation250_spill] sm:$0xff]  ;;  %v6525_v21 = vpop.eup %6524  ;;  %6538 = vrcp.f32 %v12195_v47  ;;  %v12201_v13 = vld [vmem:[#allocation252_spill] sm:$0xff]  ;;  %v12203_v46 = vld [vmem:[#allocation113_spill] sm:$0xff] }
0x104d   :  { %v4613_v22 = vpack.c.bf16 %v4564_v48, %v4563_v52  ;;  %v4412_v6 = vpop.permute.xlu0 %4411  ;;  %v1945_v4 = vmul.f32 %v6521_v36, %v12188_v29  ;;  %v1946_v52 = vmul.f32 %v6523_v61, %v12189_v18  ;;  %6540 = vrcp.f32 %v12200_v5  ;;  %v12205_v51 = vld [vmem:[#allocation261_spill] sm:$0xff]  ;;  %v12206_v61 = vld [vmem:[#allocation18_spill] sm:$0xff]  ;;  %v12217_v47 = vld [vmem:[#allocation64_spill] sm:$0xff] }
0x104e   :  { %v4406_v53 = vpop.permute.xlu1 %4405  ;;  %v4569_v48 = vadd.f32 %v4412_v6, %v3288_v49  ;;  %v6527_v38 = vpop.eup %6526  ;;  %v12196_v6 = vld [vmem:[#allocation248_spill] sm:$0xff]  ;;  %6542 = vrcp.f32 %v12203_v46  ;;  %v12207_v49 = vld [vmem:[#allocation15_spill] sm:$0xff]  ;;  %v12208_v20 = vld [vmem:[#allocation133_spill] sm:$0xff] }
0x104f   :  { %v4566_v37 = vadd.f32 %v4406_v53, %v3285_v11  ;;  %5101 = vrot.lane.b32.xlu0 %v12174_v2, %s6579_s4  ;;  %5705 = vmatprep.mubr.msk.bf16.mxu1 %vm1268_vm2, %v4613_v22  ;;  %v3290_v10 = vadd.f32 %v12193_v45, %v1945_v4  ;;  %v12194_v11 = vld [vmem:[#allocation258_spill] sm:$0xff]  ;;  %v1947_v53 = vmul.f32 %v6525_v21, %v12196_v6  ;;  %6544 = vrcp.f32 %v12208_v20  ;;  %v12211_v21 = vld [vmem:[#allocation164_spill] sm:$0xff]  ;;  %v12212_v18 = vld [vmem:[#allocation257_spill] sm:$0xff] }
0x1050   :  { %5095 = vrot.lane.b32.xlu1 %v12175_v7, %s6579_s4  ;;  %v3291_v22 = vadd.f32 %v12194_v11, %v1946_v52  ;;  %v6529_v41 = vpop.eup %6528  ;;  %v12210_v25 = vld [vmem:[#allocation262_spill] sm:$0xff]  ;;  %6546 = vrcp.f32 %v12211_v21 }
0x1051   :  { %v4614_v19 = vpack.c.bf16 %v4566_v37, %v4565_v30  ;;  %v4416_v34 = vpop.permute.xlu0 %4415  ;;  %v1948_v30 = vmul.f32 %v6527_v38, %v12197_v16  ;;  %v6531_v7 = vpop.eup %6530  ;;  %v3292_v60 = vadd.f32 %v12201_v13, %v1947_v53  ;;  %v12213_v38 = vld [vmem:[#allocation198_spill] sm:$0xff] }
0x1052   :  { %v4410_v33 = vpop.permute.xlu1 %4409  ;;  %v4571_v37 = vadd.f32 %v4416_v34, %v3290_v10  ;;  %v12204_v34 = vld [vmem:[#allocation78_spill] sm:$0xff]  ;;  %v6533_v8 = vpop.eup %6532  ;;  %v12214_v10 = vld [vmem:[#allocation20_spill] sm:$0xff] }
0x1053   :  { %v4568_v0 = vadd.f32 %v4410_v33, %v3287_v12  ;;  %5105 = vrot.lane.b32.xlu0 %v12182_v40, %s6579_s4  ;;  %5706 = vmatmul.mubr.msk.bf16.gmra.mrb[92].mxu1 %vm1268_vm2, %v4614_v19  ;;  %v12202_v12 = vld [vmem:[#allocation96_spill] sm:$0xff]  ;;  %v1949_v33 = vmul.f32 %v6529_v41, %v12204_v34  ;;  %v6535_v3 = vpop.eup %6534  ;;  %v1951_v52 = vmul.f32 %v6533_v8, %v12212_v18  ;;  %v12218_v53 = vld [vmem:[#allocation238_spill] sm:$0xff] }
0x1054   :  { %5099 = vrot.lane.b32.xlu1 %v12183_v23, %s6579_s4  ;;  %v3293_v19 = vadd.f32 %v12202_v12, %v1948_v30  ;;  %v12219_v30 = vld [vmem:[#allocation140_spill] sm:$0xff]  ;;  %v12225_v46 = vld [vmem:[#allocation118_spill] sm:$0xff] }
0x1055   :  { %v4615_v43 = vpack.c.bf16 %v4568_v0, %v4567_v32  ;;  %v4420_v54 = vpop.permute.xlu0 %4419  ;;  %v1950_v32 = vmul.f32 %v6531_v7, %v12205_v51  ;;  %v3296_v6 = vadd.f32 %v12217_v47, %v1951_v52  ;;  %v12221_v7 = vld [vmem:[#allocation269_spill] sm:$0xff]  ;;  %v12233_v21 = vld [vmem:[#allocation266_spill] sm:$0xff]  ;;  %v12234_v52 = vld [vmem:[#allocation272_spill] sm:$0xff] }
0x1056   :  { %v4414_v9 = vpop.permute.xlu1 %4413  ;;  %v4573_v0 = vadd.f32 %v4420_v54, %v3292_v60  ;;  %v12222_v60 = vld [vmem:[#allocation22_spill] sm:$0xff] }
0x1057   :  { %v4570_v26 = vadd.f32 %v4414_v9, %v3289_v27  ;;  %5109 = vrot.lane.b32.xlu0 %v12190_v44, %s6579_s4  ;;  %5709 = vmatprep.mubr.msk.bf16.mxu1 %vm1268_vm2, %v4615_v43  ;;  %v12209_v27 = vld [vmem:[#allocation115_spill] sm:$0xff]  ;;  %v3295_v54 = vadd.f32 %v12210_v25, %v1950_v32  ;;  %v6537_v44 = vpop.eup %6536  ;;  %v12227_v32 = vld [vmem:[#allocation184_spill] sm:$0xff] }
0x1058   :  { %5103 = vrot.lane.b32.xlu1 %v12191_v58, %s6579_s4  ;;  %v3294_v43 = vadd.f32 %v12209_v27, %v1949_v33  ;;  %v1952_v58 = vmul.f32 %v6535_v3, %v12213_v38  ;;  %v6539_v11 = vpop.eup %6538  ;;  %v12226_v33 = vld [vmem:[#allocation256_spill] sm:$0xff]  ;;  %v12229_v3 = vld [vmem:[#allocation95_spill] sm:$0xff] }
0x1059   :  { %v4616_v56 = vpack.c.bf16 %v4570_v26, %v4569_v48  ;;  %v4424_v35 = vpop.permute.xlu0 %4423 }
0x105a   :  { %v4418_v31 = vpop.permute.xlu1 %4417  ;;  %v4575_v55 = vadd.f32 %v4424_v35, %v3294_v43  ;;  %v12220_v35 = vld [vmem:[#allocation97_spill] sm:$0xff]  ;;  %v12230_v43 = vld [vmem:[#allocation24_spill] sm:$0xff] }
0x105b   :  { %v4572_v2 = vadd.f32 %v4418_v31, %v3291_v22  ;;  %5113 = vrot.lane.b32.xlu0 %v12198_v62, %s6579_s4  ;;  %5710 = vmatmul.mubr.msk.bf16.gmra.mrb[96].mxu1 %vm1268_vm2, %v4616_v56  ;;  %v12215_v22 = vld [vmem:[#allocation17_spill] sm:$0xff]  ;;  %v3297_v31 = vadd.f32 %v12218_v53, %v1952_v58  ;;  %v6541_v62 = vpop.eup %6540  ;;  %v12235_v58 = vld [vmem:[#allocation170_spill] sm:$0xff] }
0x105c   :  { %5107 = vrot.lane.b32.xlu1 %v12199_v42, %s6579_s4  ;;  %v12216_v56 = vld [vmem:[#allocation121_spill] sm:$0xff]  ;;  %v1954_v42 = vmul.f32 %v6539_v11, %v12221_v7  ;;  %v6543_v12 = vpop.eup %6542  ;;  %v12237_v11 = vld [vmem:[#allocation278_spill] sm:$0xff]  ;;  %v12243_v7 = vld [vmem:[#allocation208_spill] sm:$0xff] }
0x105d   :  { %v4617_v63 = vpack.c.bf16 %v4572_v2, %v4571_v37  ;;  %v4428_v1 = vpop.permute.xlu0 %4427  ;;  %6548 = vrcp.f32 %v12216_v56  ;;  %v1953_v37 = vmul.f32 %v6537_v44, %v12220_v35 }
0x105e   :  { %v4422_v36 = vpop.permute.xlu1 %4421  ;;  %6550 = vrcp.f32 %v12219_v30  ;;  %v4577_v5 = vadd.f32 %v4428_v1, %v3296_v6  ;;  %v12228_v1 = vld [vmem:[#allocation264_spill] sm:$0xff]  ;;  %v12238_v6 = vld [vmem:[#allocation26_spill] sm:$0xff] }
0x105f   :  { %v4574_v40 = vadd.f32 %v4422_v36, %v3293_v19  ;;  %5117 = vrot.lane.b32.xlu0 %v12206_v61, %s6579_s4  ;;  %v10510_v23 = vpop.f32.mrb[72].mxu1  ;;  %5713 = vmatprep.mubr.msk.bf16.mxu1 %vm1268_vm2, %v4617_v63  ;;  %v12223_v19 = vld [vmem:[#allocation19_spill] sm:$0xff]  ;;  %v12224_v63 = vld [vmem:[#allocation161_spill] sm:$0xff]  ;;  %v3298_v34 = vadd.f32 %v12225_v46, %v1953_v37  ;;  %v3299_v36 = vadd.f32 %v12226_v33, %v1954_v42  ;;  %v6545_v61 = vpop.eup %6544  ;;  %v12241_v30 = vld [vmem:[#allocation142_spill] sm:$0xff] }
0x1060   :  { %v10513_v15 = vpop.f32.mrb[73].mxu1  ;;  %5111 = vrot.lane.b32.xlu1 %v12207_v49, %s6579_s4  ;;  %6552 = vrcp.f32 %v12224_v63  ;;  %v1956_v49 = vmul.f32 %v6543_v12, %v12229_v3  ;;  %v6547_v25 = vpop.eup %6546  ;;  %v12242_v37 = vld [vmem:[#allocation251_spill] sm:$0xff]  ;;  %v12245_v12 = vld [vmem:[#allocation273_spill] sm:$0xff]  ;;  %v12251_v3 = vld [vmem:[#allocation192_spill] sm:$0xff] }
0x1061   :  { %v4618_v29 = vpack.c.bf16 %v4574_v40, %v4573_v0  ;;  %v4432_v4 = vpop.permute.xlu0 %4431  ;;  %v10520_v9 = vpop.f32.mrb[74].mxu1  ;;  %6554 = vrcp.f32 %v12227_v32  ;;  %v1955_v0 = vmul.f32 %v6541_v62, %v12228_v1  ;;  %v12249_v32 = vld [vmem:[#allocation279_spill] sm:$0xff] }
0x1062   :  { %v10524_v48 = vpop.f32.mrb[75].mxu1  ;;  %v4426_v26 = vpop.permute.xlu1 %4425  ;;  %v4579_v20 = vadd.f32 %v4432_v4, %v3298_v34  ;;  %v12236_v4 = vld [vmem:[#allocation274_spill] sm:$0xff]  ;;  %v12246_v34 = vld [vmem:[#allocation28_spill] sm:$0xff] }
0x1063   :  { %v4576_v45 = vadd.f32 %v4426_v26, %v3295_v54  ;;  %5121 = vrot.lane.b32.xlu0 %v12214_v10, %s6579_s4  ;;  %5714 = vmatmul.mubr.msk.bf16.gmra.mrb[100].mxu1 %vm1268_vm2, %v4618_v29  ;;  %v12231_v54 = vld [vmem:[#allocation21_spill] sm:$0xff]  ;;  %v3300_v18 = vadd.f32 %v12233_v21, %v1955_v0  ;;  %v3301_v26 = vadd.f32 %v12234_v52, %v1956_v49  ;;  %v12250_v0 = vld [vmem:[#allocation244_spill] sm:$0xff]  ;;  %v12254_v21 = vld [vmem:[#allocation30_spill] sm:$0xff] }
0x1064   :  { %5115 = vrot.lane.b32.xlu1 %v12215_v22, %s6579_s4  ;;  %v12232_v29 = vld [vmem:[#allocation149_spill] sm:$0xff]  ;;  %v1958_v22 = vmul.f32 %v6547_v25, %v12237_v11 }
0x1065   :  { %v4619_v41 = vpack.c.bf16 %v4576_v45, %v4575_v55  ;;  %v4436_v16 = vpop.permute.xlu0 %4435  ;;  %6556 = vrcp.f32 %v12232_v29  ;;  %v1957_v55 = vmul.f32 %v6545_v61, %v12236_v4  ;;  %v12257_v4 = vld [vmem:[#allocation292_spill] sm:$0xff] }
0x1066   :  { %v4430_v2 = vpop.permute.xlu1 %4429  ;;  %6558 = vrcp.f32 %v12235_v58  ;;  %v4581_v56 = vadd.f32 %v4436_v16, %v3300_v18  ;;  %v12244_v16 = vld [vmem:[#allocation271_spill] sm:$0xff] }
0x1067   :  { %v4578_v13 = vadd.f32 %v4430_v2, %v3297_v31  ;;  %5125 = vrot.lane.b32.xlu0 %v12222_v60, %s6579_s4  ;;  %5717 = vmatprep.mubr.msk.bf16.mxu1 %vm1268_vm2, %v4619_v41  ;;  %v6549_v10 = vpop.eup %6548  ;;  %v12239_v31 = vld [vmem:[#allocation23_spill] sm:$0xff]  ;;  %v12240_v41 = vld [vmem:[#allocation181_spill] sm:$0xff]  ;;  %v3302_v35 = vadd.f32 %v12241_v30, %v1957_v55  ;;  %v3303_v2 = vadd.f32 %v12242_v37, %v1958_v22 }
0x1068   :  { %5119 = vrot.lane.b32.xlu1 %v12223_v19, %s6579_s4  ;;  %v6551_v53 = vpop.eup %6550  ;;  %6560 = vrcp.f32 %v12240_v41  ;;  %v1959_v42 = vmul.f32 %v6549_v10, %v12244_v16  ;;  %v12258_v10 = vld [vmem:[#allocation281_spill] sm:$0xff]  ;;  %v12264_v16 = vld [vmem:[#allocation296_spill] sm:$0xff] }
0x1069   :  { %v4620_v8 = vpack.c.bf16 %v4578_v13, %v4577_v5  ;;  %v4440_v51 = vpop.permute.xlu0 %4439  ;;  %6562 = vrcp.f32 %v12243_v7  ;;  %v1960_v19 = vmul.f32 %v6551_v53, %v12245_v12  ;;  %v12261_v30 = vld [vmem:[#allocation29_spill] sm:$0xff] }
0x106a   :  { %v4434_v40 = vpop.permute.xlu1 %4433  ;;  %v6553_v60 = vpop.eup %6552  ;;  %v4583_v63 = vadd.f32 %v4440_v51, %v3302_v35  ;;  %v3304_v1 = vadd.f32 %v12249_v32, %v1959_v42  ;;  %v12252_v51 = vld [vmem:[#allocation284_spill] sm:$0xff]  ;;  %v12262_v35 = vld [vmem:[#allocation143_spill] sm:$0xff]  ;;  %v12265_v12 = vld [vmem:[#allocation301_spill] sm:$0xff] }
0x106b   :  { %v4580_v27 = vadd.f32 %v4434_v40, %v3299_v36  ;;  %5129 = vrot.lane.b32.xlu0 %v12230_v43, %s6579_s4  ;;  %5718 = vmatmul.mubr.msk.bf16.gmra.mrb[104].mxu1 %vm1268_vm2, %v4620_v8  ;;  %v6555_v33 = vpop.eup %6554  ;;  %v12247_v36 = vld [vmem:[#allocation25_spill] sm:$0xff]  ;;  %v12248_v8 = vld [vmem:[#allocation47_spill] sm:$0xff]  ;;  %v3305_v40 = vadd.f32 %v12250_v0, %v1960_v19  ;;  %v1961_v49 = vmul.f32 %v6553_v60, %v12252_v51 }
0x106c   :  { %5123 = vrot.lane.b32.xlu1 %v12231_v54, %s6579_s4  ;;  %6564 = vrcp.f32 %v12248_v8  ;;  %v12253_v43 = vld [vmem:[#allocation289_spill] sm:$0xff] }
0x106d   :  { %v4621_v44 = vpack.c.bf16 %v4580_v27, %v4579_v20  ;;  %v4444_v38 = vpop.permute.xlu0 %4443  ;;  %6566 = vrcp.f32 %v12251_v3  ;;  %v1962_v25 = vmul.f32 %v6555_v33, %v12253_v43  ;;  %v12268_v8 = vld [vmem:[#allocation173_spill] sm:$0xff] }
0x106e   :  { %v4438_v45 = vpop.permute.xlu1 %4437  ;;  %v4585_v54 = vadd.f32 %v4444_v38, %v3304_v1  ;;  %v12269_v1 = vld [vmem:[#allocation298_spill] sm:$0xff] }
0x106f   :  { %v4582_v47 = vadd.f32 %v4438_v45, %v3301_v26  ;;  %5133 = vrot.lane.b32.xlu0 %v12238_v6, %s6579_s4  ;;  %5721 = vmatprep.mubr.msk.bf16.mxu1 %vm1268_vm2, %v4621_v44  ;;  %v6557_v27 = vpop.eup %6556  ;;  %v12255_v26 = vld [vmem:[#allocation27_spill] sm:$0xff]  ;;  %v12256_v44 = vld [vmem:[#allocation144_spill] sm:$0xff]  ;;  %v3307_v55 = vadd.f32 %v12257_v4, %v1962_v25 }
0x1070   :  { %5127 = vrot.lane.b32.xlu1 %v12239_v31, %s6579_s4  ;;  %v6559_v18 = vpop.eup %6558  ;;  %v3306_v58 = vadd.f32 %v12256_v44, %v1961_v49  ;;  %v1963_v11 = vmul.f32 %v6557_v27, %v12258_v10  ;;  %v12260_v31 = vld [vmem:[#allocation32_spill] sm:$0xff]  ;;  %v12271_v49 = vld [vmem:[#allocation294_spill] sm:$0xff]  ;;  %v12277_v10 = vld [vmem:[#allocation35_spill] sm:$0xff] }
0x1071   :  { %v4622_v62 = vpack.c.bf16 %v4582_v47, %v4581_v56  ;;  %v4448_v5 = vpop.permute.xlu0 %4447  ;;  %v12259_v56 = vld [vmem:[#allocation283_spill] sm:$0xff]  ;;  %v12272_v25 = vld [vmem:[#allocation36_spill] sm:$0xff] }
0x1072   :  { %v4442_v13 = vpop.permute.xlu1 %4441  ;;  %v6561_v38 = vpop.eup %6560  ;;  %v1964_v47 = vmul.f32 %v6559_v18, %v12259_v56  ;;  %v4587_v6 = vadd.f32 %v4448_v5, %v3306_v58  ;;  %v3308_v37 = vadd.f32 %v12262_v35, %v1963_v11  ;;  %v12280_v56 = vld [vmem:[#allocation42_spill] sm:$0xff] }
0x1073   :  { %v4584_v46 = vadd.f32 %v4442_v13, %v3303_v2  ;;  %5137 = vrot.lane.b32.xlu0 %v12246_v34, %s6579_s4  ;;  %5722 = vmatmul.mubr.msk.bf16.gmra.mrb[108].mxu1 %vm1268_vm2, %v4622_v62  ;;  %v6563_v41 = vpop.eup %6562  ;;  %v12263_v2 = vld [vmem:[#allocation253_spill] sm:$0xff]  ;;  %v1965_v42 = vmul.f32 %v6561_v38, %v12264_v16  ;;  %v12266_v34 = vld [vmem:[#allocation34_spill] sm:$0xff] }
0x1074   :  { %5131 = vrot.lane.b32.xlu1 %v12247_v36, %s6579_s4  ;;  %v3309_v62 = vadd.f32 %v12263_v2, %v1964_v47  ;;  %v1966_v19 = vmul.f32 %v6563_v41, %v12265_v12  ;;  %v12267_v36 = vld [vmem:[#allocation31_spill] sm:$0xff]  ;;  %v12279_v38 = vld [vmem:[#allocation37_spill] sm:$0xff]  ;;  %v12293_v12 = vld [vmem:[#allocation62_spill] sm:$0xff] }
0x1075   :  { %v4623_v61 = vpack.c.bf16 %v4584_v46, %v4583_v63  ;;  %v4452_v52 = vpop.permute.xlu0 %4451  ;;  %v3310_v32 = vadd.f32 %v12268_v8, %v1965_v42  ;;  %v12281_v47 = vld [vmem:[#allocation39_spill] sm:$0xff]  ;;  %v12289_v42 = vld [vmem:[#allocation56_spill] sm:$0xff] }
0x1076   :  { %v4446_v20 = vpop.permute.xlu1 %4445  ;;  %v6565_v5 = vpop.eup %6564  ;;  %v4589_v63 = vadd.f32 %v4452_v52, %v3308_v37  ;;  %v3311_v0 = vadd.f32 %v12269_v1, %v1966_v19  ;;  %v12275_v52 = vld [vmem:[#allocation270_spill] sm:$0xff]  ;;  %v12285_v41 = vld [vmem:[#allocation43_spill] sm:$0xff]  ;;  %v12287_v37 = vld [vmem:[#allocation45_spill] sm:$0xff] }
0x1077   :  { %v4586_v29 = vadd.f32 %v4446_v20, %v3305_v40  ;;  %5141 = vrot.lane.b32.xlu0 %v12254_v21, %s6579_s4  ;;  %5725 = vmatprep.mubr.msk.bf16.mxu1 %vm1268_vm2, %v4623_v61  ;;  %v6567_v33 = vpop.eup %6566  ;;  %v12270_v61 = vld [vmem:[#allocation291_spill] sm:$0xff]  ;;  %v12274_v21 = vld [vmem:[#allocation146_spill] sm:$0xff]  ;;  %v12294_v19 = vld [vmem:[#allocation200_spill] sm:$0xff] }
0x1078   :  { %5135 = vrot.lane.b32.xlu1 %v12255_v26, %s6579_s4  ;;  %v1967_v3 = vmul.f32 %v6565_v5, %v12270_v61  ;;  %v1968_v20 = vmul.f32 %v6567_v33, %v12271_v49  ;;  %v12292_v5 = vld [vmem:[#allocation81_spill] sm:$0xff]  ;;  %v12298_v8 = vld [vmem:[#allocation104_spill] sm:$0xff]  ;;  %v12299_v1 = vld [vmem:[#allocation82_spill] sm:$0xff] }
0x1079   :  { %v4624_v45 = vpack.c.bf16 %v4586_v29, %v4585_v54  ;;  %v4456_v13 = vpop.permute.xlu0 %4455  ;;  %v12273_v29 = vld [vmem:[#allocation33_spill] sm:$0xff] }
0x107a   :  { %v4450_v22 = vpop.permute.xlu1 %4449  ;;  %v4591_v27 = vadd.f32 %v4456_v13, %v3310_v32  ;;  %v3312_v18 = vadd.f32 %v12274_v21, %v1967_v3  ;;  %v3313_v26 = vadd.f32 %v12275_v52, %v1968_v20  ;;  %v12290_v13 = vld [vmem:[#allocation216_spill] sm:$0xff]  ;;  %v12300_v61 = vld [vmem:[#allocation309_spill] sm:$0xff] }
0x107b   :  { %v4588_v53 = vadd.f32 %v4450_v22, %v3307_v55  ;;  %5145 = vrot.lane.b32.xlu0 %v12260_v31, %s6579_s4  ;;  %5726 = vmatmul.mubr.msk.bf16.gmra.mrb[112].mxu1 %vm1268_vm2, %v4624_v45  ;;  %v12276_v45 = vld [vmem:[#allocation38_spill] sm:$0xff]  ;;  %v12278_v22 = vld [vmem:[#allocation40_spill] sm:$0xff]  ;;  %v12284_v31 = vld [vmem:[#allocation55_spill] sm:$0xff]  ;;  %6568 = vrcp.f32 %v12290_v13 }
0x107c   :  { %5139 = vrot.lane.b32.xlu1 %v12261_v30, %s6579_s4  ;;  %v12286_v30 = vld [vmem:[#allocation60_spill] sm:$0xff] }
0x107d   :  { %v4625_v7 = vpack.c.bf16 %v4588_v53, %v4587_v6  ;;  %v4460_v54 = vpop.permute.xlu0 %4459  ;;  %v12282_v6 = vld [vmem:[#allocation44_spill] sm:$0xff]  ;;  %v12283_v53 = vld [vmem:[#allocation41_spill] sm:$0xff] }
0x107e   :  { %v4454_v60 = vpop.permute.xlu1 %4453  ;;  %v4593_v4 = vadd.f32 %v4460_v54, %v3312_v18  ;;  %v12302_v20 = vld [vmem:[#allocation128_spill] sm:$0xff] }
0x107f   :  { %v4590_v46 = vadd.f32 %v4454_v60, %v3309_v62  ;;  %5149 = vrot.lane.b32.xlu0 %v12266_v34, %s6579_s4  ;;  %5729 = vmatprep.mubr.msk.bf16.mxu1 %vm1268_vm2, %v4625_v7  ;;  %v12288_v7 = vld [vmem:[#allocation79_spill] sm:$0xff]  ;;  %v12291_v60 = vld [vmem:[#allocation213_spill] sm:$0xff]  ;;  %v12297_v34 = vld [vmem:[#allocation80_spill] sm:$0xff] }
0x1080   :  { %5143 = vrot.lane.b32.xlu1 %v12267_v36, %s6579_s4  ;;  %6570 = vrcp.f32 %v12291_v60 }
0x1081   :  { %v4626_v40 = vpack.c.bf16 %v4590_v46, %v4589_v63  ;;  %6572 = vrcp.f32 %v12294_v19  ;;  %v12295_v63 = vld [vmem:[#allocation52_spill] sm:$0xff]  ;;  %v12296_v46 = vld [vmem:[#allocation102_spill] sm:$0xff] }
0x1082   :  { %v4458_v51 = vpop.permute.xlu1 %4457  ;;  %6574 = vrcp.f32 %v12295_v63  ;;  %v12314_v19 = vld [vmem:[#allocation158_spill] sm:$0xff]  ;;  %v12315_v63 = vld [vmem:[#allocation131_spill] sm:$0xff] }
0x1083   :  { %v4592_v43 = vadd.f32 %v4458_v51, %v3311_v0  ;;  %5153 = vrot.lane.b32.xlu0 %v12272_v25, %s6579_s4  ;;  %5730 = vmatmul.mubr.msk.bf16.gmra.mrb[116].mxu1 %vm1268_vm2, %v4626_v40  ;;  %v12301_v51 = vld [vmem:[#allocation88_spill] sm:$0xff] }
0x1084   :  { %5147 = vrot.lane.b32.xlu1 %v12273_v29, %s6579_s4  ;;  %v12304_v25 = vld [vmem:[#allocation172_spill] sm:$0xff]  ;;  %v12305_v29 = vld [vmem:[#allocation303_spill] sm:$0xff] }
0x1085   :  { %v4627_v44 = vpack.c.bf16 %v4592_v43, %v4591_v27  ;;  %v6569_v36 = vpop.eup %6568  ;;  %v12303_v43 = vld [vmem:[#allocation103_spill] sm:$0xff] }
0x1086   :  { %v4462_v58 = vpop.permute.xlu1 %4461  ;;  %v1969_v3 = vmul.f32 %v6569_v36, %v12300_v61 }
0x1087   :  { %v4594_v55 = vadd.f32 %v4462_v58, %v3313_v26  ;;  %5157 = vrot.lane.b32.xlu0 %v12276_v45, %s6579_s4  ;;  %5733 = vmatprep.mubr.msk.bf16.mxu1 %vm1268_vm2, %v4627_v44  ;;  %v12306_v44 = vld [vmem:[#allocation304_spill] sm:$0xff] }
0x1088   :  { %5151 = vrot.lane.b32.xlu1 %v12277_v10, %s6579_s4  ;;  %v3314_v54 = vadd.f32 %v12304_v25, %v1969_v3 }
0x1089   :  { %v4628_v11 = vpack.c.bf16 %v4594_v55, %v4593_v4  ;;  %v12307_v4 = vld [vmem:[#allocation308_spill] sm:$0xff] }
0x108a   :  { %v6571_v32 = vpop.eup %6570 }
0x108b   :  { %5161 = vrot.lane.b32.xlu0 %v12278_v22, %s6579_s4  ;;  %5734 = vmatmul.mubr.msk.bf16.gmra.mrb[120].mxu1 %vm1268_vm2, %v4628_v11  ;;  %v6573_v40 = vpop.eup %6572  ;;  %v1970_v49 = vmul.f32 %v6571_v32, %v12301_v51  ;;  %v12308_v11 = vld [vmem:[#allocation130_spill] sm:$0xff]  ;;  %v12309_v22 = vld [vmem:[#allocation105_spill] sm:$0xff] }
0x108c   :  { %5155 = vrot.lane.b32.xlu1 %v12279_v38, %s6579_s4  ;;  %v6575_v27 = vpop.eup %6574  ;;  %v1971_v58 = vmul.f32 %v6573_v40, %v12306_v44  ;;  %v12310_v38 = vld [vmem:[#allocation205_spill] sm:$0xff] }
0x108d   :  { %v3315_v21 = vadd.f32 %v12305_v29, %v1970_v49  ;;  %v1972_v55 = vmul.f32 %v6575_v27, %v12307_v4 }
0x108f   :  { %5165 = vrot.lane.b32.xlu0 %v12280_v56, %s6579_s4  ;;  %v12311_v56 = vld [vmem:[#allocation171_spill] sm:$0xff] }
0x1090   :  { %5159 = vrot.lane.b32.xlu1 %v12281_v47, %s6579_s4  ;;  %v3317_v47 = vadd.f32 %v12311_v56, %v1972_v55 }
0x1093   :  { %5169 = vrot.lane.b32.xlu0 %v12282_v6, %s6579_s4 }
0x1094   :  { %5163 = vrot.lane.b32.xlu1 %v12283_v53, %s6579_s4 }
0x1097   :  { %5173 = vrot.lane.b32.xlu0 %v12284_v31, %s6579_s4 }
0x1098   :  { %5167 = vrot.lane.b32.xlu1 %v12285_v41, %s6579_s4 }
0x109b   :  { %5177 = vrot.lane.b32.xlu0 %v12286_v30, %s6579_s4 }
0x109c   :  { %v10640_v35 = vpop.f32.mrb[76].mxu1  ;;  %5171 = vrot.lane.b32.xlu1 %v12287_v37, %s6579_s4 }
0x109d   :  { %v10644_v2 = vpop.f32.mrb[77].mxu1 }
0x109e   :  { %v10646_v62 = vpop.f32.mrb[78].mxu1 }
0x109f   :  { %5181 = vrot.lane.b32.xlu0 %v12288_v7, %s6579_s4  ;;  %v10650_v16 = vpop.f32.mrb[79].mxu1  ;;  %v12312_v7 = vld [vmem:[#allocation156_spill] sm:$0xff] }
0x10a0   :  { %5175 = vrot.lane.b32.xlu1 %v12289_v42, %s6579_s4  ;;  %v12313_v42 = vld [vmem:[#allocation129_spill] sm:$0xff] }
0x10a3   :  { %5185 = vrot.lane.b32.xlu0 %v12292_v5, %s6579_s4 }
0x10a4   :  { %5179 = vrot.lane.b32.xlu1 %v12293_v12, %s6579_s4 }
0x10a7   :  { %5189 = vrot.lane.b32.xlu0 %v12296_v46, %s6579_s4 }
0x10a8   :  { %5183 = vrot.lane.b32.xlu1 %v12297_v34, %s6579_s4 }
0x10a9   :  { %v4464_v33 = vpop.permute.xlu0 %4463 }
0x10aa   :  { %v4595_v45 = vadd.f32 %v4464_v33, %v3314_v54  ;;  %v12316_v33 = vld [vmem:[#allocation157_spill] sm:$0xff] }
0x10ab   :  { %5193 = vrot.lane.b32.xlu0 %v12298_v8, %s6579_s4 }
0x10ac   :  { %5187 = vrot.lane.b32.xlu1 %v12299_v1, %s6579_s4 }
0x10ad   :  { %v4468_v0 = vpop.permute.xlu0 %4467 }
0x10af   :  { %5197 = vrot.lane.b32.xlu0 %v12302_v20, %s6579_s4 }
0x10b0   :  { %5191 = vrot.lane.b32.xlu1 %v12303_v43, %s6579_s4 }
0x10b1   :  { %v5086_v18 = vpop.permute.xlu0 %5085 }
0x10b2   :  { %v5277_v52 = vmul.f32 %v5086_v18, %v10332_v14  ;;  %v4466_v26 = vpop.permute.xlu1 %4465  ;;  %v3316_v14 = vadd.f32 %v12310_v38, %v1971_v58 }
0x10b3   :  { %v4596_v10 = vadd.f32 %v4466_v26, %v3315_v21  ;;  %5201 = vrot.lane.b32.xlu0 %v12308_v11, %s6579_s4 }
0x10b4   :  { %5342 = vst.msk [vmem:[%s10977_s5] sm:$0xff] %vm5341_vm5, %v5277_v52  ;;  %5195 = vrot.lane.b32.xlu1 %v12309_v22, %s6579_s4  ;;  %v4597_v30 = vadd.f32 %v4468_v0, %v3316_v14 }
0x10b5   :  { %v4629_v6 = vpack.c.bf16 %v4596_v10, %v4595_v45  ;;  %v5090_v53 = vpop.permute.xlu0 %5089 }
0x10b6   :  { %v5279_v31 = vmul.f32 %v10327_v17, %v5090_v53  ;;  %v4470_v41 = vpop.permute.xlu1 %4469 }
0x10b7   :  { %v4598_v37 = vadd.f32 %v4470_v41, %v3317_v47  ;;  %5205 = vrot.lane.b32.xlu0 %v12312_v7, %s6579_s4  ;;  %5737 = vmatprep.mubr.msk.bf16.mxu1 %vm1268_vm2, %v4629_v6 }
0x10b8   :  { %5344 = vst.msk [vmem:[%s10977_s5 + $0x10] sm:$0xff] %vm5341_vm5, %v5279_v31  ;;  %5199 = vrot.lane.b32.xlu1 %v12313_v42, %s6579_s4 }
0x10b9   :  { %v4630_v13 = vpack.c.bf16 %v4598_v37, %v4597_v30  ;;  %v5094_v60 = vpop.permute.xlu0 %5093 }
0x10ba   :  { %v5281_v17 = vmul.f32 %v5094_v60, %v10388_v28  ;;  %v5088_v5 = vpop.permute.xlu1 %5087 }
0x10bb   :  { %v5278_v12 = vmul.f32 %v5088_v5, %v10338_v57  ;;  %5209 = vrot.lane.b32.xlu0 %v12314_v19, %s6579_s4  ;;  %5738 = vmatmul.mubr.msk.bf16.gmra.mrb[124].mxu1 %vm1268_vm2, %v4630_v13 }
0x10bc   :  { %5346 = vst.msk [vmem:[%s10977_s5 + $0x20] sm:$0xff] %vm5341_vm5, %v5281_v17  ;;  %5203 = vrot.lane.b32.xlu1 %v12315_v63, %s6579_s4 }
0x10bd   :  { %5343 = vst.msk [vmem:[%s10977_s5 + $0x8] sm:$0xff] %vm5341_vm5, %v5278_v12  ;;  %v5098_v28 = vpop.permute.xlu0 %5097 }
0x10be   :  { %v5283_v57 = vmul.f32 %v10386_v59, %v5098_v28  ;;  %v5092_v46 = vpop.permute.xlu1 %5091 }
0x10bf   :  { %v5280_v34 = vmul.f32 %v10335_v24, %v5092_v46  ;;  %v12317_v24 = vld [vmem:[#allocation159_spill] sm:$0xff] }
0x10c0   :  { %5348 = vst.msk [vmem:[%s10977_s5 + $0x30] sm:$0xff] %vm5341_vm5, %v5283_v57  ;;  %5207 = vrot.lane.b32.xlu1 %v12316_v33, %s6579_s4 }
0x10c1   :  { %5345 = vst.msk [vmem:[%s10977_s5 + $0x18] sm:$0xff] %vm5341_vm5, %v5280_v34  ;;  %v5102_v36 = vpop.permute.xlu0 %5101 }
0x10c2   :  { %v5285_v8 = vmul.f32 %v5102_v36, %v10513_v15  ;;  %v5096_v59 = vpop.permute.xlu1 %5095 }
0x10c3   :  { %v5282_v32 = vmul.f32 %v5096_v59, %v10393_v39 }
0x10c4   :  { %5350 = vst.msk [vmem:[%s10977_s5 + $0x40] sm:$0xff] %vm5341_vm5, %v5285_v8  ;;  %5211 = vrot.lane.b32.xlu1 %v12317_v24, %s6579_s4 }
0x10c5   :  { %5347 = vst.msk [vmem:[%s10977_s5 + $0x28] sm:$0xff] %vm5341_vm5, %v5282_v32  ;;  %v5106_v1 = vpop.permute.xlu0 %5105 }
0x10c6   :  { %v5287_v0 = vmul.f32 %v10510_v23, %v5106_v1  ;;  %v5100_v15 = vpop.permute.xlu1 %5099 }
0x10c7   :  { %v5284_v40 = vmul.f32 %v10390_v50, %v5100_v15 }
0x10c8   :  { %5352 = vst.msk [vmem:[%s10977_s5 + $0x50] sm:$0xff] %vm5341_vm5, %v5287_v0 }
0x10c9   :  { %5349 = vst.msk [vmem:[%s10977_s5 + $0x38] sm:$0xff] %vm5341_vm5, %v5284_v40  ;;  %v5110_v39 = vpop.permute.xlu0 %5109 }
0x10ca   :  { %v5289_v61 = vmul.f32 %v5110_v39, %v10644_v2  ;;  %v5104_v3 = vpop.permute.xlu1 %5103 }
0x10cb   :  { %v5286_v51 = vmul.f32 %v5104_v3, %v10524_v48 }
0x10cc   :  { %5354 = vst.msk [vmem:[%s10977_s5 + $0x60] sm:$0xff] %vm5341_vm5, %v5289_v61 }
0x10cd   :  { %5351 = vst.msk [vmem:[%s10977_s5 + $0x48] sm:$0xff] %vm5341_vm5, %v5286_v51  ;;  %v5114_v50 = vpop.permute.xlu0 %5113 }
0x10ce   :  { %v5291_v23 = vmul.f32 %v10640_v35, %v5114_v50  ;;  %v5108_v49 = vpop.permute.xlu1 %5107 }
0x10cf   :  { %v5288_v20 = vmul.f32 %v10520_v9, %v5108_v49 }
0x10d0   :  { %5356 = vst.msk [vmem:[%s10977_s5 + $0x70] sm:$0xff] %vm5341_vm5, %v5291_v23 }
0x10d1   :  { %5353 = vst.msk [vmem:[%s10977_s5 + $0x58] sm:$0xff] %vm5341_vm5, %v5288_v20  ;;  %v5118_v2 = vpop.permute.xlu0 %5117 }
0x10d2   :  { %v5112_v48 = vpop.permute.xlu1 %5111 }
0x10d3   :  { %v5290_v27 = vmul.f32 %v5112_v48, %v10650_v16 }
0x10d5   :  { %5355 = vst.msk [vmem:[%s10977_s5 + $0x68] sm:$0xff] %vm5341_vm5, %v5290_v27  ;;  %v5122_v43 = vpop.permute.xlu0 %5121 }
0x10d6   :  { %v5116_v9 = vpop.permute.xlu1 %5115 }
0x10d7   :  { %v5292_v35 = vmul.f32 %v10646_v62, %v5116_v9 }
0x10d9   :  { %5357 = vst.msk [vmem:[%s10977_s5 + $0x78] sm:$0xff] %vm5341_vm5, %v5292_v35  ;;  %v5695_v25 = vpop.f32.mrb[80].mxu1  ;;  %v5126_v58 = vpop.permute.xlu0 %5125 }
0x10da   :  { %v5295_v54 = vmul.f32 %v5695_v25, %v5122_v43  ;;  %v4830_v29 = vpop.f32.mrb[81].mxu1  ;;  %v5120_v21 = vpop.permute.xlu1 %5119 }
0x10db   :  { %v5293_v18 = vmul.f32 %v5118_v2, %v4830_v29  ;;  %v5696_v16 = vpop.f32.mrb[82].mxu1 }
0x10dc   :  { %5360 = vst.msk [vmem:[%s10977_s5 + $0x90] sm:$0xff] %vm5341_vm5, %v5295_v54  ;;  %v4833_v52 = vpop.f32.mrb[83].mxu1 }
0x10dd   :  { %5358 = vst.msk [vmem:[%s10977_s5 + $0x80] sm:$0xff] %vm5341_vm5, %v5293_v18  ;;  %v5294_v62 = vmul.f32 %v5120_v21, %v4833_v52  ;;  %v5130_v55 = vpop.permute.xlu0 %5129 }
0x10de   :  { %v5124_v26 = vpop.permute.xlu1 %5123 }
0x10df   :  { %5359 = vst.msk [vmem:[%s10977_s5 + $0x88] sm:$0xff] %vm5341_vm5, %v5294_v62  ;;  %v5296_v44 = vmul.f32 %v5696_v16, %v5124_v26 }
0x10e1   :  { %5361 = vst.msk [vmem:[%s10977_s5 + $0x98] sm:$0xff] %vm5341_vm5, %v5296_v44  ;;  %v5134_v10 = vpop.permute.xlu0 %5133 }
0x10e2   :  { %v5128_v4 = vpop.permute.xlu1 %5127 }
0x10e5   :  { %v5138_v22 = vpop.permute.xlu0 %5137 }
0x10e6   :  { %v5132_v45 = vpop.permute.xlu1 %5131 }
0x10e9   :  { %v5142_v14 = vpop.permute.xlu0 %5141 }
0x10ea   :  { %v5136_v11 = vpop.permute.xlu1 %5135 }
0x10ed   :  { %v5146_v47 = vpop.permute.xlu0 %5145 }
0x10ee   :  { %v5140_v38 = vpop.permute.xlu1 %5139 }
0x10f1   :  { %v5150_v53 = vpop.permute.xlu0 %5149 }
0x10f2   :  { %v5144_v56 = vpop.permute.xlu1 %5143 }
0x10f5   :  { %v5154_v41 = vpop.permute.xlu0 %5153 }
0x10f6   :  { %v5148_v6 = vpop.permute.xlu1 %5147 }
0x10f9   :  { %v5158_v19 = vpop.permute.xlu0 %5157 }
0x10fa   :  { %v5152_v31 = vpop.permute.xlu1 %5151 }
0x10fd   :  { %v5162_v59 = vpop.permute.xlu0 %5161 }
0x10fe   :  { %v5156_v42 = vpop.permute.xlu1 %5155 }
0x1101   :  { %v5166_v40 = vpop.permute.xlu0 %5165 }
0x1102   :  { %v5160_v63 = vpop.permute.xlu1 %5159 }
0x1105   :  { %v5170_v49 = vpop.permute.xlu0 %5169 }
0x1106   :  { %v5164_v24 = vpop.permute.xlu1 %5163 }
0x1109   :  { %v5174_v29 = vpop.permute.xlu0 %5173 }
0x110a   :  { %v5168_v50 = vpop.permute.xlu1 %5167 }
0x110e   :  { %v5172_v27 = vpop.permute.xlu1 %5171 }
0x1112   :  { %v5176_v21 = vpop.permute.xlu1 %5175 }
0x1116   :  { %v5699_v30 = vpop.f32.mrb[84].mxu1 }
0x1117   :  { %v5299_v37 = vmul.f32 %v5699_v30, %v5130_v55  ;;  %v4846_v7 = vpop.f32.mrb[85].mxu1 }
0x1118   :  { %v5297_v13 = vmul.f32 %v5126_v58, %v4846_v7  ;;  %v5700_v60 = vpop.f32.mrb[86].mxu1 }
0x1119   :  { %5364 = vst.msk [vmem:[%s10977_s5 + $0xb0] sm:$0xff] %vm5341_vm5, %v5299_v37  ;;  %v5300_v17 = vmul.f32 %v5700_v60, %v5132_v45  ;;  %v4849_v5 = vpop.f32.mrb[87].mxu1  ;;  %v5180_v45 = vpop.permute.xlu1 %5179 }
0x111a   :  { %5362 = vst.msk [vmem:[%s10977_s5 + $0xa0] sm:$0xff] %vm5341_vm5, %v5297_v13  ;;  %v5298_v12 = vmul.f32 %v5128_v4, %v4849_v5  ;;  %v5178_v4 = vpop.permute.xlu0 %5177 }
0x111b   :  { %5365 = vst.msk [vmem:[%s10977_s5 + $0xb8] sm:$0xff] %vm5341_vm5, %v5300_v17 }
0x111c   :  { %5363 = vst.msk [vmem:[%s10977_s5 + $0xa8] sm:$0xff] %vm5341_vm5, %v5298_v12 }
0x111e   :  { %v5703_v28 = vpop.f32.mrb[88].mxu1 }
0x111f   :  { %v5303_v57 = vmul.f32 %v5703_v28, %v5138_v22  ;;  %v4862_v46 = vpop.f32.mrb[89].mxu1 }
0x1120   :  { %v5301_v34 = vmul.f32 %v5134_v10, %v4862_v46  ;;  %v5704_v33 = vpop.f32.mrb[90].mxu1 }
0x1121   :  { %5368 = vst.msk [vmem:[%s10977_s5 + $0xd0] sm:$0xff] %vm5341_vm5, %v5303_v57  ;;  %v5304_v36 = vmul.f32 %v5704_v33, %v5140_v38  ;;  %v4865_v8 = vpop.f32.mrb[91].mxu1  ;;  %v5182_v38 = vpop.permute.xlu0 %5181 }
0x1122   :  { %5366 = vst.msk [vmem:[%s10977_s5 + $0xc0] sm:$0xff] %vm5341_vm5, %v5301_v34  ;;  %v5302_v32 = vmul.f32 %v5136_v11, %v4865_v8 }
0x1123   :  { %5369 = vst.msk [vmem:[%s10977_s5 + $0xd8] sm:$0xff] %vm5341_vm5, %v5304_v36 }
0x1124   :  { %5367 = vst.msk [vmem:[%s10977_s5 + $0xc8] sm:$0xff] %vm5341_vm5, %v5302_v32 }
0x1126   :  { %v5707_v1 = vpop.f32.mrb[92].mxu1 }
0x1127   :  { %v5307_v0 = vmul.f32 %v5707_v1, %v5146_v47  ;;  %v4878_v15 = vpop.f32.mrb[93].mxu1 }
0x1128   :  { %v5305_v39 = vmul.f32 %v5142_v14, %v4878_v15  ;;  %v5708_v61 = vpop.f32.mrb[94].mxu1 }
0x1129   :  { %5372 = vst.msk [vmem:[%s10977_s5 + $0xf0] sm:$0xff] %vm5341_vm5, %v5307_v0  ;;  %v5308_v3 = vmul.f32 %v5708_v61, %v5148_v6  ;;  %v4881_v51 = vpop.f32.mrb[95].mxu1 }
0x112a   :  { %5370 = vst.msk [vmem:[%s10977_s5 + $0xe0] sm:$0xff] %vm5341_vm5, %v5305_v39  ;;  %v5306_v23 = vmul.f32 %v5144_v56, %v4881_v51 }
0x112b   :  { %5373 = vst.msk [vmem:[%s10977_s5 + $0xf8] sm:$0xff] %vm5341_vm5, %v5308_v3 }
0x112c   :  { %5371 = vst.msk [vmem:[%s10977_s5 + $0xe8] sm:$0xff] %vm5341_vm5, %v5306_v23 }
0x112e   :  { %v5711_v20 = vpop.f32.mrb[96].mxu1 }
0x112f   :  { %v5311_v48 = vmul.f32 %v5711_v20, %v5154_v41  ;;  %v4894_v2 = vpop.f32.mrb[97].mxu1  ;;  %v5186_v41 = vpop.permute.xlu0 %5185 }
0x1130   :  { %v5309_v9 = vmul.f32 %v5150_v53, %v4894_v2  ;;  %v5712_v35 = vpop.f32.mrb[98].mxu1  ;;  %v5184_v53 = vpop.permute.xlu1 %5183 }
0x1131   :  { %5376 = vst.msk [vmem:[%s10977_s5 + $0x110] sm:$0xff] %vm5341_vm5, %v5311_v48  ;;  %v5312_v43 = vmul.f32 %v5712_v35, %v5156_v42  ;;  %v4897_v25 = vpop.f32.mrb[99].mxu1 }
0x1132   :  { %5374 = vst.msk [vmem:[%s10977_s5 + $0x100] sm:$0xff] %vm5341_vm5, %v5309_v9  ;;  %v5310_v54 = vmul.f32 %v5152_v31, %v4897_v25 }
0x1133   :  { %5377 = vst.msk [vmem:[%s10977_s5 + $0x118] sm:$0xff] %vm5341_vm5, %v5312_v43 }
0x1134   :  { %5375 = vst.msk [vmem:[%s10977_s5 + $0x108] sm:$0xff] %vm5341_vm5, %v5310_v54  ;;  %v5188_v42 = vpop.permute.xlu1 %5187 }
0x1136   :  { %v5715_v18 = vpop.f32.mrb[100].mxu1 }
0x1137   :  { %v5315_v16 = vmul.f32 %v5715_v18, %v5162_v59  ;;  %v4910_v52 = vpop.f32.mrb[101].mxu1 }
0x1138   :  { %v5313_v62 = vmul.f32 %v5158_v19, %v4910_v52  ;;  %v5716_v26 = vpop.f32.mrb[102].mxu1  ;;  %v5190_v19 = vpop.permute.xlu0 %5189 }
0x1139   :  { %5380 = vst.msk [vmem:[%s10977_s5 + $0x130] sm:$0xff] %vm5341_vm5, %v5315_v16  ;;  %v5316_v44 = vmul.f32 %v5716_v26, %v5164_v24  ;;  %v4913_v58 = vpop.f32.mrb[103].mxu1 }
0x113a   :  { %5378 = vst.msk [vmem:[%s10977_s5 + $0x120] sm:$0xff] %vm5341_vm5, %v5313_v62  ;;  %v5314_v55 = vmul.f32 %v5160_v63, %v4913_v58  ;;  %v5192_v63 = vpop.permute.xlu1 %5191 }
0x113b   :  { %5381 = vst.msk [vmem:[%s10977_s5 + $0x138] sm:$0xff] %vm5341_vm5, %v5316_v44 }
0x113c   :  { %5379 = vst.msk [vmem:[%s10977_s5 + $0x128] sm:$0xff] %vm5341_vm5, %v5314_v55  ;;  %v5194_v59 = vpop.permute.xlu0 %5193 }
0x113e   :  { %v5719_v10 = vpop.f32.mrb[104].mxu1  ;;  %v5196_v24 = vpop.permute.xlu1 %5195 }
0x113f   :  { %v5319_v11 = vmul.f32 %v5719_v10, %v5170_v49  ;;  %v4926_v22 = vpop.f32.mrb[105].mxu1 }
0x1140   :  { %v5317_v14 = vmul.f32 %v5166_v40, %v4926_v22  ;;  %v5720_v56 = vpop.f32.mrb[106].mxu1  ;;  %v5198_v40 = vpop.permute.xlu0 %5197 }
0x1141   :  { %5384 = vst.msk [vmem:[%s10977_s5 + $0x150] sm:$0xff] %vm5341_vm5, %v5319_v11  ;;  %v5320_v47 = vmul.f32 %v5720_v56, %v5172_v27  ;;  %v4929_v6 = vpop.f32.mrb[107].mxu1 }
0x1142   :  { %5382 = vst.msk [vmem:[%s10977_s5 + $0x140] sm:$0xff] %vm5341_vm5, %v5317_v14  ;;  %v5318_v31 = vmul.f32 %v5168_v50, %v4929_v6  ;;  %v5200_v50 = vpop.permute.xlu1 %5199 }
0x1143   :  { %5385 = vst.msk [vmem:[%s10977_s5 + $0x158] sm:$0xff] %vm5341_vm5, %v5320_v47 }
0x1144   :  { %5383 = vst.msk [vmem:[%s10977_s5 + $0x148] sm:$0xff] %vm5341_vm5, %v5318_v31  ;;  %v5202_v49 = vpop.permute.xlu0 %5201 }
0x1146   :  { %v5723_v30 = vpop.f32.mrb[108].mxu1  ;;  %v5204_v27 = vpop.permute.xlu1 %5203 }
0x1147   :  { %v5323_v37 = vmul.f32 %v5723_v30, %v5178_v4  ;;  %v4942_v7 = vpop.f32.mrb[109].mxu1 }
0x1148   :  { %v5321_v13 = vmul.f32 %v5174_v29, %v4942_v7  ;;  %v5724_v60 = vpop.f32.mrb[110].mxu1  ;;  %v5206_v29 = vpop.permute.xlu0 %5205 }
0x1149   :  { %5388 = vst.msk [vmem:[%s10977_s5 + $0x170] sm:$0xff] %vm5341_vm5, %v5323_v37  ;;  %v5324_v17 = vmul.f32 %v5724_v60, %v5180_v45  ;;  %v4945_v5 = vpop.f32.mrb[111].mxu1 }
0x114a   :  { %5386 = vst.msk [vmem:[%s10977_s5 + $0x160] sm:$0xff] %vm5341_vm5, %v5321_v13  ;;  %v5322_v12 = vmul.f32 %v5176_v21, %v4945_v5  ;;  %v5208_v21 = vpop.permute.xlu1 %5207 }
0x114b   :  { %5389 = vst.msk [vmem:[%s10977_s5 + $0x178] sm:$0xff] %vm5341_vm5, %v5324_v17 }
0x114c   :  { %5387 = vst.msk [vmem:[%s10977_s5 + $0x168] sm:$0xff] %vm5341_vm5, %v5322_v12  ;;  %v5210_v18 = vpop.permute.xlu0 %5209 }
0x114e   :  { %v5727_v28 = vpop.f32.mrb[112].mxu1  ;;  %v5212_v26 = vpop.permute.xlu1 %5211 }
0x114f   :  { %v5327_v57 = vmul.f32 %v5727_v28, %v5186_v41  ;;  %v4958_v46 = vpop.f32.mrb[113].mxu1 }
0x1150   :  { %v5325_v34 = vmul.f32 %v5182_v38, %v4958_v46  ;;  %v5728_v33 = vpop.f32.mrb[114].mxu1 }
0x1151   :  { %5392 = vst.msk [vmem:[%s10977_s5 + $0x190] sm:$0xff] %vm5341_vm5, %v5327_v57  ;;  %v5328_v36 = vmul.f32 %v5728_v33, %v5188_v42  ;;  %v4961_v8 = vpop.f32.mrb[115].mxu1 }
0x1152   :  { %5390 = vst.msk [vmem:[%s10977_s5 + $0x180] sm:$0xff] %vm5341_vm5, %v5325_v34  ;;  %v5326_v32 = vmul.f32 %v5184_v53, %v4961_v8 }
0x1153   :  { %5393 = vst.msk [vmem:[%s10977_s5 + $0x198] sm:$0xff] %vm5341_vm5, %v5328_v36 }
0x1154   :  { %5391 = vst.msk [vmem:[%s10977_s5 + $0x188] sm:$0xff] %vm5341_vm5, %v5326_v32 }
0x1156   :  { %v5731_v1 = vpop.f32.mrb[116].mxu1 }
0x1157   :  { %v5331_v0 = vmul.f32 %v5731_v1, %v5194_v59  ;;  %v4974_v15 = vpop.f32.mrb[117].mxu1 }
0x1158   :  { %v5329_v39 = vmul.f32 %v5190_v19, %v4974_v15  ;;  %v5732_v61 = vpop.f32.mrb[118].mxu1 }
0x1159   :  { %5396 = vst.msk [vmem:[%s10977_s5 + $0x1b0] sm:$0xff] %vm5341_vm5, %v5331_v0  ;;  %v5332_v3 = vmul.f32 %v5732_v61, %v5196_v24  ;;  %v4977_v51 = vpop.f32.mrb[119].mxu1 }
0x115a   :  { %5394 = vst.msk [vmem:[%s10977_s5 + $0x1a0] sm:$0xff] %vm5341_vm5, %v5329_v39  ;;  %v5330_v23 = vmul.f32 %v5192_v63, %v4977_v51 }
0x115b   :  { %5397 = vst.msk [vmem:[%s10977_s5 + $0x1b8] sm:$0xff] %vm5341_vm5, %v5332_v3 }
0x115c   :  { %5395 = vst.msk [vmem:[%s10977_s5 + $0x1a8] sm:$0xff] %vm5341_vm5, %v5330_v23 }
0x115e   :  { %v5735_v20 = vpop.f32.mrb[120].mxu1 }
0x115f   :  { %v5335_v48 = vmul.f32 %v5735_v20, %v5202_v49  ;;  %v4990_v2 = vpop.f32.mrb[121].mxu1 }
0x1160   :  { %v5333_v9 = vmul.f32 %v5198_v40, %v4990_v2  ;;  %v5736_v35 = vpop.f32.mrb[122].mxu1 }
0x1161   :  { %5400 = vst.msk [vmem:[%s10977_s5 + $0x1d0] sm:$0xff] %vm5341_vm5, %v5335_v48  ;;  %v5336_v43 = vmul.f32 %v5736_v35, %v5204_v27  ;;  %v4993_v25 = vpop.f32.mrb[123].mxu1 }
0x1162   :  { %5398 = vst.msk [vmem:[%s10977_s5 + $0x1c0] sm:$0xff] %vm5341_vm5, %v5333_v9  ;;  %v5334_v54 = vmul.f32 %v5200_v50, %v4993_v25 }
0x1163   :  { %5401 = vst.msk [vmem:[%s10977_s5 + $0x1d8] sm:$0xff] %vm5341_vm5, %v5336_v43 }
0x1164   :  { %5399 = vst.msk [vmem:[%s10977_s5 + $0x1c8] sm:$0xff] %vm5341_vm5, %v5334_v54 }
0x118e   :  { %v5739_v16 = vpop.f32.mrb[124].mxu1 }
0x118f   :  { %v5339_v52 = vmul.f32 %v5739_v16, %v5210_v18  ;;  %v5006_v62 = vpop.f32.mrb[125].mxu1 }
0x1190   :  { %v5337_v44 = vmul.f32 %v5206_v29, %v5006_v62  ;;  %v5740_v58 = vpop.f32.mrb[126].mxu1 }
0x1191   :  { %5404 = vst.msk [vmem:[%s10977_s5 + $0x1f0] sm:$0xff] %vm5341_vm5, %v5339_v52  ;;  %v5340_v4 = vmul.f32 %v5740_v58, %v5212_v26  ;;  %v5009_v55 = vpop.f32.mrb[127].mxu1 }
0x1192   :  { %5402 = vst.msk [vmem:[%s10977_s5 + $0x1e0] sm:$0xff] %vm5341_vm5, %v5337_v44  ;;  %v5338_v45 = vmul.f32 %v5208_v21, %v5009_v55 }
0x1193   :  { %5405 = vst.msk [vmem:[%s10977_s5 + $0x1f8] sm:$0xff] %vm5341_vm5, %v5340_v4 }
0x1194   :  { %5403 = vst.msk [vmem:[%s10977_s5 + $0x1e8] sm:$0xff] %vm5341_vm5, %v5338_v45 }

</bundles_post_ra>
